<compile_context>
chip_gen: v6e
topology: v6e:2x2x1
jax: 0.10.0
libtpu: 0.0.40
codegen_flags: <defaults>
</compile_context>

<pallas_src>
import math
import functools

import jax
import jax.numpy as jnp
from jax.experimental import pallas as pl
from jax.experimental.pallas import tpu as pltpu


# ----------------------------------------------------------------------------
# In-kernel building blocks (traced inside the single fused kernel)
# ----------------------------------------------------------------------------

def _mm(a, w):
    """2-D MXU matmul: bf16 operands, f32 accumulation."""
    return jnp.dot(a.astype(jnp.bfloat16), w.astype(jnp.bfloat16),
                   preferred_element_type=jnp.float32)


def _layernorm(x, g, b):
    """x: [R, D] f32; g, b: [1, D] f32."""
    mu = jnp.mean(x, axis=-1, keepdims=True)
    xc = x - mu
    var = jnp.mean(xc * xc, axis=-1, keepdims=True)
    return xc * jax.lax.rsqrt(var + 1e-5) * g + b


def _seq_cat(x2, pos, *, ksize, seq_len):
    """im2col for a 'same'-padded Conv1d along the sequence axis.

    x2:  [B*S, D] (batches stacked along rows); pos: [B*S, 1] int32 position
    within each batch's sequence.  Returns [B*S, ksize*D].  Zero padding is
    realized by masking rows whose roll crosses a sequence/batch boundary;
    pltpu.roll lands in the XLU slot (free relative to MXU/VPU).
    """
    rows = x2.shape[0]
    pad_l = (ksize - 1) // 2
    pieces = []
    for kk in range(ksize):                        # ksize is tiny; static unroll
        off = kk - pad_l
        if off == 0:
            pieces.append(x2)
        else:
            rolled = pltpu.roll(x2, (-off) % rows, axis=0)
            valid = jnp.logical_and(pos + off >= 0, pos + off < seq_len)
            pieces.append(jnp.where(valid, rolled, 0.0))
    return jnp.concatenate(pieces, axis=-1)


def _mha(q, k, v, wo, bo, add_mask, attw_ref, *, n_heads, bsz, sq, sk):
    """Multi-head attention on flattened [B*S, D] Q/K/V.

    Stores the attention probabilities directly in their final
    [B, H, Sq, Sk] layout via attw_ref (a per-layer ref view).
    """
    d = q.shape[-1]
    dh = d // n_heads
    q3 = q.reshape(bsz, sq, d)
    k3 = k.reshape(bsz, sk, d)
    v3 = v.reshape(bsz, sk, d)
    probs, outs = [], []
    for hh in range(n_heads):                      # tiny H; static unroll
        sl = slice(hh * dh, (hh + 1) * dh)
        sc = jnp.einsum("bqd,bkd->bqk",
                        q3[..., sl].astype(jnp.bfloat16),
                        k3[..., sl].astype(jnp.bfloat16),
                        preferred_element_type=jnp.float32)
        if add_mask is not None:
            sc = sc + add_mask[None]
        sc = sc - jnp.max(sc, axis=-1, keepdims=True)
        p = jnp.exp(sc)
        p = p / jnp.sum(p, axis=-1, keepdims=True)     # exact (weights are returned)
        probs.append(p)
        outs.append(jnp.einsum("bqk,bkd->bqd",
                               p.astype(jnp.bfloat16),
                               v3[..., sl].astype(jnp.bfloat16),
                               preferred_element_type=jnp.float32))
    attw_ref[...] = jnp.stack(probs, axis=1)           # [B, H, Sq, Sk] final layout
    o = jnp.concatenate(outs, axis=-1).reshape(bsz * sq, d)
    return _mm(o, wo) + bo


# ----------------------------------------------------------------------------
# The single fused forward kernel
# ----------------------------------------------------------------------------

def _forward_kernel(
        # global inputs
        x_ref, in_w_ref, enc_add_ref, dec_init_ref, src_add_ref, tgt_add_ref,
        # stacked encoder-layer params
        enc_qkv_ref, enc_o_ref, enc_w1_ref, enc_w2_ref, enc_vecs_ref, enc_b1_ref,
        # stacked decoder-layer params
        dec_self_qkv_ref, dec_cross_q_ref, dec_cross_kv_ref, dec_o_ref,
        dec_w1_ref, dec_w2_ref, dec_vecs_ref, dec_b1_ref,
        # output projection
        out_w_ref, out_b_ref,
        # outputs
        preds_ref, enc_attw_ref, dec_self_attw_ref, dec_cross_attw_ref,
        *, n_heads, ksize, n_enc, n_dec):
    bsz, s, _ = x_ref.shape
    t, d = dec_init_ref.shape

    # ---- encoder input: linear + bias + positional encoding (one matmul) ----
    x2 = x_ref[...].reshape(bsz * s, x_ref.shape[-1])
    h = _mm(x2, in_w_ref[...]) + jnp.tile(enc_add_ref[...], (bsz, 1))   # [B*S, D]

    src_add = src_add_ref[...]
    row_s = jax.lax.broadcasted_iota(jnp.int32, (bsz * s, 1), 0) % s

    # ------------------------------- encoder --------------------------------
    for li in range(n_enc):                        # static unroll over layers
        vec = enc_vecs_ref[li]                     # [9, D]
        bq, bk, bv, bo, b2 = (vec[i:i + 1] for i in range(5))
        g1, be1, g2, be2 = (vec[i:i + 1] for i in range(5, 9))
        b1 = enc_b1_ref[li:li + 1]                 # [1, d_ff]

        h_cat = _seq_cat(h, row_s, ksize=ksize, seq_len=s)      # [B*S, K*D]
        qkv = _mm(h_cat, enc_qkv_ref[li])                       # [B*S, 3D]
        q = qkv[:, :d] + bq
        k = qkv[:, d:2 * d] + bk
        v = qkv[:, 2 * d:] + bv
        a = _mha(q, k, v, enc_o_ref[li], bo, src_add, enc_attw_ref.at[li],
                 n_heads=n_heads, bsz=bsz, sq=s, sk=s)
        h1 = _layernorm(h + a, g1, be1)
        hid = jnp.maximum(_mm(h1, enc_w1_ref[li]) + b1, 0.0)    # ReLU FFN
        h = _layernorm(h1 + _mm(hid, enc_w2_ref[li]) + b2, g2, be2)

    mem = h
    mem_cat = _seq_cat(mem, row_s, ksize=ksize, seq_len=s)      # reused by all dec layers

    # ------------------------------- decoder --------------------------------
    # decoder input = input_projection(zeros) + PE  ==  in_b + PE  broadcast
    y = jnp.tile(dec_init_ref[...], (bsz, 1))                   # [B*T, D]
    tgt_add = tgt_add_ref[...]
    row_t = jax.lax.broadcasted_iota(jnp.int32, (bsz * t, 1), 0) % t

    for li in range(n_dec):
        vec = dec_vecs_ref[li]                     # [15, D]
        sbq, sbk, sbv, sbo, cbq, cbk, cbv, cbo, b2 = (vec[i:i + 1] for i in range(9))
        g1, be1, g2, be2, g3, be3 = (vec[i:i + 1] for i in range(9, 15))
        b1 = dec_b1_ref[li:li + 1]

        # masked self-attention (conv Q/K, linear V fused into one matmul)
        y_cat = _seq_cat(y, row_t, ksize=ksize, seq_len=t)
        qkv = _mm(y_cat, dec_self_qkv_ref[li])
        q = qkv[:, :d] + sbq
        k = qkv[:, d:2 * d] + sbk
        v = qkv[:, 2 * d:] + sbv
        a = _mha(q, k, v, dec_o_ref[li, 0], sbo, tgt_add, dec_self_attw_ref.at[li],
                 n_heads=n_heads, bsz=bsz, sq=t, sk=t)
        y1 = _layernorm(y + a, g1, be1)

        # cross-attention (Q from target, K/V from encoder memory)
        y1_cat = _seq_cat(y1, row_t, ksize=ksize, seq_len=t)
        qc = _mm(y1_cat, dec_cross_q_ref[li]) + cbq
        kv = _mm(mem_cat, dec_cross_kv_ref[li])
        kc = kv[:, :d] + cbk
        vc = kv[:, d:] + cbv
        c = _mha(qc, kc, vc, dec_o_ref[li, 1], cbo, None, dec_cross_attw_ref.at[li],
                 n_heads=n_heads, bsz=bsz, sq=t, sk=s)
        y2 = _layernorm(y1 + c, g2, be2)

        hid = jnp.maximum(_mm(y2, dec_w1_ref[li]) + b1, 0.0)
        y = _layernorm(y2 + _mm(hid, dec_w2_ref[li]) + b2, g3, be3)

    # ---- output projection ----
    preds_ref[...] = (_mm(y, out_w_ref[...]) + out_b_ref[...]).reshape(bsz, t, -1)


# ----------------------------------------------------------------------------
# Host-side wrappers
# ----------------------------------------------------------------------------

def _full_spec(shape):
    return pl.BlockSpec(shape, lambda: (0,) * len(shape))


def transformer_forward(pp, x, target_len, src_mask=None):
    """x: [B, S, input_size] -> (predictions [B, target_len, output_size], attn dict)."""
    bsz, s, _ = x.shape
    d = pp["d_model"]
    n_heads = pp["n_heads"]
    ksize = pp["kernel_size"]
    t = target_len
    n_enc = pp["enc_qkv_w"].shape[0]
    n_dec = pp["dec_self_qkv_w"].shape[0]
    out_size = pp["out_w"].shape[1]
    pe = pp["pe"]

    # bias + positional encoding, folded (constant under jit)
    enc_add = pp["in_b"][None, :] + pe[:s]          # [S, D]
    dec_init = pp["in_b"][None, :] + pe[:t]         # [T, D]

    # additive masks (0 allowed, -1e9 blocked)
    if src_mask is None:
        src_add = jnp.zeros((s, s), jnp.float32)
    else:
        src_add = jnp.where(src_mask, 0.0, -1e9).astype(jnp.float32)
    causal_allowed = jnp.tril(jnp.ones((t, t), dtype=bool))   # ~triu(diag=1)
    tgt_add = jnp.where(causal_allowed, 0.0, -1e9).astype(jnp.float32)

    inputs = [
        x.astype(jnp.float32), pp["in_w"], enc_add, dec_init, src_add, tgt_add,
        pp["enc_qkv_w"], pp["enc_o_w"], pp["enc_w1"], pp["enc_w2"],
        pp["enc_vecs"], pp["enc_b1"],
        pp["dec_self_qkv_w"], pp["dec_cross_q_w"], pp["dec_cross_kv_w"], pp["dec_o_w"],
        pp["dec_w1"], pp["dec_w2"], pp["dec_vecs"], pp["dec_b1"],
        pp["out_w"], pp["out_b"],
    ]
    out_shapes = (
        jax.ShapeDtypeStruct((bsz, t, out_size), jnp.float32),
        jax.ShapeDtypeStruct((n_enc, bsz, n_heads, s, s), jnp.float32),
        jax.ShapeDtypeStruct((n_dec, bsz, n_heads, t, t), jnp.float32),
        jax.ShapeDtypeStruct((n_dec, bsz, n_heads, t, s), jnp.float32),
    )
    kern = functools.partial(_forward_kernel, n_heads=n_heads, ksize=ksize,
                             n_enc=n_enc, n_dec=n_dec)
    preds, enc_w, dec_sw, dec_cw = pl.pallas_call(
        kern,
        out_shape=out_shapes,
        in_specs=[_full_spec(a.shape) for a in inputs],
        out_specs=tuple(_full_spec(o.shape) for o in out_shapes),
    )(*inputs)

    attn = {}
    for i in range(n_enc):
        attn[f"encoder_layer_{i}"] = enc_w[i]
    for i in range(n_dec):
        attn[f"decoder_layer_{i}_self"] = dec_sw[i]
        attn[f"decoder_layer_{i}_cross"] = dec_cw[i]
    return preds, attn


# ----------------------------------------------------------------------------
# Parameter construction and host-side packing
# ----------------------------------------------------------------------------

def sinusoidal_pe(max_len, d_model):
    pos = jnp.arange(max_len, dtype=jnp.float32)[:, None]
    div = jnp.exp(
        jnp.arange(0, d_model, 2, dtype=jnp.float32) * (-math.log(10000.0) / d_model))
    pe = jnp.zeros((max_len, d_model), jnp.float32)
    pe = pe.at[:, 0::2].set(jnp.sin(pos * div))
    pe = pe.at[:, 1::2].set(jnp.cos(pos * div))
    return pe


def init_params(key, *, d_model, n_heads, n_enc, n_dec, d_ff, kernel_size,
                max_seq_length, input_size, output_size):
    keys = iter(jax.random.split(key, 4096))

    def w(shape, scale=0.05):
        return scale * jax.random.normal(next(keys), shape, jnp.float32)

    def attn_block():
        return {
            "wq": w((kernel_size, d_model, d_model)),   # conv Q taps [K, Cin, Cout]
            "bq": jnp.zeros((d_model,), jnp.float32),
            "wk": w((kernel_size, d_model, d_model)),   # conv K taps
            "bk": jnp.zeros((d_model,), jnp.float32),
            "wv": w((d_model, d_model)),                # linear V
            "bv": jnp.zeros((d_model,), jnp.float32),
            "wo": w((d_model, d_model)),
            "bo": jnp.zeros((d_model,), jnp.float32),
        }

    def ffn_block():
        return {"w1": w((d_model, d_ff)), "b1": jnp.zeros((d_ff,), jnp.float32),
                "w2": w((d_ff, d_model)), "b2": jnp.zeros((d_model,), jnp.float32)}

    def ln():
        return jnp.ones((d_model,), jnp.float32), jnp.zeros((d_model,), jnp.float32)

    def enc_layer():
        g1, b1 = ln(); g2, b2 = ln()
        return {"self": attn_block(), "ffn": ffn_block(),
                "ln1_g": g1, "ln1_b": b1, "ln2_g": g2, "ln2_b": b2}

    def dec_layer():
        g1, b1 = ln(); g2, b2 = ln(); g3, b3 = ln()
        return {"self": attn_block(), "cross": attn_block(), "ffn": ffn_block(),
                "ln1_g": g1, "ln1_b": b1, "ln2_g": g2, "ln2_b": b2,
                "ln3_g": g3, "ln3_b": b3}

    return {
        "d_model": d_model, "n_heads": n_heads, "kernel_size": kernel_size,
        "in_w": w((input_size, d_model)), "in_b": jnp.zeros((d_model,), jnp.float32),
        "out_w": w((d_model, output_size)), "out_b": jnp.zeros((output_size,), jnp.float32),
        "pe": sinusoidal_pe(max_seq_length, d_model),
        "enc_layers": [enc_layer() for _ in range(n_enc)],
        "dec_layers": [dec_layer() for _ in range(n_dec)],
    }


def pack_params(p):
    """Stack per-layer weights, fold softmax scale into wq/bq, express the
    conv-Q/K + linear-V projections as one [K*D, nD] matrix, cast big weights
    to bf16 (MXU operands), keep small vectors f32."""
    d = p["d_model"]; H = p["n_heads"]; K = p["kernel_size"]
    dh = d // H
    scale = 1.0 / math.sqrt(dh)
    pad_l = (K - 1) // 2
    BF = jnp.bfloat16

    def conv_cat(wc):                      # [K, Cin, Cout] -> [K*Cin, Cout]
        return wc.reshape(K * d, d)

    def center_pad(wl):                    # linear [Cin, Cout] -> conv-cat format
        z = jnp.zeros((K * d, d), jnp.float32)
        return z.at[pad_l * d:(pad_l + 1) * d].set(wl)

    e_qkv, e_o, e_w1, e_w2, e_vecs, e_b1 = ([] for _ in range(6))
    for lp in p["enc_layers"]:
        sp, fp = lp["self"], lp["ffn"]
        e_qkv.append(jnp.concatenate(
            [conv_cat(sp["wq"]) * scale, conv_cat(sp["wk"]), center_pad(sp["wv"])], axis=1))
        e_o.append(sp["wo"])
        e_w1.append(fp["w1"]); e_w2.append(fp["w2"]); e_b1.append(fp["b1"])
        e_vecs.append(jnp.stack([
            sp["bq"] * scale, sp["bk"], sp["bv"], sp["bo"], fp["b2"],
            lp["ln1_g"], lp["ln1_b"], lp["ln2_g"], lp["ln2_b"]], axis=0))

    d_sqkv, d_cq, d_ckv, d_o, d_w1, d_w2, d_vecs, d_b1 = ([] for _ in range(8))
    for lp in p["dec_layers"]:
        sp, cp, fp = lp["self"], lp["cross"], lp["ffn"]
        d_sqkv.append(jnp.concatenate(
            [conv_cat(sp["wq"]) * scale, conv_cat(sp["wk"]), center_pad(sp["wv"])], axis=1))
        d_cq.append(conv_cat(cp["wq"]) * scale)
        d_ckv.append(jnp.concatenate([conv_cat(cp["wk"]), center_pad(cp["wv"])], axis=1))
        d_o.append(jnp.stack([sp["wo"], cp["wo"]], axis=0))
        d_w1.append(fp["w1"]); d_w2.append(fp["w2"]); d_b1.append(fp["b1"])
        d_vecs.append(jnp.stack([
            sp["bq"] * scale, sp["bk"], sp["bv"], sp["bo"],
            cp["bq"] * scale, cp["bk"], cp["bv"], cp["bo"], fp["b2"],
            lp["ln1_g"], lp["ln1_b"], lp["ln2_g"], lp["ln2_b"],
            lp["ln3_g"], lp["ln3_b"]], axis=0))

    return {
        "d_model": d, "n_heads": H, "kernel_size": K,
        "in_w": p["in_w"].astype(BF), "in_b": p["in_b"],
        "out_w": p["out_w"].astype(BF), "out_b": p["out_b"].reshape(1, -1),
        "pe": p["pe"],
        "enc_qkv_w": jnp.stack(e_qkv).astype(BF),
        "enc_o_w": jnp.stack(e_o).astype(BF),
        "enc_w1": jnp.stack(e_w1).astype(BF),
        "enc_w2": jnp.stack(e_w2).astype(BF),
        "enc_vecs": jnp.stack(e_vecs),
        "enc_b1": jnp.stack(e_b1),
        "dec_self_qkv_w": jnp.stack(d_sqkv).astype(BF),
        "dec_cross_q_w": jnp.stack(d_cq).astype(BF),
        "dec_cross_kv_w": jnp.stack(d_ckv).astype(BF),
        "dec_o_w": jnp.stack(d_o).astype(BF),
        "dec_w1": jnp.stack(d_w1).astype(BF),
        "dec_w2": jnp.stack(d_w2).astype(BF),
        "dec_vecs": jnp.stack(d_vecs),
        "dec_b1": jnp.stack(d_b1),
    }


# ----------------------------------------------------------------------------
# main
# ----------------------------------------------------------------------------

if __name__ == "__main__":
    key = jax.random.PRNGKey(0)
    k_param, k_x = jax.random.split(key)

    batch = 2
    seq_len = 8
    input_size = 4
    output_size = 2
    d_model = 32
    n_heads = 4
    n_encoder_layers = 2
    n_decoder_layers = 2
    d_ff = 64
    kernel_size = 3
    max_seq_length = 64
    target_len = 8

    params = init_params(
        k_param,
        d_model=d_model, n_heads=n_heads,
        n_enc=n_encoder_layers, n_dec=n_decoder_layers,
        d_ff=d_ff, kernel_size=kernel_size,
        max_seq_length=max_seq_length,
        input_size=input_size, output_size=output_size,
    )
    packed = pack_params(params)

    x = jax.random.normal(k_x, (batch, seq_len, input_size), jnp.float32)

    fwd = jax.jit(lambda inp: transformer_forward(packed, inp, target_len))
    preds, attn = fwd(x)
    jax.block_until_ready(preds)
    for v in attn.values():
        jax.block_until_ready(v)

    assert preds.shape == (batch, target_len, output_size)
    assert attn["encoder_layer_0"].shape == (batch, n_heads, seq_len, seq_len)
    assert attn["decoder_layer_0_self"].shape == (batch, n_heads, target_len, target_len)
    assert attn["decoder_layer_0_cross"].shape == (batch, n_heads, target_len, seq_len)
    assert bool(jnp.all(jnp.isfinite(preds)))
    print("KERNEL_OK")
</pallas_src>

<mosaic_0001>
module attributes {stable_mosaic.version = 11 : i64} {
  func.func @_forward_kernel(%arg0: memref<2x8x4xf32, #tpu.memory_space<vmem>>, %arg1: memref<4x32xbf16, #tpu.memory_space<vmem>>, %arg2: memref<8x32xf32, #tpu.memory_space<vmem>>, %arg3: memref<8x32xf32, #tpu.memory_space<vmem>>, %arg4: memref<8x8xf32, #tpu.memory_space<vmem>>, %arg5: memref<8x8xf32, #tpu.memory_space<vmem>>, %arg6: memref<2x96x96xbf16, #tpu.memory_space<vmem>>, %arg7: memref<2x32x32xbf16, #tpu.memory_space<vmem>>, %arg8: memref<2x32x64xbf16, #tpu.memory_space<vmem>>, %arg9: memref<2x64x32xbf16, #tpu.memory_space<vmem>>, %arg10: memref<2x9x32xf32, #tpu.memory_space<vmem>>, %arg11: memref<2x64xf32, #tpu.memory_space<vmem>>, %arg12: memref<2x96x96xbf16, #tpu.memory_space<vmem>>, %arg13: memref<2x96x32xbf16, #tpu.memory_space<vmem>>, %arg14: memref<2x96x64xbf16, #tpu.memory_space<vmem>>, %arg15: memref<2x2x32x32xbf16, #tpu.memory_space<vmem>>, %arg16: memref<2x32x64xbf16, #tpu.memory_space<vmem>>, %arg17: memref<2x64x32xbf16, #tpu.memory_space<vmem>>, %arg18: memref<2x15x32xf32, #tpu.memory_space<vmem>>, %arg19: memref<2x64xf32, #tpu.memory_space<vmem>>, %arg20: memref<32x2xbf16, #tpu.memory_space<vmem>>, %arg21: memref<1x2xf32, #tpu.memory_space<vmem>>, %arg22: memref<2x8x2xf32, #tpu.memory_space<vmem>>, %arg23: memref<2x2x4x8x8xf32, #tpu.memory_space<vmem>>, %arg24: memref<2x2x4x8x8xf32, #tpu.memory_space<vmem>>, %arg25: memref<2x2x4x8x8xf32, #tpu.memory_space<vmem>>) attributes {dimension_semantics = [], scalar_prefetch = 0 : i64, scratch_operands = 0 : i64, tpu.core_type = #tpu.core_type<tc>} {
    %c0 = arith.constant 0 : index
    %c0_0 = arith.constant 0 : index
    %c0_1 = arith.constant 0 : index
    %0 = vector.load %arg0[%c0, %c0_0, %c0_1] : memref<2x8x4xf32, #tpu.memory_space<vmem>>, vector<2x8x4xf32>
    %1 = vector.shape_cast %0 : vector<2x8x4xf32> to vector<16x4xf32>
    %c0_2 = arith.constant 0 : index
    %c0_3 = arith.constant 0 : index
    %2 = vector.load %arg1[%c0_2, %c0_3] : memref<4x32xbf16, #tpu.memory_space<vmem>>, vector<4x32xbf16>
    %3 = arith.truncf %1 : vector<16x4xf32> to vector<16x4xbf16>
    %cst = arith.constant dense<0.000000e+00> : vector<16x32xf32>
    %4 = tpu.matmul %3, %2, %cst {dimension_numbers = #tpu.dot_dimension_numbers<[1], [0], [0], [1], [0, 0, 1, 1], [], []>} : vector<16x4xbf16>, vector<4x32xbf16>, vector<16x32xf32> -> vector<16x32xf32>
    %c0_4 = arith.constant 0 : index
    %c0_5 = arith.constant 0 : index
    %5 = vector.load %arg2[%c0_4, %c0_5] : memref<8x32xf32, #tpu.memory_space<vmem>>, vector<8x32xf32>
    %6 = tpu.concatenate %5, %5 in 0 : vector<8x32xf32>, vector<8x32xf32> -> vector<16x32xf32>
    %7 = arith.addf %4, %6 : vector<16x32xf32>
    %c0_6 = arith.constant 0 : index
    %c0_7 = arith.constant 0 : index
    %8 = vector.load %arg4[%c0_6, %c0_7] : memref<8x8xf32, #tpu.memory_space<vmem>>, vector<8x8xf32>
    %9 = tpu.iota {dimensions = array<i32: 0>} : vector<16x1xi32>
    %c8_i32 = arith.constant 8 : i32
    %c0_i32 = arith.constant 0 : i32
    %10 = arith.cmpi eq, %c8_i32, %c0_i32 : i32
    %c1_i32 = arith.constant 1 : i32
    %11 = arith.select %10, %c1_i32, %c8_i32 : i32
    %12 = vector.broadcast %11 : i32 to vector<16x1xi32>
    %13 = arith.remsi %9, %12 : vector<16x1xi32>
    %c0_i32_8 = arith.constant 0 : i32
    %14 = vector.broadcast %c0_i32_8 : i32 to vector<16x1xi32>
    %15 = arith.cmpi ne, %13, %14 : vector<16x1xi32>
    %c0_i32_9 = arith.constant 0 : i32
    %16 = vector.broadcast %c0_i32_9 : i32 to vector<16x1xi32>
    %17 = arith.cmpi slt, %13, %16 : vector<16x1xi32>
    %c0_i32_10 = arith.constant 0 : i32
    %18 = arith.cmpi slt, %11, %c0_i32_10 : i32
    %19 = vector.broadcast %18 : i1 to vector<16x1xi1>
    %20 = vector.broadcast %19 : vector<16x1xi1> to vector<16x1xi1>
    %21 = arith.xori %17, %20 : vector<16x1xi1>
    %22 = arith.andi %21, %15 : vector<16x1xi1>
    %23 = vector.broadcast %11 : i32 to vector<16x1xi32>
    %24 = arith.addi %13, %23 : vector<16x1xi32>
    %25 = arith.select %22, %24, %13 : vector<16x1xi1>, vector<16x1xi32>
    %c0_11 = arith.constant 0 : index
    %c0_12 = arith.constant 0 : index
    %c0_13 = arith.constant 0 : index
    %26 = vector.load %arg10[%c0_11, %c0_12, %c0_13] : memref<2x9x32xf32, #tpu.memory_space<vmem>>, vector<1x9x32xf32>
    %27 = vector.shape_cast %26 : vector<1x9x32xf32> to vector<9x32xf32>
    %28 = vector.extract_strided_slice %27 {offsets = [0, 0], sizes = [1, 32], strides = [1, 1]} : vector<9x32xf32> to vector<1x32xf32>
    %29 = vector.extract_strided_slice %27 {offsets = [1, 0], sizes = [1, 32], strides = [1, 1]} : vector<9x32xf32> to vector<1x32xf32>
    %30 = vector.extract_strided_slice %27 {offsets = [2, 0], sizes = [1, 32], strides = [1, 1]} : vector<9x32xf32> to vector<1x32xf32>
    %31 = vector.extract_strided_slice %27 {offsets = [3, 0], sizes = [1, 32], strides = [1, 1]} : vector<9x32xf32> to vector<1x32xf32>
    %32 = vector.extract_strided_slice %27 {offsets = [4, 0], sizes = [1, 32], strides = [1, 1]} : vector<9x32xf32> to vector<1x32xf32>
    %33 = vector.extract_strided_slice %27 {offsets = [5, 0], sizes = [1, 32], strides = [1, 1]} : vector<9x32xf32> to vector<1x32xf32>
    %34 = vector.extract_strided_slice %27 {offsets = [6, 0], sizes = [1, 32], strides = [1, 1]} : vector<9x32xf32> to vector<1x32xf32>
    %35 = vector.extract_strided_slice %27 {offsets = [7, 0], sizes = [1, 32], strides = [1, 1]} : vector<9x32xf32> to vector<1x32xf32>
    %36 = vector.extract_strided_slice %27 {offsets = [8, 0], sizes = [1, 32], strides = [1, 1]} : vector<9x32xf32> to vector<1x32xf32>
    %c0_14 = arith.constant 0 : index
    %c0_15 = arith.constant 0 : index
    %37 = vector.load %arg11[%c0_14, %c0_15] : memref<2x64xf32, #tpu.memory_space<vmem>>, vector<1x64xf32>
    %c1_i32_16 = arith.constant 1 : i32
    %38 = tpu.dynamic_rotate %7 by %c1_i32_16 dim 0 : vector<16x32xf32>, i32 -> vector<16x32xf32>
    %c-1_i32 = arith.constant -1 : i32
    %39 = vector.broadcast %c-1_i32 : i32 to vector<16x1xi32>
    %40 = arith.addi %25, %39 : vector<16x1xi32>
    %c0_i32_17 = arith.constant 0 : i32
    %41 = vector.broadcast %c0_i32_17 : i32 to vector<16x1xi32>
    %42 = arith.cmpi sge, %40, %41 : vector<16x1xi32>
    %c-1_i32_18 = arith.constant -1 : i32
    %43 = vector.broadcast %c-1_i32_18 : i32 to vector<16x1xi32>
    %44 = arith.addi %25, %43 : vector<16x1xi32>
    %c8_i32_19 = arith.constant 8 : i32
    %45 = vector.broadcast %c8_i32_19 : i32 to vector<16x1xi32>
    %46 = arith.cmpi slt, %44, %45 : vector<16x1xi32>
    %47 = arith.andi %42, %46 : vector<16x1xi1>
    %cst_20 = arith.constant 0.000000e+00 : f32
    %48 = vector.shape_cast %47 : vector<16x1xi1> to vector<16x1xi1>
    %49 = vector.broadcast %48 : vector<16x1xi1> to vector<16x32xi1>
    %50 = vector.broadcast %cst_20 : f32 to vector<16x32xf32>
    %51 = arith.select %49, %38, %50 : vector<16x32xi1>, vector<16x32xf32>
    %c15_i32 = arith.constant 15 : i32
    %52 = tpu.dynamic_rotate %7 by %c15_i32 dim 0 : vector<16x32xf32>, i32 -> vector<16x32xf32>
    %c1_i32_21 = arith.constant 1 : i32
    %53 = vector.broadcast %c1_i32_21 : i32 to vector<16x1xi32>
    %54 = arith.addi %25, %53 : vector<16x1xi32>
    %c0_i32_22 = arith.constant 0 : i32
    %55 = vector.broadcast %c0_i32_22 : i32 to vector<16x1xi32>
    %56 = arith.cmpi sge, %54, %55 : vector<16x1xi32>
    %c1_i32_23 = arith.constant 1 : i32
    %57 = vector.broadcast %c1_i32_23 : i32 to vector<16x1xi32>
    %58 = arith.addi %25, %57 : vector<16x1xi32>
    %c8_i32_24 = arith.constant 8 : i32
    %59 = vector.broadcast %c8_i32_24 : i32 to vector<16x1xi32>
    %60 = arith.cmpi slt, %58, %59 : vector<16x1xi32>
    %61 = arith.andi %56, %60 : vector<16x1xi1>
    %cst_25 = arith.constant 0.000000e+00 : f32
    %62 = vector.shape_cast %61 : vector<16x1xi1> to vector<16x1xi1>
    %63 = vector.broadcast %62 : vector<16x1xi1> to vector<16x32xi1>
    %64 = vector.broadcast %cst_25 : f32 to vector<16x32xf32>
    %65 = arith.select %63, %52, %64 : vector<16x32xi1>, vector<16x32xf32>
    %66 = tpu.concatenate %51, %7, %65 in 1 : vector<16x32xf32>, vector<16x32xf32>, vector<16x32xf32> -> vector<16x96xf32>
    %c0_26 = arith.constant 0 : index
    %c0_27 = arith.constant 0 : index
    %c0_28 = arith.constant 0 : index
    %67 = vector.load %arg6[%c0_26, %c0_27, %c0_28] : memref<2x96x96xbf16, #tpu.memory_space<vmem>>, vector<1x96x96xbf16>
    %68 = vector.shape_cast %67 : vector<1x96x96xbf16> to vector<96x96xbf16>
    %69 = arith.truncf %66 : vector<16x96xf32> to vector<16x96xbf16>
    %cst_29 = arith.constant dense<0.000000e+00> : vector<16x96xf32>
    %70 = tpu.matmul %69, %68, %cst_29 {dimension_numbers = #tpu.dot_dimension_numbers<[1], [0], [0], [1], [0, 0, 1, 1], [], []>} : vector<16x96xbf16>, vector<96x96xbf16>, vector<16x96xf32> -> vector<16x96xf32>
    %71 = vector.extract_strided_slice %70 {offsets = [0, 0], sizes = [16, 32], strides = [1, 1]} : vector<16x96xf32> to vector<16x32xf32>
    %72 = vector.broadcast %28 : vector<1x32xf32> to vector<16x32xf32>
    %73 = arith.addf %71, %72 : vector<16x32xf32>
    %74 = vector.extract_strided_slice %70 {offsets = [0, 32], sizes = [16, 32], strides = [1, 1]} : vector<16x96xf32> to vector<16x32xf32>
    %75 = vector.broadcast %29 : vector<1x32xf32> to vector<16x32xf32>
    %76 = arith.addf %74, %75 : vector<16x32xf32>
    %77 = vector.extract_strided_slice %70 {offsets = [0, 64], sizes = [16, 32], strides = [1, 1]} : vector<16x96xf32> to vector<16x32xf32>
    %78 = vector.broadcast %30 : vector<1x32xf32> to vector<16x32xf32>
    %79 = arith.addf %77, %78 : vector<16x32xf32>
    %c0_30 = arith.constant 0 : index
    %c0_31 = arith.constant 0 : index
    %c0_32 = arith.constant 0 : index
    %80 = vector.load %arg7[%c0_30, %c0_31, %c0_32] : memref<2x32x32xbf16, #tpu.memory_space<vmem>>, vector<1x32x32xbf16>
    %81 = vector.shape_cast %80 : vector<1x32x32xbf16> to vector<32x32xbf16>
    %82 = vector.shape_cast %73 : vector<16x32xf32> to vector<2x8x32xf32>
    %83 = vector.shape_cast %76 : vector<16x32xf32> to vector<2x8x32xf32>
    %84 = vector.shape_cast %79 : vector<16x32xf32> to vector<2x8x32xf32>
    %85 = vector.extract_strided_slice %82 {offsets = [0, 0, 0], sizes = [2, 8, 8], strides = [1, 1, 1]} : vector<2x8x32xf32> to vector<2x8x8xf32>
    %86 = arith.truncf %85 : vector<2x8x8xf32> to vector<2x8x8xbf16>
    %87 = vector.extract_strided_slice %83 {offsets = [0, 0, 0], sizes = [2, 8, 8], strides = [1, 1, 1]} : vector<2x8x32xf32> to vector<2x8x8xf32>
    %88 = arith.truncf %87 : vector<2x8x8xf32> to vector<2x8x8xbf16>
    "tpu.trace_start"() <{level = 10 : i32, message = "bqd,bkd->bqk"}> : () -> ()
    %cst_33 = arith.constant dense<0.000000e+00> : vector<2x8x8xf32>
    %89 = tpu.matmul %86, %88, %cst_33 {dimension_numbers = #tpu.dot_dimension_numbers<[2], [2], [1], [1], [0, 0, 0, 1, 1, 1], [0], [0]>} : vector<2x8x8xbf16>, vector<2x8x8xbf16>, vector<2x8x8xf32> -> vector<2x8x8xf32>
    "tpu.trace_stop"() : () -> ()
    %90 = vector.shape_cast %8 : vector<8x8xf32> to vector<1x8x8xf32>
    %91 = vector.broadcast %90 : vector<1x8x8xf32> to vector<2x8x8xf32>
    %92 = arith.addf %89, %91 : vector<2x8x8xf32>
    %cst_34 = arith.constant dense<0xFF800000> : vector<2x8xf32>
    %93 = vector.multi_reduction <maximumf>, %92, %cst_34 [2] : vector<2x8x8xf32> to vector<2x8xf32>
    %94 = vector.shape_cast %93 : vector<2x8xf32> to vector<2x8x1xf32>
    %95 = vector.broadcast %94 : vector<2x8x1xf32> to vector<2x8x8xf32>
    %96 = arith.subf %92, %95 : vector<2x8x8xf32>
    %97 = math.exp %96 : vector<2x8x8xf32>
    %cst_35 = arith.constant dense<0.000000e+00> : vector<2x8xf32>
    %98 = vector.multi_reduction <add>, %97, %cst_35 [2] : vector<2x8x8xf32> to vector<2x8xf32>
    %99 = vector.shape_cast %98 : vector<2x8xf32> to vector<2x8x1xf32>
    %100 = vector.broadcast %99 : vector<2x8x1xf32> to vector<2x8x8xf32>
    %101 = arith.divf %97, %100 : vector<2x8x8xf32>
    %102 = arith.truncf %101 : vector<2x8x8xf32> to vector<2x8x8xbf16>
    %103 = vector.extract_strided_slice %84 {offsets = [0, 0, 0], sizes = [2, 8, 8], strides = [1, 1, 1]} : vector<2x8x32xf32> to vector<2x8x8xf32>
    %104 = arith.truncf %103 : vector<2x8x8xf32> to vector<2x8x8xbf16>
    "tpu.trace_start"() <{level = 10 : i32, message = "bqk,bkd->bqd"}> : () -> ()
    %cst_36 = arith.constant dense<0.000000e+00> : vector<2x8x8xf32>
    %105 = tpu.matmul %102, %104, %cst_36 {dimension_numbers = #tpu.dot_dimension_numbers<[2], [1], [1], [2], [0, 0, 0, 1, 1, 2], [0], [0]>} : vector<2x8x8xbf16>, vector<2x8x8xbf16>, vector<2x8x8xf32> -> vector<2x8x8xf32>
    "tpu.trace_stop"() : () -> ()
    %106 = vector.extract_strided_slice %82 {offsets = [0, 0, 8], sizes = [2, 8, 8], strides = [1, 1, 1]} : vector<2x8x32xf32> to vector<2x8x8xf32>
    %107 = arith.truncf %106 : vector<2x8x8xf32> to vector<2x8x8xbf16>
    %108 = vector.extract_strided_slice %83 {offsets = [0, 0, 8], sizes = [2, 8, 8], strides = [1, 1, 1]} : vector<2x8x32xf32> to vector<2x8x8xf32>
    %109 = arith.truncf %108 : vector<2x8x8xf32> to vector<2x8x8xbf16>
    "tpu.trace_start"() <{level = 10 : i32, message = "bqd,bkd->bqk"}> : () -> ()
    %cst_37 = arith.constant dense<0.000000e+00> : vector<2x8x8xf32>
    %110 = tpu.matmul %107, %109, %cst_37 {dimension_numbers = #tpu.dot_dimension_numbers<[2], [2], [1], [1], [0, 0, 0, 1, 1, 1], [0], [0]>} : vector<2x8x8xbf16>, vector<2x8x8xbf16>, vector<2x8x8xf32> -> vector<2x8x8xf32>
    "tpu.trace_stop"() : () -> ()
    %111 = vector.shape_cast %8 : vector<8x8xf32> to vector<1x8x8xf32>
    %112 = vector.broadcast %111 : vector<1x8x8xf32> to vector<2x8x8xf32>
    %113 = arith.addf %110, %112 : vector<2x8x8xf32>
    %cst_38 = arith.constant dense<0xFF800000> : vector<2x8xf32>
    %114 = vector.multi_reduction <maximumf>, %113, %cst_38 [2] : vector<2x8x8xf32> to vector<2x8xf32>
    %115 = vector.shape_cast %114 : vector<2x8xf32> to vector<2x8x1xf32>
    %116 = vector.broadcast %115 : vector<2x8x1xf32> to vector<2x8x8xf32>
    %117 = arith.subf %113, %116 : vector<2x8x8xf32>
    %118 = math.exp %117 : vector<2x8x8xf32>
    %cst_39 = arith.constant dense<0.000000e+00> : vector<2x8xf32>
    %119 = vector.multi_reduction <add>, %118, %cst_39 [2] : vector<2x8x8xf32> to vector<2x8xf32>
    %120 = vector.shape_cast %119 : vector<2x8xf32> to vector<2x8x1xf32>
    %121 = vector.broadcast %120 : vector<2x8x1xf32> to vector<2x8x8xf32>
    %122 = arith.divf %118, %121 : vector<2x8x8xf32>
    %123 = arith.truncf %122 : vector<2x8x8xf32> to vector<2x8x8xbf16>
    %124 = vector.extract_strided_slice %84 {offsets = [0, 0, 8], sizes = [2, 8, 8], strides = [1, 1, 1]} : vector<2x8x32xf32> to vector<2x8x8xf32>
    %125 = arith.truncf %124 : vector<2x8x8xf32> to vector<2x8x8xbf16>
    "tpu.trace_start"() <{level = 10 : i32, message = "bqk,bkd->bqd"}> : () -> ()
    %cst_40 = arith.constant dense<0.000000e+00> : vector<2x8x8xf32>
    %126 = tpu.matmul %123, %125, %cst_40 {dimension_numbers = #tpu.dot_dimension_numbers<[2], [1], [1], [2], [0, 0, 0, 1, 1, 2], [0], [0]>} : vector<2x8x8xbf16>, vector<2x8x8xbf16>, vector<2x8x8xf32> -> vector<2x8x8xf32>
    "tpu.trace_stop"() : () -> ()
    %127 = vector.extract_strided_slice %82 {offsets = [0, 0, 16], sizes = [2, 8, 8], strides = [1, 1, 1]} : vector<2x8x32xf32> to vector<2x8x8xf32>
    %128 = arith.truncf %127 : vector<2x8x8xf32> to vector<2x8x8xbf16>
    %129 = vector.extract_strided_slice %83 {offsets = [0, 0, 16], sizes = [2, 8, 8], strides = [1, 1, 1]} : vector<2x8x32xf32> to vector<2x8x8xf32>
    %130 = arith.truncf %129 : vector<2x8x8xf32> to vector<2x8x8xbf16>
    "tpu.trace_start"() <{level = 10 : i32, message = "bqd,bkd->bqk"}> : () -> ()
    %cst_41 = arith.constant dense<0.000000e+00> : vector<2x8x8xf32>
    %131 = tpu.matmul %128, %130, %cst_41 {dimension_numbers = #tpu.dot_dimension_numbers<[2], [2], [1], [1], [0, 0, 0, 1, 1, 1], [0], [0]>} : vector<2x8x8xbf16>, vector<2x8x8xbf16>, vector<2x8x8xf32> -> vector<2x8x8xf32>
    "tpu.trace_stop"() : () -> ()
    %132 = vector.shape_cast %8 : vector<8x8xf32> to vector<1x8x8xf32>
    %133 = vector.broadcast %132 : vector<1x8x8xf32> to vector<2x8x8xf32>
    %134 = arith.addf %131, %133 : vector<2x8x8xf32>
    %cst_42 = arith.constant dense<0xFF800000> : vector<2x8xf32>
    %135 = vector.multi_reduction <maximumf>, %134, %cst_42 [2] : vector<2x8x8xf32> to vector<2x8xf32>
    %136 = vector.shape_cast %135 : vector<2x8xf32> to vector<2x8x1xf32>
    %137 = vector.broadcast %136 : vector<2x8x1xf32> to vector<2x8x8xf32>
    %138 = arith.subf %134, %137 : vector<2x8x8xf32>
    %139 = math.exp %138 : vector<2x8x8xf32>
    %cst_43 = arith.constant dense<0.000000e+00> : vector<2x8xf32>
    %140 = vector.multi_reduction <add>, %139, %cst_43 [2] : vector<2x8x8xf32> to vector<2x8xf32>
    %141 = vector.shape_cast %140 : vector<2x8xf32> to vector<2x8x1xf32>
    %142 = vector.broadcast %141 : vector<2x8x1xf32> to vector<2x8x8xf32>
    %143 = arith.divf %139, %142 : vector<2x8x8xf32>
    %144 = arith.truncf %143 : vector<2x8x8xf32> to vector<2x8x8xbf16>
    %145 = vector.extract_strided_slice %84 {offsets = [0, 0, 16], sizes = [2, 8, 8], strides = [1, 1, 1]} : vector<2x8x32xf32> to vector<2x8x8xf32>
    %146 = arith.truncf %145 : vector<2x8x8xf32> to vector<2x8x8xbf16>
    "tpu.trace_start"() <{level = 10 : i32, message = "bqk,bkd->bqd"}> : () -> ()
    %cst_44 = arith.constant dense<0.000000e+00> : vector<2x8x8xf32>
    %147 = tpu.matmul %144, %146, %cst_44 {dimension_numbers = #tpu.dot_dimension_numbers<[2], [1], [1], [2], [0, 0, 0, 1, 1, 2], [0], [0]>} : vector<2x8x8xbf16>, vector<2x8x8xbf16>, vector<2x8x8xf32> -> vector<2x8x8xf32>
    "tpu.trace_stop"() : () -> ()
    %148 = vector.extract_strided_slice %82 {offsets = [0, 0, 24], sizes = [2, 8, 8], strides = [1, 1, 1]} : vector<2x8x32xf32> to vector<2x8x8xf32>
    %149 = arith.truncf %148 : vector<2x8x8xf32> to vector<2x8x8xbf16>
    %150 = vector.extract_strided_slice %83 {offsets = [0, 0, 24], sizes = [2, 8, 8], strides = [1, 1, 1]} : vector<2x8x32xf32> to vector<2x8x8xf32>
    %151 = arith.truncf %150 : vector<2x8x8xf32> to vector<2x8x8xbf16>
    "tpu.trace_start"() <{level = 10 : i32, message = "bqd,bkd->bqk"}> : () -> ()
    %cst_45 = arith.constant dense<0.000000e+00> : vector<2x8x8xf32>
    %152 = tpu.matmul %149, %151, %cst_45 {dimension_numbers = #tpu.dot_dimension_numbers<[2], [2], [1], [1], [0, 0, 0, 1, 1, 1], [0], [0]>} : vector<2x8x8xbf16>, vector<2x8x8xbf16>, vector<2x8x8xf32> -> vector<2x8x8xf32>
    "tpu.trace_stop"() : () -> ()
    %153 = vector.shape_cast %8 : vector<8x8xf32> to vector<1x8x8xf32>
    %154 = vector.broadcast %153 : vector<1x8x8xf32> to vector<2x8x8xf32>
    %155 = arith.addf %152, %154 : vector<2x8x8xf32>
    %cst_46 = arith.constant dense<0xFF800000> : vector<2x8xf32>
    %156 = vector.multi_reduction <maximumf>, %155, %cst_46 [2] : vector<2x8x8xf32> to vector<2x8xf32>
    %157 = vector.shape_cast %156 : vector<2x8xf32> to vector<2x8x1xf32>
    %158 = vector.broadcast %157 : vector<2x8x1xf32> to vector<2x8x8xf32>
    %159 = arith.subf %155, %158 : vector<2x8x8xf32>
    %160 = math.exp %159 : vector<2x8x8xf32>
    %cst_47 = arith.constant dense<0.000000e+00> : vector<2x8xf32>
    %161 = vector.multi_reduction <add>, %160, %cst_47 [2] : vector<2x8x8xf32> to vector<2x8xf32>
    %162 = vector.shape_cast %161 : vector<2x8xf32> to vector<2x8x1xf32>
    %163 = vector.broadcast %162 : vector<2x8x1xf32> to vector<2x8x8xf32>
    %164 = arith.divf %160, %163 : vector<2x8x8xf32>
    %165 = arith.truncf %164 : vector<2x8x8xf32> to vector<2x8x8xbf16>
    %166 = vector.extract_strided_slice %84 {offsets = [0, 0, 24], sizes = [2, 8, 8], strides = [1, 1, 1]} : vector<2x8x32xf32> to vector<2x8x8xf32>
    %167 = arith.truncf %166 : vector<2x8x8xf32> to vector<2x8x8xbf16>
    "tpu.trace_start"() <{level = 10 : i32, message = "bqk,bkd->bqd"}> : () -> ()
    %cst_48 = arith.constant dense<0.000000e+00> : vector<2x8x8xf32>
    %168 = tpu.matmul %165, %167, %cst_48 {dimension_numbers = #tpu.dot_dimension_numbers<[2], [1], [1], [2], [0, 0, 0, 1, 1, 2], [0], [0]>} : vector<2x8x8xbf16>, vector<2x8x8xbf16>, vector<2x8x8xf32> -> vector<2x8x8xf32>
    "tpu.trace_stop"() : () -> ()
    %169 = vector.shape_cast %101 : vector<2x8x8xf32> to vector<2x1x8x8xf32>
    %170 = vector.shape_cast %122 : vector<2x8x8xf32> to vector<2x1x8x8xf32>
    %171 = vector.shape_cast %143 : vector<2x8x8xf32> to vector<2x1x8x8xf32>
    %172 = vector.shape_cast %164 : vector<2x8x8xf32> to vector<2x1x8x8xf32>
    %173 = tpu.concatenate %169, %170, %171, %172 in 1 : vector<2x1x8x8xf32>, vector<2x1x8x8xf32>, vector<2x1x8x8xf32>, vector<2x1x8x8xf32> -> vector<2x4x8x8xf32>
    %c0_49 = arith.constant 0 : index
    %c0_50 = arith.constant 0 : index
    %c0_51 = arith.constant 0 : index
    %c0_52 = arith.constant 0 : index
    %c0_53 = arith.constant 0 : index
    %174 = vector.load %arg23[%c0_49, %c0_50, %c0_51, %c0_52, %c0_53] : memref<2x2x4x8x8xf32, #tpu.memory_space<vmem>>, vector<1x2x4x8x8xf32>
    %175 = vector.shape_cast %174 : vector<1x2x4x8x8xf32> to vector<2x4x8x8xf32>
    %176 = vector.shape_cast %173 : vector<2x4x8x8xf32> to vector<1x2x4x8x8xf32>
    tpu.vector_store %arg23[%c0_49, %c0_50, %c0_51, %c0_52, %c0_53], %176 {strides = array<i32>} : memref<2x2x4x8x8xf32, #tpu.memory_space<vmem>>, vector<1x2x4x8x8xf32>,
    %177 = tpu.concatenate %105, %126, %147, %168 in 2 : vector<2x8x8xf32>, vector<2x8x8xf32>, vector<2x8x8xf32>, vector<2x8x8xf32> -> vector<2x8x32xf32>
    %178 = vector.shape_cast %177 : vector<2x8x32xf32> to vector<16x32xf32>
    %179 = arith.truncf %178 : vector<16x32xf32> to vector<16x32xbf16>
    %cst_54 = arith.constant dense<0.000000e+00> : vector<16x32xf32>
    %180 = tpu.matmul %179, %81, %cst_54 {dimension_numbers = #tpu.dot_dimension_numbers<[1], [0], [0], [1], [0, 0, 1, 1], [], []>} : vector<16x32xbf16>, vector<32x32xbf16>, vector<16x32xf32> -> vector<16x32xf32>
    %181 = vector.broadcast %31 : vector<1x32xf32> to vector<16x32xf32>
    %182 = arith.addf %180, %181 : vector<16x32xf32>
    %183 = arith.addf %7, %182 : vector<16x32xf32>
    %cst_55 = arith.constant dense<0.000000e+00> : vector<16xf32>
    %184 = vector.multi_reduction <add>, %183, %cst_55 [1] : vector<16x32xf32> to vector<16xf32>
    %185 = vector.shape_cast %184 : vector<16xf32> to vector<16x1xf32>
    %cst_56 = arith.constant 3.200000e+01 : f32
    %186 = vector.broadcast %cst_56 : f32 to vector<16x1xf32>
    %187 = arith.divf %185, %186 : vector<16x1xf32>
    %188 = vector.broadcast %187 : vector<16x1xf32> to vector<16x32xf32>
    %189 = arith.subf %183, %188 : vector<16x32xf32>
    %190 = arith.mulf %189, %189 : vector<16x32xf32>
    %cst_57 = arith.constant dense<0.000000e+00> : vector<16xf32>
    %191 = vector.multi_reduction <add>, %190, %cst_57 [1] : vector<16x32xf32> to vector<16xf32>
    %192 = vector.shape_cast %191 : vector<16xf32> to vector<16x1xf32>
    %cst_58 = arith.constant 3.200000e+01 : f32
    %193 = vector.broadcast %cst_58 : f32 to vector<16x1xf32>
    %194 = arith.divf %192, %193 : vector<16x1xf32>
    %cst_59 = arith.constant 9.99999974E-6 : f32
    %195 = vector.broadcast %cst_59 : f32 to vector<16x1xf32>
    %196 = arith.addf %194, %195 : vector<16x1xf32>
    %197 = math.rsqrt %196 : vector<16x1xf32>
    %198 = vector.broadcast %197 : vector<16x1xf32> to vector<16x32xf32>
    %199 = arith.mulf %189, %198 : vector<16x32xf32>
    %200 = vector.broadcast %33 : vector<1x32xf32> to vector<16x32xf32>
    %201 = arith.mulf %199, %200 : vector<16x32xf32>
    %202 = vector.broadcast %34 : vector<1x32xf32> to vector<16x32xf32>
    %203 = arith.addf %201, %202 : vector<16x32xf32>
    %c0_60 = arith.constant 0 : index
    %c0_61 = arith.constant 0 : index
    %c0_62 = arith.constant 0 : index
    %204 = vector.load %arg8[%c0_60, %c0_61, %c0_62] : memref<2x32x64xbf16, #tpu.memory_space<vmem>>, vector<1x32x64xbf16>
    %205 = vector.shape_cast %204 : vector<1x32x64xbf16> to vector<32x64xbf16>
    %206 = arith.truncf %203 : vector<16x32xf32> to vector<16x32xbf16>
    %cst_63 = arith.constant dense<0.000000e+00> : vector<16x64xf32>
    %207 = tpu.matmul %206, %205, %cst_63 {dimension_numbers = #tpu.dot_dimension_numbers<[1], [0], [0], [1], [0, 0, 1, 1], [], []>} : vector<16x32xbf16>, vector<32x64xbf16>, vector<16x64xf32> -> vector<16x64xf32>
    %208 = vector.broadcast %37 : vector<1x64xf32> to vector<16x64xf32>
    %209 = arith.addf %207, %208 : vector<16x64xf32>
    %cst_64 = arith.constant 0.000000e+00 : f32
    %210 = vector.broadcast %cst_64 : f32 to vector<16x64xf32>
    %211 = arith.maximumf %209, %210 : vector<16x64xf32>
    %c0_65 = arith.constant 0 : index
    %c0_66 = arith.constant 0 : index
    %c0_67 = arith.constant 0 : index
    %212 = vector.load %arg9[%c0_65, %c0_66, %c0_67] : memref<2x64x32xbf16, #tpu.memory_space<vmem>>, vector<1x64x32xbf16>
    %213 = vector.shape_cast %212 : vector<1x64x32xbf16> to vector<64x32xbf16>
    %214 = arith.truncf %211 : vector<16x64xf32> to vector<16x64xbf16>
    %cst_68 = arith.constant dense<0.000000e+00> : vector<16x32xf32>
    %215 = tpu.matmul %214, %213, %cst_68 {dimension_numbers = #tpu.dot_dimension_numbers<[1], [0], [0], [1], [0, 0, 1, 1], [], []>} : vector<16x64xbf16>, vector<64x32xbf16>, vector<16x32xf32> -> vector<16x32xf32>
    %216 = arith.addf %203, %215 : vector<16x32xf32>
    %217 = vector.broadcast %32 : vector<1x32xf32> to vector<16x32xf32>
    %218 = arith.addf %216, %217 : vector<16x32xf32>
    %cst_69 = arith.constant dense<0.000000e+00> : vector<16xf32>
    %219 = vector.multi_reduction <add>, %218, %cst_69 [1] : vector<16x32xf32> to vector<16xf32>
    %220 = vector.shape_cast %219 : vector<16xf32> to vector<16x1xf32>
    %cst_70 = arith.constant 3.200000e+01 : f32
    %221 = vector.broadcast %cst_70 : f32 to vector<16x1xf32>
    %222 = arith.divf %220, %221 : vector<16x1xf32>
    %223 = vector.broadcast %222 : vector<16x1xf32> to vector<16x32xf32>
    %224 = arith.subf %218, %223 : vector<16x32xf32>
    %225 = arith.mulf %224, %224 : vector<16x32xf32>
    %cst_71 = arith.constant dense<0.000000e+00> : vector<16xf32>
    %226 = vector.multi_reduction <add>, %225, %cst_71 [1] : vector<16x32xf32> to vector<16xf32>
    %227 = vector.shape_cast %226 : vector<16xf32> to vector<16x1xf32>
    %cst_72 = arith.constant 3.200000e+01 : f32
    %228 = vector.broadcast %cst_72 : f32 to vector<16x1xf32>
    %229 = arith.divf %227, %228 : vector<16x1xf32>
    %cst_73 = arith.constant 9.99999974E-6 : f32
    %230 = vector.broadcast %cst_73 : f32 to vector<16x1xf32>
    %231 = arith.addf %229, %230 : vector<16x1xf32>
    %232 = math.rsqrt %231 : vector<16x1xf32>
    %233 = vector.broadcast %232 : vector<16x1xf32> to vector<16x32xf32>
    %234 = arith.mulf %224, %233 : vector<16x32xf32>
    %235 = vector.broadcast %35 : vector<1x32xf32> to vector<16x32xf32>
    %236 = arith.mulf %234, %235 : vector<16x32xf32>
    %237 = vector.broadcast %36 : vector<1x32xf32> to vector<16x32xf32>
    %238 = arith.addf %236, %237 : vector<16x32xf32>
    %c1 = arith.constant 1 : index
    %c0_74 = arith.constant 0 : index
    %c0_75 = arith.constant 0 : index
    %239 = vector.load %arg10[%c1, %c0_74, %c0_75] : memref<2x9x32xf32, #tpu.memory_space<vmem>>, vector<1x9x32xf32>
    %240 = vector.shape_cast %239 : vector<1x9x32xf32> to vector<9x32xf32>
    %241 = vector.extract_strided_slice %240 {offsets = [0, 0], sizes = [1, 32], strides = [1, 1]} : vector<9x32xf32> to vector<1x32xf32>
    %242 = vector.extract_strided_slice %240 {offsets = [1, 0], sizes = [1, 32], strides = [1, 1]} : vector<9x32xf32> to vector<1x32xf32>
    %243 = vector.extract_strided_slice %240 {offsets = [2, 0], sizes = [1, 32], strides = [1, 1]} : vector<9x32xf32> to vector<1x32xf32>
    %244 = vector.extract_strided_slice %240 {offsets = [3, 0], sizes = [1, 32], strides = [1, 1]} : vector<9x32xf32> to vector<1x32xf32>
    %245 = vector.extract_strided_slice %240 {offsets = [4, 0], sizes = [1, 32], strides = [1, 1]} : vector<9x32xf32> to vector<1x32xf32>
    %246 = vector.extract_strided_slice %240 {offsets = [5, 0], sizes = [1, 32], strides = [1, 1]} : vector<9x32xf32> to vector<1x32xf32>
    %247 = vector.extract_strided_slice %240 {offsets = [6, 0], sizes = [1, 32], strides = [1, 1]} : vector<9x32xf32> to vector<1x32xf32>
    %248 = vector.extract_strided_slice %240 {offsets = [7, 0], sizes = [1, 32], strides = [1, 1]} : vector<9x32xf32> to vector<1x32xf32>
    %249 = vector.extract_strided_slice %240 {offsets = [8, 0], sizes = [1, 32], strides = [1, 1]} : vector<9x32xf32> to vector<1x32xf32>
    %c1_76 = arith.constant 1 : index
    %c0_77 = arith.constant 0 : index
    %250 = vector.load %arg11[%c1_76, %c0_77] : memref<2x64xf32, #tpu.memory_space<vmem>>, vector<1x64xf32>
    %c1_i32_78 = arith.constant 1 : i32
    %251 = tpu.dynamic_rotate %238 by %c1_i32_78 dim 0 : vector<16x32xf32>, i32 -> vector<16x32xf32>
    %c-1_i32_79 = arith.constant -1 : i32
    %252 = vector.broadcast %c-1_i32_79 : i32 to vector<16x1xi32>
    %253 = arith.addi %25, %252 : vector<16x1xi32>
    %c0_i32_80 = arith.constant 0 : i32
    %254 = vector.broadcast %c0_i32_80 : i32 to vector<16x1xi32>
    %255 = arith.cmpi sge, %253, %254 : vector<16x1xi32>
    %c-1_i32_81 = arith.constant -1 : i32
    %256 = vector.broadcast %c-1_i32_81 : i32 to vector<16x1xi32>
    %257 = arith.addi %25, %256 : vector<16x1xi32>
    %c8_i32_82 = arith.constant 8 : i32
    %258 = vector.broadcast %c8_i32_82 : i32 to vector<16x1xi32>
    %259 = arith.cmpi slt, %257, %258 : vector<16x1xi32>
    %260 = arith.andi %255, %259 : vector<16x1xi1>
    %cst_83 = arith.constant 0.000000e+00 : f32
    %261 = vector.shape_cast %260 : vector<16x1xi1> to vector<16x1xi1>
    %262 = vector.broadcast %261 : vector<16x1xi1> to vector<16x32xi1>
    %263 = vector.broadcast %cst_83 : f32 to vector<16x32xf32>
    %264 = arith.select %262, %251, %263 : vector<16x32xi1>, vector<16x32xf32>
    %c15_i32_84 = arith.constant 15 : i32
    %265 = tpu.dynamic_rotate %238 by %c15_i32_84 dim 0 : vector<16x32xf32>, i32 -> vector<16x32xf32>
    %c1_i32_85 = arith.constant 1 : i32
    %266 = vector.broadcast %c1_i32_85 : i32 to vector<16x1xi32>
    %267 = arith.addi %25, %266 : vector<16x1xi32>
    %c0_i32_86 = arith.constant 0 : i32
    %268 = vector.broadcast %c0_i32_86 : i32 to vector<16x1xi32>
    %269 = arith.cmpi sge, %267, %268 : vector<16x1xi32>
    %c1_i32_87 = arith.constant 1 : i32
    %270 = vector.broadcast %c1_i32_87 : i32 to vector<16x1xi32>
    %271 = arith.addi %25, %270 : vector<16x1xi32>
    %c8_i32_88 = arith.constant 8 : i32
    %272 = vector.broadcast %c8_i32_88 : i32 to vector<16x1xi32>
    %273 = arith.cmpi slt, %271, %272 : vector<16x1xi32>
    %274 = arith.andi %269, %273 : vector<16x1xi1>
    %cst_89 = arith.constant 0.000000e+00 : f32
    %275 = vector.shape_cast %274 : vector<16x1xi1> to vector<16x1xi1>
    %276 = vector.broadcast %275 : vector<16x1xi1> to vector<16x32xi1>
    %277 = vector.broadcast %cst_89 : f32 to vector<16x32xf32>
    %278 = arith.select %276, %265, %277 : vector<16x32xi1>, vector<16x32xf32>
    %279 = tpu.concatenate %264, %238, %278 in 1 : vector<16x32xf32>, vector<16x32xf32>, vector<16x32xf32> -> vector<16x96xf32>
    %c1_90 = arith.constant 1 : index
    %c0_91 = arith.constant 0 : index
    %c0_92 = arith.constant 0 : index
    %280 = vector.load %arg6[%c1_90, %c0_91, %c0_92] : memref<2x96x96xbf16, #tpu.memory_space<vmem>>, vector<1x96x96xbf16>
    %281 = vector.shape_cast %280 : vector<1x96x96xbf16> to vector<96x96xbf16>
    %282 = arith.truncf %279 : vector<16x96xf32> to vector<16x96xbf16>
    %cst_93 = arith.constant dense<0.000000e+00> : vector<16x96xf32>
    %283 = tpu.matmul %282, %281, %cst_93 {dimension_numbers = #tpu.dot_dimension_numbers<[1], [0], [0], [1], [0, 0, 1, 1], [], []>} : vector<16x96xbf16>, vector<96x96xbf16>, vector<16x96xf32> -> vector<16x96xf32>
    %284 = vector.extract_strided_slice %283 {offsets = [0, 0], sizes = [16, 32], strides = [1, 1]} : vector<16x96xf32> to vector<16x32xf32>
    %285 = vector.broadcast %241 : vector<1x32xf32> to vector<16x32xf32>
    %286 = arith.addf %284, %285 : vector<16x32xf32>
    %287 = vector.extract_strided_slice %283 {offsets = [0, 32], sizes = [16, 32], strides = [1, 1]} : vector<16x96xf32> to vector<16x32xf32>
    %288 = vector.broadcast %242 : vector<1x32xf32> to vector<16x32xf32>
    %289 = arith.addf %287, %288 : vector<16x32xf32>
    %290 = vector.extract_strided_slice %283 {offsets = [0, 64], sizes = [16, 32], strides = [1, 1]} : vector<16x96xf32> to vector<16x32xf32>
    %291 = vector.broadcast %243 : vector<1x32xf32> to vector<16x32xf32>
    %292 = arith.addf %290, %291 : vector<16x32xf32>
    %c1_94 = arith.constant 1 : index
    %c0_95 = arith.constant 0 : index
    %c0_96 = arith.constant 0 : index
    %293 = vector.load %arg7[%c1_94, %c0_95, %c0_96] : memref<2x32x32xbf16, #tpu.memory_space<vmem>>, vector<1x32x32xbf16>
    %294 = vector.shape_cast %293 : vector<1x32x32xbf16> to vector<32x32xbf16>
    %295 = vector.shape_cast %286 : vector<16x32xf32> to vector<2x8x32xf32>
    %296 = vector.shape_cast %289 : vector<16x32xf32> to vector<2x8x32xf32>
    %297 = vector.shape_cast %292 : vector<16x32xf32> to vector<2x8x32xf32>
    %298 = vector.extract_strided_slice %295 {offsets = [0, 0, 0], sizes = [2, 8, 8], strides = [1, 1, 1]} : vector<2x8x32xf32> to vector<2x8x8xf32>
    %299 = arith.truncf %298 : vector<2x8x8xf32> to vector<2x8x8xbf16>
    %300 = vector.extract_strided_slice %296 {offsets = [0, 0, 0], sizes = [2, 8, 8], strides = [1, 1, 1]} : vector<2x8x32xf32> to vector<2x8x8xf32>
    %301 = arith.truncf %300 : vector<2x8x8xf32> to vector<2x8x8xbf16>
    "tpu.trace_start"() <{level = 10 : i32, message = "bqd,bkd->bqk"}> : () -> ()
    %cst_97 = arith.constant dense<0.000000e+00> : vector<2x8x8xf32>
    %302 = tpu.matmul %299, %301, %cst_97 {dimension_numbers = #tpu.dot_dimension_numbers<[2], [2], [1], [1], [0, 0, 0, 1, 1, 1], [0], [0]>} : vector<2x8x8xbf16>, vector<2x8x8xbf16>, vector<2x8x8xf32> -> vector<2x8x8xf32>
    "tpu.trace_stop"() : () -> ()
    %303 = vector.shape_cast %8 : vector<8x8xf32> to vector<1x8x8xf32>
    %304 = vector.broadcast %303 : vector<1x8x8xf32> to vector<2x8x8xf32>
    %305 = arith.addf %302, %304 : vector<2x8x8xf32>
    %cst_98 = arith.constant dense<0xFF800000> : vector<2x8xf32>
    %306 = vector.multi_reduction <maximumf>, %305, %cst_98 [2] : vector<2x8x8xf32> to vector<2x8xf32>
    %307 = vector.shape_cast %306 : vector<2x8xf32> to vector<2x8x1xf32>
    %308 = vector.broadcast %307 : vector<2x8x1xf32> to vector<2x8x8xf32>
    %309 = arith.subf %305, %308 : vector<2x8x8xf32>
    %310 = math.exp %309 : vector<2x8x8xf32>
    %cst_99 = arith.constant dense<0.000000e+00> : vector<2x8xf32>
    %311 = vector.multi_reduction <add>, %310, %cst_99 [2] : vector<2x8x8xf32> to vector<2x8xf32>
    %312 = vector.shape_cast %311 : vector<2x8xf32> to vector<2x8x1xf32>
    %313 = vector.broadcast %312 : vector<2x8x1xf32> to vector<2x8x8xf32>
    %314 = arith.divf %310, %313 : vector<2x8x8xf32>
    %315 = arith.truncf %314 : vector<2x8x8xf32> to vector<2x8x8xbf16>
    %316 = vector.extract_strided_slice %297 {offsets = [0, 0, 0], sizes = [2, 8, 8], strides = [1, 1, 1]} : vector<2x8x32xf32> to vector<2x8x8xf32>
    %317 = arith.truncf %316 : vector<2x8x8xf32> to vector<2x8x8xbf16>
    "tpu.trace_start"() <{level = 10 : i32, message = "bqk,bkd->bqd"}> : () -> ()
    %cst_100 = arith.constant dense<0.000000e+00> : vector<2x8x8xf32>
    %318 = tpu.matmul %315, %317, %cst_100 {dimension_numbers = #tpu.dot_dimension_numbers<[2], [1], [1], [2], [0, 0, 0, 1, 1, 2], [0], [0]>} : vector<2x8x8xbf16>, vector<2x8x8xbf16>, vector<2x8x8xf32> -> vector<2x8x8xf32>
    "tpu.trace_stop"() : () -> ()
    %319 = vector.extract_strided_slice %295 {offsets = [0, 0, 8], sizes = [2, 8, 8], strides = [1, 1, 1]} : vector<2x8x32xf32> to vector<2x8x8xf32>
    %320 = arith.truncf %319 : vector<2x8x8xf32> to vector<2x8x8xbf16>
    %321 = vector.extract_strided_slice %296 {offsets = [0, 0, 8], sizes = [2, 8, 8], strides = [1, 1, 1]} : vector<2x8x32xf32> to vector<2x8x8xf32>
    %322 = arith.truncf %321 : vector<2x8x8xf32> to vector<2x8x8xbf16>
    "tpu.trace_start"() <{level = 10 : i32, message = "bqd,bkd->bqk"}> : () -> ()
    %cst_101 = arith.constant dense<0.000000e+00> : vector<2x8x8xf32>
    %323 = tpu.matmul %320, %322, %cst_101 {dimension_numbers = #tpu.dot_dimension_numbers<[2], [2], [1], [1], [0, 0, 0, 1, 1, 1], [0], [0]>} : vector<2x8x8xbf16>, vector<2x8x8xbf16>, vector<2x8x8xf32> -> vector<2x8x8xf32>
    "tpu.trace_stop"() : () -> ()
    %324 = vector.shape_cast %8 : vector<8x8xf32> to vector<1x8x8xf32>
    %325 = vector.broadcast %324 : vector<1x8x8xf32> to vector<2x8x8xf32>
    %326 = arith.addf %323, %325 : vector<2x8x8xf32>
    %cst_102 = arith.constant dense<0xFF800000> : vector<2x8xf32>
    %327 = vector.multi_reduction <maximumf>, %326, %cst_102 [2] : vector<2x8x8xf32> to vector<2x8xf32>
    %328 = vector.shape_cast %327 : vector<2x8xf32> to vector<2x8x1xf32>
    %329 = vector.broadcast %328 : vector<2x8x1xf32> to vector<2x8x8xf32>
    %330 = arith.subf %326, %329 : vector<2x8x8xf32>
    %331 = math.exp %330 : vector<2x8x8xf32>
    %cst_103 = arith.constant dense<0.000000e+00> : vector<2x8xf32>
    %332 = vector.multi_reduction <add>, %331, %cst_103 [2] : vector<2x8x8xf32> to vector<2x8xf32>
    %333 = vector.shape_cast %332 : vector<2x8xf32> to vector<2x8x1xf32>
    %334 = vector.broadcast %333 : vector<2x8x1xf32> to vector<2x8x8xf32>
    %335 = arith.divf %331, %334 : vector<2x8x8xf32>
    %336 = arith.truncf %335 : vector<2x8x8xf32> to vector<2x8x8xbf16>
    %337 = vector.extract_strided_slice %297 {offsets = [0, 0, 8], sizes = [2, 8, 8], strides = [1, 1, 1]} : vector<2x8x32xf32> to vector<2x8x8xf32>
    %338 = arith.truncf %337 : vector<2x8x8xf32> to vector<2x8x8xbf16>
    "tpu.trace_start"() <{level = 10 : i32, message = "bqk,bkd->bqd"}> : () -> ()
    %cst_104 = arith.constant dense<0.000000e+00> : vector<2x8x8xf32>
    %339 = tpu.matmul %336, %338, %cst_104 {dimension_numbers = #tpu.dot_dimension_numbers<[2], [1], [1], [2], [0, 0, 0, 1, 1, 2], [0], [0]>} : vector<2x8x8xbf16>, vector<2x8x8xbf16>, vector<2x8x8xf32> -> vector<2x8x8xf32>
    "tpu.trace_stop"() : () -> ()
    %340 = vector.extract_strided_slice %295 {offsets = [0, 0, 16], sizes = [2, 8, 8], strides = [1, 1, 1]} : vector<2x8x32xf32> to vector<2x8x8xf32>
    %341 = arith.truncf %340 : vector<2x8x8xf32> to vector<2x8x8xbf16>
    %342 = vector.extract_strided_slice %296 {offsets = [0, 0, 16], sizes = [2, 8, 8], strides = [1, 1, 1]} : vector<2x8x32xf32> to vector<2x8x8xf32>
    %343 = arith.truncf %342 : vector<2x8x8xf32> to vector<2x8x8xbf16>
    "tpu.trace_start"() <{level = 10 : i32, message = "bqd,bkd->bqk"}> : () -> ()
    %cst_105 = arith.constant dense<0.000000e+00> : vector<2x8x8xf32>
    %344 = tpu.matmul %341, %343, %cst_105 {dimension_numbers = #tpu.dot_dimension_numbers<[2], [2], [1], [1], [0, 0, 0, 1, 1, 1], [0], [0]>} : vector<2x8x8xbf16>, vector<2x8x8xbf16>, vector<2x8x8xf32> -> vector<2x8x8xf32>
    "tpu.trace_stop"() : () -> ()
    %345 = vector.shape_cast %8 : vector<8x8xf32> to vector<1x8x8xf32>
    %346 = vector.broadcast %345 : vector<1x8x8xf32> to vector<2x8x8xf32>
    %347 = arith.addf %344, %346 : vector<2x8x8xf32>
    %cst_106 = arith.constant dense<0xFF800000> : vector<2x8xf32>
    %348 = vector.multi_reduction <maximumf>, %347, %cst_106 [2] : vector<2x8x8xf32> to vector<2x8xf32>
    %349 = vector.shape_cast %348 : vector<2x8xf32> to vector<2x8x1xf32>
    %350 = vector.broadcast %349 : vector<2x8x1xf32> to vector<2x8x8xf32>
    %351 = arith.subf %347, %350 : vector<2x8x8xf32>
    %352 = math.exp %351 : vector<2x8x8xf32>
    %cst_107 = arith.constant dense<0.000000e+00> : vector<2x8xf32>
    %353 = vector.multi_reduction <add>, %352, %cst_107 [2] : vector<2x8x8xf32> to vector<2x8xf32>
    %354 = vector.shape_cast %353 : vector<2x8xf32> to vector<2x8x1xf32>
    %355 = vector.broadcast %354 : vector<2x8x1xf32> to vector<2x8x8xf32>
    %356 = arith.divf %352, %355 : vector<2x8x8xf32>
    %357 = arith.truncf %356 : vector<2x8x8xf32> to vector<2x8x8xbf16>
    %358 = vector.extract_strided_slice %297 {offsets = [0, 0, 16], sizes = [2, 8, 8], strides = [1, 1, 1]} : vector<2x8x32xf32> to vector<2x8x8xf32>
    %359 = arith.truncf %358 : vector<2x8x8xf32> to vector<2x8x8xbf16>
    "tpu.trace_start"() <{level = 10 : i32, message = "bqk,bkd->bqd"}> : () -> ()
    %cst_108 = arith.constant dense<0.000000e+00> : vector<2x8x8xf32>
    %360 = tpu.matmul %357, %359, %cst_108 {dimension_numbers = #tpu.dot_dimension_numbers<[2], [1], [1], [2], [0, 0, 0, 1, 1, 2], [0], [0]>} : vector<2x8x8xbf16>, vector<2x8x8xbf16>, vector<2x8x8xf32> -> vector<2x8x8xf32>
    "tpu.trace_stop"() : () -> ()
    %361 = vector.extract_strided_slice %295 {offsets = [0, 0, 24], sizes = [2, 8, 8], strides = [1, 1, 1]} : vector<2x8x32xf32> to vector<2x8x8xf32>
    %362 = arith.truncf %361 : vector<2x8x8xf32> to vector<2x8x8xbf16>
    %363 = vector.extract_strided_slice %296 {offsets = [0, 0, 24], sizes = [2, 8, 8], strides = [1, 1, 1]} : vector<2x8x32xf32> to vector<2x8x8xf32>
    %364 = arith.truncf %363 : vector<2x8x8xf32> to vector<2x8x8xbf16>
    "tpu.trace_start"() <{level = 10 : i32, message = "bqd,bkd->bqk"}> : () -> ()
    %cst_109 = arith.constant dense<0.000000e+00> : vector<2x8x8xf32>
    %365 = tpu.matmul %362, %364, %cst_109 {dimension_numbers = #tpu.dot_dimension_numbers<[2], [2], [1], [1], [0, 0, 0, 1, 1, 1], [0], [0]>} : vector<2x8x8xbf16>, vector<2x8x8xbf16>, vector<2x8x8xf32> -> vector<2x8x8xf32>
    "tpu.trace_stop"() : () -> ()
    %366 = vector.shape_cast %8 : vector<8x8xf32> to vector<1x8x8xf32>
    %367 = vector.broadcast %366 : vector<1x8x8xf32> to vector<2x8x8xf32>
    %368 = arith.addf %365, %367 : vector<2x8x8xf32>
    %cst_110 = arith.constant dense<0xFF800000> : vector<2x8xf32>
    %369 = vector.multi_reduction <maximumf>, %368, %cst_110 [2] : vector<2x8x8xf32> to vector<2x8xf32>
    %370 = vector.shape_cast %369 : vector<2x8xf32> to vector<2x8x1xf32>
    %371 = vector.broadcast %370 : vector<2x8x1xf32> to vector<2x8x8xf32>
    %372 = arith.subf %368, %371 : vector<2x8x8xf32>
    %373 = math.exp %372 : vector<2x8x8xf32>
    %cst_111 = arith.constant dense<0.000000e+00> : vector<2x8xf32>
    %374 = vector.multi_reduction <add>, %373, %cst_111 [2] : vector<2x8x8xf32> to vector<2x8xf32>
    %375 = vector.shape_cast %374 : vector<2x8xf32> to vector<2x8x1xf32>
    %376 = vector.broadcast %375 : vector<2x8x1xf32> to vector<2x8x8xf32>
    %377 = arith.divf %373, %376 : vector<2x8x8xf32>
    %378 = arith.truncf %377 : vector<2x8x8xf32> to vector<2x8x8xbf16>
    %379 = vector.extract_strided_slice %297 {offsets = [0, 0, 24], sizes = [2, 8, 8], strides = [1, 1, 1]} : vector<2x8x32xf32> to vector<2x8x8xf32>
    %380 = arith.truncf %379 : vector<2x8x8xf32> to vector<2x8x8xbf16>
    "tpu.trace_start"() <{level = 10 : i32, message = "bqk,bkd->bqd"}> : () -> ()
    %cst_112 = arith.constant dense<0.000000e+00> : vector<2x8x8xf32>
    %381 = tpu.matmul %378, %380, %cst_112 {dimension_numbers = #tpu.dot_dimension_numbers<[2], [1], [1], [2], [0, 0, 0, 1, 1, 2], [0], [0]>} : vector<2x8x8xbf16>, vector<2x8x8xbf16>, vector<2x8x8xf32> -> vector<2x8x8xf32>
    "tpu.trace_stop"() : () -> ()
    %382 = vector.shape_cast %314 : vector<2x8x8xf32> to vector<2x1x8x8xf32>
    %383 = vector.shape_cast %335 : vector<2x8x8xf32> to vector<2x1x8x8xf32>
    %384 = vector.shape_cast %356 : vector<2x8x8xf32> to vector<2x1x8x8xf32>
    %385 = vector.shape_cast %377 : vector<2x8x8xf32> to vector<2x1x8x8xf32>
    %386 = tpu.concatenate %382, %383, %384, %385 in 1 : vector<2x1x8x8xf32>, vector<2x1x8x8xf32>, vector<2x1x8x8xf32>, vector<2x1x8x8xf32> -> vector<2x4x8x8xf32>
    %c1_113 = arith.constant 1 : index
    %c0_114 = arith.constant 0 : index
    %c0_115 = arith.constant 0 : index
    %c0_116 = arith.constant 0 : index
    %c0_117 = arith.constant 0 : index
    %387 = vector.load %arg23[%c1_113, %c0_114, %c0_115, %c0_116, %c0_117] : memref<2x2x4x8x8xf32, #tpu.memory_space<vmem>>, vector<1x2x4x8x8xf32>
    %388 = vector.shape_cast %387 : vector<1x2x4x8x8xf32> to vector<2x4x8x8xf32>
    %389 = vector.shape_cast %386 : vector<2x4x8x8xf32> to vector<1x2x4x8x8xf32>
    tpu.vector_store %arg23[%c1_113, %c0_114, %c0_115, %c0_116, %c0_117], %389 {strides = array<i32>} : memref<2x2x4x8x8xf32, #tpu.memory_space<vmem>>, vector<1x2x4x8x8xf32>,
    %390 = tpu.concatenate %318, %339, %360, %381 in 2 : vector<2x8x8xf32>, vector<2x8x8xf32>, vector<2x8x8xf32>, vector<2x8x8xf32> -> vector<2x8x32xf32>
    %391 = vector.shape_cast %390 : vector<2x8x32xf32> to vector<16x32xf32>
    %392 = arith.truncf %391 : vector<16x32xf32> to vector<16x32xbf16>
    %cst_118 = arith.constant dense<0.000000e+00> : vector<16x32xf32>
    %393 = tpu.matmul %392, %294, %cst_118 {dimension_numbers = #tpu.dot_dimension_numbers<[1], [0], [0], [1], [0, 0, 1, 1], [], []>} : vector<16x32xbf16>, vector<32x32xbf16>, vector<16x32xf32> -> vector<16x32xf32>
    %394 = vector.broadcast %244 : vector<1x32xf32> to vector<16x32xf32>
    %395 = arith.addf %393, %394 : vector<16x32xf32>
    %396 = arith.addf %238, %395 : vector<16x32xf32>
    %cst_119 = arith.constant dense<0.000000e+00> : vector<16xf32>
    %397 = vector.multi_reduction <add>, %396, %cst_119 [1] : vector<16x32xf32> to vector<16xf32>
    %398 = vector.shape_cast %397 : vector<16xf32> to vector<16x1xf32>
    %cst_120 = arith.constant 3.200000e+01 : f32
    %399 = vector.broadcast %cst_120 : f32 to vector<16x1xf32>
    %400 = arith.divf %398, %399 : vector<16x1xf32>
    %401 = vector.broadcast %400 : vector<16x1xf32> to vector<16x32xf32>
    %402 = arith.subf %396, %401 : vector<16x32xf32>
    %403 = arith.mulf %402, %402 : vector<16x32xf32>
    %cst_121 = arith.constant dense<0.000000e+00> : vector<16xf32>
    %404 = vector.multi_reduction <add>, %403, %cst_121 [1] : vector<16x32xf32> to vector<16xf32>
    %405 = vector.shape_cast %404 : vector<16xf32> to vector<16x1xf32>
    %cst_122 = arith.constant 3.200000e+01 : f32
    %406 = vector.broadcast %cst_122 : f32 to vector<16x1xf32>
    %407 = arith.divf %405, %406 : vector<16x1xf32>
    %cst_123 = arith.constant 9.99999974E-6 : f32
    %408 = vector.broadcast %cst_123 : f32 to vector<16x1xf32>
    %409 = arith.addf %407, %408 : vector<16x1xf32>
    %410 = math.rsqrt %409 : vector<16x1xf32>
    %411 = vector.broadcast %410 : vector<16x1xf32> to vector<16x32xf32>
    %412 = arith.mulf %402, %411 : vector<16x32xf32>
    %413 = vector.broadcast %246 : vector<1x32xf32> to vector<16x32xf32>
    %414 = arith.mulf %412, %413 : vector<16x32xf32>
    %415 = vector.broadcast %247 : vector<1x32xf32> to vector<16x32xf32>
    %416 = arith.addf %414, %415 : vector<16x32xf32>
    %c1_124 = arith.constant 1 : index
    %c0_125 = arith.constant 0 : index
    %c0_126 = arith.constant 0 : index
    %417 = vector.load %arg8[%c1_124, %c0_125, %c0_126] : memref<2x32x64xbf16, #tpu.memory_space<vmem>>, vector<1x32x64xbf16>
    %418 = vector.shape_cast %417 : vector<1x32x64xbf16> to vector<32x64xbf16>
    %419 = arith.truncf %416 : vector<16x32xf32> to vector<16x32xbf16>
    %cst_127 = arith.constant dense<0.000000e+00> : vector<16x64xf32>
    %420 = tpu.matmul %419, %418, %cst_127 {dimension_numbers = #tpu.dot_dimension_numbers<[1], [0], [0], [1], [0, 0, 1, 1], [], []>} : vector<16x32xbf16>, vector<32x64xbf16>, vector<16x64xf32> -> vector<16x64xf32>
    %421 = vector.broadcast %250 : vector<1x64xf32> to vector<16x64xf32>
    %422 = arith.addf %420, %421 : vector<16x64xf32>
    %cst_128 = arith.constant 0.000000e+00 : f32
    %423 = vector.broadcast %cst_128 : f32 to vector<16x64xf32>
    %424 = arith.maximumf %422, %423 : vector<16x64xf32>
    %c1_129 = arith.constant 1 : index
    %c0_130 = arith.constant 0 : index
    %c0_131 = arith.constant 0 : index
    %425 = vector.load %arg9[%c1_129, %c0_130, %c0_131] : memref<2x64x32xbf16, #tpu.memory_space<vmem>>, vector<1x64x32xbf16>
    %426 = vector.shape_cast %425 : vector<1x64x32xbf16> to vector<64x32xbf16>
    %427 = arith.truncf %424 : vector<16x64xf32> to vector<16x64xbf16>
    %cst_132 = arith.constant dense<0.000000e+00> : vector<16x32xf32>
    %428 = tpu.matmul %427, %426, %cst_132 {dimension_numbers = #tpu.dot_dimension_numbers<[1], [0], [0], [1], [0, 0, 1, 1], [], []>} : vector<16x64xbf16>, vector<64x32xbf16>, vector<16x32xf32> -> vector<16x32xf32>
    %429 = arith.addf %416, %428 : vector<16x32xf32>
    %430 = vector.broadcast %245 : vector<1x32xf32> to vector<16x32xf32>
    %431 = arith.addf %429, %430 : vector<16x32xf32>
    %cst_133 = arith.constant dense<0.000000e+00> : vector<16xf32>
    %432 = vector.multi_reduction <add>, %431, %cst_133 [1] : vector<16x32xf32> to vector<16xf32>
    %433 = vector.shape_cast %432 : vector<16xf32> to vector<16x1xf32>
    %cst_134 = arith.constant 3.200000e+01 : f32
    %434 = vector.broadcast %cst_134 : f32 to vector<16x1xf32>
    %435 = arith.divf %433, %434 : vector<16x1xf32>
    %436 = vector.broadcast %435 : vector<16x1xf32> to vector<16x32xf32>
    %437 = arith.subf %431, %436 : vector<16x32xf32>
    %438 = arith.mulf %437, %437 : vector<16x32xf32>
    %cst_135 = arith.constant dense<0.000000e+00> : vector<16xf32>
    %439 = vector.multi_reduction <add>, %438, %cst_135 [1] : vector<16x32xf32> to vector<16xf32>
    %440 = vector.shape_cast %439 : vector<16xf32> to vector<16x1xf32>
    %cst_136 = arith.constant 3.200000e+01 : f32
    %441 = vector.broadcast %cst_136 : f32 to vector<16x1xf32>
    %442 = arith.divf %440, %441 : vector<16x1xf32>
    %cst_137 = arith.constant 9.99999974E-6 : f32
    %443 = vector.broadcast %cst_137 : f32 to vector<16x1xf32>
    %444 = arith.addf %442, %443 : vector<16x1xf32>
    %445 = math.rsqrt %444 : vector<16x1xf32>
    %446 = vector.broadcast %445 : vector<16x1xf32> to vector<16x32xf32>
    %447 = arith.mulf %437, %446 : vector<16x32xf32>
    %448 = vector.broadcast %248 : vector<1x32xf32> to vector<16x32xf32>
    %449 = arith.mulf %447, %448 : vector<16x32xf32>
    %450 = vector.broadcast %249 : vector<1x32xf32> to vector<16x32xf32>
    %451 = arith.addf %449, %450 : vector<16x32xf32>
    %c1_i32_138 = arith.constant 1 : i32
    %452 = tpu.dynamic_rotate %451 by %c1_i32_138 dim 0 : vector<16x32xf32>, i32 -> vector<16x32xf32>
    %c-1_i32_139 = arith.constant -1 : i32
    %453 = vector.broadcast %c-1_i32_139 : i32 to vector<16x1xi32>
    %454 = arith.addi %25, %453 : vector<16x1xi32>
    %c0_i32_140 = arith.constant 0 : i32
    %455 = vector.broadcast %c0_i32_140 : i32 to vector<16x1xi32>
    %456 = arith.cmpi sge, %454, %455 : vector<16x1xi32>
    %c-1_i32_141 = arith.constant -1 : i32
    %457 = vector.broadcast %c-1_i32_141 : i32 to vector<16x1xi32>
    %458 = arith.addi %25, %457 : vector<16x1xi32>
    %c8_i32_142 = arith.constant 8 : i32
    %459 = vector.broadcast %c8_i32_142 : i32 to vector<16x1xi32>
    %460 = arith.cmpi slt, %458, %459 : vector<16x1xi32>
    %461 = arith.andi %456, %460 : vector<16x1xi1>
    %cst_143 = arith.constant 0.000000e+00 : f32
    %462 = vector.shape_cast %461 : vector<16x1xi1> to vector<16x1xi1>
    %463 = vector.broadcast %462 : vector<16x1xi1> to vector<16x32xi1>
    %464 = vector.broadcast %cst_143 : f32 to vector<16x32xf32>
    %465 = arith.select %463, %452, %464 : vector<16x32xi1>, vector<16x32xf32>
    %c15_i32_144 = arith.constant 15 : i32
    %466 = tpu.dynamic_rotate %451 by %c15_i32_144 dim 0 : vector<16x32xf32>, i32 -> vector<16x32xf32>
    %c1_i32_145 = arith.constant 1 : i32
    %467 = vector.broadcast %c1_i32_145 : i32 to vector<16x1xi32>
    %468 = arith.addi %25, %467 : vector<16x1xi32>
    %c0_i32_146 = arith.constant 0 : i32
    %469 = vector.broadcast %c0_i32_146 : i32 to vector<16x1xi32>
    %470 = arith.cmpi sge, %468, %469 : vector<16x1xi32>
    %c1_i32_147 = arith.constant 1 : i32
    %471 = vector.broadcast %c1_i32_147 : i32 to vector<16x1xi32>
    %472 = arith.addi %25, %471 : vector<16x1xi32>
    %c8_i32_148 = arith.constant 8 : i32
    %473 = vector.broadcast %c8_i32_148 : i32 to vector<16x1xi32>
    %474 = arith.cmpi slt, %472, %473 : vector<16x1xi32>
    %475 = arith.andi %470, %474 : vector<16x1xi1>
    %cst_149 = arith.constant 0.000000e+00 : f32
    %476 = vector.shape_cast %475 : vector<16x1xi1> to vector<16x1xi1>
    %477 = vector.broadcast %476 : vector<16x1xi1> to vector<16x32xi1>
    %478 = vector.broadcast %cst_149 : f32 to vector<16x32xf32>
    %479 = arith.select %477, %466, %478 : vector<16x32xi1>, vector<16x32xf32>
    %480 = tpu.concatenate %465, %451, %479 in 1 : vector<16x32xf32>, vector<16x32xf32>, vector<16x32xf32> -> vector<16x96xf32>
    %c0_150 = arith.constant 0 : index
    %c0_151 = arith.constant 0 : index
    %481 = vector.load %arg3[%c0_150, %c0_151] : memref<8x32xf32, #tpu.memory_space<vmem>>, vector<8x32xf32>
    %482 = tpu.concatenate %481, %481 in 0 : vector<8x32xf32>, vector<8x32xf32> -> vector<16x32xf32>
    %c0_152 = arith.constant 0 : index
    %c0_153 = arith.constant 0 : index
    %483 = vector.load %arg5[%c0_152, %c0_153] : memref<8x8xf32, #tpu.memory_space<vmem>>, vector<8x8xf32>
    %484 = tpu.iota {dimensions = array<i32: 0>} : vector<16x1xi32>
    %c8_i32_154 = arith.constant 8 : i32
    %c0_i32_155 = arith.constant 0 : i32
    %485 = arith.cmpi eq, %c8_i32_154, %c0_i32_155 : i32
    %c1_i32_156 = arith.constant 1 : i32
    %486 = arith.select %485, %c1_i32_156, %c8_i32_154 : i32
    %487 = vector.broadcast %486 : i32 to vector<16x1xi32>
    %488 = arith.remsi %484, %487 : vector<16x1xi32>
    %c0_i32_157 = arith.constant 0 : i32
    %489 = vector.broadcast %c0_i32_157 : i32 to vector<16x1xi32>
    %490 = arith.cmpi ne, %488, %489 : vector<16x1xi32>
    %c0_i32_158 = arith.constant 0 : i32
    %491 = vector.broadcast %c0_i32_158 : i32 to vector<16x1xi32>
    %492 = arith.cmpi slt, %488, %491 : vector<16x1xi32>
    %c0_i32_159 = arith.constant 0 : i32
    %493 = arith.cmpi slt, %486, %c0_i32_159 : i32
    %494 = vector.broadcast %493 : i1 to vector<16x1xi1>
    %495 = vector.broadcast %494 : vector<16x1xi1> to vector<16x1xi1>
    %496 = arith.xori %492, %495 : vector<16x1xi1>
    %497 = arith.andi %496, %490 : vector<16x1xi1>
    %498 = vector.broadcast %486 : i32 to vector<16x1xi32>
    %499 = arith.addi %488, %498 : vector<16x1xi32>
    %500 = arith.select %497, %499, %488 : vector<16x1xi1>, vector<16x1xi32>
    %c0_160 = arith.constant 0 : index
    %c0_161 = arith.constant 0 : index
    %c0_162 = arith.constant 0 : index
    %501 = vector.load %arg18[%c0_160, %c0_161, %c0_162] : memref<2x15x32xf32, #tpu.memory_space<vmem>>, vector<1x15x32xf32>
    %502 = vector.shape_cast %501 : vector<1x15x32xf32> to vector<15x32xf32>
    %503 = vector.extract_strided_slice %502 {offsets = [0, 0], sizes = [1, 32], strides = [1, 1]} : vector<15x32xf32> to vector<1x32xf32>
    %504 = vector.extract_strided_slice %502 {offsets = [1, 0], sizes = [1, 32], strides = [1, 1]} : vector<15x32xf32> to vector<1x32xf32>
    %505 = vector.extract_strided_slice %502 {offsets = [2, 0], sizes = [1, 32], strides = [1, 1]} : vector<15x32xf32> to vector<1x32xf32>
    %506 = vector.extract_strided_slice %502 {offsets = [3, 0], sizes = [1, 32], strides = [1, 1]} : vector<15x32xf32> to vector<1x32xf32>
    %507 = vector.extract_strided_slice %502 {offsets = [4, 0], sizes = [1, 32], strides = [1, 1]} : vector<15x32xf32> to vector<1x32xf32>
    %508 = vector.extract_strided_slice %502 {offsets = [5, 0], sizes = [1, 32], strides = [1, 1]} : vector<15x32xf32> to vector<1x32xf32>
    %509 = vector.extract_strided_slice %502 {offsets = [6, 0], sizes = [1, 32], strides = [1, 1]} : vector<15x32xf32> to vector<1x32xf32>
    %510 = vector.extract_strided_slice %502 {offsets = [7, 0], sizes = [1, 32], strides = [1, 1]} : vector<15x32xf32> to vector<1x32xf32>
    %511 = vector.extract_strided_slice %502 {offsets = [8, 0], sizes = [1, 32], strides = [1, 1]} : vector<15x32xf32> to vector<1x32xf32>
    %512 = vector.extract_strided_slice %502 {offsets = [9, 0], sizes = [1, 32], strides = [1, 1]} : vector<15x32xf32> to vector<1x32xf32>
    %513 = vector.extract_strided_slice %502 {offsets = [10, 0], sizes = [1, 32], strides = [1, 1]} : vector<15x32xf32> to vector<1x32xf32>
    %514 = vector.extract_strided_slice %502 {offsets = [11, 0], sizes = [1, 32], strides = [1, 1]} : vector<15x32xf32> to vector<1x32xf32>
    %515 = vector.extract_strided_slice %502 {offsets = [12, 0], sizes = [1, 32], strides = [1, 1]} : vector<15x32xf32> to vector<1x32xf32>
    %516 = vector.extract_strided_slice %502 {offsets = [13, 0], sizes = [1, 32], strides = [1, 1]} : vector<15x32xf32> to vector<1x32xf32>
    %517 = vector.extract_strided_slice %502 {offsets = [14, 0], sizes = [1, 32], strides = [1, 1]} : vector<15x32xf32> to vector<1x32xf32>
    %c0_163 = arith.constant 0 : index
    %c0_164 = arith.constant 0 : index
    %518 = vector.load %arg19[%c0_163, %c0_164] : memref<2x64xf32, #tpu.memory_space<vmem>>, vector<1x64xf32>
    %c1_i32_165 = arith.constant 1 : i32
    %519 = tpu.dynamic_rotate %482 by %c1_i32_165 dim 0 : vector<16x32xf32>, i32 -> vector<16x32xf32>
    %c-1_i32_166 = arith.constant -1 : i32
    %520 = vector.broadcast %c-1_i32_166 : i32 to vector<16x1xi32>
    %521 = arith.addi %500, %520 : vector<16x1xi32>
    %c0_i32_167 = arith.constant 0 : i32
    %522 = vector.broadcast %c0_i32_167 : i32 to vector<16x1xi32>
    %523 = arith.cmpi sge, %521, %522 : vector<16x1xi32>
    %c-1_i32_168 = arith.constant -1 : i32
    %524 = vector.broadcast %c-1_i32_168 : i32 to vector<16x1xi32>
    %525 = arith.addi %500, %524 : vector<16x1xi32>
    %c8_i32_169 = arith.constant 8 : i32
    %526 = vector.broadcast %c8_i32_169 : i32 to vector<16x1xi32>
    %527 = arith.cmpi slt, %525, %526 : vector<16x1xi32>
    %528 = arith.andi %523, %527 : vector<16x1xi1>
    %cst_170 = arith.constant 0.000000e+00 : f32
    %529 = vector.shape_cast %528 : vector<16x1xi1> to vector<16x1xi1>
    %530 = vector.broadcast %529 : vector<16x1xi1> to vector<16x32xi1>
    %531 = vector.broadcast %cst_170 : f32 to vector<16x32xf32>
    %532 = arith.select %530, %519, %531 : vector<16x32xi1>, vector<16x32xf32>
    %c15_i32_171 = arith.constant 15 : i32
    %533 = tpu.dynamic_rotate %482 by %c15_i32_171 dim 0 : vector<16x32xf32>, i32 -> vector<16x32xf32>
    %c1_i32_172 = arith.constant 1 : i32
    %534 = vector.broadcast %c1_i32_172 : i32 to vector<16x1xi32>
    %535 = arith.addi %500, %534 : vector<16x1xi32>
    %c0_i32_173 = arith.constant 0 : i32
    %536 = vector.broadcast %c0_i32_173 : i32 to vector<16x1xi32>
    %537 = arith.cmpi sge, %535, %536 : vector<16x1xi32>
    %c1_i32_174 = arith.constant 1 : i32
    %538 = vector.broadcast %c1_i32_174 : i32 to vector<16x1xi32>
    %539 = arith.addi %500, %538 : vector<16x1xi32>
    %c8_i32_175 = arith.constant 8 : i32
    %540 = vector.broadcast %c8_i32_175 : i32 to vector<16x1xi32>
    %541 = arith.cmpi slt, %539, %540 : vector<16x1xi32>
    %542 = arith.andi %537, %541 : vector<16x1xi1>
    %cst_176 = arith.constant 0.000000e+00 : f32
    %543 = vector.shape_cast %542 : vector<16x1xi1> to vector<16x1xi1>
    %544 = vector.broadcast %543 : vector<16x1xi1> to vector<16x32xi1>
    %545 = vector.broadcast %cst_176 : f32 to vector<16x32xf32>
    %546 = arith.select %544, %533, %545 : vector<16x32xi1>, vector<16x32xf32>
    %547 = tpu.concatenate %532, %482, %546 in 1 : vector<16x32xf32>, vector<16x32xf32>, vector<16x32xf32> -> vector<16x96xf32>
    %c0_177 = arith.constant 0 : index
    %c0_178 = arith.constant 0 : index
    %c0_179 = arith.constant 0 : index
    %548 = vector.load %arg12[%c0_177, %c0_178, %c0_179] : memref<2x96x96xbf16, #tpu.memory_space<vmem>>, vector<1x96x96xbf16>
    %549 = vector.shape_cast %548 : vector<1x96x96xbf16> to vector<96x96xbf16>
    %550 = arith.truncf %547 : vector<16x96xf32> to vector<16x96xbf16>
    %cst_180 = arith.constant dense<0.000000e+00> : vector<16x96xf32>
    %551 = tpu.matmul %550, %549, %cst_180 {dimension_numbers = #tpu.dot_dimension_numbers<[1], [0], [0], [1], [0, 0, 1, 1], [], []>} : vector<16x96xbf16>, vector<96x96xbf16>, vector<16x96xf32> -> vector<16x96xf32>
    %552 = vector.extract_strided_slice %551 {offsets = [0, 0], sizes = [16, 32], strides = [1, 1]} : vector<16x96xf32> to vector<16x32xf32>
    %553 = vector.broadcast %503 : vector<1x32xf32> to vector<16x32xf32>
    %554 = arith.addf %552, %553 : vector<16x32xf32>
    %555 = vector.extract_strided_slice %551 {offsets = [0, 32], sizes = [16, 32], strides = [1, 1]} : vector<16x96xf32> to vector<16x32xf32>
    %556 = vector.broadcast %504 : vector<1x32xf32> to vector<16x32xf32>
    %557 = arith.addf %555, %556 : vector<16x32xf32>
    %558 = vector.extract_strided_slice %551 {offsets = [0, 64], sizes = [16, 32], strides = [1, 1]} : vector<16x96xf32> to vector<16x32xf32>
    %559 = vector.broadcast %505 : vector<1x32xf32> to vector<16x32xf32>
    %560 = arith.addf %558, %559 : vector<16x32xf32>
    %c0_181 = arith.constant 0 : index
    %c0_182 = arith.constant 0 : index
    %c0_183 = arith.constant 0 : index
    %c0_184 = arith.constant 0 : index
    %561 = vector.load %arg15[%c0_181, %c0_182, %c0_183, %c0_184] : memref<2x2x32x32xbf16, #tpu.memory_space<vmem>>, vector<1x1x32x32xbf16>
    %562 = vector.shape_cast %561 : vector<1x1x32x32xbf16> to vector<32x32xbf16>
    %563 = vector.shape_cast %554 : vector<16x32xf32> to vector<2x8x32xf32>
    %564 = vector.shape_cast %557 : vector<16x32xf32> to vector<2x8x32xf32>
    %565 = vector.shape_cast %560 : vector<16x32xf32> to vector<2x8x32xf32>
    %566 = vector.extract_strided_slice %563 {offsets = [0, 0, 0], sizes = [2, 8, 8], strides = [1, 1, 1]} : vector<2x8x32xf32> to vector<2x8x8xf32>
    %567 = arith.truncf %566 : vector<2x8x8xf32> to vector<2x8x8xbf16>
    %568 = vector.extract_strided_slice %564 {offsets = [0, 0, 0], sizes = [2, 8, 8], strides = [1, 1, 1]} : vector<2x8x32xf32> to vector<2x8x8xf32>
    %569 = arith.truncf %568 : vector<2x8x8xf32> to vector<2x8x8xbf16>
    "tpu.trace_start"() <{level = 10 : i32, message = "bqd,bkd->bqk"}> : () -> ()
    %cst_185 = arith.constant dense<0.000000e+00> : vector<2x8x8xf32>
    %570 = tpu.matmul %567, %569, %cst_185 {dimension_numbers = #tpu.dot_dimension_numbers<[2], [2], [1], [1], [0, 0, 0, 1, 1, 1], [0], [0]>} : vector<2x8x8xbf16>, vector<2x8x8xbf16>, vector<2x8x8xf32> -> vector<2x8x8xf32>
    "tpu.trace_stop"() : () -> ()
    %571 = vector.shape_cast %483 : vector<8x8xf32> to vector<1x8x8xf32>
    %572 = vector.broadcast %571 : vector<1x8x8xf32> to vector<2x8x8xf32>
    %573 = arith.addf %570, %572 : vector<2x8x8xf32>
    %cst_186 = arith.constant dense<0xFF800000> : vector<2x8xf32>
    %574 = vector.multi_reduction <maximumf>, %573, %cst_186 [2] : vector<2x8x8xf32> to vector<2x8xf32>
    %575 = vector.shape_cast %574 : vector<2x8xf32> to vector<2x8x1xf32>
    %576 = vector.broadcast %575 : vector<2x8x1xf32> to vector<2x8x8xf32>
    %577 = arith.subf %573, %576 : vector<2x8x8xf32>
    %578 = math.exp %577 : vector<2x8x8xf32>
    %cst_187 = arith.constant dense<0.000000e+00> : vector<2x8xf32>
    %579 = vector.multi_reduction <add>, %578, %cst_187 [2] : vector<2x8x8xf32> to vector<2x8xf32>
    %580 = vector.shape_cast %579 : vector<2x8xf32> to vector<2x8x1xf32>
    %581 = vector.broadcast %580 : vector<2x8x1xf32> to vector<2x8x8xf32>
    %582 = arith.divf %578, %581 : vector<2x8x8xf32>
    %583 = arith.truncf %582 : vector<2x8x8xf32> to vector<2x8x8xbf16>
    %584 = vector.extract_strided_slice %565 {offsets = [0, 0, 0], sizes = [2, 8, 8], strides = [1, 1, 1]} : vector<2x8x32xf32> to vector<2x8x8xf32>
    %585 = arith.truncf %584 : vector<2x8x8xf32> to vector<2x8x8xbf16>
    "tpu.trace_start"() <{level = 10 : i32, message = "bqk,bkd->bqd"}> : () -> ()
    %cst_188 = arith.constant dense<0.000000e+00> : vector<2x8x8xf32>
    %586 = tpu.matmul %583, %585, %cst_188 {dimension_numbers = #tpu.dot_dimension_numbers<[2], [1], [1], [2], [0, 0, 0, 1, 1, 2], [0], [0]>} : vector<2x8x8xbf16>, vector<2x8x8xbf16>, vector<2x8x8xf32> -> vector<2x8x8xf32>
    "tpu.trace_stop"() : () -> ()
    %587 = vector.extract_strided_slice %563 {offsets = [0, 0, 8], sizes = [2, 8, 8], strides = [1, 1, 1]} : vector<2x8x32xf32> to vector<2x8x8xf32>
    %588 = arith.truncf %587 : vector<2x8x8xf32> to vector<2x8x8xbf16>
    %589 = vector.extract_strided_slice %564 {offsets = [0, 0, 8], sizes = [2, 8, 8], strides = [1, 1, 1]} : vector<2x8x32xf32> to vector<2x8x8xf32>
    %590 = arith.truncf %589 : vector<2x8x8xf32> to vector<2x8x8xbf16>
    "tpu.trace_start"() <{level = 10 : i32, message = "bqd,bkd->bqk"}> : () -> ()
    %cst_189 = arith.constant dense<0.000000e+00> : vector<2x8x8xf32>
    %591 = tpu.matmul %588, %590, %cst_189 {dimension_numbers = #tpu.dot_dimension_numbers<[2], [2], [1], [1], [0, 0, 0, 1, 1, 1], [0], [0]>} : vector<2x8x8xbf16>, vector<2x8x8xbf16>, vector<2x8x8xf32> -> vector<2x8x8xf32>
    "tpu.trace_stop"() : () -> ()
    %592 = vector.shape_cast %483 : vector<8x8xf32> to vector<1x8x8xf32>
    %593 = vector.broadcast %592 : vector<1x8x8xf32> to vector<2x8x8xf32>
    %594 = arith.addf %591, %593 : vector<2x8x8xf32>
    %cst_190 = arith.constant dense<0xFF800000> : vector<2x8xf32>
    %595 = vector.multi_reduction <maximumf>, %594, %cst_190 [2] : vector<2x8x8xf32> to vector<2x8xf32>
    %596 = vector.shape_cast %595 : vector<2x8xf32> to vector<2x8x1xf32>
    %597 = vector.broadcast %596 : vector<2x8x1xf32> to vector<2x8x8xf32>
    %598 = arith.subf %594, %597 : vector<2x8x8xf32>
    %599 = math.exp %598 : vector<2x8x8xf32>
    %cst_191 = arith.constant dense<0.000000e+00> : vector<2x8xf32>
    %600 = vector.multi_reduction <add>, %599, %cst_191 [2] : vector<2x8x8xf32> to vector<2x8xf32>
    %601 = vector.shape_cast %600 : vector<2x8xf32> to vector<2x8x1xf32>
    %602 = vector.broadcast %601 : vector<2x8x1xf32> to vector<2x8x8xf32>
    %603 = arith.divf %599, %602 : vector<2x8x8xf32>
    %604 = arith.truncf %603 : vector<2x8x8xf32> to vector<2x8x8xbf16>
    %605 = vector.extract_strided_slice %565 {offsets = [0, 0, 8], sizes = [2, 8, 8], strides = [1, 1, 1]} : vector<2x8x32xf32> to vector<2x8x8xf32>
    %606 = arith.truncf %605 : vector<2x8x8xf32> to vector<2x8x8xbf16>
    "tpu.trace_start"() <{level = 10 : i32, message = "bqk,bkd->bqd"}> : () -> ()
    %cst_192 = arith.constant dense<0.000000e+00> : vector<2x8x8xf32>
    %607 = tpu.matmul %604, %606, %cst_192 {dimension_numbers = #tpu.dot_dimension_numbers<[2], [1], [1], [2], [0, 0, 0, 1, 1, 2], [0], [0]>} : vector<2x8x8xbf16>, vector<2x8x8xbf16>, vector<2x8x8xf32> -> vector<2x8x8xf32>
    "tpu.trace_stop"() : () -> ()
    %608 = vector.extract_strided_slice %563 {offsets = [0, 0, 16], sizes = [2, 8, 8], strides = [1, 1, 1]} : vector<2x8x32xf32> to vector<2x8x8xf32>
    %609 = arith.truncf %608 : vector<2x8x8xf32> to vector<2x8x8xbf16>
    %610 = vector.extract_strided_slice %564 {offsets = [0, 0, 16], sizes = [2, 8, 8], strides = [1, 1, 1]} : vector<2x8x32xf32> to vector<2x8x8xf32>
    %611 = arith.truncf %610 : vector<2x8x8xf32> to vector<2x8x8xbf16>
    "tpu.trace_start"() <{level = 10 : i32, message = "bqd,bkd->bqk"}> : () -> ()
    %cst_193 = arith.constant dense<0.000000e+00> : vector<2x8x8xf32>
    %612 = tpu.matmul %609, %611, %cst_193 {dimension_numbers = #tpu.dot_dimension_numbers<[2], [2], [1], [1], [0, 0, 0, 1, 1, 1], [0], [0]>} : vector<2x8x8xbf16>, vector<2x8x8xbf16>, vector<2x8x8xf32> -> vector<2x8x8xf32>
    "tpu.trace_stop"() : () -> ()
    %613 = vector.shape_cast %483 : vector<8x8xf32> to vector<1x8x8xf32>
    %614 = vector.broadcast %613 : vector<1x8x8xf32> to vector<2x8x8xf32>
    %615 = arith.addf %612, %614 : vector<2x8x8xf32>
    %cst_194 = arith.constant dense<0xFF800000> : vector<2x8xf32>
    %616 = vector.multi_reduction <maximumf>, %615, %cst_194 [2] : vector<2x8x8xf32> to vector<2x8xf32>
    %617 = vector.shape_cast %616 : vector<2x8xf32> to vector<2x8x1xf32>
    %618 = vector.broadcast %617 : vector<2x8x1xf32> to vector<2x8x8xf32>
    %619 = arith.subf %615, %618 : vector<2x8x8xf32>
    %620 = math.exp %619 : vector<2x8x8xf32>
    %cst_195 = arith.constant dense<0.000000e+00> : vector<2x8xf32>
    %621 = vector.multi_reduction <add>, %620, %cst_195 [2] : vector<2x8x8xf32> to vector<2x8xf32>
    %622 = vector.shape_cast %621 : vector<2x8xf32> to vector<2x8x1xf32>
    %623 = vector.broadcast %622 : vector<2x8x1xf32> to vector<2x8x8xf32>
    %624 = arith.divf %620, %623 : vector<2x8x8xf32>
    %625 = arith.truncf %624 : vector<2x8x8xf32> to vector<2x8x8xbf16>
    %626 = vector.extract_strided_slice %565 {offsets = [0, 0, 16], sizes = [2, 8, 8], strides = [1, 1, 1]} : vector<2x8x32xf32> to vector<2x8x8xf32>
    %627 = arith.truncf %626 : vector<2x8x8xf32> to vector<2x8x8xbf16>
    "tpu.trace_start"() <{level = 10 : i32, message = "bqk,bkd->bqd"}> : () -> ()
    %cst_196 = arith.constant dense<0.000000e+00> : vector<2x8x8xf32>
    %628 = tpu.matmul %625, %627, %cst_196 {dimension_numbers = #tpu.dot_dimension_numbers<[2], [1], [1], [2], [0, 0, 0, 1, 1, 2], [0], [0]>} : vector<2x8x8xbf16>, vector<2x8x8xbf16>, vector<2x8x8xf32> -> vector<2x8x8xf32>
    "tpu.trace_stop"() : () -> ()
    %629 = vector.extract_strided_slice %563 {offsets = [0, 0, 24], sizes = [2, 8, 8], strides = [1, 1, 1]} : vector<2x8x32xf32> to vector<2x8x8xf32>
    %630 = arith.truncf %629 : vector<2x8x8xf32> to vector<2x8x8xbf16>
    %631 = vector.extract_strided_slice %564 {offsets = [0, 0, 24], sizes = [2, 8, 8], strides = [1, 1, 1]} : vector<2x8x32xf32> to vector<2x8x8xf32>
    %632 = arith.truncf %631 : vector<2x8x8xf32> to vector<2x8x8xbf16>
    "tpu.trace_start"() <{level = 10 : i32, message = "bqd,bkd->bqk"}> : () -> ()
    %cst_197 = arith.constant dense<0.000000e+00> : vector<2x8x8xf32>
    %633 = tpu.matmul %630, %632, %cst_197 {dimension_numbers = #tpu.dot_dimension_numbers<[2], [2], [1], [1], [0, 0, 0, 1, 1, 1], [0], [0]>} : vector<2x8x8xbf16>, vector<2x8x8xbf16>, vector<2x8x8xf32> -> vector<2x8x8xf32>
    "tpu.trace_stop"() : () -> ()
    %634 = vector.shape_cast %483 : vector<8x8xf32> to vector<1x8x8xf32>
    %635 = vector.broadcast %634 : vector<1x8x8xf32> to vector<2x8x8xf32>
    %636 = arith.addf %633, %635 : vector<2x8x8xf32>
    %cst_198 = arith.constant dense<0xFF800000> : vector<2x8xf32>
    %637 = vector.multi_reduction <maximumf>, %636, %cst_198 [2] : vector<2x8x8xf32> to vector<2x8xf32>
    %638 = vector.shape_cast %637 : vector<2x8xf32> to vector<2x8x1xf32>
    %639 = vector.broadcast %638 : vector<2x8x1xf32> to vector<2x8x8xf32>
    %640 = arith.subf %636, %639 : vector<2x8x8xf32>
    %641 = math.exp %640 : vector<2x8x8xf32>
    %cst_199 = arith.constant dense<0.000000e+00> : vector<2x8xf32>
    %642 = vector.multi_reduction <add>, %641, %cst_199 [2] : vector<2x8x8xf32> to vector<2x8xf32>
    %643 = vector.shape_cast %642 : vector<2x8xf32> to vector<2x8x1xf32>
    %644 = vector.broadcast %643 : vector<2x8x1xf32> to vector<2x8x8xf32>
    %645 = arith.divf %641, %644 : vector<2x8x8xf32>
    %646 = arith.truncf %645 : vector<2x8x8xf32> to vector<2x8x8xbf16>
    %647 = vector.extract_strided_slice %565 {offsets = [0, 0, 24], sizes = [2, 8, 8], strides = [1, 1, 1]} : vector<2x8x32xf32> to vector<2x8x8xf32>
    %648 = arith.truncf %647 : vector<2x8x8xf32> to vector<2x8x8xbf16>
    "tpu.trace_start"() <{level = 10 : i32, message = "bqk,bkd->bqd"}> : () -> ()
    %cst_200 = arith.constant dense<0.000000e+00> : vector<2x8x8xf32>
    %649 = tpu.matmul %646, %648, %cst_200 {dimension_numbers = #tpu.dot_dimension_numbers<[2], [1], [1], [2], [0, 0, 0, 1, 1, 2], [0], [0]>} : vector<2x8x8xbf16>, vector<2x8x8xbf16>, vector<2x8x8xf32> -> vector<2x8x8xf32>
    "tpu.trace_stop"() : () -> ()
    %650 = vector.shape_cast %582 : vector<2x8x8xf32> to vector<2x1x8x8xf32>
    %651 = vector.shape_cast %603 : vector<2x8x8xf32> to vector<2x1x8x8xf32>
    %652 = vector.shape_cast %624 : vector<2x8x8xf32> to vector<2x1x8x8xf32>
    %653 = vector.shape_cast %645 : vector<2x8x8xf32> to vector<2x1x8x8xf32>
    %654 = tpu.concatenate %650, %651, %652, %653 in 1 : vector<2x1x8x8xf32>, vector<2x1x8x8xf32>, vector<2x1x8x8xf32>, vector<2x1x8x8xf32> -> vector<2x4x8x8xf32>
    %c0_201 = arith.constant 0 : index
    %c0_202 = arith.constant 0 : index
    %c0_203 = arith.constant 0 : index
    %c0_204 = arith.constant 0 : index
    %c0_205 = arith.constant 0 : index
    %655 = vector.load %arg24[%c0_201, %c0_202, %c0_203, %c0_204, %c0_205] : memref<2x2x4x8x8xf32, #tpu.memory_space<vmem>>, vector<1x2x4x8x8xf32>
    %656 = vector.shape_cast %655 : vector<1x2x4x8x8xf32> to vector<2x4x8x8xf32>
    %657 = vector.shape_cast %654 : vector<2x4x8x8xf32> to vector<1x2x4x8x8xf32>
    tpu.vector_store %arg24[%c0_201, %c0_202, %c0_203, %c0_204, %c0_205], %657 {strides = array<i32>} : memref<2x2x4x8x8xf32, #tpu.memory_space<vmem>>, vector<1x2x4x8x8xf32>,
    %658 = tpu.concatenate %586, %607, %628, %649 in 2 : vector<2x8x8xf32>, vector<2x8x8xf32>, vector<2x8x8xf32>, vector<2x8x8xf32> -> vector<2x8x32xf32>
    %659 = vector.shape_cast %658 : vector<2x8x32xf32> to vector<16x32xf32>
    %660 = arith.truncf %659 : vector<16x32xf32> to vector<16x32xbf16>
    %cst_206 = arith.constant dense<0.000000e+00> : vector<16x32xf32>
    %661 = tpu.matmul %660, %562, %cst_206 {dimension_numbers = #tpu.dot_dimension_numbers<[1], [0], [0], [1], [0, 0, 1, 1], [], []>} : vector<16x32xbf16>, vector<32x32xbf16>, vector<16x32xf32> -> vector<16x32xf32>
    %662 = vector.broadcast %506 : vector<1x32xf32> to vector<16x32xf32>
    %663 = arith.addf %661, %662 : vector<16x32xf32>
    %664 = arith.addf %482, %663 : vector<16x32xf32>
    %cst_207 = arith.constant dense<0.000000e+00> : vector<16xf32>
    %665 = vector.multi_reduction <add>, %664, %cst_207 [1] : vector<16x32xf32> to vector<16xf32>
    %666 = vector.shape_cast %665 : vector<16xf32> to vector<16x1xf32>
    %cst_208 = arith.constant 3.200000e+01 : f32
    %667 = vector.broadcast %cst_208 : f32 to vector<16x1xf32>
    %668 = arith.divf %666, %667 : vector<16x1xf32>
    %669 = vector.broadcast %668 : vector<16x1xf32> to vector<16x32xf32>
    %670 = arith.subf %664, %669 : vector<16x32xf32>
    %671 = arith.mulf %670, %670 : vector<16x32xf32>
    %cst_209 = arith.constant dense<0.000000e+00> : vector<16xf32>
    %672 = vector.multi_reduction <add>, %671, %cst_209 [1] : vector<16x32xf32> to vector<16xf32>
    %673 = vector.shape_cast %672 : vector<16xf32> to vector<16x1xf32>
    %cst_210 = arith.constant 3.200000e+01 : f32
    %674 = vector.broadcast %cst_210 : f32 to vector<16x1xf32>
    %675 = arith.divf %673, %674 : vector<16x1xf32>
    %cst_211 = arith.constant 9.99999974E-6 : f32
    %676 = vector.broadcast %cst_211 : f32 to vector<16x1xf32>
    %677 = arith.addf %675, %676 : vector<16x1xf32>
    %678 = math.rsqrt %677 : vector<16x1xf32>
    %679 = vector.broadcast %678 : vector<16x1xf32> to vector<16x32xf32>
    %680 = arith.mulf %670, %679 : vector<16x32xf32>
    %681 = vector.broadcast %512 : vector<1x32xf32> to vector<16x32xf32>
    %682 = arith.mulf %680, %681 : vector<16x32xf32>
    %683 = vector.broadcast %513 : vector<1x32xf32> to vector<16x32xf32>
    %684 = arith.addf %682, %683 : vector<16x32xf32>
    %c1_i32_212 = arith.constant 1 : i32
    %685 = tpu.dynamic_rotate %684 by %c1_i32_212 dim 0 : vector<16x32xf32>, i32 -> vector<16x32xf32>
    %c-1_i32_213 = arith.constant -1 : i32
    %686 = vector.broadcast %c-1_i32_213 : i32 to vector<16x1xi32>
    %687 = arith.addi %500, %686 : vector<16x1xi32>
    %c0_i32_214 = arith.constant 0 : i32
    %688 = vector.broadcast %c0_i32_214 : i32 to vector<16x1xi32>
    %689 = arith.cmpi sge, %687, %688 : vector<16x1xi32>
    %c-1_i32_215 = arith.constant -1 : i32
    %690 = vector.broadcast %c-1_i32_215 : i32 to vector<16x1xi32>
    %691 = arith.addi %500, %690 : vector<16x1xi32>
    %c8_i32_216 = arith.constant 8 : i32
    %692 = vector.broadcast %c8_i32_216 : i32 to vector<16x1xi32>
    %693 = arith.cmpi slt, %691, %692 : vector<16x1xi32>
    %694 = arith.andi %689, %693 : vector<16x1xi1>
    %cst_217 = arith.constant 0.000000e+00 : f32
    %695 = vector.shape_cast %694 : vector<16x1xi1> to vector<16x1xi1>
    %696 = vector.broadcast %695 : vector<16x1xi1> to vector<16x32xi1>
    %697 = vector.broadcast %cst_217 : f32 to vector<16x32xf32>
    %698 = arith.select %696, %685, %697 : vector<16x32xi1>, vector<16x32xf32>
    %c15_i32_218 = arith.constant 15 : i32
    %699 = tpu.dynamic_rotate %684 by %c15_i32_218 dim 0 : vector<16x32xf32>, i32 -> vector<16x32xf32>
    %c1_i32_219 = arith.constant 1 : i32
    %700 = vector.broadcast %c1_i32_219 : i32 to vector<16x1xi32>
    %701 = arith.addi %500, %700 : vector<16x1xi32>
    %c0_i32_220 = arith.constant 0 : i32
    %702 = vector.broadcast %c0_i32_220 : i32 to vector<16x1xi32>
    %703 = arith.cmpi sge, %701, %702 : vector<16x1xi32>
    %c1_i32_221 = arith.constant 1 : i32
    %704 = vector.broadcast %c1_i32_221 : i32 to vector<16x1xi32>
    %705 = arith.addi %500, %704 : vector<16x1xi32>
    %c8_i32_222 = arith.constant 8 : i32
    %706 = vector.broadcast %c8_i32_222 : i32 to vector<16x1xi32>
    %707 = arith.cmpi slt, %705, %706 : vector<16x1xi32>
    %708 = arith.andi %703, %707 : vector<16x1xi1>
    %cst_223 = arith.constant 0.000000e+00 : f32
    %709 = vector.shape_cast %708 : vector<16x1xi1> to vector<16x1xi1>
    %710 = vector.broadcast %709 : vector<16x1xi1> to vector<16x32xi1>
    %711 = vector.broadcast %cst_223 : f32 to vector<16x32xf32>
    %712 = arith.select %710, %699, %711 : vector<16x32xi1>, vector<16x32xf32>
    %713 = tpu.concatenate %698, %684, %712 in 1 : vector<16x32xf32>, vector<16x32xf32>, vector<16x32xf32> -> vector<16x96xf32>
    %c0_224 = arith.constant 0 : index
    %c0_225 = arith.constant 0 : index
    %c0_226 = arith.constant 0 : index
    %714 = vector.load %arg13[%c0_224, %c0_225, %c0_226] : memref<2x96x32xbf16, #tpu.memory_space<vmem>>, vector<1x96x32xbf16>
    %715 = vector.shape_cast %714 : vector<1x96x32xbf16> to vector<96x32xbf16>
    %716 = arith.truncf %713 : vector<16x96xf32> to vector<16x96xbf16>
    %cst_227 = arith.constant dense<0.000000e+00> : vector<16x32xf32>
    %717 = tpu.matmul %716, %715, %cst_227 {dimension_numbers = #tpu.dot_dimension_numbers<[1], [0], [0], [1], [0, 0, 1, 1], [], []>} : vector<16x96xbf16>, vector<96x32xbf16>, vector<16x32xf32> -> vector<16x32xf32>
    %718 = vector.broadcast %507 : vector<1x32xf32> to vector<16x32xf32>
    %719 = arith.addf %717, %718 : vector<16x32xf32>
    %c0_228 = arith.constant 0 : index
    %c0_229 = arith.constant 0 : index
    %c0_230 = arith.constant 0 : index
    %720 = vector.load %arg14[%c0_228, %c0_229, %c0_230] : memref<2x96x64xbf16, #tpu.memory_space<vmem>>, vector<1x96x64xbf16>
    %721 = vector.shape_cast %720 : vector<1x96x64xbf16> to vector<96x64xbf16>
    %722 = arith.truncf %480 : vector<16x96xf32> to vector<16x96xbf16>
    %cst_231 = arith.constant dense<0.000000e+00> : vector<16x64xf32>
    %723 = tpu.matmul %722, %721, %cst_231 {dimension_numbers = #tpu.dot_dimension_numbers<[1], [0], [0], [1], [0, 0, 1, 1], [], []>} : vector<16x96xbf16>, vector<96x64xbf16>, vector<16x64xf32> -> vector<16x64xf32>
    %724 = vector.extract_strided_slice %723 {offsets = [0, 0], sizes = [16, 32], strides = [1, 1]} : vector<16x64xf32> to vector<16x32xf32>
    %725 = vector.broadcast %508 : vector<1x32xf32> to vector<16x32xf32>
    %726 = arith.addf %724, %725 : vector<16x32xf32>
    %727 = vector.extract_strided_slice %723 {offsets = [0, 32], sizes = [16, 32], strides = [1, 1]} : vector<16x64xf32> to vector<16x32xf32>
    %728 = vector.broadcast %509 : vector<1x32xf32> to vector<16x32xf32>
    %729 = arith.addf %727, %728 : vector<16x32xf32>
    %c0_232 = arith.constant 0 : index
    %c1_233 = arith.constant 1 : index
    %c0_234 = arith.constant 0 : index
    %c0_235 = arith.constant 0 : index
    %730 = vector.load %arg15[%c0_232, %c1_233, %c0_234, %c0_235] : memref<2x2x32x32xbf16, #tpu.memory_space<vmem>>, vector<1x1x32x32xbf16>
    %731 = vector.shape_cast %730 : vector<1x1x32x32xbf16> to vector<32x32xbf16>
    %732 = vector.shape_cast %719 : vector<16x32xf32> to vector<2x8x32xf32>
    %733 = vector.shape_cast %726 : vector<16x32xf32> to vector<2x8x32xf32>
    %734 = vector.shape_cast %729 : vector<16x32xf32> to vector<2x8x32xf32>
    %735 = vector.extract_strided_slice %732 {offsets = [0, 0, 0], sizes = [2, 8, 8], strides = [1, 1, 1]} : vector<2x8x32xf32> to vector<2x8x8xf32>
    %736 = arith.truncf %735 : vector<2x8x8xf32> to vector<2x8x8xbf16>
    %737 = vector.extract_strided_slice %733 {offsets = [0, 0, 0], sizes = [2, 8, 8], strides = [1, 1, 1]} : vector<2x8x32xf32> to vector<2x8x8xf32>
    %738 = arith.truncf %737 : vector<2x8x8xf32> to vector<2x8x8xbf16>
    "tpu.trace_start"() <{level = 10 : i32, message = "bqd,bkd->bqk"}> : () -> ()
    %cst_236 = arith.constant dense<0.000000e+00> : vector<2x8x8xf32>
    %739 = tpu.matmul %736, %738, %cst_236 {dimension_numbers = #tpu.dot_dimension_numbers<[2], [2], [1], [1], [0, 0, 0, 1, 1, 1], [0], [0]>} : vector<2x8x8xbf16>, vector<2x8x8xbf16>, vector<2x8x8xf32> -> vector<2x8x8xf32>
    "tpu.trace_stop"() : () -> ()
    %cst_237 = arith.constant dense<0xFF800000> : vector<2x8xf32>
    %740 = vector.multi_reduction <maximumf>, %739, %cst_237 [2] : vector<2x8x8xf32> to vector<2x8xf32>
    %741 = vector.shape_cast %740 : vector<2x8xf32> to vector<2x8x1xf32>
    %742 = vector.broadcast %741 : vector<2x8x1xf32> to vector<2x8x8xf32>
    %743 = arith.subf %739, %742 : vector<2x8x8xf32>
    %744 = math.exp %743 : vector<2x8x8xf32>
    %cst_238 = arith.constant dense<0.000000e+00> : vector<2x8xf32>
    %745 = vector.multi_reduction <add>, %744, %cst_238 [2] : vector<2x8x8xf32> to vector<2x8xf32>
    %746 = vector.shape_cast %745 : vector<2x8xf32> to vector<2x8x1xf32>
    %747 = vector.broadcast %746 : vector<2x8x1xf32> to vector<2x8x8xf32>
    %748 = arith.divf %744, %747 : vector<2x8x8xf32>
    %749 = arith.truncf %748 : vector<2x8x8xf32> to vector<2x8x8xbf16>
    %750 = vector.extract_strided_slice %734 {offsets = [0, 0, 0], sizes = [2, 8, 8], strides = [1, 1, 1]} : vector<2x8x32xf32> to vector<2x8x8xf32>
    %751 = arith.truncf %750 : vector<2x8x8xf32> to vector<2x8x8xbf16>
    "tpu.trace_start"() <{level = 10 : i32, message = "bqk,bkd->bqd"}> : () -> ()
    %cst_239 = arith.constant dense<0.000000e+00> : vector<2x8x8xf32>
    %752 = tpu.matmul %749, %751, %cst_239 {dimension_numbers = #tpu.dot_dimension_numbers<[2], [1], [1], [2], [0, 0, 0, 1, 1, 2], [0], [0]>} : vector<2x8x8xbf16>, vector<2x8x8xbf16>, vector<2x8x8xf32> -> vector<2x8x8xf32>
    "tpu.trace_stop"() : () -> ()
    %753 = vector.extract_strided_slice %732 {offsets = [0, 0, 8], sizes = [2, 8, 8], strides = [1, 1, 1]} : vector<2x8x32xf32> to vector<2x8x8xf32>
    %754 = arith.truncf %753 : vector<2x8x8xf32> to vector<2x8x8xbf16>
    %755 = vector.extract_strided_slice %733 {offsets = [0, 0, 8], sizes = [2, 8, 8], strides = [1, 1, 1]} : vector<2x8x32xf32> to vector<2x8x8xf32>
    %756 = arith.truncf %755 : vector<2x8x8xf32> to vector<2x8x8xbf16>
    "tpu.trace_start"() <{level = 10 : i32, message = "bqd,bkd->bqk"}> : () -> ()
    %cst_240 = arith.constant dense<0.000000e+00> : vector<2x8x8xf32>
    %757 = tpu.matmul %754, %756, %cst_240 {dimension_numbers = #tpu.dot_dimension_numbers<[2], [2], [1], [1], [0, 0, 0, 1, 1, 1], [0], [0]>} : vector<2x8x8xbf16>, vector<2x8x8xbf16>, vector<2x8x8xf32> -> vector<2x8x8xf32>
    "tpu.trace_stop"() : () -> ()
    %cst_241 = arith.constant dense<0xFF800000> : vector<2x8xf32>
    %758 = vector.multi_reduction <maximumf>, %757, %cst_241 [2] : vector<2x8x8xf32> to vector<2x8xf32>
    %759 = vector.shape_cast %758 : vector<2x8xf32> to vector<2x8x1xf32>
    %760 = vector.broadcast %759 : vector<2x8x1xf32> to vector<2x8x8xf32>
    %761 = arith.subf %757, %760 : vector<2x8x8xf32>
    %762 = math.exp %761 : vector<2x8x8xf32>
    %cst_242 = arith.constant dense<0.000000e+00> : vector<2x8xf32>
    %763 = vector.multi_reduction <add>, %762, %cst_242 [2] : vector<2x8x8xf32> to vector<2x8xf32>
    %764 = vector.shape_cast %763 : vector<2x8xf32> to vector<2x8x1xf32>
    %765 = vector.broadcast %764 : vector<2x8x1xf32> to vector<2x8x8xf32>
    %766 = arith.divf %762, %765 : vector<2x8x8xf32>
    %767 = arith.truncf %766 : vector<2x8x8xf32> to vector<2x8x8xbf16>
    %768 = vector.extract_strided_slice %734 {offsets = [0, 0, 8], sizes = [2, 8, 8], strides = [1, 1, 1]} : vector<2x8x32xf32> to vector<2x8x8xf32>
    %769 = arith.truncf %768 : vector<2x8x8xf32> to vector<2x8x8xbf16>
    "tpu.trace_start"() <{level = 10 : i32, message = "bqk,bkd->bqd"}> : () -> ()
    %cst_243 = arith.constant dense<0.000000e+00> : vector<2x8x8xf32>
    %770 = tpu.matmul %767, %769, %cst_243 {dimension_numbers = #tpu.dot_dimension_numbers<[2], [1], [1], [2], [0, 0, 0, 1, 1, 2], [0], [0]>} : vector<2x8x8xbf16>, vector<2x8x8xbf16>, vector<2x8x8xf32> -> vector<2x8x8xf32>
    "tpu.trace_stop"() : () -> ()
    %771 = vector.extract_strided_slice %732 {offsets = [0, 0, 16], sizes = [2, 8, 8], strides = [1, 1, 1]} : vector<2x8x32xf32> to vector<2x8x8xf32>
    %772 = arith.truncf %771 : vector<2x8x8xf32> to vector<2x8x8xbf16>
    %773 = vector.extract_strided_slice %733 {offsets = [0, 0, 16], sizes = [2, 8, 8], strides = [1, 1, 1]} : vector<2x8x32xf32> to vector<2x8x8xf32>
    %774 = arith.truncf %773 : vector<2x8x8xf32> to vector<2x8x8xbf16>
    "tpu.trace_start"() <{level = 10 : i32, message = "bqd,bkd->bqk"}> : () -> ()
    %cst_244 = arith.constant dense<0.000000e+00> : vector<2x8x8xf32>
    %775 = tpu.matmul %772, %774, %cst_244 {dimension_numbers = #tpu.dot_dimension_numbers<[2], [2], [1], [1], [0, 0, 0, 1, 1, 1], [0], [0]>} : vector<2x8x8xbf16>, vector<2x8x8xbf16>, vector<2x8x8xf32> -> vector<2x8x8xf32>
    "tpu.trace_stop"() : () -> ()
    %cst_245 = arith.constant dense<0xFF800000> : vector<2x8xf32>
    %776 = vector.multi_reduction <maximumf>, %775, %cst_245 [2] : vector<2x8x8xf32> to vector<2x8xf32>
    %777 = vector.shape_cast %776 : vector<2x8xf32> to vector<2x8x1xf32>
    %778 = vector.broadcast %777 : vector<2x8x1xf32> to vector<2x8x8xf32>
    %779 = arith.subf %775, %778 : vector<2x8x8xf32>
    %780 = math.exp %779 : vector<2x8x8xf32>
    %cst_246 = arith.constant dense<0.000000e+00> : vector<2x8xf32>
    %781 = vector.multi_reduction <add>, %780, %cst_246 [2] : vector<2x8x8xf32> to vector<2x8xf32>
    %782 = vector.shape_cast %781 : vector<2x8xf32> to vector<2x8x1xf32>
    %783 = vector.broadcast %782 : vector<2x8x1xf32> to vector<2x8x8xf32>
    %784 = arith.divf %780, %783 : vector<2x8x8xf32>
    %785 = arith.truncf %784 : vector<2x8x8xf32> to vector<2x8x8xbf16>
    %786 = vector.extract_strided_slice %734 {offsets = [0, 0, 16], sizes = [2, 8, 8], strides = [1, 1, 1]} : vector<2x8x32xf32> to vector<2x8x8xf32>
    %787 = arith.truncf %786 : vector<2x8x8xf32> to vector<2x8x8xbf16>
    "tpu.trace_start"() <{level = 10 : i32, message = "bqk,bkd->bqd"}> : () -> ()
    %cst_247 = arith.constant dense<0.000000e+00> : vector<2x8x8xf32>
    %788 = tpu.matmul %785, %787, %cst_247 {dimension_numbers = #tpu.dot_dimension_numbers<[2], [1], [1], [2], [0, 0, 0, 1, 1, 2], [0], [0]>} : vector<2x8x8xbf16>, vector<2x8x8xbf16>, vector<2x8x8xf32> -> vector<2x8x8xf32>
    "tpu.trace_stop"() : () -> ()
    %789 = vector.extract_strided_slice %732 {offsets = [0, 0, 24], sizes = [2, 8, 8], strides = [1, 1, 1]} : vector<2x8x32xf32> to vector<2x8x8xf32>
    %790 = arith.truncf %789 : vector<2x8x8xf32> to vector<2x8x8xbf16>
    %791 = vector.extract_strided_slice %733 {offsets = [0, 0, 24], sizes = [2, 8, 8], strides = [1, 1, 1]} : vector<2x8x32xf32> to vector<2x8x8xf32>
    %792 = arith.truncf %791 : vector<2x8x8xf32> to vector<2x8x8xbf16>
    "tpu.trace_start"() <{level = 10 : i32, message = "bqd,bkd->bqk"}> : () -> ()
    %cst_248 = arith.constant dense<0.000000e+00> : vector<2x8x8xf32>
    %793 = tpu.matmul %790, %792, %cst_248 {dimension_numbers = #tpu.dot_dimension_numbers<[2], [2], [1], [1], [0, 0, 0, 1, 1, 1], [0], [0]>} : vector<2x8x8xbf16>, vector<2x8x8xbf16>, vector<2x8x8xf32> -> vector<2x8x8xf32>
    "tpu.trace_stop"() : () -> ()
    %cst_249 = arith.constant dense<0xFF800000> : vector<2x8xf32>
    %794 = vector.multi_reduction <maximumf>, %793, %cst_249 [2] : vector<2x8x8xf32> to vector<2x8xf32>
    %795 = vector.shape_cast %794 : vector<2x8xf32> to vector<2x8x1xf32>
    %796 = vector.broadcast %795 : vector<2x8x1xf32> to vector<2x8x8xf32>
    %797 = arith.subf %793, %796 : vector<2x8x8xf32>
    %798 = math.exp %797 : vector<2x8x8xf32>
    %cst_250 = arith.constant dense<0.000000e+00> : vector<2x8xf32>
    %799 = vector.multi_reduction <add>, %798, %cst_250 [2] : vector<2x8x8xf32> to vector<2x8xf32>
    %800 = vector.shape_cast %799 : vector<2x8xf32> to vector<2x8x1xf32>
    %801 = vector.broadcast %800 : vector<2x8x1xf32> to vector<2x8x8xf32>
    %802 = arith.divf %798, %801 : vector<2x8x8xf32>
    %803 = arith.truncf %802 : vector<2x8x8xf32> to vector<2x8x8xbf16>
    %804 = vector.extract_strided_slice %734 {offsets = [0, 0, 24], sizes = [2, 8, 8], strides = [1, 1, 1]} : vector<2x8x32xf32> to vector<2x8x8xf32>
    %805 = arith.truncf %804 : vector<2x8x8xf32> to vector<2x8x8xbf16>
    "tpu.trace_start"() <{level = 10 : i32, message = "bqk,bkd->bqd"}> : () -> ()
    %cst_251 = arith.constant dense<0.000000e+00> : vector<2x8x8xf32>
    %806 = tpu.matmul %803, %805, %cst_251 {dimension_numbers = #tpu.dot_dimension_numbers<[2], [1], [1], [2], [0, 0, 0, 1, 1, 2], [0], [0]>} : vector<2x8x8xbf16>, vector<2x8x8xbf16>, vector<2x8x8xf32> -> vector<2x8x8xf32>
    "tpu.trace_stop"() : () -> ()
    %807 = vector.shape_cast %748 : vector<2x8x8xf32> to vector<2x1x8x8xf32>
    %808 = vector.shape_cast %766 : vector<2x8x8xf32> to vector<2x1x8x8xf32>
    %809 = vector.shape_cast %784 : vector<2x8x8xf32> to vector<2x1x8x8xf32>
    %810 = vector.shape_cast %802 : vector<2x8x8xf32> to vector<2x1x8x8xf32>
    %811 = tpu.concatenate %807, %808, %809, %810 in 1 : vector<2x1x8x8xf32>, vector<2x1x8x8xf32>, vector<2x1x8x8xf32>, vector<2x1x8x8xf32> -> vector<2x4x8x8xf32>
    %c0_252 = arith.constant 0 : index
    %c0_253 = arith.constant 0 : index
    %c0_254 = arith.constant 0 : index
    %c0_255 = arith.constant 0 : index
    %c0_256 = arith.constant 0 : index
    %812 = vector.load %arg25[%c0_252, %c0_253, %c0_254, %c0_255, %c0_256] : memref<2x2x4x8x8xf32, #tpu.memory_space<vmem>>, vector<1x2x4x8x8xf32>
    %813 = vector.shape_cast %812 : vector<1x2x4x8x8xf32> to vector<2x4x8x8xf32>
    %814 = vector.shape_cast %811 : vector<2x4x8x8xf32> to vector<1x2x4x8x8xf32>
    tpu.vector_store %arg25[%c0_252, %c0_253, %c0_254, %c0_255, %c0_256], %814 {strides = array<i32>} : memref<2x2x4x8x8xf32, #tpu.memory_space<vmem>>, vector<1x2x4x8x8xf32>,
    %815 = tpu.concatenate %752, %770, %788, %806 in 2 : vector<2x8x8xf32>, vector<2x8x8xf32>, vector<2x8x8xf32>, vector<2x8x8xf32> -> vector<2x8x32xf32>
    %816 = vector.shape_cast %815 : vector<2x8x32xf32> to vector<16x32xf32>
    %817 = arith.truncf %816 : vector<16x32xf32> to vector<16x32xbf16>
    %cst_257 = arith.constant dense<0.000000e+00> : vector<16x32xf32>
    %818 = tpu.matmul %817, %731, %cst_257 {dimension_numbers = #tpu.dot_dimension_numbers<[1], [0], [0], [1], [0, 0, 1, 1], [], []>} : vector<16x32xbf16>, vector<32x32xbf16>, vector<16x32xf32> -> vector<16x32xf32>
    %819 = vector.broadcast %510 : vector<1x32xf32> to vector<16x32xf32>
    %820 = arith.addf %818, %819 : vector<16x32xf32>
    %821 = arith.addf %684, %820 : vector<16x32xf32>
    %cst_258 = arith.constant dense<0.000000e+00> : vector<16xf32>
    %822 = vector.multi_reduction <add>, %821, %cst_258 [1] : vector<16x32xf32> to vector<16xf32>
    %823 = vector.shape_cast %822 : vector<16xf32> to vector<16x1xf32>
    %cst_259 = arith.constant 3.200000e+01 : f32
    %824 = vector.broadcast %cst_259 : f32 to vector<16x1xf32>
    %825 = arith.divf %823, %824 : vector<16x1xf32>
    %826 = vector.broadcast %825 : vector<16x1xf32> to vector<16x32xf32>
    %827 = arith.subf %821, %826 : vector<16x32xf32>
    %828 = arith.mulf %827, %827 : vector<16x32xf32>
    %cst_260 = arith.constant dense<0.000000e+00> : vector<16xf32>
    %829 = vector.multi_reduction <add>, %828, %cst_260 [1] : vector<16x32xf32> to vector<16xf32>
    %830 = vector.shape_cast %829 : vector<16xf32> to vector<16x1xf32>
    %cst_261 = arith.constant 3.200000e+01 : f32
    %831 = vector.broadcast %cst_261 : f32 to vector<16x1xf32>
    %832 = arith.divf %830, %831 : vector<16x1xf32>
    %cst_262 = arith.constant 9.99999974E-6 : f32
    %833 = vector.broadcast %cst_262 : f32 to vector<16x1xf32>
    %834 = arith.addf %832, %833 : vector<16x1xf32>
    %835 = math.rsqrt %834 : vector<16x1xf32>
    %836 = vector.broadcast %835 : vector<16x1xf32> to vector<16x32xf32>
    %837 = arith.mulf %827, %836 : vector<16x32xf32>
    %838 = vector.broadcast %514 : vector<1x32xf32> to vector<16x32xf32>
    %839 = arith.mulf %837, %838 : vector<16x32xf32>
    %840 = vector.broadcast %515 : vector<1x32xf32> to vector<16x32xf32>
    %841 = arith.addf %839, %840 : vector<16x32xf32>
    %c0_263 = arith.constant 0 : index
    %c0_264 = arith.constant 0 : index
    %c0_265 = arith.constant 0 : index
    %842 = vector.load %arg16[%c0_263, %c0_264, %c0_265] : memref<2x32x64xbf16, #tpu.memory_space<vmem>>, vector<1x32x64xbf16>
    %843 = vector.shape_cast %842 : vector<1x32x64xbf16> to vector<32x64xbf16>
    %844 = arith.truncf %841 : vector<16x32xf32> to vector<16x32xbf16>
    %cst_266 = arith.constant dense<0.000000e+00> : vector<16x64xf32>
    %845 = tpu.matmul %844, %843, %cst_266 {dimension_numbers = #tpu.dot_dimension_numbers<[1], [0], [0], [1], [0, 0, 1, 1], [], []>} : vector<16x32xbf16>, vector<32x64xbf16>, vector<16x64xf32> -> vector<16x64xf32>
    %846 = vector.broadcast %518 : vector<1x64xf32> to vector<16x64xf32>
    %847 = arith.addf %845, %846 : vector<16x64xf32>
    %cst_267 = arith.constant 0.000000e+00 : f32
    %848 = vector.broadcast %cst_267 : f32 to vector<16x64xf32>
    %849 = arith.maximumf %847, %848 : vector<16x64xf32>
    %c0_268 = arith.constant 0 : index
    %c0_269 = arith.constant 0 : index
    %c0_270 = arith.constant 0 : index
    %850 = vector.load %arg17[%c0_268, %c0_269, %c0_270] : memref<2x64x32xbf16, #tpu.memory_space<vmem>>, vector<1x64x32xbf16>
    %851 = vector.shape_cast %850 : vector<1x64x32xbf16> to vector<64x32xbf16>
    %852 = arith.truncf %849 : vector<16x64xf32> to vector<16x64xbf16>
    %cst_271 = arith.constant dense<0.000000e+00> : vector<16x32xf32>
    %853 = tpu.matmul %852, %851, %cst_271 {dimension_numbers = #tpu.dot_dimension_numbers<[1], [0], [0], [1], [0, 0, 1, 1], [], []>} : vector<16x64xbf16>, vector<64x32xbf16>, vector<16x32xf32> -> vector<16x32xf32>
    %854 = arith.addf %841, %853 : vector<16x32xf32>
    %855 = vector.broadcast %511 : vector<1x32xf32> to vector<16x32xf32>
    %856 = arith.addf %854, %855 : vector<16x32xf32>
    %cst_272 = arith.constant dense<0.000000e+00> : vector<16xf32>
    %857 = vector.multi_reduction <add>, %856, %cst_272 [1] : vector<16x32xf32> to vector<16xf32>
    %858 = vector.shape_cast %857 : vector<16xf32> to vector<16x1xf32>
    %cst_273 = arith.constant 3.200000e+01 : f32
    %859 = vector.broadcast %cst_273 : f32 to vector<16x1xf32>
    %860 = arith.divf %858, %859 : vector<16x1xf32>
    %861 = vector.broadcast %860 : vector<16x1xf32> to vector<16x32xf32>
    %862 = arith.subf %856, %861 : vector<16x32xf32>
    %863 = arith.mulf %862, %862 : vector<16x32xf32>
    %cst_274 = arith.constant dense<0.000000e+00> : vector<16xf32>
    %864 = vector.multi_reduction <add>, %863, %cst_274 [1] : vector<16x32xf32> to vector<16xf32>
    %865 = vector.shape_cast %864 : vector<16xf32> to vector<16x1xf32>
    %cst_275 = arith.constant 3.200000e+01 : f32
    %866 = vector.broadcast %cst_275 : f32 to vector<16x1xf32>
    %867 = arith.divf %865, %866 : vector<16x1xf32>
    %cst_276 = arith.constant 9.99999974E-6 : f32
    %868 = vector.broadcast %cst_276 : f32 to vector<16x1xf32>
    %869 = arith.addf %867, %868 : vector<16x1xf32>
    %870 = math.rsqrt %869 : vector<16x1xf32>
    %871 = vector.broadcast %870 : vector<16x1xf32> to vector<16x32xf32>
    %872 = arith.mulf %862, %871 : vector<16x32xf32>
    %873 = vector.broadcast %516 : vector<1x32xf32> to vector<16x32xf32>
    %874 = arith.mulf %872, %873 : vector<16x32xf32>
    %875 = vector.broadcast %517 : vector<1x32xf32> to vector<16x32xf32>
    %876 = arith.addf %874, %875 : vector<16x32xf32>
    %c1_277 = arith.constant 1 : index
    %c0_278 = arith.constant 0 : index
    %c0_279 = arith.constant 0 : index
    %877 = vector.load %arg18[%c1_277, %c0_278, %c0_279] : memref<2x15x32xf32, #tpu.memory_space<vmem>>, vector<1x15x32xf32>
    %878 = vector.shape_cast %877 : vector<1x15x32xf32> to vector<15x32xf32>
    %879 = vector.extract_strided_slice %878 {offsets = [0, 0], sizes = [1, 32], strides = [1, 1]} : vector<15x32xf32> to vector<1x32xf32>
    %880 = vector.extract_strided_slice %878 {offsets = [1, 0], sizes = [1, 32], strides = [1, 1]} : vector<15x32xf32> to vector<1x32xf32>
    %881 = vector.extract_strided_slice %878 {offsets = [2, 0], sizes = [1, 32], strides = [1, 1]} : vector<15x32xf32> to vector<1x32xf32>
    %882 = vector.extract_strided_slice %878 {offsets = [3, 0], sizes = [1, 32], strides = [1, 1]} : vector<15x32xf32> to vector<1x32xf32>
    %883 = vector.extract_strided_slice %878 {offsets = [4, 0], sizes = [1, 32], strides = [1, 1]} : vector<15x32xf32> to vector<1x32xf32>
    %884 = vector.extract_strided_slice %878 {offsets = [5, 0], sizes = [1, 32], strides = [1, 1]} : vector<15x32xf32> to vector<1x32xf32>
    %885 = vector.extract_strided_slice %878 {offsets = [6, 0], sizes = [1, 32], strides = [1, 1]} : vector<15x32xf32> to vector<1x32xf32>
    %886 = vector.extract_strided_slice %878 {offsets = [7, 0], sizes = [1, 32], strides = [1, 1]} : vector<15x32xf32> to vector<1x32xf32>
    %887 = vector.extract_strided_slice %878 {offsets = [8, 0], sizes = [1, 32], strides = [1, 1]} : vector<15x32xf32> to vector<1x32xf32>
    %888 = vector.extract_strided_slice %878 {offsets = [9, 0], sizes = [1, 32], strides = [1, 1]} : vector<15x32xf32> to vector<1x32xf32>
    %889 = vector.extract_strided_slice %878 {offsets = [10, 0], sizes = [1, 32], strides = [1, 1]} : vector<15x32xf32> to vector<1x32xf32>
    %890 = vector.extract_strided_slice %878 {offsets = [11, 0], sizes = [1, 32], strides = [1, 1]} : vector<15x32xf32> to vector<1x32xf32>
    %891 = vector.extract_strided_slice %878 {offsets = [12, 0], sizes = [1, 32], strides = [1, 1]} : vector<15x32xf32> to vector<1x32xf32>
    %892 = vector.extract_strided_slice %878 {offsets = [13, 0], sizes = [1, 32], strides = [1, 1]} : vector<15x32xf32> to vector<1x32xf32>
    %893 = vector.extract_strided_slice %878 {offsets = [14, 0], sizes = [1, 32], strides = [1, 1]} : vector<15x32xf32> to vector<1x32xf32>
    %c1_280 = arith.constant 1 : index
    %c0_281 = arith.constant 0 : index
    %894 = vector.load %arg19[%c1_280, %c0_281] : memref<2x64xf32, #tpu.memory_space<vmem>>, vector<1x64xf32>
    %c1_i32_282 = arith.constant 1 : i32
    %895 = tpu.dynamic_rotate %876 by %c1_i32_282 dim 0 : vector<16x32xf32>, i32 -> vector<16x32xf32>
    %c-1_i32_283 = arith.constant -1 : i32
    %896 = vector.broadcast %c-1_i32_283 : i32 to vector<16x1xi32>
    %897 = arith.addi %500, %896 : vector<16x1xi32>
    %c0_i32_284 = arith.constant 0 : i32
    %898 = vector.broadcast %c0_i32_284 : i32 to vector<16x1xi32>
    %899 = arith.cmpi sge, %897, %898 : vector<16x1xi32>
    %c-1_i32_285 = arith.constant -1 : i32
    %900 = vector.broadcast %c-1_i32_285 : i32 to vector<16x1xi32>
    %901 = arith.addi %500, %900 : vector<16x1xi32>
    %c8_i32_286 = arith.constant 8 : i32
    %902 = vector.broadcast %c8_i32_286 : i32 to vector<16x1xi32>
    %903 = arith.cmpi slt, %901, %902 : vector<16x1xi32>
    %904 = arith.andi %899, %903 : vector<16x1xi1>
    %cst_287 = arith.constant 0.000000e+00 : f32
    %905 = vector.shape_cast %904 : vector<16x1xi1> to vector<16x1xi1>
    %906 = vector.broadcast %905 : vector<16x1xi1> to vector<16x32xi1>
    %907 = vector.broadcast %cst_287 : f32 to vector<16x32xf32>
    %908 = arith.select %906, %895, %907 : vector<16x32xi1>, vector<16x32xf32>
    %c15_i32_288 = arith.constant 15 : i32
    %909 = tpu.dynamic_rotate %876 by %c15_i32_288 dim 0 : vector<16x32xf32>, i32 -> vector<16x32xf32>
    %c1_i32_289 = arith.constant 1 : i32
    %910 = vector.broadcast %c1_i32_289 : i32 to vector<16x1xi32>
    %911 = arith.addi %500, %910 : vector<16x1xi32>
    %c0_i32_290 = arith.constant 0 : i32
    %912 = vector.broadcast %c0_i32_290 : i32 to vector<16x1xi32>
    %913 = arith.cmpi sge, %911, %912 : vector<16x1xi32>
    %c1_i32_291 = arith.constant 1 : i32
    %914 = vector.broadcast %c1_i32_291 : i32 to vector<16x1xi32>
    %915 = arith.addi %500, %914 : vector<16x1xi32>
    %c8_i32_292 = arith.constant 8 : i32
    %916 = vector.broadcast %c8_i32_292 : i32 to vector<16x1xi32>
    %917 = arith.cmpi slt, %915, %916 : vector<16x1xi32>
    %918 = arith.andi %913, %917 : vector<16x1xi1>
    %cst_293 = arith.constant 0.000000e+00 : f32
    %919 = vector.shape_cast %918 : vector<16x1xi1> to vector<16x1xi1>
    %920 = vector.broadcast %919 : vector<16x1xi1> to vector<16x32xi1>
    %921 = vector.broadcast %cst_293 : f32 to vector<16x32xf32>
    %922 = arith.select %920, %909, %921 : vector<16x32xi1>, vector<16x32xf32>
    %923 = tpu.concatenate %908, %876, %922 in 1 : vector<16x32xf32>, vector<16x32xf32>, vector<16x32xf32> -> vector<16x96xf32>
    %c1_294 = arith.constant 1 : index
    %c0_295 = arith.constant 0 : index
    %c0_296 = arith.constant 0 : index
    %924 = vector.load %arg12[%c1_294, %c0_295, %c0_296] : memref<2x96x96xbf16, #tpu.memory_space<vmem>>, vector<1x96x96xbf16>
    %925 = vector.shape_cast %924 : vector<1x96x96xbf16> to vector<96x96xbf16>
    %926 = arith.truncf %923 : vector<16x96xf32> to vector<16x96xbf16>
    %cst_297 = arith.constant dense<0.000000e+00> : vector<16x96xf32>
    %927 = tpu.matmul %926, %925, %cst_297 {dimension_numbers = #tpu.dot_dimension_numbers<[1], [0], [0], [1], [0, 0, 1, 1], [], []>} : vector<16x96xbf16>, vector<96x96xbf16>, vector<16x96xf32> -> vector<16x96xf32>
    %928 = vector.extract_strided_slice %927 {offsets = [0, 0], sizes = [16, 32], strides = [1, 1]} : vector<16x96xf32> to vector<16x32xf32>
    %929 = vector.broadcast %879 : vector<1x32xf32> to vector<16x32xf32>
    %930 = arith.addf %928, %929 : vector<16x32xf32>
    %931 = vector.extract_strided_slice %927 {offsets = [0, 32], sizes = [16, 32], strides = [1, 1]} : vector<16x96xf32> to vector<16x32xf32>
    %932 = vector.broadcast %880 : vector<1x32xf32> to vector<16x32xf32>
    %933 = arith.addf %931, %932 : vector<16x32xf32>
    %934 = vector.extract_strided_slice %927 {offsets = [0, 64], sizes = [16, 32], strides = [1, 1]} : vector<16x96xf32> to vector<16x32xf32>
    %935 = vector.broadcast %881 : vector<1x32xf32> to vector<16x32xf32>
    %936 = arith.addf %934, %935 : vector<16x32xf32>
    %c1_298 = arith.constant 1 : index
    %c0_299 = arith.constant 0 : index
    %c0_300 = arith.constant 0 : index
    %c0_301 = arith.constant 0 : index
    %937 = vector.load %arg15[%c1_298, %c0_299, %c0_300, %c0_301] : memref<2x2x32x32xbf16, #tpu.memory_space<vmem>>, vector<1x1x32x32xbf16>
    %938 = vector.shape_cast %937 : vector<1x1x32x32xbf16> to vector<32x32xbf16>
    %939 = vector.shape_cast %930 : vector<16x32xf32> to vector<2x8x32xf32>
    %940 = vector.shape_cast %933 : vector<16x32xf32> to vector<2x8x32xf32>
    %941 = vector.shape_cast %936 : vector<16x32xf32> to vector<2x8x32xf32>
    %942 = vector.extract_strided_slice %939 {offsets = [0, 0, 0], sizes = [2, 8, 8], strides = [1, 1, 1]} : vector<2x8x32xf32> to vector<2x8x8xf32>
    %943 = arith.truncf %942 : vector<2x8x8xf32> to vector<2x8x8xbf16>
    %944 = vector.extract_strided_slice %940 {offsets = [0, 0, 0], sizes = [2, 8, 8], strides = [1, 1, 1]} : vector<2x8x32xf32> to vector<2x8x8xf32>
    %945 = arith.truncf %944 : vector<2x8x8xf32> to vector<2x8x8xbf16>
    "tpu.trace_start"() <{level = 10 : i32, message = "bqd,bkd->bqk"}> : () -> ()
    %cst_302 = arith.constant dense<0.000000e+00> : vector<2x8x8xf32>
    %946 = tpu.matmul %943, %945, %cst_302 {dimension_numbers = #tpu.dot_dimension_numbers<[2], [2], [1], [1], [0, 0, 0, 1, 1, 1], [0], [0]>} : vector<2x8x8xbf16>, vector<2x8x8xbf16>, vector<2x8x8xf32> -> vector<2x8x8xf32>
    "tpu.trace_stop"() : () -> ()
    %947 = vector.shape_cast %483 : vector<8x8xf32> to vector<1x8x8xf32>
    %948 = vector.broadcast %947 : vector<1x8x8xf32> to vector<2x8x8xf32>
    %949 = arith.addf %946, %948 : vector<2x8x8xf32>
    %cst_303 = arith.constant dense<0xFF800000> : vector<2x8xf32>
    %950 = vector.multi_reduction <maximumf>, %949, %cst_303 [2] : vector<2x8x8xf32> to vector<2x8xf32>
    %951 = vector.shape_cast %950 : vector<2x8xf32> to vector<2x8x1xf32>
    %952 = vector.broadcast %951 : vector<2x8x1xf32> to vector<2x8x8xf32>
    %953 = arith.subf %949, %952 : vector<2x8x8xf32>
    %954 = math.exp %953 : vector<2x8x8xf32>
    %cst_304 = arith.constant dense<0.000000e+00> : vector<2x8xf32>
    %955 = vector.multi_reduction <add>, %954, %cst_304 [2] : vector<2x8x8xf32> to vector<2x8xf32>
    %956 = vector.shape_cast %955 : vector<2x8xf32> to vector<2x8x1xf32>
    %957 = vector.broadcast %956 : vector<2x8x1xf32> to vector<2x8x8xf32>
    %958 = arith.divf %954, %957 : vector<2x8x8xf32>
    %959 = arith.truncf %958 : vector<2x8x8xf32> to vector<2x8x8xbf16>
    %960 = vector.extract_strided_slice %941 {offsets = [0, 0, 0], sizes = [2, 8, 8], strides = [1, 1, 1]} : vector<2x8x32xf32> to vector<2x8x8xf32>
    %961 = arith.truncf %960 : vector<2x8x8xf32> to vector<2x8x8xbf16>
    "tpu.trace_start"() <{level = 10 : i32, message = "bqk,bkd->bqd"}> : () -> ()
    %cst_305 = arith.constant dense<0.000000e+00> : vector<2x8x8xf32>
    %962 = tpu.matmul %959, %961, %cst_305 {dimension_numbers = #tpu.dot_dimension_numbers<[2], [1], [1], [2], [0, 0, 0, 1, 1, 2], [0], [0]>} : vector<2x8x8xbf16>, vector<2x8x8xbf16>, vector<2x8x8xf32> -> vector<2x8x8xf32>
    "tpu.trace_stop"() : () -> ()
    %963 = vector.extract_strided_slice %939 {offsets = [0, 0, 8], sizes = [2, 8, 8], strides = [1, 1, 1]} : vector<2x8x32xf32> to vector<2x8x8xf32>
    %964 = arith.truncf %963 : vector<2x8x8xf32> to vector<2x8x8xbf16>
    %965 = vector.extract_strided_slice %940 {offsets = [0, 0, 8], sizes = [2, 8, 8], strides = [1, 1, 1]} : vector<2x8x32xf32> to vector<2x8x8xf32>
    %966 = arith.truncf %965 : vector<2x8x8xf32> to vector<2x8x8xbf16>
    "tpu.trace_start"() <{level = 10 : i32, message = "bqd,bkd->bqk"}> : () -> ()
    %cst_306 = arith.constant dense<0.000000e+00> : vector<2x8x8xf32>
    %967 = tpu.matmul %964, %966, %cst_306 {dimension_numbers = #tpu.dot_dimension_numbers<[2], [2], [1], [1], [0, 0, 0, 1, 1, 1], [0], [0]>} : vector<2x8x8xbf16>, vector<2x8x8xbf16>, vector<2x8x8xf32> -> vector<2x8x8xf32>
    "tpu.trace_stop"() : () -> ()
    %968 = vector.shape_cast %483 : vector<8x8xf32> to vector<1x8x8xf32>
    %969 = vector.broadcast %968 : vector<1x8x8xf32> to vector<2x8x8xf32>
    %970 = arith.addf %967, %969 : vector<2x8x8xf32>
    %cst_307 = arith.constant dense<0xFF800000> : vector<2x8xf32>
    %971 = vector.multi_reduction <maximumf>, %970, %cst_307 [2] : vector<2x8x8xf32> to vector<2x8xf32>
    %972 = vector.shape_cast %971 : vector<2x8xf32> to vector<2x8x1xf32>
    %973 = vector.broadcast %972 : vector<2x8x1xf32> to vector<2x8x8xf32>
    %974 = arith.subf %970, %973 : vector<2x8x8xf32>
    %975 = math.exp %974 : vector<2x8x8xf32>
    %cst_308 = arith.constant dense<0.000000e+00> : vector<2x8xf32>
    %976 = vector.multi_reduction <add>, %975, %cst_308 [2] : vector<2x8x8xf32> to vector<2x8xf32>
    %977 = vector.shape_cast %976 : vector<2x8xf32> to vector<2x8x1xf32>
    %978 = vector.broadcast %977 : vector<2x8x1xf32> to vector<2x8x8xf32>
    %979 = arith.divf %975, %978 : vector<2x8x8xf32>
    %980 = arith.truncf %979 : vector<2x8x8xf32> to vector<2x8x8xbf16>
    %981 = vector.extract_strided_slice %941 {offsets = [0, 0, 8], sizes = [2, 8, 8], strides = [1, 1, 1]} : vector<2x8x32xf32> to vector<2x8x8xf32>
    %982 = arith.truncf %981 : vector<2x8x8xf32> to vector<2x8x8xbf16>
    "tpu.trace_start"() <{level = 10 : i32, message = "bqk,bkd->bqd"}> : () -> ()
    %cst_309 = arith.constant dense<0.000000e+00> : vector<2x8x8xf32>
    %983 = tpu.matmul %980, %982, %cst_309 {dimension_numbers = #tpu.dot_dimension_numbers<[2], [1], [1], [2], [0, 0, 0, 1, 1, 2], [0], [0]>} : vector<2x8x8xbf16>, vector<2x8x8xbf16>, vector<2x8x8xf32> -> vector<2x8x8xf32>
    "tpu.trace_stop"() : () -> ()
    %984 = vector.extract_strided_slice %939 {offsets = [0, 0, 16], sizes = [2, 8, 8], strides = [1, 1, 1]} : vector<2x8x32xf32> to vector<2x8x8xf32>
    %985 = arith.truncf %984 : vector<2x8x8xf32> to vector<2x8x8xbf16>
    %986 = vector.extract_strided_slice %940 {offsets = [0, 0, 16], sizes = [2, 8, 8], strides = [1, 1, 1]} : vector<2x8x32xf32> to vector<2x8x8xf32>
    %987 = arith.truncf %986 : vector<2x8x8xf32> to vector<2x8x8xbf16>
    "tpu.trace_start"() <{level = 10 : i32, message = "bqd,bkd->bqk"}> : () -> ()
    %cst_310 = arith.constant dense<0.000000e+00> : vector<2x8x8xf32>
    %988 = tpu.matmul %985, %987, %cst_310 {dimension_numbers = #tpu.dot_dimension_numbers<[2], [2], [1], [1], [0, 0, 0, 1, 1, 1], [0], [0]>} : vector<2x8x8xbf16>, vector<2x8x8xbf16>, vector<2x8x8xf32> -> vector<2x8x8xf32>
    "tpu.trace_stop"() : () -> ()
    %989 = vector.shape_cast %483 : vector<8x8xf32> to vector<1x8x8xf32>
    %990 = vector.broadcast %989 : vector<1x8x8xf32> to vector<2x8x8xf32>
    %991 = arith.addf %988, %990 : vector<2x8x8xf32>
    %cst_311 = arith.constant dense<0xFF800000> : vector<2x8xf32>
    %992 = vector.multi_reduction <maximumf>, %991, %cst_311 [2] : vector<2x8x8xf32> to vector<2x8xf32>
    %993 = vector.shape_cast %992 : vector<2x8xf32> to vector<2x8x1xf32>
    %994 = vector.broadcast %993 : vector<2x8x1xf32> to vector<2x8x8xf32>
    %995 = arith.subf %991, %994 : vector<2x8x8xf32>
    %996 = math.exp %995 : vector<2x8x8xf32>
    %cst_312 = arith.constant dense<0.000000e+00> : vector<2x8xf32>
    %997 = vector.multi_reduction <add>, %996, %cst_312 [2] : vector<2x8x8xf32> to vector<2x8xf32>
    %998 = vector.shape_cast %997 : vector<2x8xf32> to vector<2x8x1xf32>
    %999 = vector.broadcast %998 : vector<2x8x1xf32> to vector<2x8x8xf32>
    %1000 = arith.divf %996, %999 : vector<2x8x8xf32>
    %1001 = arith.truncf %1000 : vector<2x8x8xf32> to vector<2x8x8xbf16>
    %1002 = vector.extract_strided_slice %941 {offsets = [0, 0, 16], sizes = [2, 8, 8], strides = [1, 1, 1]} : vector<2x8x32xf32> to vector<2x8x8xf32>
    %1003 = arith.truncf %1002 : vector<2x8x8xf32> to vector<2x8x8xbf16>
    "tpu.trace_start"() <{level = 10 : i32, message = "bqk,bkd->bqd"}> : () -> ()
    %cst_313 = arith.constant dense<0.000000e+00> : vector<2x8x8xf32>
    %1004 = tpu.matmul %1001, %1003, %cst_313 {dimension_numbers = #tpu.dot_dimension_numbers<[2], [1], [1], [2], [0, 0, 0, 1, 1, 2], [0], [0]>} : vector<2x8x8xbf16>, vector<2x8x8xbf16>, vector<2x8x8xf32> -> vector<2x8x8xf32>
    "tpu.trace_stop"() : () -> ()
    %1005 = vector.extract_strided_slice %939 {offsets = [0, 0, 24], sizes = [2, 8, 8], strides = [1, 1, 1]} : vector<2x8x32xf32> to vector<2x8x8xf32>
    %1006 = arith.truncf %1005 : vector<2x8x8xf32> to vector<2x8x8xbf16>
    %1007 = vector.extract_strided_slice %940 {offsets = [0, 0, 24], sizes = [2, 8, 8], strides = [1, 1, 1]} : vector<2x8x32xf32> to vector<2x8x8xf32>
    %1008 = arith.truncf %1007 : vector<2x8x8xf32> to vector<2x8x8xbf16>
    "tpu.trace_start"() <{level = 10 : i32, message = "bqd,bkd->bqk"}> : () -> ()
    %cst_314 = arith.constant dense<0.000000e+00> : vector<2x8x8xf32>
    %1009 = tpu.matmul %1006, %1008, %cst_314 {dimension_numbers = #tpu.dot_dimension_numbers<[2], [2], [1], [1], [0, 0, 0, 1, 1, 1], [0], [0]>} : vector<2x8x8xbf16>, vector<2x8x8xbf16>, vector<2x8x8xf32> -> vector<2x8x8xf32>
    "tpu.trace_stop"() : () -> ()
    %1010 = vector.shape_cast %483 : vector<8x8xf32> to vector<1x8x8xf32>
    %1011 = vector.broadcast %1010 : vector<1x8x8xf32> to vector<2x8x8xf32>
    %1012 = arith.addf %1009, %1011 : vector<2x8x8xf32>
    %cst_315 = arith.constant dense<0xFF800000> : vector<2x8xf32>
    %1013 = vector.multi_reduction <maximumf>, %1012, %cst_315 [2] : vector<2x8x8xf32> to vector<2x8xf32>
    %1014 = vector.shape_cast %1013 : vector<2x8xf32> to vector<2x8x1xf32>
    %1015 = vector.broadcast %1014 : vector<2x8x1xf32> to vector<2x8x8xf32>
    %1016 = arith.subf %1012, %1015 : vector<2x8x8xf32>
    %1017 = math.exp %1016 : vector<2x8x8xf32>
    %cst_316 = arith.constant dense<0.000000e+00> : vector<2x8xf32>
    %1018 = vector.multi_reduction <add>, %1017, %cst_316 [2] : vector<2x8x8xf32> to vector<2x8xf32>
    %1019 = vector.shape_cast %1018 : vector<2x8xf32> to vector<2x8x1xf32>
    %1020 = vector.broadcast %1019 : vector<2x8x1xf32> to vector<2x8x8xf32>
    %1021 = arith.divf %1017, %1020 : vector<2x8x8xf32>
    %1022 = arith.truncf %1021 : vector<2x8x8xf32> to vector<2x8x8xbf16>
    %1023 = vector.extract_strided_slice %941 {offsets = [0, 0, 24], sizes = [2, 8, 8], strides = [1, 1, 1]} : vector<2x8x32xf32> to vector<2x8x8xf32>
    %1024 = arith.truncf %1023 : vector<2x8x8xf32> to vector<2x8x8xbf16>
    "tpu.trace_start"() <{level = 10 : i32, message = "bqk,bkd->bqd"}> : () -> ()
    %cst_317 = arith.constant dense<0.000000e+00> : vector<2x8x8xf32>
    %1025 = tpu.matmul %1022, %1024, %cst_317 {dimension_numbers = #tpu.dot_dimension_numbers<[2], [1], [1], [2], [0, 0, 0, 1, 1, 2], [0], [0]>} : vector<2x8x8xbf16>, vector<2x8x8xbf16>, vector<2x8x8xf32> -> vector<2x8x8xf32>
    "tpu.trace_stop"() : () -> ()
    %1026 = vector.shape_cast %958 : vector<2x8x8xf32> to vector<2x1x8x8xf32>
    %1027 = vector.shape_cast %979 : vector<2x8x8xf32> to vector<2x1x8x8xf32>
    %1028 = vector.shape_cast %1000 : vector<2x8x8xf32> to vector<2x1x8x8xf32>
    %1029 = vector.shape_cast %1021 : vector<2x8x8xf32> to vector<2x1x8x8xf32>
    %1030 = tpu.concatenate %1026, %1027, %1028, %1029 in 1 : vector<2x1x8x8xf32>, vector<2x1x8x8xf32>, vector<2x1x8x8xf32>, vector<2x1x8x8xf32> -> vector<2x4x8x8xf32>
    %c1_318 = arith.constant 1 : index
    %c0_319 = arith.constant 0 : index
    %c0_320 = arith.constant 0 : index
    %c0_321 = arith.constant 0 : index
    %c0_322 = arith.constant 0 : index
    %1031 = vector.load %arg24[%c1_318, %c0_319, %c0_320, %c0_321, %c0_322] : memref<2x2x4x8x8xf32, #tpu.memory_space<vmem>>, vector<1x2x4x8x8xf32>
    %1032 = vector.shape_cast %1031 : vector<1x2x4x8x8xf32> to vector<2x4x8x8xf32>
    %1033 = vector.shape_cast %1030 : vector<2x4x8x8xf32> to vector<1x2x4x8x8xf32>
    tpu.vector_store %arg24[%c1_318, %c0_319, %c0_320, %c0_321, %c0_322], %1033 {strides = array<i32>} : memref<2x2x4x8x8xf32, #tpu.memory_space<vmem>>, vector<1x2x4x8x8xf32>,
    %1034 = tpu.concatenate %962, %983, %1004, %1025 in 2 : vector<2x8x8xf32>, vector<2x8x8xf32>, vector<2x8x8xf32>, vector<2x8x8xf32> -> vector<2x8x32xf32>
    %1035 = vector.shape_cast %1034 : vector<2x8x32xf32> to vector<16x32xf32>
    %1036 = arith.truncf %1035 : vector<16x32xf32> to vector<16x32xbf16>
    %cst_323 = arith.constant dense<0.000000e+00> : vector<16x32xf32>
    %1037 = tpu.matmul %1036, %938, %cst_323 {dimension_numbers = #tpu.dot_dimension_numbers<[1], [0], [0], [1], [0, 0, 1, 1], [], []>} : vector<16x32xbf16>, vector<32x32xbf16>, vector<16x32xf32> -> vector<16x32xf32>
    %1038 = vector.broadcast %882 : vector<1x32xf32> to vector<16x32xf32>
    %1039 = arith.addf %1037, %1038 : vector<16x32xf32>
    %1040 = arith.addf %876, %1039 : vector<16x32xf32>
    %cst_324 = arith.constant dense<0.000000e+00> : vector<16xf32>
    %1041 = vector.multi_reduction <add>, %1040, %cst_324 [1] : vector<16x32xf32> to vector<16xf32>
    %1042 = vector.shape_cast %1041 : vector<16xf32> to vector<16x1xf32>
    %cst_325 = arith.constant 3.200000e+01 : f32
    %1043 = vector.broadcast %cst_325 : f32 to vector<16x1xf32>
    %1044 = arith.divf %1042, %1043 : vector<16x1xf32>
    %1045 = vector.broadcast %1044 : vector<16x1xf32> to vector<16x32xf32>
    %1046 = arith.subf %1040, %1045 : vector<16x32xf32>
    %1047 = arith.mulf %1046, %1046 : vector<16x32xf32>
    %cst_326 = arith.constant dense<0.000000e+00> : vector<16xf32>
    %1048 = vector.multi_reduction <add>, %1047, %cst_326 [1] : vector<16x32xf32> to vector<16xf32>
    %1049 = vector.shape_cast %1048 : vector<16xf32> to vector<16x1xf32>
    %cst_327 = arith.constant 3.200000e+01 : f32
    %1050 = vector.broadcast %cst_327 : f32 to vector<16x1xf32>
    %1051 = arith.divf %1049, %1050 : vector<16x1xf32>
    %cst_328 = arith.constant 9.99999974E-6 : f32
    %1052 = vector.broadcast %cst_328 : f32 to vector<16x1xf32>
    %1053 = arith.addf %1051, %1052 : vector<16x1xf32>
    %1054 = math.rsqrt %1053 : vector<16x1xf32>
    %1055 = vector.broadcast %1054 : vector<16x1xf32> to vector<16x32xf32>
    %1056 = arith.mulf %1046, %1055 : vector<16x32xf32>
    %1057 = vector.broadcast %888 : vector<1x32xf32> to vector<16x32xf32>
    %1058 = arith.mulf %1056, %1057 : vector<16x32xf32>
    %1059 = vector.broadcast %889 : vector<1x32xf32> to vector<16x32xf32>
    %1060 = arith.addf %1058, %1059 : vector<16x32xf32>
    %c1_i32_329 = arith.constant 1 : i32
    %1061 = tpu.dynamic_rotate %1060 by %c1_i32_329 dim 0 : vector<16x32xf32>, i32 -> vector<16x32xf32>
    %c-1_i32_330 = arith.constant -1 : i32
    %1062 = vector.broadcast %c-1_i32_330 : i32 to vector<16x1xi32>
    %1063 = arith.addi %500, %1062 : vector<16x1xi32>
    %c0_i32_331 = arith.constant 0 : i32
    %1064 = vector.broadcast %c0_i32_331 : i32 to vector<16x1xi32>
    %1065 = arith.cmpi sge, %1063, %1064 : vector<16x1xi32>
    %c-1_i32_332 = arith.constant -1 : i32
    %1066 = vector.broadcast %c-1_i32_332 : i32 to vector<16x1xi32>
    %1067 = arith.addi %500, %1066 : vector<16x1xi32>
    %c8_i32_333 = arith.constant 8 : i32
    %1068 = vector.broadcast %c8_i32_333 : i32 to vector<16x1xi32>
    %1069 = arith.cmpi slt, %1067, %1068 : vector<16x1xi32>
    %1070 = arith.andi %1065, %1069 : vector<16x1xi1>
    %cst_334 = arith.constant 0.000000e+00 : f32
    %1071 = vector.shape_cast %1070 : vector<16x1xi1> to vector<16x1xi1>
    %1072 = vector.broadcast %1071 : vector<16x1xi1> to vector<16x32xi1>
    %1073 = vector.broadcast %cst_334 : f32 to vector<16x32xf32>
    %1074 = arith.select %1072, %1061, %1073 : vector<16x32xi1>, vector<16x32xf32>
    %c15_i32_335 = arith.constant 15 : i32
    %1075 = tpu.dynamic_rotate %1060 by %c15_i32_335 dim 0 : vector<16x32xf32>, i32 -> vector<16x32xf32>
    %c1_i32_336 = arith.constant 1 : i32
    %1076 = vector.broadcast %c1_i32_336 : i32 to vector<16x1xi32>
    %1077 = arith.addi %500, %1076 : vector<16x1xi32>
    %c0_i32_337 = arith.constant 0 : i32
    %1078 = vector.broadcast %c0_i32_337 : i32 to vector<16x1xi32>
    %1079 = arith.cmpi sge, %1077, %1078 : vector<16x1xi32>
    %c1_i32_338 = arith.constant 1 : i32
    %1080 = vector.broadcast %c1_i32_338 : i32 to vector<16x1xi32>
    %1081 = arith.addi %500, %1080 : vector<16x1xi32>
    %c8_i32_339 = arith.constant 8 : i32
    %1082 = vector.broadcast %c8_i32_339 : i32 to vector<16x1xi32>
    %1083 = arith.cmpi slt, %1081, %1082 : vector<16x1xi32>
    %1084 = arith.andi %1079, %1083 : vector<16x1xi1>
    %cst_340 = arith.constant 0.000000e+00 : f32
    %1085 = vector.shape_cast %1084 : vector<16x1xi1> to vector<16x1xi1>
    %1086 = vector.broadcast %1085 : vector<16x1xi1> to vector<16x32xi1>
    %1087 = vector.broadcast %cst_340 : f32 to vector<16x32xf32>
    %1088 = arith.select %1086, %1075, %1087 : vector<16x32xi1>, vector<16x32xf32>
    %1089 = tpu.concatenate %1074, %1060, %1088 in 1 : vector<16x32xf32>, vector<16x32xf32>, vector<16x32xf32> -> vector<16x96xf32>
    %c1_341 = arith.constant 1 : index
    %c0_342 = arith.constant 0 : index
    %c0_343 = arith.constant 0 : index
    %1090 = vector.load %arg13[%c1_341, %c0_342, %c0_343] : memref<2x96x32xbf16, #tpu.memory_space<vmem>>, vector<1x96x32xbf16>
    %1091 = vector.shape_cast %1090 : vector<1x96x32xbf16> to vector<96x32xbf16>
    %1092 = arith.truncf %1089 : vector<16x96xf32> to vector<16x96xbf16>
    %cst_344 = arith.constant dense<0.000000e+00> : vector<16x32xf32>
    %1093 = tpu.matmul %1092, %1091, %cst_344 {dimension_numbers = #tpu.dot_dimension_numbers<[1], [0], [0], [1], [0, 0, 1, 1], [], []>} : vector<16x96xbf16>, vector<96x32xbf16>, vector<16x32xf32> -> vector<16x32xf32>
    %1094 = vector.broadcast %883 : vector<1x32xf32> to vector<16x32xf32>
    %1095 = arith.addf %1093, %1094 : vector<16x32xf32>
    %c1_345 = arith.constant 1 : index
    %c0_346 = arith.constant 0 : index
    %c0_347 = arith.constant 0 : index
    %1096 = vector.load %arg14[%c1_345, %c0_346, %c0_347] : memref<2x96x64xbf16, #tpu.memory_space<vmem>>, vector<1x96x64xbf16>
    %1097 = vector.shape_cast %1096 : vector<1x96x64xbf16> to vector<96x64xbf16>
    %1098 = arith.truncf %480 : vector<16x96xf32> to vector<16x96xbf16>
    %cst_348 = arith.constant dense<0.000000e+00> : vector<16x64xf32>
    %1099 = tpu.matmul %1098, %1097, %cst_348 {dimension_numbers = #tpu.dot_dimension_numbers<[1], [0], [0], [1], [0, 0, 1, 1], [], []>} : vector<16x96xbf16>, vector<96x64xbf16>, vector<16x64xf32> -> vector<16x64xf32>
    %1100 = vector.extract_strided_slice %1099 {offsets = [0, 0], sizes = [16, 32], strides = [1, 1]} : vector<16x64xf32> to vector<16x32xf32>
    %1101 = vector.broadcast %884 : vector<1x32xf32> to vector<16x32xf32>
    %1102 = arith.addf %1100, %1101 : vector<16x32xf32>
    %1103 = vector.extract_strided_slice %1099 {offsets = [0, 32], sizes = [16, 32], strides = [1, 1]} : vector<16x64xf32> to vector<16x32xf32>
    %1104 = vector.broadcast %885 : vector<1x32xf32> to vector<16x32xf32>
    %1105 = arith.addf %1103, %1104 : vector<16x32xf32>
    %c1_349 = arith.constant 1 : index
    %c1_350 = arith.constant 1 : index
    %c0_351 = arith.constant 0 : index
    %c0_352 = arith.constant 0 : index
    %1106 = vector.load %arg15[%c1_349, %c1_350, %c0_351, %c0_352] : memref<2x2x32x32xbf16, #tpu.memory_space<vmem>>, vector<1x1x32x32xbf16>
    %1107 = vector.shape_cast %1106 : vector<1x1x32x32xbf16> to vector<32x32xbf16>
    %1108 = vector.shape_cast %1095 : vector<16x32xf32> to vector<2x8x32xf32>
    %1109 = vector.shape_cast %1102 : vector<16x32xf32> to vector<2x8x32xf32>
    %1110 = vector.shape_cast %1105 : vector<16x32xf32> to vector<2x8x32xf32>
    %1111 = vector.extract_strided_slice %1108 {offsets = [0, 0, 0], sizes = [2, 8, 8], strides = [1, 1, 1]} : vector<2x8x32xf32> to vector<2x8x8xf32>
    %1112 = arith.truncf %1111 : vector<2x8x8xf32> to vector<2x8x8xbf16>
    %1113 = vector.extract_strided_slice %1109 {offsets = [0, 0, 0], sizes = [2, 8, 8], strides = [1, 1, 1]} : vector<2x8x32xf32> to vector<2x8x8xf32>
    %1114 = arith.truncf %1113 : vector<2x8x8xf32> to vector<2x8x8xbf16>
    "tpu.trace_start"() <{level = 10 : i32, message = "bqd,bkd->bqk"}> : () -> ()
    %cst_353 = arith.constant dense<0.000000e+00> : vector<2x8x8xf32>
    %1115 = tpu.matmul %1112, %1114, %cst_353 {dimension_numbers = #tpu.dot_dimension_numbers<[2], [2], [1], [1], [0, 0, 0, 1, 1, 1], [0], [0]>} : vector<2x8x8xbf16>, vector<2x8x8xbf16>, vector<2x8x8xf32> -> vector<2x8x8xf32>
    "tpu.trace_stop"() : () -> ()
    %cst_354 = arith.constant dense<0xFF800000> : vector<2x8xf32>
    %1116 = vector.multi_reduction <maximumf>, %1115, %cst_354 [2] : vector<2x8x8xf32> to vector<2x8xf32>
    %1117 = vector.shape_cast %1116 : vector<2x8xf32> to vector<2x8x1xf32>
    %1118 = vector.broadcast %1117 : vector<2x8x1xf32> to vector<2x8x8xf32>
    %1119 = arith.subf %1115, %1118 : vector<2x8x8xf32>
    %1120 = math.exp %1119 : vector<2x8x8xf32>
    %cst_355 = arith.constant dense<0.000000e+00> : vector<2x8xf32>
    %1121 = vector.multi_reduction <add>, %1120, %cst_355 [2] : vector<2x8x8xf32> to vector<2x8xf32>
    %1122 = vector.shape_cast %1121 : vector<2x8xf32> to vector<2x8x1xf32>
    %1123 = vector.broadcast %1122 : vector<2x8x1xf32> to vector<2x8x8xf32>
    %1124 = arith.divf %1120, %1123 : vector<2x8x8xf32>
    %1125 = arith.truncf %1124 : vector<2x8x8xf32> to vector<2x8x8xbf16>
    %1126 = vector.extract_strided_slice %1110 {offsets = [0, 0, 0], sizes = [2, 8, 8], strides = [1, 1, 1]} : vector<2x8x32xf32> to vector<2x8x8xf32>
    %1127 = arith.truncf %1126 : vector<2x8x8xf32> to vector<2x8x8xbf16>
    "tpu.trace_start"() <{level = 10 : i32, message = "bqk,bkd->bqd"}> : () -> ()
    %cst_356 = arith.constant dense<0.000000e+00> : vector<2x8x8xf32>
    %1128 = tpu.matmul %1125, %1127, %cst_356 {dimension_numbers = #tpu.dot_dimension_numbers<[2], [1], [1], [2], [0, 0, 0, 1, 1, 2], [0], [0]>} : vector<2x8x8xbf16>, vector<2x8x8xbf16>, vector<2x8x8xf32> -> vector<2x8x8xf32>
    "tpu.trace_stop"() : () -> ()
    %1129 = vector.extract_strided_slice %1108 {offsets = [0, 0, 8], sizes = [2, 8, 8], strides = [1, 1, 1]} : vector<2x8x32xf32> to vector<2x8x8xf32>
    %1130 = arith.truncf %1129 : vector<2x8x8xf32> to vector<2x8x8xbf16>
    %1131 = vector.extract_strided_slice %1109 {offsets = [0, 0, 8], sizes = [2, 8, 8], strides = [1, 1, 1]} : vector<2x8x32xf32> to vector<2x8x8xf32>
    %1132 = arith.truncf %1131 : vector<2x8x8xf32> to vector<2x8x8xbf16>
    "tpu.trace_start"() <{level = 10 : i32, message = "bqd,bkd->bqk"}> : () -> ()
    %cst_357 = arith.constant dense<0.000000e+00> : vector<2x8x8xf32>
    %1133 = tpu.matmul %1130, %1132, %cst_357 {dimension_numbers = #tpu.dot_dimension_numbers<[2], [2], [1], [1], [0, 0, 0, 1, 1, 1], [0], [0]>} : vector<2x8x8xbf16>, vector<2x8x8xbf16>, vector<2x8x8xf32> -> vector<2x8x8xf32>
    "tpu.trace_stop"() : () -> ()
    %cst_358 = arith.constant dense<0xFF800000> : vector<2x8xf32>
    %1134 = vector.multi_reduction <maximumf>, %1133, %cst_358 [2] : vector<2x8x8xf32> to vector<2x8xf32>
    %1135 = vector.shape_cast %1134 : vector<2x8xf32> to vector<2x8x1xf32>
    %1136 = vector.broadcast %1135 : vector<2x8x1xf32> to vector<2x8x8xf32>
    %1137 = arith.subf %1133, %1136 : vector<2x8x8xf32>
    %1138 = math.exp %1137 : vector<2x8x8xf32>
    %cst_359 = arith.constant dense<0.000000e+00> : vector<2x8xf32>
    %1139 = vector.multi_reduction <add>, %1138, %cst_359 [2] : vector<2x8x8xf32> to vector<2x8xf32>
    %1140 = vector.shape_cast %1139 : vector<2x8xf32> to vector<2x8x1xf32>
    %1141 = vector.broadcast %1140 : vector<2x8x1xf32> to vector<2x8x8xf32>
    %1142 = arith.divf %1138, %1141 : vector<2x8x8xf32>
    %1143 = arith.truncf %1142 : vector<2x8x8xf32> to vector<2x8x8xbf16>
    %1144 = vector.extract_strided_slice %1110 {offsets = [0, 0, 8], sizes = [2, 8, 8], strides = [1, 1, 1]} : vector<2x8x32xf32> to vector<2x8x8xf32>
    %1145 = arith.truncf %1144 : vector<2x8x8xf32> to vector<2x8x8xbf16>
    "tpu.trace_start"() <{level = 10 : i32, message = "bqk,bkd->bqd"}> : () -> ()
    %cst_360 = arith.constant dense<0.000000e+00> : vector<2x8x8xf32>
    %1146 = tpu.matmul %1143, %1145, %cst_360 {dimension_numbers = #tpu.dot_dimension_numbers<[2], [1], [1], [2], [0, 0, 0, 1, 1, 2], [0], [0]>} : vector<2x8x8xbf16>, vector<2x8x8xbf16>, vector<2x8x8xf32> -> vector<2x8x8xf32>
    "tpu.trace_stop"() : () -> ()
    %1147 = vector.extract_strided_slice %1108 {offsets = [0, 0, 16], sizes = [2, 8, 8], strides = [1, 1, 1]} : vector<2x8x32xf32> to vector<2x8x8xf32>
    %1148 = arith.truncf %1147 : vector<2x8x8xf32> to vector<2x8x8xbf16>
    %1149 = vector.extract_strided_slice %1109 {offsets = [0, 0, 16], sizes = [2, 8, 8], strides = [1, 1, 1]} : vector<2x8x32xf32> to vector<2x8x8xf32>
    %1150 = arith.truncf %1149 : vector<2x8x8xf32> to vector<2x8x8xbf16>
    "tpu.trace_start"() <{level = 10 : i32, message = "bqd,bkd->bqk"}> : () -> ()
    %cst_361 = arith.constant dense<0.000000e+00> : vector<2x8x8xf32>
    %1151 = tpu.matmul %1148, %1150, %cst_361 {dimension_numbers = #tpu.dot_dimension_numbers<[2], [2], [1], [1], [0, 0, 0, 1, 1, 1], [0], [0]>} : vector<2x8x8xbf16>, vector<2x8x8xbf16>, vector<2x8x8xf32> -> vector<2x8x8xf32>
    "tpu.trace_stop"() : () -> ()
    %cst_362 = arith.constant dense<0xFF800000> : vector<2x8xf32>
    %1152 = vector.multi_reduction <maximumf>, %1151, %cst_362 [2] : vector<2x8x8xf32> to vector<2x8xf32>
    %1153 = vector.shape_cast %1152 : vector<2x8xf32> to vector<2x8x1xf32>
    %1154 = vector.broadcast %1153 : vector<2x8x1xf32> to vector<2x8x8xf32>
    %1155 = arith.subf %1151, %1154 : vector<2x8x8xf32>
    %1156 = math.exp %1155 : vector<2x8x8xf32>
    %cst_363 = arith.constant dense<0.000000e+00> : vector<2x8xf32>
    %1157 = vector.multi_reduction <add>, %1156, %cst_363 [2] : vector<2x8x8xf32> to vector<2x8xf32>
    %1158 = vector.shape_cast %1157 : vector<2x8xf32> to vector<2x8x1xf32>
    %1159 = vector.broadcast %1158 : vector<2x8x1xf32> to vector<2x8x8xf32>
    %1160 = arith.divf %1156, %1159 : vector<2x8x8xf32>
    %1161 = arith.truncf %1160 : vector<2x8x8xf32> to vector<2x8x8xbf16>
    %1162 = vector.extract_strided_slice %1110 {offsets = [0, 0, 16], sizes = [2, 8, 8], strides = [1, 1, 1]} : vector<2x8x32xf32> to vector<2x8x8xf32>
    %1163 = arith.truncf %1162 : vector<2x8x8xf32> to vector<2x8x8xbf16>
    "tpu.trace_start"() <{level = 10 : i32, message = "bqk,bkd->bqd"}> : () -> ()
    %cst_364 = arith.constant dense<0.000000e+00> : vector<2x8x8xf32>
    %1164 = tpu.matmul %1161, %1163, %cst_364 {dimension_numbers = #tpu.dot_dimension_numbers<[2], [1], [1], [2], [0, 0, 0, 1, 1, 2], [0], [0]>} : vector<2x8x8xbf16>, vector<2x8x8xbf16>, vector<2x8x8xf32> -> vector<2x8x8xf32>
    "tpu.trace_stop"() : () -> ()
    %1165 = vector.extract_strided_slice %1108 {offsets = [0, 0, 24], sizes = [2, 8, 8], strides = [1, 1, 1]} : vector<2x8x32xf32> to vector<2x8x8xf32>
    %1166 = arith.truncf %1165 : vector<2x8x8xf32> to vector<2x8x8xbf16>
    %1167 = vector.extract_strided_slice %1109 {offsets = [0, 0, 24], sizes = [2, 8, 8], strides = [1, 1, 1]} : vector<2x8x32xf32> to vector<2x8x8xf32>
    %1168 = arith.truncf %1167 : vector<2x8x8xf32> to vector<2x8x8xbf16>
    "tpu.trace_start"() <{level = 10 : i32, message = "bqd,bkd->bqk"}> : () -> ()
    %cst_365 = arith.constant dense<0.000000e+00> : vector<2x8x8xf32>
    %1169 = tpu.matmul %1166, %1168, %cst_365 {dimension_numbers = #tpu.dot_dimension_numbers<[2], [2], [1], [1], [0, 0, 0, 1, 1, 1], [0], [0]>} : vector<2x8x8xbf16>, vector<2x8x8xbf16>, vector<2x8x8xf32> -> vector<2x8x8xf32>
    "tpu.trace_stop"() : () -> ()
    %cst_366 = arith.constant dense<0xFF800000> : vector<2x8xf32>
    %1170 = vector.multi_reduction <maximumf>, %1169, %cst_366 [2] : vector<2x8x8xf32> to vector<2x8xf32>
    %1171 = vector.shape_cast %1170 : vector<2x8xf32> to vector<2x8x1xf32>
    %1172 = vector.broadcast %1171 : vector<2x8x1xf32> to vector<2x8x8xf32>
    %1173 = arith.subf %1169, %1172 : vector<2x8x8xf32>
    %1174 = math.exp %1173 : vector<2x8x8xf32>
    %cst_367 = arith.constant dense<0.000000e+00> : vector<2x8xf32>
    %1175 = vector.multi_reduction <add>, %1174, %cst_367 [2] : vector<2x8x8xf32> to vector<2x8xf32>
    %1176 = vector.shape_cast %1175 : vector<2x8xf32> to vector<2x8x1xf32>
    %1177 = vector.broadcast %1176 : vector<2x8x1xf32> to vector<2x8x8xf32>
    %1178 = arith.divf %1174, %1177 : vector<2x8x8xf32>
    %1179 = arith.truncf %1178 : vector<2x8x8xf32> to vector<2x8x8xbf16>
    %1180 = vector.extract_strided_slice %1110 {offsets = [0, 0, 24], sizes = [2, 8, 8], strides = [1, 1, 1]} : vector<2x8x32xf32> to vector<2x8x8xf32>
    %1181 = arith.truncf %1180 : vector<2x8x8xf32> to vector<2x8x8xbf16>
    "tpu.trace_start"() <{level = 10 : i32, message = "bqk,bkd->bqd"}> : () -> ()
    %cst_368 = arith.constant dense<0.000000e+00> : vector<2x8x8xf32>
    %1182 = tpu.matmul %1179, %1181, %cst_368 {dimension_numbers = #tpu.dot_dimension_numbers<[2], [1], [1], [2], [0, 0, 0, 1, 1, 2], [0], [0]>} : vector<2x8x8xbf16>, vector<2x8x8xbf16>, vector<2x8x8xf32> -> vector<2x8x8xf32>
    "tpu.trace_stop"() : () -> ()
    %1183 = vector.shape_cast %1124 : vector<2x8x8xf32> to vector<2x1x8x8xf32>
    %1184 = vector.shape_cast %1142 : vector<2x8x8xf32> to vector<2x1x8x8xf32>
    %1185 = vector.shape_cast %1160 : vector<2x8x8xf32> to vector<2x1x8x8xf32>
    %1186 = vector.shape_cast %1178 : vector<2x8x8xf32> to vector<2x1x8x8xf32>
    %1187 = tpu.concatenate %1183, %1184, %1185, %1186 in 1 : vector<2x1x8x8xf32>, vector<2x1x8x8xf32>, vector<2x1x8x8xf32>, vector<2x1x8x8xf32> -> vector<2x4x8x8xf32>
    %c1_369 = arith.constant 1 : index
    %c0_370 = arith.constant 0 : index
    %c0_371 = arith.constant 0 : index
    %c0_372 = arith.constant 0 : index
    %c0_373 = arith.constant 0 : index
    %1188 = vector.load %arg25[%c1_369, %c0_370, %c0_371, %c0_372, %c0_373] : memref<2x2x4x8x8xf32, #tpu.memory_space<vmem>>, vector<1x2x4x8x8xf32>
    %1189 = vector.shape_cast %1188 : vector<1x2x4x8x8xf32> to vector<2x4x8x8xf32>
    %1190 = vector.shape_cast %1187 : vector<2x4x8x8xf32> to vector<1x2x4x8x8xf32>
    tpu.vector_store %arg25[%c1_369, %c0_370, %c0_371, %c0_372, %c0_373], %1190 {strides = array<i32>} : memref<2x2x4x8x8xf32, #tpu.memory_space<vmem>>, vector<1x2x4x8x8xf32>,
    %1191 = tpu.concatenate %1128, %1146, %1164, %1182 in 2 : vector<2x8x8xf32>, vector<2x8x8xf32>, vector<2x8x8xf32>, vector<2x8x8xf32> -> vector<2x8x32xf32>
    %1192 = vector.shape_cast %1191 : vector<2x8x32xf32> to vector<16x32xf32>
    %1193 = arith.truncf %1192 : vector<16x32xf32> to vector<16x32xbf16>
    %cst_374 = arith.constant dense<0.000000e+00> : vector<16x32xf32>
    %1194 = tpu.matmul %1193, %1107, %cst_374 {dimension_numbers = #tpu.dot_dimension_numbers<[1], [0], [0], [1], [0, 0, 1, 1], [], []>} : vector<16x32xbf16>, vector<32x32xbf16>, vector<16x32xf32> -> vector<16x32xf32>
    %1195 = vector.broadcast %886 : vector<1x32xf32> to vector<16x32xf32>
    %1196 = arith.addf %1194, %1195 : vector<16x32xf32>
    %1197 = arith.addf %1060, %1196 : vector<16x32xf32>
    %cst_375 = arith.constant dense<0.000000e+00> : vector<16xf32>
    %1198 = vector.multi_reduction <add>, %1197, %cst_375 [1] : vector<16x32xf32> to vector<16xf32>
    %1199 = vector.shape_cast %1198 : vector<16xf32> to vector<16x1xf32>
    %cst_376 = arith.constant 3.200000e+01 : f32
    %1200 = vector.broadcast %cst_376 : f32 to vector<16x1xf32>
    %1201 = arith.divf %1199, %1200 : vector<16x1xf32>
    %1202 = vector.broadcast %1201 : vector<16x1xf32> to vector<16x32xf32>
    %1203 = arith.subf %1197, %1202 : vector<16x32xf32>
    %1204 = arith.mulf %1203, %1203 : vector<16x32xf32>
    %cst_377 = arith.constant dense<0.000000e+00> : vector<16xf32>
    %1205 = vector.multi_reduction <add>, %1204, %cst_377 [1] : vector<16x32xf32> to vector<16xf32>
    %1206 = vector.shape_cast %1205 : vector<16xf32> to vector<16x1xf32>
    %cst_378 = arith.constant 3.200000e+01 : f32
    %1207 = vector.broadcast %cst_378 : f32 to vector<16x1xf32>
    %1208 = arith.divf %1206, %1207 : vector<16x1xf32>
    %cst_379 = arith.constant 9.99999974E-6 : f32
    %1209 = vector.broadcast %cst_379 : f32 to vector<16x1xf32>
    %1210 = arith.addf %1208, %1209 : vector<16x1xf32>
    %1211 = math.rsqrt %1210 : vector<16x1xf32>
    %1212 = vector.broadcast %1211 : vector<16x1xf32> to vector<16x32xf32>
    %1213 = arith.mulf %1203, %1212 : vector<16x32xf32>
    %1214 = vector.broadcast %890 : vector<1x32xf32> to vector<16x32xf32>
    %1215 = arith.mulf %1213, %1214 : vector<16x32xf32>
    %1216 = vector.broadcast %891 : vector<1x32xf32> to vector<16x32xf32>
    %1217 = arith.addf %1215, %1216 : vector<16x32xf32>
    %c1_380 = arith.constant 1 : index
    %c0_381 = arith.constant 0 : index
    %c0_382 = arith.constant 0 : index
    %1218 = vector.load %arg16[%c1_380, %c0_381, %c0_382] : memref<2x32x64xbf16, #tpu.memory_space<vmem>>, vector<1x32x64xbf16>
    %1219 = vector.shape_cast %1218 : vector<1x32x64xbf16> to vector<32x64xbf16>
    %1220 = arith.truncf %1217 : vector<16x32xf32> to vector<16x32xbf16>
    %cst_383 = arith.constant dense<0.000000e+00> : vector<16x64xf32>
    %1221 = tpu.matmul %1220, %1219, %cst_383 {dimension_numbers = #tpu.dot_dimension_numbers<[1], [0], [0], [1], [0, 0, 1, 1], [], []>} : vector<16x32xbf16>, vector<32x64xbf16>, vector<16x64xf32> -> vector<16x64xf32>
    %1222 = vector.broadcast %894 : vector<1x64xf32> to vector<16x64xf32>
    %1223 = arith.addf %1221, %1222 : vector<16x64xf32>
    %cst_384 = arith.constant 0.000000e+00 : f32
    %1224 = vector.broadcast %cst_384 : f32 to vector<16x64xf32>
    %1225 = arith.maximumf %1223, %1224 : vector<16x64xf32>
    %c1_385 = arith.constant 1 : index
    %c0_386 = arith.constant 0 : index
    %c0_387 = arith.constant 0 : index
    %1226 = vector.load %arg17[%c1_385, %c0_386, %c0_387] : memref<2x64x32xbf16, #tpu.memory_space<vmem>>, vector<1x64x32xbf16>
    %1227 = vector.shape_cast %1226 : vector<1x64x32xbf16> to vector<64x32xbf16>
    %1228 = arith.truncf %1225 : vector<16x64xf32> to vector<16x64xbf16>
    %cst_388 = arith.constant dense<0.000000e+00> : vector<16x32xf32>
    %1229 = tpu.matmul %1228, %1227, %cst_388 {dimension_numbers = #tpu.dot_dimension_numbers<[1], [0], [0], [1], [0, 0, 1, 1], [], []>} : vector<16x64xbf16>, vector<64x32xbf16>, vector<16x32xf32> -> vector<16x32xf32>
    %1230 = arith.addf %1217, %1229 : vector<16x32xf32>
    %1231 = vector.broadcast %887 : vector<1x32xf32> to vector<16x32xf32>
    %1232 = arith.addf %1230, %1231 : vector<16x32xf32>
    %cst_389 = arith.constant dense<0.000000e+00> : vector<16xf32>
    %1233 = vector.multi_reduction <add>, %1232, %cst_389 [1] : vector<16x32xf32> to vector<16xf32>
    %1234 = vector.shape_cast %1233 : vector<16xf32> to vector<16x1xf32>
    %cst_390 = arith.constant 3.200000e+01 : f32
    %1235 = vector.broadcast %cst_390 : f32 to vector<16x1xf32>
    %1236 = arith.divf %1234, %1235 : vector<16x1xf32>
    %1237 = vector.broadcast %1236 : vector<16x1xf32> to vector<16x32xf32>
    %1238 = arith.subf %1232, %1237 : vector<16x32xf32>
    %1239 = arith.mulf %1238, %1238 : vector<16x32xf32>
    %cst_391 = arith.constant dense<0.000000e+00> : vector<16xf32>
    %1240 = vector.multi_reduction <add>, %1239, %cst_391 [1] : vector<16x32xf32> to vector<16xf32>
    %1241 = vector.shape_cast %1240 : vector<16xf32> to vector<16x1xf32>
    %cst_392 = arith.constant 3.200000e+01 : f32
    %1242 = vector.broadcast %cst_392 : f32 to vector<16x1xf32>
    %1243 = arith.divf %1241, %1242 : vector<16x1xf32>
    %cst_393 = arith.constant 9.99999974E-6 : f32
    %1244 = vector.broadcast %cst_393 : f32 to vector<16x1xf32>
    %1245 = arith.addf %1243, %1244 : vector<16x1xf32>
    %1246 = math.rsqrt %1245 : vector<16x1xf32>
    %1247 = vector.broadcast %1246 : vector<16x1xf32> to vector<16x32xf32>
    %1248 = arith.mulf %1238, %1247 : vector<16x32xf32>
    %1249 = vector.broadcast %892 : vector<1x32xf32> to vector<16x32xf32>
    %1250 = arith.mulf %1248, %1249 : vector<16x32xf32>
    %1251 = vector.broadcast %893 : vector<1x32xf32> to vector<16x32xf32>
    %1252 = arith.addf %1250, %1251 : vector<16x32xf32>
    %c0_394 = arith.constant 0 : index
    %c0_395 = arith.constant 0 : index
    %1253 = vector.load %arg20[%c0_394, %c0_395] : memref<32x2xbf16, #tpu.memory_space<vmem>>, vector<32x2xbf16>
    %1254 = arith.truncf %1252 : vector<16x32xf32> to vector<16x32xbf16>
    %cst_396 = arith.constant dense<0.000000e+00> : vector<16x2xf32>
    %1255 = tpu.matmul %1254, %1253, %cst_396 {dimension_numbers = #tpu.dot_dimension_numbers<[1], [0], [0], [1], [0, 0, 1, 1], [], []>} : vector<16x32xbf16>, vector<32x2xbf16>, vector<16x2xf32> -> vector<16x2xf32>
    %c0_397 = arith.constant 0 : index
    %c0_398 = arith.constant 0 : index
    %1256 = vector.load %arg21[%c0_397, %c0_398] : memref<1x2xf32, #tpu.memory_space<vmem>>, vector<1x2xf32>
    %1257 = vector.broadcast %1256 : vector<1x2xf32> to vector<16x2xf32>
    %1258 = arith.addf %1255, %1257 : vector<16x2xf32>
    %1259 = vector.shape_cast %1258 : vector<16x2xf32> to vector<2x8x2xf32>
    %c0_399 = arith.constant 0 : index
    %c0_400 = arith.constant 0 : index
    %c0_401 = arith.constant 0 : index
    %1260 = vector.load %arg22[%c0_399, %c0_400, %c0_401] : memref<2x8x2xf32, #tpu.memory_space<vmem>>, vector<2x8x2xf32>
    tpu.vector_store %arg22[%c0_399, %c0_400, %c0_401], %1259 {strides = array<i32>} : memref<2x8x2xf32, #tpu.memory_space<vmem>>, vector<2x8x2xf32>,
    return
  }
}

</mosaic_0001>

<bundles_post_ra>
// kernel: _lambda_.1
= control target key start
LH: loop header
LB: loop body
LE: loop exit
PB: predicated region body
PF: predicated region fallthrough
CT: control target
= control target key end

     0   :  { %s12937_s0 = inlined_call_operand.vmem [shape: f32[2,8,4], index: 0, kind: input, shape index: {}]   ;;  %s12938_s1 = inlined_call_operand.hbm [shape: bf16[4,32], index: 1, kind: input, shape index: {}]   ;;  %s12939_s2 = inlined_call_operand.vmem [shape: f32[8,32], index: 2, kind: input, shape index: {}, may-alias: {2,3}]   ;;  %s12940_s3 = inlined_call_operand.vmem [shape: f32[8,32], index: 3, kind: input, shape index: {}, may-alias: {2,3}]   ;;  %s12941_s4 = inlined_call_operand.vmem [shape: f32[8,8], index: 4, kind: input, shape index: {}]   ;;  %s12942_s5 = inlined_call_operand.vmem [shape: f32[8,8], index: 5, kind: input, shape index: {}]   ;;  %s12943_s6 = inlined_call_operand.hbm [shape: bf16[2,96,96], index: 6, kind: input, shape index: {}]   ;;  %s12944_s7 = inlined_call_operand.hbm [shape: bf16[2,32,32], index: 7, kind: input, shape index: {}]   ;;  %s12945_s8 = inlined_call_operand.hbm [shape: bf16[2,32,64], index: 8, kind: input, shape index: {}]   ;;  %s12946_s9 = inlined_call_operand.hbm [shape: bf16[2,64,32], index: 9, kind: input, shape index: {}]   ;;  %s12947_s10 = inlined_call_operand.hbm [shape: f32[2,9,32], index: 10, kind: input, shape index: {}]   ;;  %s12948_s11 = inlined_call_operand.vmem [shape: f32[2,64], index: 11, kind: input, shape index: {}, may-alias: {11,19}]   ;;  %s12949_s12 = inlined_call_operand.hbm [shape: bf16[2,96,96], index: 12, kind: input, shape index: {}]   ;;  %s12950_s13 = inlined_call_operand.hbm [shape: bf16[2,96,32], index: 13, kind: input, shape index: {}]   ;;  %s12951_s14 = inlined_call_operand.hbm [shape: bf16[2,96,64], index: 14, kind: input, shape index: {}]   ;;  %s12952_s15 = inlined_call_operand.hbm [shape: bf16[2,2,32,32], index: 15, kind: input, shape index: {}]   ;;  %s12953_s16 = inlined_call_operand.hbm [shape: bf16[2,32,64], index: 16, kind: input, shape index: {}]   ;;  %s12954_s17 = inlined_call_operand.vmem [shape: bf16[2,64,32], index: 17, kind: input, shape index: {}]   ;;  %s12955_s18 = inlined_call_operand.hbm [shape: f32[2,15,32], index: 18, kind: input, shape index: {}]   ;;  %s12956_s19 = inlined_call_operand.vmem [shape: f32[2,64], index: 19, kind: input, shape index: {}, may-alias: {11,19}]   ;;  %s12957_s20 = inlined_call_operand.hbm [shape: bf16[32,2], index: 20, kind: input, shape index: {}]   ;;  %s12958_s21 = inlined_call_operand.vmem [shape: f32[1,2], index: 21, kind: input, shape index: {}]   ;;  %s12959_s22 = inlined_call_operand.vmem [shape: f32[2,8,2], index: 22, kind: output, shape index: {0}]   ;;  %s12960_s23 = inlined_call_operand.vmem [shape: f32[2,2,4,8,8], index: 23, kind: output, shape index: {1}]   ;;  %s12961_s24 = inlined_call_operand.vmem [shape: f32[2,2,4,8,8], index: 24, kind: output, shape index: {2}]   ;;  %s12962_s25 = inlined_call_operand.vmem [shape: f32[2,2,4,8,8], index: 25, kind: output, shape index: {3}]  }
   0x1   :  { %12966 = sst [smem:[#allocation29_spill]] %s12937_s0 }
   0x2   :  { %12967 = sst [smem:[#allocation30_spill]] %s12938_s1 }
   0x3   :  { %12968 = sst [smem:[#allocation31_spill]] %s12939_s2 }
   0x4   :  { %12969 = sst [smem:[#allocation32_spill]] %s12940_s3 }
   0x5   :  { %12970 = sst [smem:[#allocation33_spill]] %s12941_s4 }
   0x6   :  { %12971 = sst [smem:[#allocation34_spill]] %s12942_s5 }
   0x7   :  { %12972 = sst [smem:[#allocation35_spill]] %s12943_s6 }
   0x8   :  { %12973 = sst [smem:[#allocation36_spill]] %s12944_s7 }
   0x9   :  { %12974 = sst [smem:[#allocation37_spill]] %s12945_s8 }
   0xa   :  { %12975 = sst [smem:[#allocation38_spill]] %s12946_s9 }
   0xb   :  { %31 = vsyncpa [#allocation3], 0 }
   0xc   :  { %32 = vsyncpa [#allocation5], 0 }
   0xd   :  { %33 = vsyncpa [#allocation8], 0 }
   0xe   :  { %34 = vsyncpa [#allocation11], 0 }
   0xf   :  { %35 = vsyncpa [#allocation14], 0 }
  0x10   :  { %36 = vsyncpa [#allocation17], 0 }
  0x11   :  { %37 = vsyncpa [#allocation20], 0  ;;  %s10707_s29 = smov [#allocation4]  }
  0x12   :  { %s63_s2 = sshll.u32 %s10707_s29, 4  ;;  %s64_s2 = int_to_ptr.vmem [resolvable:$true] %s63_s2 }
  0x13   :  { %s10441_s6 = scalar_lea.vmem %s64_s2, 1536  ;;  %p10446_p1 = scmp.lt.s32.totalorder %s64_s2, %s64_s2 }
  0x14   :  { %p10442_p0 = scmp.ne.s32.totalorder %s64_s2, %s10441_s6  ;;  %p10447_p2 = scmp.lt.s32.totalorder %s10441_s6, %s10441_s6 }
  0x16   :  { %p10448_p3 = por %p10447_p2, %p10446_p1 }
  0x18   :  { %p10449_p4 = pnand %p10448_p3, %p10442_p0 }
  0x1a   :  { %10452 = shalt.err (!%p10449_p4)
}
  0x1b   :  { %s10708_s30 = smov 64   ;;  %s10709_s7 = smov 4  }
  0x1c   :  { %s12976_s1 = sld [smem:[#allocation35_spill]]  ;;  %s10710_s8 = smov [#allocation7]  }
  0x1d   :  { %s87_s27 = sshll.u32 %s10710_s8, 4  ;;  %s10711_s4 = smov [#allocation10]   ;;  %s88_s27 = int_to_ptr.vmem [resolvable:$true] %s87_s27 }
  0x1e   :  { %s111_s28 = sshll.u32 %s10711_s4, 4  ;;  %s10461_s9 = scalar_lea.vmem %s88_s27, 512  ;;  %s112_s28 = int_to_ptr.vmem [resolvable:$true] %s111_s28 }
  0x1f   :  { %p10462_p5 = scmp.ne.s32.totalorder %s88_s27, %s10461_s9  ;;  %p10466_p6 = scmp.lt.s32.totalorder %s88_s27, %s88_s27 }
  0x20   :  { %p10467_p7 = scmp.lt.s32.totalorder %s10461_s9, %s10461_s9 }
  0x22   :  { %69 = dma.hbm_to_vmem [thread:$0]  %s12976_s1, 1536, %s64_s2, [#allocation5], %s10708_s30, %s10708_s30, %s10709_s7  }
  0x23   :  { %p10468_p8 = por %p10467_p7, %p10466_p6 }
  0x25   :  { %p10469_p9 = pnand %p10468_p8, %p10462_p5 }
  0x27   :  { %10472 = shalt.err (!%p10469_p9)
}
  0x28   :  { %s12977_s29 = sld [smem:[#allocation37_spill]]  ;;  %s10481_s2 = scalar_lea.vmem %s112_s28, 512 }
  0x29   :  { %p10482_p10 = scmp.ne.s32.totalorder %s112_s28, %s10481_s2  ;;  %p10486_p11 = scmp.lt.s32.totalorder %s112_s28, %s112_s28 }
  0x2a   :  { %p10487_p12 = scmp.lt.s32.totalorder %s10481_s2, %s10481_s2 }
  0x2c   :  { %p10488_p13 = por %p10487_p12, %p10486_p11 }
  0x2e   :  { %93 = dma.hbm_to_vmem [thread:$0]  %s12977_s29, 512, %s88_s27, [#allocation8], %s10708_s30, %s10708_s30, %s10709_s7  }
  0x2f   :  { %p10489_p0 = pnand %p10488_p13, %p10482_p10 }
  0x31   :  { %10492 = shalt.err (!%p10489_p0)
}
  0x32   :  { %s10712_s6 = smov 128   ;;  %s10713_s3 = smov 8  }
  0x33   :  { %117 = dma.hbm_to_vmem [thread:$0]  %s12947_s10, 512, %s112_s28, [#allocation11], %s10712_s6, %s10712_s6, %s10713_s3  }
  0x34   :  { %s10714_s8 = smov [#allocation13]   ;;  %s10715_s27 = smov [#allocation16]  }
  0x35   :  { %s137_s4 = sshll.u32 %s10714_s8, 4  ;;  %s161_s9 = sshll.u32 %s10715_s27, 4  ;;  %s138_s4 = int_to_ptr.vmem [resolvable:$true] %s137_s4  ;;  %s162_s9 = int_to_ptr.vmem [resolvable:$true] %s161_s9 }
  0x36   :  { %s10501_s5 = scalar_lea.vmem %s138_s4, 1536  ;;  %p10506_p2 = scmp.lt.s32.totalorder %s138_s4, %s138_s4 }
  0x37   :  { %p10502_p1 = scmp.ne.s32.totalorder %s138_s4, %s10501_s5  ;;  %p10507_p3 = scmp.lt.s32.totalorder %s10501_s5, %s10501_s5 }
  0x39   :  { %p10508_p4 = por %p10507_p3, %p10506_p2 }
  0x3b   :  { %p10509_p5 = pnand %p10508_p4, %p10502_p1 }
  0x3d   :  { %10512 = shalt.err (!%p10509_p5)
}
  0x3e   :  { %143 = dma.hbm_to_vmem [thread:$0]  %s12950_s13, 1536, %s138_s4, [#allocation14], %s10708_s30, %s10708_s30, %s10709_s7  }
  0x3f   :  { %s10521_s10 = scalar_lea.vmem %s162_s9, 1024  ;;  %p10526_p7 = scmp.lt.s32.totalorder %s162_s9, %s162_s9 }
  0x40   :  { %p10522_p6 = scmp.ne.s32.totalorder %s162_s9, %s10521_s10  ;;  %p10527_p8 = scmp.lt.s32.totalorder %s10521_s10, %s10521_s10 }
  0x42   :  { %p10528_p9 = por %p10527_p8, %p10526_p7 }
  0x44   :  { %p10529_p10 = pnand %p10528_p9, %p10522_p6 }
  0x46   :  { %10532 = shalt.err (!%p10529_p10)
}
  0x47   :  { %167 = dma.hbm_to_vmem [thread:$0]  %s12952_s15, 1024, %s162_s9, [#allocation17], %s10708_s30, %s10708_s30, %s10709_s7  }
  0x48   :  { %s10716_s26 = smov [#allocation19]   ;;  %s10717_s8 = smov [#allocation2]  }
  0x49   :  { %s187_s1 = sshll.u32 %s10716_s26, 4  ;;  %s46_s13 = sshll.u32 %s10717_s8, 4  ;;  %s188_s1 = int_to_ptr.vmem [resolvable:$true] %s187_s1  ;;  %s47_s13 = int_to_ptr.vmem [resolvable:$true] %s46_s13 }
  0x4a   :  { %s10541_s4 = scalar_lea.vmem %s188_s1, 512  ;;  %p10546_p12 = scmp.lt.s32.totalorder %s188_s1, %s188_s1 }
  0x4b   :  { %p10542_p11 = scmp.ne.s32.totalorder %s188_s1, %s10541_s4  ;;  %p10547_p13 = scmp.lt.s32.totalorder %s10541_s4, %s10541_s4 }
  0x4d   :  { %p10548_p0 = por %p10547_p13, %p10546_p12 }
  0x4f   :  { %p10549_p1 = pnand %p10548_p0, %p10542_p11 }
  0x51   :  { %10552 = shalt.err (!%p10549_p1)
}
  0x52   :  { %193 = dma.hbm_to_vmem [thread:$0]  %s12955_s18, 512, %s188_s1, [#allocation20], %s10712_s6, %s10712_s6, %s10713_s3  }
  0x53   :  { %s10561_s15 = scalar_lea.vmem %s47_s13, 32  ;;  %p10566_p3 = scmp.lt.s32.totalorder %s47_s13, %s47_s13 }
  0x54   :  { %p10562_p2 = scmp.ne.s32.totalorder %s47_s13, %s10561_s15  ;;  %p10567_p4 = scmp.lt.s32.totalorder %s10561_s15, %s10561_s15 }
  0x56   :  { %p10568_p5 = por %p10567_p4, %p10566_p3 }
  0x58   :  { %p10569_p6 = pnand %p10568_p5, %p10562_p2 }
  0x5a   :  { %10572 = shalt.err (!%p10569_p6)
}
  0x5b   :  { %s12978_s29 = sld [smem:[#allocation30_spill]]  ;;  %s10718_s10 = smov [#allocation6]  }
  0x5c   :  { %s75_s28 = sshll.u32 %s10718_s10, 4  ;;  %s10719_s2 = smov [#allocation9]   ;;  %s76_s28 = int_to_ptr.vmem [resolvable:$true] %s75_s28 }
  0x5d   :  { %s99_s26 = sshll.u32 %s10719_s2, 4  ;;  %s10581_s8 = scalar_lea.vmem %s76_s28, 512  ;;  %s100_s26 = int_to_ptr.vmem [resolvable:$true] %s99_s26 }
  0x5e   :  { %p10582_p7 = scmp.ne.s32.totalorder %s76_s28, %s10581_s8  ;;  %p10586_p8 = scmp.lt.s32.totalorder %s76_s28, %s76_s28 }
  0x5f   :  { %p10587_p9 = scmp.lt.s32.totalorder %s10581_s8, %s10581_s8 }
  0x61   :  { %49 = dma.hbm_to_vmem [thread:$0]  %s12978_s29, 32, %s47_s13, [#allocation3]  }
  0x62   :  { %p10588_p10 = por %p10587_p9, %p10586_p8 }
  0x64   :  { %p10589_p11 = pnand %p10588_p10, %p10582_p7 }
  0x66   :  { %10592 = shalt.err (!%p10589_p11)
}
  0x67   :  { %s12979_s1 = sld [smem:[#allocation36_spill]]  ;;  %s10601_s13 = scalar_lea.vmem %s100_s26, 1024 }
  0x68   :  { %p10602_p12 = scmp.ne.s32.totalorder %s100_s26, %s10601_s13  ;;  %p10606_p13 = scmp.lt.s32.totalorder %s100_s26, %s100_s26 }
  0x69   :  { %p10607_p0 = scmp.lt.s32.totalorder %s10601_s13, %s10601_s13 }
  0x6b   :  { %p10608_p1 = por %p10607_p0, %p10606_p13 }
  0x6d   :  { %81 = dma.hbm_to_vmem [thread:$0]  %s12979_s1, 512, %s76_s28, [#allocation5], %s10708_s30, %s10708_s30, %s10709_s7  }
  0x6e   :  { %p10609_p2 = pnand %p10608_p1, %p10602_p12 }
  0x70   :  { %10612 = shalt.err (!%p10609_p2)
}
  0x71   :  { %s12980_s5 = sld [smem:[#allocation38_spill]]  ;;  %s10720_s15 = smov [#allocation12]  }
  0x72   :  { %s125_s9 = sshll.u32 %s10720_s15, 4  ;;  %s10721_s0 = smov [#allocation15]   ;;  %s126_s9 = int_to_ptr.vmem [resolvable:$true] %s125_s9 }
  0x73   :  { %s149_s29 = sshll.u32 %s10721_s0, 4  ;;  %s10621_s10 = scalar_lea.vmem %s126_s9, 1536  ;;  %s150_s29 = int_to_ptr.vmem [resolvable:$true] %s149_s29 }
  0x74   :  { %p10622_p3 = scmp.ne.s32.totalorder %s126_s9, %s10621_s10  ;;  %p10626_p4 = scmp.lt.s32.totalorder %s126_s9, %s126_s9 }
  0x75   :  { %p10627_p5 = scmp.lt.s32.totalorder %s10621_s10, %s10621_s10 }
  0x77   :  { %105 = dma.hbm_to_vmem [thread:$0]  %s12980_s5, 1024, %s100_s26, [#allocation8], %s10708_s30, %s10708_s30, %s10709_s7  }
  0x78   :  { %p10628_p6 = por %p10627_p5, %p10626_p4 }
  0x7a   :  { %p10629_p7 = pnand %p10628_p6, %p10622_p3 }
  0x7c   :  { %10632 = shalt.err (!%p10629_p7)
}
  0x7d   :  { %131 = dma.hbm_to_vmem [thread:$0]  %s12949_s12, 1536, %s126_s9, [#allocation11], %s10708_s30, %s10708_s30, %s10709_s7  }
  0x7e   :  { %s10641_s26 = scalar_lea.vmem %s150_s29, 1536  ;;  %p10646_p9 = scmp.lt.s32.totalorder %s150_s29, %s150_s29 }
  0x7f   :  { %p10642_p8 = scmp.ne.s32.totalorder %s150_s29, %s10641_s26  ;;  %p10647_p10 = scmp.lt.s32.totalorder %s10641_s26, %s10641_s26 }
  0x81   :  { %p10648_p11 = por %p10647_p10, %p10646_p9 }
  0x83   :  { %p10649_p12 = pnand %p10648_p11, %p10642_p8 }
  0x85   :  { %10652 = shalt.err (!%p10649_p12)
}
  0x86   :  { %155 = dma.hbm_to_vmem [thread:$0]  %s12951_s14, 1536, %s150_s29, [#allocation14], %s10708_s30, %s10708_s30, %s10709_s7  }
  0x87   :  { %s10722_s6 = smov [#allocation18]   ;;  %s10723_s13 = smov [#allocation21]  }
  0x88   :  { %s173_s1 = sshll.u32 %s10722_s6, 4  ;;  %s201_s12 = sshll.u32 %s10723_s13, 4  ;;  %s174_s1 = int_to_ptr.vmem [resolvable:$true] %s173_s1  ;;  %s202_s12 = int_to_ptr.vmem [resolvable:$true] %s201_s12 }
  0x89   :  { %s10661_s4 = scalar_lea.vmem %s174_s1, 512  ;;  %p10666_p0 = scmp.lt.s32.totalorder %s174_s1, %s174_s1 }
  0x8a   :  { %p10662_p13 = scmp.ne.s32.totalorder %s174_s1, %s10661_s4  ;;  %p10667_p1 = scmp.lt.s32.totalorder %s10661_s4, %s10661_s4 }
  0x8c   :  { %p10668_p2 = por %p10667_p1, %p10666_p0 }
  0x8e   :  { %p10669_p3 = pnand %p10668_p2, %p10662_p13 }
  0x90   :  { %10672 = shalt.err (!%p10669_p3)
}
  0x91   :  { %179 = dma.hbm_to_vmem [thread:$0]  %s12953_s16, 512, %s174_s1, [#allocation17], %s10708_s30, %s10708_s30, %s10709_s7  }
  0x92   :  { %s10681_s14 = scalar_lea.vmem %s202_s12, 256  ;;  %p10686_p5 = scmp.lt.s32.totalorder %s202_s12, %s202_s12 }
  0x93   :  { %p10682_p4 = scmp.ne.s32.totalorder %s202_s12, %s10681_s14  ;;  %p10687_p6 = scmp.lt.s32.totalorder %s10681_s14, %s10681_s14 }
  0x95   :  { %p10688_p7 = por %p10687_p6, %p10686_p5 }
  0x97   :  { %p10689_p8 = pnand %p10688_p7, %p10682_p4 }
  0x99   :  { %10692 = shalt.err (!%p10689_p8)
}
  0x9a   :  { %207 = dma.hbm_to_vmem [thread:$0]  %s12957_s20, 256, %s202_s12, [#allocation20], %s10708_s30, %s10708_s30, %s10709_s7  }
  0x9b   :  { %10693 = dma.done.wait [#allocation3], 32  }
  0x9c   :  { %10694 = vsyncadd [#allocation3], 4294967264 }
  0x9d   :  { %10695 = dma.done.wait [#allocation5], 2048  }
  0x9e   :  { %10696 = vsyncadd [#allocation5], 4294965248 }
  0x9f   :  { %10697 = dma.done.wait [#allocation8], 1536  }
  0xa0   :  { %10698 = vsyncadd [#allocation8], 4294965760 }
  0xa1   :  { %10699 = dma.done.wait [#allocation11], 2048  }
  0xa2   :  { %10700 = vsyncadd [#allocation11], 4294965248 }
  0xa3   :  { %10701 = dma.done.wait [#allocation14], 3072  }
  0xa4   :  { %10702 = vsyncadd [#allocation14], 4294964224 }
  0xa5   :  { %10703 = dma.done.wait [#allocation17], 1536  }
  0xa6   :  { %10704 = vsyncadd [#allocation17], 4294965760 }
  0xa7   :  { %10705 = dma.done.wait [#allocation20], 768  }
  0xa8   :  { %10706 = vsyncadd [#allocation20], 4294966528  ;;  %v10724_v0 = vmov 0.0   ;;  %vm10725_vm0 = vmmov 0   ;;  %vm259_vm1 = vcmask 1041408   ;;  %s12981_s7 = sld [smem:[#allocation29_spill]]  ;;  %v305_v10 = vlaneseq }
  0xa9   :  { %9075 = vmatprep.subr.bf16.mxu0 %v10724_v0  ;;  %9077 = vmatprep.mubr.msk.bf16.mxu0 %vm10725_vm0, %v10724_v0  ;;  %v252_v1 = vld [vmem:[#allocation2] sm:$0x3]  ;;  %vm255_vm2 = vcmask 31744   ;;  %v10108_v6 = vld [vmem:[#allocation4 + $0x28] sm:$0xff]   ;;  %v10109_v7 = vld [vmem:[#allocation4 + $0x20] sm:$0xff]   ;;  %s12982_s2 = sld [smem:[#allocation31_spill]] }
  0xaa   :  { %9081 = vmatprep.subr.bf16.mxu1 %v10724_v0  ;;  %9093 = vmatprep.mubr.msk.bf16.mxu1 %vm10725_vm0, %v10724_v0  ;;  %v261_v4 = vsel %vm259_vm1, %v252_v1, 0  ;;  %v10110_v8 = vld [vmem:[#allocation4 + $0x18] sm:$0xff]   ;;  %v10111_v9 = vld [vmem:[#allocation4 + $0x10] sm:$0xff]   ;;  %v10963_v11 = vshrl.u32 %v305_v10, 7  ;;  %v10112_v13 = vld [vmem:[#allocation4 + $0x8] sm:$0xff]   ;;  %s10726_s26 = smov 32  }
  0xab   :  { %9076 = vmatpush3.bf16.msra.mxu0 %v261_v4  ;;  %9082 = vmatpush3.bf16.msra.mxu1 %v10108_v6  ;;  %v10113_v18 = vld [vmem:[#allocation4] sm:$0xff]   ;;  %vm389_vm9 = vcmask 261120   ;;  %vm392_vm10 = vcmask 523264   ;;  %vm444_vm11 = vcmask 785408   ;;  %s10727_s8 = smov 96   ;;  %vm526_vm12 = vcmask 64512  }
  0xac   :  { %9097 = vmatprep.subr.bf16.mxu0 %v10724_v0  ;;  %9083 = vmatprep.subr.bf16.mxu1 %v10724_v0  ;;  %v307_v12 = vadd.s32 8, %v10963_v11  ;;  %v312_v14 = vand.u32 7, %v10963_v11  ;;  %v10980_v25 = vld [vmem:[#allocation10] sm:$0xff]  ;;  %v10983_v26 = vsub.s32 1, %v10963_v11  ;;  %vm356_vm3 = vcmp.lt.s32.totalorder %v10963_v11, 7  ;;  %s12983_s1 = sld [smem:[#allocation33_spill]] }
  0xad   :  { %vm337_vm6 = vcmp.lt.s32.totalorder %v10963_v11, 1  ;;  %s10728_s13 = smov 88   ;;  %s10729_s12 = smov 120   ;;  %vm654_vm13 = vcmask 1043456   ;;  %vm1443_vm14 = vcmask 130048   ;;  %vm1446_vm15 = vcmask 195584  }
  0xae   :  { %v250_v2 = vld [vmem:[%s12981_s7] sm:$0xff]  ;;  %v251_v3 = vld [vmem:[%s12981_s7 + $0x8] sm:$0xff]  ;;  %v319_v15 = vand.u32 7, %v307_v12  ;;  %v10971_v20 = vadd.s32 1, %v312_v14  ;;  %v498_v31 = vrot.slane %v10980_v25, %v10983_v26  ;;  %v11005_v37 = vadd.s32 4294967295, %v312_v14  ;;  %s10730_s15 = smov 56  }
  0xaf   :  { %v253_v5 = vpack.c.bf16 %v251_v3, %v250_v2  ;;  %9084 = vmatpush3.bf16.msra.mxu1 %v10109_v7  ;;  %v254_v16 = vld [vmem:[%s12982_s2] sm:$0xff]  ;;  %v11038_v2 = vsub.s32 0, %v10963_v11  ;;  %s10731_s9 = smov 80   ;;  %s10732_s16 = smov 112  }
  0xb0   :  { %9085 = vmatprep.subr.bf16.mxu1 %v10724_v0  ;;  %v10973_v21 = vadd.s32 1, %v319_v15  ;;  %vm363_vm4 = vcmp.lt.s32.totalorder %v10971_v20, 8  ;;  %500 = vrot.lane.b32.xlu1 %v498_v31, %s10726_s26  ;;  %v11007_v38 = vadd.s32 4294967295, %v319_v15  ;;  %vm342_vm7 = vcmp.ge.s32.totalorder %v11005_v37, 0  ;;  %s10733_s10 = smov 48   ;;  %s10734_s28 = smov 72  }
  0xb1   :  { %9078 = vmatmul.mubr.msk.bf16.vlgmr.msra.gmra.mxu0 %vm255_vm2, %v253_v5  ;;  %v492_v3 = vrot.slane %v10980_v25, %v11038_v2  ;;  %s10735_s2 = smov 104   ;;  %s10736_s5 = smov 40  }
  0xb2   :  { %9099 = vmatprep.mubr.msk.bf16.mxu0 %vm10725_vm0, %v10724_v0  ;;  %vm364_vm5 = vcmp.lt.s32.totalorder %v10973_v21, 8  ;;  %vm343_vm8 = vcmp.ge.s32.totalorder %v11007_v38, 0  ;;  %s10737_s14 = smov 16   ;;  %s10738_s18 = smov 24   ;;  %v12668_v38 = vld [vmem:[#allocation19 + $0x10] sm:$0xff] }
  0xb3   :  { %9086 = vmatpush3.bf16.msra.mxu1 %v10110_v8  ;;  %s12984_s7 = sld [smem:[#allocation32_spill]] }
  0xb4   :  { %9087 = vmatprep.subr.bf16.mxu1 %v10724_v0  ;;  %s12985_s4 = sld [smem:[#allocation34_spill]] }
  0xb7   :  { %9088 = vmatpush3.bf16.msra.mxu1 %v10111_v9 }
  0xb8   :  { %9089 = vmatprep.subr.bf16.mxu1 %v10724_v0 }
  0xbb   :  { %9090 = vmatpush3.bf16.msra.mxu1 %v10112_v13  ;;  %v11061_v13 = vld [vmem:[%s12983_s1] sm:$0xff] }
  0xbc   :  { %9091 = vmatprep.subr.bf16.mxu1 %v10724_v0 }
  0xbf   :  { %9092 = vmatpush3.bf16.msra.mxu1 %v10113_v18 }
  0xc0   :  { %9115 = vmatprep.subr.bf16.mxu1 %v10724_v0 }
 0x122   :  { %v501_v56 = vpop.permute.xlu1 %500 }
 0x171   :  { %v297_v17 = vpop.f32.mrf.mxu0 }
 0x172   :  { %v10975_v22 = vadd.f32 %v297_v17, %v254_v16 }
 0x173   :  { %v9079_v19 = vpop.f32.mrf.mxu0 }
 0x174   :  { %v354_v29 = vrot.slane %v10975_v22, 1  ;;  %v335_v40 = vrot.slane %v10975_v22, 7 }
 0x175   :  { %v300_v23 = vpop.f32.mrf.mxu0 }
 0x176   :  { %v10978_v24 = vadd.f32 %v300_v23, %v254_v16 }
 0x177   :  { %v9080_v27 = vpop.f32.mrf.mxu0 }
 0x178   :  { %v9953_v28 = vpack.i.bf16 %v10978_v24, %v10975_v22  ;;  %v355_v30 = vrot.slane %v10978_v24, 1  ;;  %v336_v39 = vrot.slane %v10978_v24, 7 }
 0x17a   :  { %9954 = vrot.lane.b32.xlu0 %v9953_v28, %s10726_s26  ;;  %v357_v32 = vsel %vm356_vm3, %v354_v29, %v355_v30  ;;  %v358_v33 = vsel %vm356_vm3, %v355_v30, %v354_v29  ;;  %v338_v44 = vsel %vm337_vm6, %v335_v40, %v336_v39  ;;  %v339_v45 = vsel %vm337_vm6, %v336_v39, %v335_v40 }
 0x17b   :  { %v371_v34 = vsel %vm363_vm4, %v357_v32, 0.0  ;;  %v372_v35 = vsel %vm364_vm5, %v358_v33, 0.0  ;;  %v352_v47 = vsel %vm342_vm7, %v339_v45, 0.0  ;;  %v353_v48 = vsel %vm343_vm8, %v338_v44, 0.0 }
 0x17c   :  { %v9958_v36 = vpack.i.bf16 %v372_v35, %v371_v34  ;;  %v11068_v32 = vsub.s32 2, %v10963_v11 }
 0x17e   :  { %9959 = vrot.lane.b32.xlu0 %v9958_v36, %s10708_s30  ;;  %v508_v33 = vrot.slane %v10980_v25, %v11068_v32 }
 0x1ec   :  { %v9955_v41 = vpop.permute.xlu0 %9954 }
 0x1ed   :  { %v9957_v42 = vunpack.i.h.bf16 %v9955_v41  ;;  %v9956_v43 = vunpack.i.l.bf16 %v9955_v41 }
 0x1ef   :  { %v390_v51 = vsel %vm389_vm9, %v352_v47, %v9956_v43  ;;  %v391_v52 = vsel %vm389_vm9, %v353_v48, %v9957_v42 }
 0x1f0   :  { %v9960_v46 = vpop.permute.xlu0 %9959 }
 0x1f1   :  { %v9962_v49 = vunpack.i.h.bf16 %v9960_v46  ;;  %v9961_v50 = vunpack.i.l.bf16 %v9960_v46 }
 0x1f3   :  { %v393_v53 = vsel %vm392_vm10, %v390_v51, %v9961_v50  ;;  %v394_v54 = vsel %vm392_vm10, %v391_v52, %v9962_v49 }
 0x1f4   :  { %v407_v55 = vpack.c.bf16 %v394_v54, %v393_v53 }
 0x1f6   :  { %9094 = vmatmul.mubr.msk.bf16.vlgmr.msra.gmra.mxu1 %vm444_vm11, %v407_v55 }
 0x1f7   :  { %9117 = vmatprep.mubr.msk.bf16.mxu1 %vm10725_vm0, %v10724_v0 }
 0x2b6   :  { %v482_v57 = vpop.f32.mrf.mxu1 }
 0x2b7   :  { %v503_v58 = vadd.f32 %v501_v56, %v482_v57  ;;  %v493_v6 = vadd.f32 %v492_v3, %v482_v57 }
 0x2b8   :  { %v9095_v59 = vpop.f32.mrf.mxu1 }
 0x2b9   :  { %v11029_v60 = vpack.c.bf16 %v503_v58, %v503_v58  ;;  %v11044_v8 = vpack.c.bf16 %v493_v6, %v493_v6 }
 0x2ba   :  { %v485_v61 = vpop.f32.mrf.mxu1 }
 0x2bb   :  { %v504_v62 = vadd.f32 %v501_v56, %v485_v61  ;;  %524 = vrot.lane.b32.xlu1 %v11029_v60, %s10727_s8  ;;  %v494_v10 = vadd.f32 %v492_v3, %v485_v61 }
 0x2bc   :  { %v9096_v63 = vpop.f32.mrf.mxu1 }
 0x2bd   :  { %v11033_v1 = vpack.c.bf16 %v504_v62, %v504_v62  ;;  %v11052_v12 = vpack.c.bf16 %v494_v10, %v494_v10 }
 0x2bf   :  { %574 = vrot.lane.b32.xlu0 %v11033_v1, %s10727_s8 }
 0x32d   :  { %v525_v4 = vpop.permute.xlu1 %524 }
 0x32e   :  { %v531_v5 = vsel %vm526_vm12, %v525_v4, 0 }
 0x32f   :  { %9098 = vmatpush3.bf16.xpose.msra.mxu0 %v531_v5 }
 0x330   :  { %9103 = vmatprep.subr.bf16.mxu0 %v10724_v0 }
 0x331   :  { %v575_v7 = vpop.permute.xlu0 %574 }
 0x332   :  { %v580_v9 = vsel %vm526_vm12, %v575_v7, 0 }
 0x336   :  { %9100 = vmatmul.mubr.msk.bf16.vlgmr.msra.gmra.mxu0 %vm526_vm12, %v11044_v8 }
 0x337   :  { %9104 = vmatpush3.bf16.xpose.msra.mxu0 %v580_v9  ;;  %9105 = vmatprep.mubr.msk.bf16.mxu0 %vm10725_vm0, %v10724_v0 }
 0x338   :  { %9109 = vmatprep.subr.bf16.mxu0 %v10724_v0 }
 0x33e   :  { %9106 = vmatmul.mubr.msk.bf16.vlgmr.msra.gmra.mxu0 %vm526_vm12, %v11052_v12 }
 0x33f   :  { %9111 = vmatprep.mubr.msk.bf16.mxu0 %vm10725_vm0, %v10724_v0 }
 0x3f6   :  { %v567_v14 = vpop.f32.mrf.mxu0 }
 0x3f7   :  { %v568_v15 = vadd.f32 %v567_v14, %v11061_v13 }
 0x3f8   :  { %v9101_v16 = vpop.f32.mrf.mxu0 }
 0x3f9   :  { %v622_v17 = vsel %vm526_vm12, %v568_v15, -inf }
 0x3fa   :  { %623 = vmax.xlane.f32.xlu1 %v622_v17  ;;  %v570_v18 = vpop.f32.mrf.mxu0 }
 0x3fc   :  { %v9102_v19 = vpop.f32.mrf.mxu0 }
 0x3fe   :  { %v616_v23 = vpop.f32.mrf.mxu0 }
 0x3ff   :  { %v617_v27 = vadd.f32 %v616_v23, %v11061_v13 }
 0x400   :  { %v9107_v28 = vpop.f32.mrf.mxu0 }
 0x401   :  { %v625_v29 = vsel %vm526_vm12, %v617_v27, -inf }
 0x402   :  { %626 = vmax.xlane.f32.xlu0 %v625_v29  ;;  %v619_v30 = vpop.f32.mrf.mxu0 }
 0x404   :  { %v9108_v31 = vpop.f32.mrf.mxu0 }
 0x418   :  { %510 = vrot.lane.b32.xlu0 %v508_v33, %s10708_s30 }
 0x483   :  { %v624_v42 = vpop.xlane.xlu1 %623 }
 0x484   :  { %v628_v43 = vsub.f32 %v568_v15, %v624_v42 }
 0x486   :  { %v630_v44 = vmul.f32 1.442695, %v628_v43 }
 0x488   :  { %10194 = vpow2.f32 %v630_v44 }
 0x48b   :  { %v627_v34 = vpop.xlane.xlu0 %626 }
 0x48c   :  { %v629_v45 = vsub.f32 %v617_v27, %v627_v34 }
 0x48e   :  { %v632_v46 = vmul.f32 1.442695, %v629_v45 }
 0x48f   :  { %v511_v35 = vpop.permute.xlu0 %510 }
 0x490   :  { %v513_v36 = vadd.f32 %v511_v35, %v482_v57  ;;  %v514_v39 = vadd.f32 %v511_v35, %v485_v61  ;;  %10196 = vpow2.f32 %v632_v46 }
 0x492   :  { %v11073_v40 = vpack.c.bf16 %v513_v36, %v513_v36  ;;  %v11075_v41 = vpack.c.bf16 %v514_v39, %v514_v39 }
 0x494   :  { %699 = vrot.lane.b32.xlu0 %v11075_v41, %s10708_s30  ;;  %649 = vrot.lane.b32.xlu1 %v11073_v40, %s10708_s30 }
 0x495   :  { %v10195_v47 = vpop.eup %10194 }
 0x496   :  { %v634_v48 = vsel %vm526_vm12, %v10195_v47, 0.0 }
 0x498   :  { %750 = vrot.lane.b32.xlu0 %v11029_v60, %s10728_s13 }
 0x49c   :  { %748 = vrot.lane.b32.xlu0 %v11044_v8, %s10729_s12 }
 0x49d   :  { %v10197_v49 = vpop.eup %10196 }
 0x49e   :  { %v637_v50 = vsel %vm526_vm12, %v10197_v49, 0.0 }
 0x4b8   :  { %635 = vadd.xlane.f32.xlu1 %v634_v48 }
 0x4bc   :  { %638 = vadd.xlane.f32.xlu1 %v637_v50 }
 0x4cd   :  { %801 = vrot.lane.b32.xlu1 %v11033_v1, %s10728_s13 }
 0x4d1   :  { %799 = vrot.lane.b32.xlu1 %v11052_v12, %s10729_s12 }
 0x506   :  { %v700_v51 = vpop.permute.xlu0 %699  ;;  %v650_v52 = vpop.permute.xlu1 %649 }
 0x507   :  { %v705_v53 = vsel %vm654_vm13, %v700_v51, 0  ;;  %v656_v54 = vsel %vm654_vm13, %v650_v52, 0 }
 0x508   :  { %9110 = vmatpush3.bf16.msra.mxu0 %v656_v54  ;;  %9116 = vmatpush3.bf16.msra.mxu1 %v705_v53 }
 0x509   :  { %9121 = vmatprep.subr.bf16.mxu0 %v10724_v0  ;;  %9127 = vmatprep.subr.bf16.mxu1 %v10724_v0 }
 0x50a   :  { %v751_v59 = vpop.permute.xlu0 %750 }
 0x50b   :  { %v756_v63 = vsel %vm526_vm12, %v751_v59, 0 }
 0x50e   :  { %v749_v7 = vpop.permute.xlu0 %748 }
 0x541   :  { %v636_v55 = vpop.xlane.xlu1 %635 }
 0x542   :  { %10198 = vrcp.f32 %v636_v55 }
 0x545   :  { %v639_v56 = vpop.xlane.xlu1 %638 }
 0x546   :  { %10200 = vrcp.f32 %v639_v56 }
 0x549   :  { %v802_v4 = vpop.permute.xlu1 %801 }
 0x54a   :  { %v807_v6 = vsel %vm526_vm12, %v802_v4, 0 }
 0x54d   :  { %v800_v9 = vpop.permute.xlu1 %799 }
 0x54f   :  { %v10199_v57 = vpop.eup %10198 }
 0x550   :  { %v641_v58 = vmul.f32 %v10199_v57, %v10195_v47 }
 0x552   :  { %v644_v61 = vpack.c.bf16 %v641_v58, %v641_v58  ;;  %1409 = vst.msk [vmem:[%s12960_s23] sm:$0xff] %vm526_vm12, %v641_v58 }
 0x553   :  { %v10201_v62 = vpop.eup %10200 }
 0x554   :  { %9112 = vmatmul.mubr.msk.bf16.vlgmr.msra.gmra.mxu0 %vm526_vm12, %v644_v61  ;;  %v643_v3 = vmul.f32 %v10201_v62, %v10197_v49 }
 0x555   :  { %9122 = vmatpush3.bf16.xpose.msra.mxu0 %v756_v63  ;;  %9123 = vmatprep.mubr.msk.bf16.mxu0 %vm10725_vm0, %v10724_v0 }
 0x556   :  { %v645_v5 = vpack.c.bf16 %v643_v3, %v643_v3  ;;  %1413 = vst.msk [vmem:[%s12960_s23 + $0x20] sm:$0xff] %vm526_vm12, %v643_v3  ;;  %9133 = vmatprep.subr.bf16.mxu0 %v10724_v0 }
 0x558   :  { %9118 = vmatmul.mubr.msk.bf16.vlgmr.msra.gmra.mxu1 %vm526_vm12, %v645_v5 }
 0x559   :  { %9128 = vmatpush3.bf16.xpose.msra.mxu1 %v807_v6  ;;  %9129 = vmatprep.mubr.msk.bf16.mxu1 %vm10725_vm0, %v10724_v0 }
 0x55a   :  { %9139 = vmatprep.subr.bf16.mxu1 %v10724_v0 }
 0x55c   :  { %9124 = vmatmul.mubr.msk.bf16.vlgmr.msra.gmra.mxu0 %vm526_vm12, %v749_v7 }
 0x55d   :  { %9135 = vmatprep.mubr.msk.bf16.mxu0 %vm10725_vm0, %v10724_v0 }
 0x560   :  { %9130 = vmatmul.mubr.msk.bf16.vlgmr.msra.gmra.mxu1 %vm526_vm12, %v800_v9 }
 0x561   :  { %9141 = vmatprep.mubr.msk.bf16.mxu1 %vm10725_vm0, %v10724_v0 }
 0x614   :  { %v11119_v10 = vpop.f32.mrf.mxu0 }
 0x616   :  { %v9113_v14 = vpop.f32.mrf.mxu0 }
 0x618   :  { %v695_v15 = vpop.f32.mrf.mxu0  ;;  %v11121_v16 = vpop.f32.mrf.mxu1 }
 0x61a   :  { %v9114_v17 = vpop.f32.mrf.mxu0  ;;  %v9119_v18 = vpop.f32.mrf.mxu1 }
 0x61c   :  { %v744_v19 = vpop.f32.mrf.mxu1  ;;  %v792_v23 = vpop.f32.mrf.mxu0 }
 0x61d   :  { %v793_v27 = vadd.f32 %v792_v23, %v11061_v13 }
 0x61e   :  { %v9120_v28 = vpop.f32.mrf.mxu1  ;;  %v9125_v29 = vpop.f32.mrf.mxu0 }
 0x61f   :  { %v849_v30 = vsel %vm526_vm12, %v793_v27, -inf }
 0x620   :  { %v843_v31 = vpop.f32.mrf.mxu1  ;;  %850 = vmax.xlane.f32.xlu0 %v849_v30  ;;  %v795_v33 = vpop.f32.mrf.mxu0 }
 0x621   :  { %v844_v34 = vadd.f32 %v843_v31, %v11061_v13 }
 0x622   :  { %v9126_v35 = vpop.f32.mrf.mxu0  ;;  %v9131_v36 = vpop.f32.mrf.mxu1 }
 0x623   :  { %v852_v39 = vsel %vm526_vm12, %v844_v34, -inf }
 0x624   :  { %853 = vmax.xlane.f32.xlu1 %v852_v39  ;;  %v846_v42 = vpop.f32.mrf.mxu1 }
 0x626   :  { %v9132_v43 = vpop.f32.mrf.mxu1 }
 0x635   :  { %873 = vrot.lane.b32.xlu1 %v11073_v40, %s10730_s15 }
 0x639   :  { %971 = vrot.lane.b32.xlu1 %v11029_v60, %s10731_s9 }
 0x63d   :  { %1021 = vrot.lane.b32.xlu1 %v11033_v1, %s10731_s9 }
 0x641   :  { %1019 = vrot.lane.b32.xlu1 %v11052_v12, %s10732_s16 }
 0x6a9   :  { %v851_v44 = vpop.xlane.xlu0 %850 }
 0x6aa   :  { %v855_v45 = vsub.f32 %v793_v27, %v851_v44 }
 0x6ac   :  { %v857_v46 = vmul.f32 1.442695, %v855_v45 }
 0x6ad   :  { %v854_v47 = vpop.xlane.xlu1 %853 }
 0x6ae   :  { %10202 = vpow2.f32 %v857_v46  ;;  %v856_v48 = vsub.f32 %v844_v34, %v854_v47 }
 0x6b0   :  { %v859_v49 = vmul.f32 1.442695, %v856_v48 }
 0x6b1   :  { %v874_v50 = vpop.permute.xlu1 %873 }
 0x6b2   :  { %10204 = vpow2.f32 %v859_v49  ;;  %v879_v51 = vsel %vm654_vm13, %v874_v50, 0 }
 0x6b3   :  { %9134 = vmatpush3.bf16.msra.mxu0 %v879_v51 }
 0x6b4   :  { %9145 = vmatprep.subr.bf16.mxu0 %v10724_v0 }
 0x6b5   :  { %v972_v62 = vpop.permute.xlu1 %971 }
 0x6b6   :  { %v977_v5 = vsel %vm526_vm12, %v972_v62, 0 }
 0x6b9   :  { %v1022_v7 = vpop.permute.xlu1 %1021 }
 0x6ba   :  { %v1027_v14 = vsel %vm526_vm12, %v1022_v7, 0 }
 0x6bb   :  { %v10203_v52 = vpop.eup %10202 }
 0x6bc   :  { %v861_v53 = vsel %vm526_vm12, %v10203_v52, 0.0 }
 0x6bd   :  { %862 = vadd.xlane.f32.xlu0 %v861_v53  ;;  %v1020_v17 = vpop.permute.xlu1 %1019 }
 0x6bf   :  { %v10205_v54 = vpop.eup %10204 }
 0x6c0   :  { %v864_v55 = vsel %vm526_vm12, %v10205_v54, 0.0 }
 0x6c1   :  { %865 = vadd.xlane.f32.xlu0 %v864_v55 }
 0x6d7   :  { %921 = vrot.lane.b32.xlu0 %v11075_v41, %s10730_s15 }
 0x6db   :  { %969 = vrot.lane.b32.xlu0 %v11044_v8, %s10732_s16 }
 0x746   :  { %v863_v56 = vpop.xlane.xlu0 %862 }
 0x747   :  { %10206 = vrcp.f32 %v863_v56 }
 0x74a   :  { %v866_v57 = vpop.xlane.xlu0 %865 }
 0x74b   :  { %10208 = vrcp.f32 %v866_v57 }
 0x74e   :  { %v922_v58 = vpop.permute.xlu0 %921 }
 0x74f   :  { %v927_v59 = vsel %vm654_vm13, %v922_v58, 0 }
 0x750   :  { %9140 = vmatpush3.bf16.msra.mxu1 %v927_v59 }
 0x751   :  { %9151 = vmatprep.subr.bf16.mxu1 %v10724_v0 }
 0x752   :  { %v970_v15 = vpop.permute.xlu0 %969 }
 0x754   :  { %v10207_v61 = vpop.eup %10206 }
 0x755   :  { %v868_v63 = vmul.f32 %v10207_v61, %v10203_v52 }
 0x757   :  { %v871_v3 = vpack.c.bf16 %v868_v63, %v868_v63  ;;  %1410 = vst.msk [vmem:[%s12960_s23 + $0x8] sm:$0xff] %vm526_vm12, %v868_v63 }
 0x758   :  { %v10209_v4 = vpop.eup %10208 }
 0x759   :  { %9136 = vmatmul.mubr.msk.bf16.vlgmr.msra.gmra.mxu0 %vm526_vm12, %v871_v3  ;;  %v870_v6 = vmul.f32 %v10209_v4, %v10205_v54 }
 0x75a   :  { %9146 = vmatpush3.bf16.xpose.msra.mxu0 %v977_v5  ;;  %9147 = vmatprep.mubr.msk.bf16.mxu0 %vm10725_vm0, %v10724_v0 }
 0x75b   :  { %v872_v9 = vpack.c.bf16 %v870_v6, %v870_v6  ;;  %1414 = vst.msk [vmem:[%s12960_s23 + $0x28] sm:$0xff] %vm526_vm12, %v870_v6  ;;  %9157 = vmatprep.subr.bf16.mxu0 %v10724_v0 }
 0x75d   :  { %9142 = vmatmul.mubr.msk.bf16.vlgmr.msra.gmra.mxu1 %vm526_vm12, %v872_v9 }
 0x75e   :  { %9152 = vmatpush3.bf16.xpose.msra.mxu1 %v1027_v14  ;;  %9153 = vmatprep.mubr.msk.bf16.mxu1 %vm10725_vm0, %v10724_v0 }
 0x75f   :  { %9163 = vmatprep.subr.bf16.mxu1 %v10724_v0 }
 0x761   :  { %9148 = vmatmul.mubr.msk.bf16.vlgmr.msra.gmra.mxu0 %vm526_vm12, %v970_v15 }
 0x762   :  { %9159 = vmatprep.mubr.msk.bf16.mxu0 %vm10725_vm0, %v10724_v0 }
 0x765   :  { %9154 = vmatmul.mubr.msk.bf16.vlgmr.msra.gmra.mxu1 %vm526_vm12, %v1020_v17 }
 0x766   :  { %9165 = vmatprep.mubr.msk.bf16.mxu1 %vm10725_vm0, %v10724_v0 }
 0x819   :  { %v11169_v18 = vpop.f32.mrf.mxu0 }
 0x81b   :  { %v9137_v19 = vpop.f32.mrf.mxu0 }
 0x81d   :  { %v918_v23 = vpop.f32.mrf.mxu0  ;;  %v11171_v27 = vpop.f32.mrf.mxu1 }
 0x81e   :  { %v9963_v28 = vpack.i.bf16 %v11171_v27, %v11169_v18 }
 0x81f   :  { %v9138_v29 = vpop.f32.mrf.mxu0  ;;  %v9143_v30 = vpop.f32.mrf.mxu1 }
 0x821   :  { %v966_v31 = vpop.f32.mrf.mxu1  ;;  %v1013_v33 = vpop.f32.mrf.mxu0 }
 0x822   :  { %v1014_v34 = vadd.f32 %v1013_v33, %v11061_v13 }
 0x823   :  { %v9144_v35 = vpop.f32.mrf.mxu1  ;;  %v9149_v36 = vpop.f32.mrf.mxu0 }
 0x824   :  { %v1069_v39 = vsel %vm526_vm12, %v1014_v34, -inf }
 0x825   :  { %v1063_v42 = vpop.f32.mrf.mxu1  ;;  %1070 = vmax.xlane.f32.xlu0 %v1069_v39  ;;  %v1016_v43 = vpop.f32.mrf.mxu0 }
 0x826   :  { %v1064_v44 = vadd.f32 %v1063_v42, %v11061_v13 }
 0x827   :  { %v9150_v45 = vpop.f32.mrf.mxu0  ;;  %v9155_v46 = vpop.f32.mrf.mxu1 }
 0x828   :  { %v1072_v47 = vsel %vm526_vm12, %v1064_v44, -inf }
 0x829   :  { %1073 = vmax.xlane.f32.xlu1 %v1072_v47  ;;  %v1066_v48 = vpop.f32.mrf.mxu1 }
 0x82b   :  { %v9156_v49 = vpop.f32.mrf.mxu1 }
 0x83a   :  { %1093 = vrot.lane.b32.xlu1 %v11073_v40, %s10733_s10 }
 0x83e   :  { %1191 = vrot.lane.b32.xlu1 %v11029_v60, %s10734_s28 }
 0x842   :  { %1241 = vrot.lane.b32.xlu1 %v11033_v1, %s10734_s28 }
 0x846   :  { %1239 = vrot.lane.b32.xlu1 %v11052_v12, %s10735_s2 }
 0x8ae   :  { %v1071_v50 = vpop.xlane.xlu0 %1070 }
 0x8af   :  { %v1075_v51 = vsub.f32 %v1014_v34, %v1071_v50 }
 0x8b1   :  { %v1077_v52 = vmul.f32 1.442695, %v1075_v51 }
 0x8b2   :  { %v1074_v53 = vpop.xlane.xlu1 %1073 }
 0x8b3   :  { %10210 = vpow2.f32 %v1077_v52  ;;  %v1076_v54 = vsub.f32 %v1064_v44, %v1074_v53 }
 0x8b5   :  { %v1079_v55 = vmul.f32 1.442695, %v1076_v54 }
 0x8b6   :  { %v1094_v56 = vpop.permute.xlu1 %1093 }
 0x8b7   :  { %10212 = vpow2.f32 %v1079_v55  ;;  %v1099_v57 = vsel %vm654_vm13, %v1094_v56, 0 }
 0x8b8   :  { %9158 = vmatpush3.bf16.msra.mxu0 %v1099_v57 }
 0x8b9   :  { %9169 = vmatprep.subr.bf16.mxu0 %v10724_v0 }
 0x8ba   :  { %v1192_v4 = vpop.permute.xlu1 %1191 }
 0x8bb   :  { %v1197_v7 = vsel %vm526_vm12, %v1192_v4, 0 }
 0x8be   :  { %v1242_v14 = vpop.permute.xlu1 %1241 }
 0x8bf   :  { %v1247_v17 = vsel %vm526_vm12, %v1242_v14, 0 }
 0x8c0   :  { %v10211_v60 = vpop.eup %10210 }
 0x8c1   :  { %v1081_v1 = vsel %vm526_vm12, %v10211_v60, 0.0 }
 0x8c2   :  { %1082 = vadd.xlane.f32.xlu0 %v1081_v1  ;;  %v1240_v23 = vpop.permute.xlu1 %1239 }
 0x8c4   :  { %v10213_v58 = vpop.eup %10212 }
 0x8c5   :  { %v1084_v12 = vsel %vm526_vm12, %v10213_v58, 0.0 }
 0x8c6   :  { %1085 = vadd.xlane.f32.xlu0 %v1084_v12 }
 0x8dc   :  { %1141 = vrot.lane.b32.xlu0 %v11075_v41, %s10733_s10 }
 0x8e0   :  { %1189 = vrot.lane.b32.xlu0 %v11044_v8, %s10735_s2 }
 0x94b   :  { %v1083_v59 = vpop.xlane.xlu0 %1082 }
 0x94c   :  { %10214 = vrcp.f32 %v1083_v59 }
 0x94f   :  { %v1086_v61 = vpop.xlane.xlu0 %1085 }
 0x950   :  { %10216 = vrcp.f32 %v1086_v61 }
 0x953   :  { %v1142_v62 = vpop.permute.xlu0 %1141 }
 0x954   :  { %v1147_v63 = vsel %vm654_vm13, %v1142_v62, 0 }
 0x955   :  { %9164 = vmatpush3.bf16.msra.mxu1 %v1147_v63 }
 0x956   :  { %9175 = vmatprep.subr.bf16.mxu1 %v10724_v0 }
 0x957   :  { %v1190_v19 = vpop.permute.xlu0 %1189 }
 0x959   :  { %v10215_v3 = vpop.eup %10214 }
 0x95a   :  { %v1088_v5 = vmul.f32 %v10215_v3, %v10211_v60 }
 0x95c   :  { %v1091_v6 = vpack.c.bf16 %v1088_v5, %v1088_v5  ;;  %1411 = vst.msk [vmem:[%s12960_s23 + $0x10] sm:$0xff] %vm526_vm12, %v1088_v5 }
 0x95d   :  { %v10217_v8 = vpop.eup %10216 }
 0x95e   :  { %9160 = vmatmul.mubr.msk.bf16.vlgmr.msra.gmra.mxu0 %vm526_vm12, %v1091_v6  ;;  %v1090_v9 = vmul.f32 %v10217_v8, %v10213_v58 }
 0x95f   :  { %9170 = vmatpush3.bf16.xpose.msra.mxu0 %v1197_v7  ;;  %9171 = vmatprep.mubr.msk.bf16.mxu0 %vm10725_vm0, %v10724_v0  ;;  %v10114_v7 = vld [vmem:[#allocation6 + $0x8] sm:$0xff]  }
 0x960   :  { %v1092_v15 = vpack.c.bf16 %v1090_v9, %v1090_v9  ;;  %1415 = vst.msk [vmem:[%s12960_s23 + $0x30] sm:$0xff] %vm526_vm12, %v1090_v9  ;;  %9181 = vmatprep.subr.bf16.mxu0 %v10724_v0  ;;  %v10115_v9 = vld [vmem:[#allocation6] sm:$0xff]  }
 0x962   :  { %9166 = vmatmul.mubr.msk.bf16.vlgmr.msra.gmra.mxu1 %vm526_vm12, %v1092_v15 }
 0x963   :  { %9176 = vmatpush3.bf16.xpose.msra.mxu1 %v1247_v17  ;;  %9177 = vmatprep.mubr.msk.bf16.mxu1 %vm10725_vm0, %v10724_v0 }
 0x964   :  { %9187 = vmatprep.subr.bf16.mxu1 %v10724_v0 }
 0x966   :  { %9172 = vmatmul.mubr.msk.bf16.vlgmr.msra.gmra.mxu0 %vm526_vm12, %v1190_v19 }
 0x967   :  { %9183 = vmatprep.mubr.msk.bf16.mxu0 %vm10725_vm0, %v10724_v0 }
 0x96a   :  { %9178 = vmatmul.mubr.msk.bf16.vlgmr.msra.gmra.mxu1 %vm526_vm12, %v1240_v23 }
 0x96b   :  { %9189 = vmatprep.mubr.msk.bf16.mxu1 %vm10725_vm0, %v10724_v0 }
 0xa1e   :  { %v1135_v29 = vpop.f32.mrf.mxu0 }
 0xa20   :  { %v9161_v30 = vpop.f32.mrf.mxu0 }
 0xa22   :  { %v1138_v31 = vpop.f32.mrf.mxu0  ;;  %v1183_v33 = vpop.f32.mrf.mxu1 }
 0xa23   :  { %v9968_v54 = vpack.i.bf16 %v1183_v33, %v1135_v29 }
 0xa24   :  { %v9162_v34 = vpop.f32.mrf.mxu0  ;;  %v9167_v35 = vpop.f32.mrf.mxu1 }
 0xa26   :  { %v1186_v36 = vpop.f32.mrf.mxu1  ;;  %v1233_v39 = vpop.f32.mrf.mxu0 }
 0xa27   :  { %v1234_v42 = vadd.f32 %v1233_v39, %v11061_v13 }
 0xa28   :  { %v9168_v43 = vpop.f32.mrf.mxu1  ;;  %v9173_v44 = vpop.f32.mrf.mxu0 }
 0xa29   :  { %v1289_v45 = vsel %vm526_vm12, %v1234_v42, -inf }
 0xa2a   :  { %v1283_v46 = vpop.f32.mrf.mxu1  ;;  %1290 = vmax.xlane.f32.xlu0 %v1289_v45  ;;  %v1236_v47 = vpop.f32.mrf.mxu0 }
 0xa2b   :  { %v1284_v48 = vadd.f32 %v1283_v46, %v11061_v13 }
 0xa2c   :  { %v9174_v49 = vpop.f32.mrf.mxu0  ;;  %v9179_v50 = vpop.f32.mrf.mxu1 }
 0xa2d   :  { %v1292_v51 = vsel %vm526_vm12, %v1284_v48, -inf }
 0xa2e   :  { %1293 = vmax.xlane.f32.xlu1 %v1292_v51  ;;  %v1286_v52 = vpop.f32.mrf.mxu1 }
 0xa30   :  { %v9180_v53 = vpop.f32.mrf.mxu1 }
 0xa3f   :  { %1313 = vrot.lane.b32.xlu1 %v11073_v40, %s10736_s5 }
 0xa43   :  { %9964 = vrot.lane.b32.xlu1 %v9963_v28, %s10713_s3 }
 0xa47   :  { %9969 = vrot.lane.b32.xlu1 %v9968_v54, %s10737_s14 }
 0xab3   :  { %v1291_v13 = vpop.xlane.xlu0 %1290 }
 0xab4   :  { %v1295_v55 = vsub.f32 %v1234_v42, %v1291_v13 }
 0xab6   :  { %v1297_v56 = vmul.f32 1.442695, %v1295_v55 }
 0xab7   :  { %v1294_v57 = vpop.xlane.xlu1 %1293 }
 0xab8   :  { %10218 = vpow2.f32 %v1297_v56  ;;  %v1296_v60 = vsub.f32 %v1284_v48, %v1294_v57 }
 0xaba   :  { %v1299_v1 = vmul.f32 1.442695, %v1296_v60 }
 0xabb   :  { %v1314_v58 = vpop.permute.xlu1 %1313 }
 0xabc   :  { %10220 = vpow2.f32 %v1299_v1  ;;  %v1319_v40 = vsel %vm654_vm13, %v1314_v58, 0 }
 0xabd   :  { %9182 = vmatpush3.bf16.msra.mxu0 %v1319_v40 }
 0xabe   :  { %9193 = vmatprep.subr.bf16.mxu0 %v10724_v0 }
 0xabf   :  { %v9965_v34 = vpop.permute.xlu1 %9964 }
 0xac0   :  { %v9967_v36 = vunpack.i.h.bf16 %v9965_v34  ;;  %v9966_v39 = vunpack.i.l.bf16 %v9965_v34 }
 0xac2   :  { %v1442_v45 = vsel %vm526_vm12, %v11121_v16, %v9967_v36  ;;  %v1441_v46 = vsel %vm526_vm12, %v11119_v10, %v9966_v39  ;;  %v11269_v16 = vsub.s32 3, %v10963_v11 }
 0xac3   :  { %v9970_v35 = vpop.permute.xlu1 %9969 }
 0xac4   :  { %v9972_v42 = vunpack.i.h.bf16 %v9970_v35  ;;  %v9971_v43 = vunpack.i.l.bf16 %v9970_v35  ;;  %v1453_v10 = vrot.slane %v10980_v25, %v11269_v16 }
 0xac5   :  { %v10219_v18 = vpop.eup %10218 }
 0xac6   :  { %v1301_v27 = vsel %vm526_vm12, %v10219_v18, 0.0  ;;  %v1445_v49 = vsel %vm1443_vm14, %v1442_v45, %v9972_v42  ;;  %v1444_v50 = vsel %vm1443_vm14, %v1441_v46, %v9971_v43  ;;  %v10120_v45 = vld [vmem:[#allocation9 + $0x8] sm:$0xff]   ;;  %v10121_v46 = vld [vmem:[#allocation9] sm:$0xff]  }
 0xac7   :  { %1302 = vadd.xlane.f32.xlu0 %v1301_v27 }
 0xac9   :  { %v10221_v28 = vpop.eup %10220 }
 0xaca   :  { %v1304_v12 = vsel %vm526_vm12, %v10221_v28, 0.0 }
 0xacb   :  { %1305 = vadd.xlane.f32.xlu0 %v1304_v12 }
 0xae1   :  { %1361 = vrot.lane.b32.xlu0 %v11075_v41, %s10736_s5 }
 0xb50   :  { %v1303_v59 = vpop.xlane.xlu0 %1302 }
 0xb51   :  { %10222 = vrcp.f32 %v1303_v59 }
 0xb54   :  { %v1306_v61 = vpop.xlane.xlu0 %1305 }
 0xb55   :  { %10224 = vrcp.f32 %v1306_v61 }
 0xb58   :  { %v1362_v62 = vpop.permute.xlu0 %1361 }
 0xb59   :  { %v1367_v63 = vsel %vm654_vm13, %v1362_v62, 0 }
 0xb5a   :  { %9188 = vmatpush3.bf16.msra.mxu1 %v1367_v63 }
 0xb5b   :  { %9201 = vmatprep.subr.bf16.mxu1 %v10724_v0 }
 0xb5e   :  { %v10223_v3 = vpop.eup %10222 }
 0xb5f   :  { %v1308_v4 = vmul.f32 %v10223_v3, %v10219_v18 }
 0xb61   :  { %v1311_v5 = vpack.c.bf16 %v1308_v4, %v1308_v4  ;;  %1412 = vst.msk [vmem:[%s12960_s23 + $0x18] sm:$0xff] %vm526_vm12, %v1308_v4 }
 0xb62   :  { %v10225_v6 = vpop.eup %10224 }
 0xb63   :  { %9184 = vmatmul.mubr.msk.bf16.vlgmr.msra.gmra.mxu0 %vm526_vm12, %v1311_v5  ;;  %v1310_v41 = vmul.f32 %v10225_v6, %v10221_v28  ;;  %v10116_v5 = vld [vmem:[#allocation7 + $0x8] sm:$0xff]   ;;  %v10118_v6 = vld [vmem:[#allocation9 + $0x18] sm:$0xff]  }
 0xb64   :  { %9197 = vmatprep.mubr.msk.bf16.mxu0 %vm10725_vm0, %v10724_v0  ;;  %9194 = vmatpush3.bf16.msra.mxu0 %v10114_v7 }
 0xb65   :  { %v1312_v8 = vpack.c.bf16 %v1310_v41, %v1310_v41  ;;  %1416 = vst.msk [vmem:[%s12960_s23 + $0x38] sm:$0xff] %vm526_vm12, %v1310_v41  ;;  %9195 = vmatprep.subr.bf16.mxu0 %v10724_v0 }
 0xb67   :  { %9190 = vmatmul.mubr.msk.bf16.vlgmr.msra.gmra.mxu1 %vm526_vm12, %v1312_v8 }
 0xb68   :  { %9205 = vmatprep.mubr.msk.bf16.mxu1 %vm10725_vm0, %v10724_v0  ;;  %9196 = vmatpush3.bf16.msra.mxu0 %v10115_v9 }
 0xb69   :  { %9209 = vmatprep.subr.bf16.mxu0 %v10724_v0  ;;  %9202 = vmatpush3.bf16.msra.mxu1 %v10116_v5 }
 0xb6a   :  { %9203 = vmatprep.subr.bf16.mxu1 %v10724_v0 }
 0xc23   :  { %v1355_v14 = vpop.f32.mrf.mxu0 }
 0xc25   :  { %v9185_v15 = vpop.f32.mrf.mxu0 }
 0xc27   :  { %v1358_v17 = vpop.f32.mrf.mxu0  ;;  %v1403_v19 = vpop.f32.mrf.mxu1 }
 0xc28   :  { %v9973_v23 = vpack.i.bf16 %v1403_v19, %v1355_v14  ;;  %v11283_v17 = vsub.s32 5, %v10963_v11 }
 0xc29   :  { %v9186_v29 = vpop.f32.mrf.mxu0  ;;  %v9191_v30 = vpop.f32.mrf.mxu1 }
 0xc2a   :  { %9974 = vrot.lane.b32.xlu0 %v9973_v23, %s10738_s18  ;;  %v1542_v29 = vrot.slane %v10980_v25, %v11283_v17  ;;  %v11288_v30 = vsub.s32 6, %v10963_v11 }
 0xc2b   :  { %v1406_v31 = vpop.f32.mrf.mxu1 }
 0xc2c   :  { %v1548_v35 = vrot.slane %v10980_v25, %v11288_v30  ;;  %v8554_v25 = vld [vmem:[%s12948_s11] ss:$0 sm:$0xff] }
 0xc2d   :  { %v9192_v33 = vpop.f32.mrf.mxu1 }
 0xc9c   :  { %v9975_v44 = vpop.permute.xlu0 %9974 }
 0xc9d   :  { %v9977_v47 = vunpack.i.h.bf16 %v9975_v44  ;;  %v9976_v48 = vunpack.i.l.bf16 %v9975_v44  ;;  %v10119_v44 = vld [vmem:[#allocation9 + $0x10] sm:$0xff]  }
 0xc9f   :  { %v1448_v51 = vsel %vm1446_vm15, %v1445_v49, %v9977_v47  ;;  %v1447_v52 = vsel %vm1446_vm15, %v1444_v50, %v9976_v48 }
 0xca0   :  { %v1449_v53 = vpack.c.bf16 %v1448_v51, %v1447_v52 }
 0xca2   :  { %9198 = vmatmul.mubr.msk.bf16.vlgmr.msra.gmra.mxu0 %vm389_vm9, %v1449_v53 }
 0xca3   :  { %9217 = vmatprep.mubr.msk.bf16.mxu0 %vm10725_vm0, %v10724_v0  ;;  %9210 = vmatpush3.bf16.msra.mxu0 %v10118_v6 }
 0xca4   :  { %9211 = vmatprep.subr.bf16.mxu0 %v10724_v0 }
 0xca7   :  { %9212 = vmatpush3.bf16.msra.mxu0 %v10119_v44 }
 0xca8   :  { %9213 = vmatprep.subr.bf16.mxu0 %v10724_v0 }
 0xcab   :  { %9214 = vmatpush3.bf16.msra.mxu0 %v10120_v45  ;;  %v8563_v45 = vld [vmem:[#allocation10 + $0x8] ss:$0 sm:$0xff] }
 0xcac   :  { %9215 = vmatprep.subr.bf16.mxu0 %v10724_v0 }
 0xcaf   :  { %9216 = vmatpush3.bf16.msra.mxu0 %v10121_v46 }
 0xcb0   :  { %9237 = vmatprep.subr.bf16.mxu0 %v10724_v0 }
 0xd62   :  { %v1503_v54 = vpop.f32.mrf.mxu0 }
 0xd63   :  { %v1504_v13 = vadd.f32 %v1503_v54, %v1453_v10 }
 0xd64   :  { %v9199_v55 = vpop.f32.mrf.mxu0 }
 0xd65   :  { %v1510_v56 = vadd.f32 %v1504_v13, %v10975_v22  ;;  %v11305_v13 = vsub.s32 4, %v10963_v11  ;;  %v10426_v55 = vld [vmem:[#allocation10] sm:$0xff] }
 0xd66   :  { %v1506_v57 = vpop.f32.mrf.mxu0 }
 0xd67   :  { %v1507_v60 = vadd.f32 %v1506_v57, %v1453_v10  ;;  %v1512_v1 = vsel %vm389_vm9, %v1510_v56, 0.0 }
 0xd68   :  { %1513 = vadd.xlane.f32.xlu1 %v1512_v1  ;;  %v9200_v58 = vpop.f32.mrf.mxu0 }
 0xd69   :  { %v1511_v40 = vadd.f32 %v1507_v60, %v10978_v24  ;;  %v10117_v24 = vld [vmem:[#allocation7] sm:$0xff]  }
 0xd6a   :  { %9204 = vmatpush3.bf16.msra.mxu1 %v10117_v24 }
 0xd6b   :  { %v1515_v18 = vsel %vm389_vm9, %v1511_v40, 0.0  ;;  %9221 = vmatprep.subr.bf16.mxu1 %v10724_v0 }
 0xd6c   :  { %1516 = vadd.xlane.f32.xlu0 %v1515_v18 }
 0xdf1   :  { %v1514_v27 = vpop.xlane.xlu1 %1513 }
 0xdf2   :  { %v1519_v28 = vmul.f32 0.03125, %v1514_v27 }
 0xdf4   :  { %v1521_v12 = vsub.f32 %v1510_v56, %v1519_v28  ;;  %v1700_v56 = vrot.slane %v10426_v55, %v11305_v13 }
 0xdf5   :  { %v1517_v59 = vpop.xlane.xlu0 %1516 }
 0xdf6   :  { %v1520_v61 = vmul.f32 0.03125, %v1517_v59  ;;  %v1523_v62 = vmul.f32 %v1521_v12, %v1521_v12 }
 0xdf8   :  { %v1522_v63 = vsub.f32 %v1511_v40, %v1520_v61  ;;  %v1525_v22 = vsel %vm389_vm9, %v1523_v62, 0.0 }
 0xdf9   :  { %1526 = vadd.xlane.f32.xlu0 %v1525_v22 }
 0xdfa   :  { %v1524_v3 = vmul.f32 %v1522_v63, %v1522_v63 }
 0xdfc   :  { %v1528_v4 = vsel %vm389_vm9, %v1524_v3, 0.0 }
 0xdfd   :  { %1529 = vadd.xlane.f32.xlu1 %v1528_v4 }
 0xe82   :  { %v1527_v41 = vpop.xlane.xlu0 %1526 }
 0xe83   :  { %v1531_v8 = vmul.f32 0.03125, %v1527_v41 }
 0xe85   :  { %v1533_v7 = vadd.f32 1e-05, %v1531_v8  ;;  %v10122_v8 = vld [vmem:[#allocation4 + $0x58] sm:$0xff]  }
 0xe86   :  { %v1530_v9 = vpop.xlane.xlu1 %1529 }
 0xe87   :  { %10226 = vrsqrt.f32 %v1533_v7  ;;  %v1532_v14 = vmul.f32 0.03125, %v1530_v9  ;;  %v10123_v7 = vld [vmem:[#allocation4 + $0x50] sm:$0xff]   ;;  %v10124_v9 = vld [vmem:[#allocation4 + $0x48] sm:$0xff]  }
 0xe89   :  { %v1534_v15 = vadd.f32 1e-05, %v1532_v14  ;;  %v10125_v14 = vld [vmem:[#allocation4 + $0x40] sm:$0xff]  }
 0xe8b   :  { %10228 = vrsqrt.f32 %v1534_v15 }
 0xe94   :  { %v10227_v19 = vpop.eup %10226 }
 0xe95   :  { %v1537_v23 = vmul.f32 %v10227_v19, %v1521_v12 }
 0xe97   :  { %v1543_v34 = vmul.f32 %v1542_v29, %v1537_v23 }
 0xe98   :  { %v10229_v31 = vpop.eup %10228 }
 0xe99   :  { %v1538_v33 = vmul.f32 %v10229_v31, %v1522_v63  ;;  %v1549_v39 = vadd.f32 %v1548_v35, %v1543_v34  ;;  %v11317_v34 = vsub.s32 7, %v10963_v11 }
 0xe9b   :  { %v1544_v36 = vmul.f32 %v1542_v29, %v1538_v33 }
 0xe9d   :  { %v1550_v42 = vadd.f32 %v1548_v35, %v1544_v36  ;;  %v1732_v35 = vrot.slane %v10426_v55, %v11317_v34 }
 0xe9f   :  { %v1555_v43 = vpack.c.bf16 %v1550_v42, %v1549_v39 }
 0xea1   :  { %9206 = vmatmul.mubr.msk.bf16.vlgmr.msra.gmra.mxu1 %vm389_vm9, %v1555_v43 }
 0xea2   :  { %9233 = vmatprep.mubr.msk.bf16.mxu1 %vm10725_vm0, %v10724_v0  ;;  %9222 = vmatpush3.bf16.msra.mxu1 %v10122_v8 }
 0xea3   :  { %9223 = vmatprep.subr.bf16.mxu1 %v10724_v0 }
 0xea6   :  { %9224 = vmatpush3.bf16.msra.mxu1 %v10123_v7 }
 0xea7   :  { %9225 = vmatprep.subr.bf16.mxu1 %v10724_v0 }
 0xeaa   :  { %9226 = vmatpush3.bf16.msra.mxu1 %v10124_v9 }
 0xeab   :  { %9227 = vmatprep.subr.bf16.mxu1 %v10724_v0 }
 0xeae   :  { %9228 = vmatpush3.bf16.msra.mxu1 %v10125_v14 }
 0xeaf   :  { %9229 = vmatprep.subr.bf16.mxu1 %v10724_v0 }
 0xf61   :  { %v1609_v47 = vpop.f32.mrf.mxu1 }
 0xf62   :  { %v1610_v49 = vadd.f32 %v8554_v25, %v1609_v47 }
 0xf63   :  { %v9207_v48 = vpop.f32.mrf.mxu1 }
 0xf64   :  { %v1616_v53 = vmax.f32 %v1610_v49, 0.0 }
 0xf65   :  { %v1612_v50 = vpop.f32.mrf.mxu1 }
 0xf66   :  { %v1613_v51 = vadd.f32 %v8554_v25, %v1612_v50  ;;  %v10127_v25 = vld [vmem:[#allocation4 + $0x30] sm:$0xff]  }
 0xf67   :  { %v9208_v52 = vpop.f32.mrf.mxu1 }
 0xf68   :  { %v1617_v10 = vmax.f32 %v1613_v51, 0.0 }
 0xf6a   :  { %v1626_v54 = vpack.c.bf16 %v1617_v10, %v1616_v53 }
 0xf6c   :  { %9218 = vmatmul.mubr.msk.bf16.vlgmr.msra.gmra.mxu0 %vm392_vm10, %v1626_v54 }
 0xf6d   :  { %9239 = vmatprep.mubr.msk.bf16.mxu0 %vm10725_vm0, %v10724_v0 }
0x102c   :  { %v1688_v57 = vpop.f32.mrf.mxu0 }
0x102d   :  { %v1695_v60 = vadd.f32 %v1688_v57, %v1549_v39 }
0x102e   :  { %v9219_v1 = vpop.f32.mrf.mxu0 }
0x102f   :  { %v1701_v58 = vadd.f32 %v1700_v56, %v1695_v60 }
0x1030   :  { %v1691_v40 = vpop.f32.mrf.mxu0 }
0x1031   :  { %v1696_v18 = vadd.f32 %v1691_v40, %v1550_v42  ;;  %v1703_v27 = vsel %vm389_vm9, %v1701_v58, 0.0  ;;  %v10126_v42 = vld [vmem:[#allocation4 + $0x38] sm:$0xff]  }
0x1032   :  { %1704 = vadd.xlane.f32.xlu0 %v1703_v27  ;;  %v9220_v28 = vpop.f32.mrf.mxu0  ;;  %9230 = vmatpush3.bf16.msra.mxu1 %v10126_v42 }
0x1033   :  { %v1702_v12 = vadd.f32 %v1700_v56, %v1696_v18  ;;  %9231 = vmatprep.subr.bf16.mxu1 %v10724_v0  ;;  %v11339_v56 = vld [vmem:[#allocation10 + $0x10] sm:$0xff] }
0x1034   :  { %v1880_v60 = vrot.slane %v11339_v56, %v10983_v26 }
0x1035   :  { %v1706_v59 = vsel %vm389_vm9, %v1702_v12, 0.0 }
0x1036   :  { %1707 = vadd.xlane.f32.xlu1 %v1706_v59  ;;  %9232 = vmatpush3.bf16.msra.mxu1 %v10127_v25  ;;  %v11395_v25 = vld [vmem:[%s12983_s1] sm:$0xff] }
0x1037   :  { %9249 = vmatprep.subr.bf16.mxu1 %v10724_v0 }
0x10bb   :  { %v1705_v61 = vpop.xlane.xlu0 %1704 }
0x10bc   :  { %v1709_v62 = vmul.f32 0.03125, %v1705_v61 }
0x10be   :  { %v1711_v63 = vsub.f32 %v1701_v58, %v1709_v62 }
0x10bf   :  { %v1708_v22 = vpop.xlane.xlu1 %1707 }
0x10c0   :  { %v1710_v3 = vmul.f32 0.03125, %v1708_v22  ;;  %v1713_v4 = vmul.f32 %v1711_v63, %v1711_v63 }
0x10c2   :  { %v1712_v5 = vsub.f32 %v1702_v12, %v1710_v3  ;;  %v1715_v24 = vsel %vm389_vm9, %v1713_v4, 0.0 }
0x10c3   :  { %1716 = vadd.xlane.f32.xlu0 %v1715_v24 }
0x10c4   :  { %v1714_v6 = vmul.f32 %v1712_v5, %v1712_v5 }
0x10c6   :  { %v1718_v41 = vsel %vm389_vm9, %v1714_v6, 0.0 }
0x10c7   :  { %1719 = vadd.xlane.f32.xlu1 %v1718_v41 }
0x114c   :  { %v1717_v15 = vpop.xlane.xlu0 %1716 }
0x114d   :  { %v1721_v19 = vmul.f32 0.03125, %v1717_v15 }
0x114f   :  { %v1723_v23 = vadd.f32 1e-05, %v1721_v19 }
0x1150   :  { %v1720_v29 = vpop.xlane.xlu1 %1719 }
0x1151   :  { %10230 = vrsqrt.f32 %v1723_v23  ;;  %v1722_v31 = vmul.f32 0.03125, %v1720_v29 }
0x1153   :  { %v1724_v33 = vadd.f32 1e-05, %v1722_v31  ;;  %v1874_v31 = vrot.slane %v11339_v56, %v11038_v2 }
0x1155   :  { %10232 = vrsqrt.f32 %v1724_v33 }
0x115e   :  { %v10231_v36 = vpop.eup %10230 }
0x115f   :  { %v1727_v39 = vmul.f32 %v10231_v36, %v1711_v63 }
0x1161   :  { %v1733_v43 = vmul.f32 %v1732_v35, %v1727_v39 }
0x1162   :  { %v10233_v44 = vpop.eup %10232 }
0x1163   :  { %v1728_v46 = vmul.f32 %v10233_v44, %v1712_v5  ;;  %v11321_v48 = vadd.f32 %v8563_v45, %v1733_v43 }
0x1165   :  { %v1734_v47 = vmul.f32 %v1732_v35, %v1728_v46  ;;  %v1751_v51 = vrot.slane %v11321_v48, 1  ;;  %v1745_v58 = vrot.slane %v11321_v48, 7 }
0x1167   :  { %v11324_v49 = vadd.f32 %v8563_v45, %v1734_v47 }
0x1169   :  { %v9978_v50 = vpack.i.bf16 %v11324_v49, %v11321_v48  ;;  %v1752_v52 = vrot.slane %v11324_v49, 1  ;;  %v1746_v1 = vrot.slane %v11324_v49, 7 }
0x116b   :  { %9979 = vrot.lane.b32.xlu0 %v9978_v50, %s10726_s26  ;;  %v1753_v53 = vsel %vm356_vm3, %v1751_v51, %v1752_v52  ;;  %v1754_v10 = vsel %vm356_vm3, %v1752_v52, %v1751_v51  ;;  %v1747_v28 = vsel %vm337_vm6, %v1745_v58, %v1746_v1  ;;  %v1748_v12 = vsel %vm337_vm6, %v1746_v1, %v1745_v58 }
0x116c   :  { %v1755_v54 = vsel %vm363_vm4, %v1753_v53, 0.0  ;;  %v1756_v55 = vsel %vm364_vm5, %v1754_v10, 0.0  ;;  %v1749_v61 = vsel %vm342_vm7, %v1748_v12, 0.0  ;;  %v1750_v62 = vsel %vm343_vm8, %v1747_v28, 0.0 }
0x116d   :  { %v9983_v57 = vpack.i.bf16 %v1756_v55, %v1755_v54  ;;  %v1890_v58 = vrot.slane %v11339_v56, %v11068_v32 }
0x116f   :  { %9984 = vrot.lane.b32.xlu1 %v9983_v57, %s10708_s30 }
0x1173   :  { %1882 = vrot.lane.b32.xlu1 %v1880_v60, %s10726_s26 }
0x11dd   :  { %v9980_v40 = vpop.permute.xlu0 %9979 }
0x11de   :  { %v9982_v18 = vunpack.i.h.bf16 %v9980_v40  ;;  %v9981_v27 = vunpack.i.l.bf16 %v9980_v40 }
0x11e0   :  { %v1773_v3 = vsel %vm389_vm9, %v1749_v61, %v9981_v27  ;;  %v1774_v4 = vsel %vm389_vm9, %v1750_v62, %v9982_v18 }
0x11e1   :  { %v9985_v59 = vpop.permute.xlu1 %9984 }
0x11e2   :  { %v9987_v63 = vunpack.i.h.bf16 %v9985_v59  ;;  %v9986_v22 = vunpack.i.l.bf16 %v9985_v59 }
0x11e4   :  { %v1775_v5 = vsel %vm392_vm10, %v1773_v3, %v9986_v22  ;;  %v1776_v24 = vsel %vm392_vm10, %v1774_v4, %v9987_v63 }
0x11e5   :  { %v1790_v6 = vpack.c.bf16 %v1776_v24, %v1775_v5  ;;  %v1883_v41 = vpop.permute.xlu1 %1882 }
0x11e7   :  { %9234 = vmatmul.mubr.msk.bf16.vlgmr.msra.gmra.mxu1 %vm444_vm11, %v1790_v6 }
0x11e8   :  { %9251 = vmatprep.mubr.msk.bf16.mxu1 %vm10725_vm0, %v10724_v0 }
0x12a7   :  { %v11362_v8 = vpop.f32.mrf.mxu1 }
0x12a8   :  { %v1885_v7 = vadd.f32 %v1883_v41, %v11362_v8  ;;  %v1875_v36 = vadd.f32 %v1874_v31, %v11362_v8 }
0x12a9   :  { %v9235_v9 = vpop.f32.mrf.mxu1 }
0x12aa   :  { %v11365_v14 = vpack.c.bf16 %v1885_v7, %v1885_v7  ;;  %v11378_v42 = vpack.c.bf16 %v1875_v36, %v1875_v36 }
0x12ab   :  { %v1867_v15 = vpop.f32.mrf.mxu1 }
0x12ac   :  { %v1886_v19 = vadd.f32 %v1883_v41, %v1867_v15  ;;  %1907 = vrot.lane.b32.xlu0 %v11365_v14, %s10727_s8  ;;  %v1876_v44 = vadd.f32 %v1874_v31, %v1867_v15 }
0x12ad   :  { %v9236_v23 = vpop.f32.mrf.mxu1 }
0x12ae   :  { %v11369_v29 = vpack.c.bf16 %v1886_v19, %v1886_v19  ;;  %v11386_v45 = vpack.c.bf16 %v1876_v44, %v1876_v44 }
0x12b0   :  { %1956 = vrot.lane.b32.xlu1 %v11369_v29, %s10727_s8 }
0x131e   :  { %v1908_v33 = vpop.permute.xlu0 %1907 }
0x131f   :  { %v1913_v35 = vsel %vm526_vm12, %v1908_v33, 0 }
0x1320   :  { %9238 = vmatpush3.bf16.xpose.msra.mxu0 %v1913_v35 }
0x1321   :  { %9243 = vmatprep.subr.bf16.mxu0 %v10724_v0 }
0x1322   :  { %v1957_v39 = vpop.permute.xlu1 %1956 }
0x1323   :  { %v1962_v43 = vsel %vm526_vm12, %v1957_v39, 0 }
0x1327   :  { %9240 = vmatmul.mubr.msk.bf16.vlgmr.msra.gmra.mxu0 %vm526_vm12, %v11378_v42 }
0x1328   :  { %9244 = vmatpush3.bf16.xpose.msra.mxu0 %v1962_v43  ;;  %9245 = vmatprep.mubr.msk.bf16.mxu0 %vm10725_vm0, %v10724_v0 }
0x1329   :  { %9255 = vmatprep.subr.bf16.mxu0 %v10724_v0 }
0x132f   :  { %9246 = vmatmul.mubr.msk.bf16.vlgmr.msra.gmra.mxu0 %vm526_vm12, %v11386_v45 }
0x1330   :  { %9257 = vmatprep.mubr.msk.bf16.mxu0 %vm10725_vm0, %v10724_v0 }
0x13e7   :  { %v1949_v46 = vpop.f32.mrf.mxu0 }
0x13e8   :  { %v1950_v47 = vadd.f32 %v11395_v25, %v1949_v46 }
0x13e9   :  { %v9241_v50 = vpop.f32.mrf.mxu0 }
0x13ea   :  { %v2004_v51 = vsel %vm526_vm12, %v1950_v47, -inf }
0x13eb   :  { %2005 = vmax.xlane.f32.xlu0 %v2004_v51  ;;  %v1952_v52 = vpop.f32.mrf.mxu0 }
0x13ed   :  { %v9242_v53 = vpop.f32.mrf.mxu0 }
0x13ef   :  { %v1998_v10 = vpop.f32.mrf.mxu0 }
0x13f0   :  { %v1999_v54 = vadd.f32 %v11395_v25, %v1998_v10 }
0x13f1   :  { %v9247_v55 = vpop.f32.mrf.mxu0 }
0x13f2   :  { %v2007_v57 = vsel %vm526_vm12, %v1999_v54, -inf }
0x13f3   :  { %2008 = vmax.xlane.f32.xlu1 %v2007_v57  ;;  %v2001_v60 = vpop.f32.mrf.mxu0 }
0x13f5   :  { %v9248_v1 = vpop.f32.mrf.mxu0 }
0x1401   :  { %1892 = vrot.lane.b32.xlu0 %v1890_v58, %s10708_s30 }
0x1474   :  { %v2006_v40 = vpop.xlane.xlu0 %2005 }
0x1475   :  { %v2010_v18 = vsub.f32 %v1950_v47, %v2006_v40 }
0x1477   :  { %v2012_v27 = vmul.f32 1.442695, %v2010_v18 }
0x1478   :  { %v1893_v28 = vpop.permute.xlu0 %1892 }
0x1479   :  { %10234 = vpow2.f32 %v2012_v27  ;;  %v1896_v12 = vadd.f32 %v1893_v28, %v1867_v15  ;;  %v1895_v24 = vadd.f32 %v1893_v28, %v11362_v8 }
0x147b   :  { %v11404_v59 = vpack.c.bf16 %v1896_v12, %v1896_v12  ;;  %v11417_v6 = vpack.c.bf16 %v1895_v24, %v1895_v24 }
0x147c   :  { %v2009_v61 = vpop.xlane.xlu1 %2008 }
0x147d   :  { %v2011_v62 = vsub.f32 %v1999_v54, %v2009_v61  ;;  %2080 = vrot.lane.b32.xlu0 %v11404_v59, %s10708_s30 }
0x147f   :  { %v2014_v63 = vmul.f32 1.442695, %v2011_v62 }
0x1481   :  { %10236 = vpow2.f32 %v2014_v63  ;;  %2131 = vrot.lane.b32.xlu0 %v11365_v14, %s10728_s13 }
0x1485   :  { %2182 = vrot.lane.b32.xlu0 %v11369_v29, %s10728_s13 }
0x1486   :  { %v10235_v22 = vpop.eup %10234 }
0x1487   :  { %v2016_v3 = vsel %vm526_vm12, %v10235_v22, 0.0 }
0x1488   :  { %2017 = vadd.xlane.f32.xlu1 %v2016_v3 }
0x1489   :  { %2180 = vrot.lane.b32.xlu0 %v11386_v45, %s10729_s12 }
0x148e   :  { %v10237_v4 = vpop.eup %10236 }
0x148f   :  { %v2019_v5 = vsel %vm526_vm12, %v10237_v4, 0.0 }
0x1490   :  { %2020 = vadd.xlane.f32.xlu1 %v2019_v5 }
0x14a1   :  { %2031 = vrot.lane.b32.xlu1 %v11417_v6, %s10708_s30 }
0x14a5   :  { %2129 = vrot.lane.b32.xlu1 %v11378_v42, %s10729_s12 }
0x14ef   :  { %v2081_v41 = vpop.permute.xlu0 %2080 }
0x14f0   :  { %v2086_v7 = vsel %vm654_vm13, %v2081_v41, 0 }
0x14f1   :  { %9256 = vmatpush3.bf16.msra.mxu0 %v2086_v7 }
0x14f2   :  { %9267 = vmatprep.subr.bf16.mxu0 %v10724_v0 }
0x14f3   :  { %v2132_v33 = vpop.permute.xlu0 %2131 }
0x14f4   :  { %v2137_v36 = vsel %vm526_vm12, %v2132_v33, 0 }
0x14f7   :  { %v2183_v44 = vpop.permute.xlu0 %2182 }
0x14f8   :  { %v2188_v50 = vsel %vm526_vm12, %v2183_v44, 0 }
0x14fb   :  { %v2181_v51 = vpop.permute.xlu0 %2180 }
0x1511   :  { %v2018_v9 = vpop.xlane.xlu1 %2017 }
0x1512   :  { %10238 = vrcp.f32 %v2018_v9 }
0x1519   :  { %v2021_v15 = vpop.xlane.xlu1 %2020 }
0x151a   :  { %10240 = vrcp.f32 %v2021_v15 }
0x151d   :  { %v2032_v19 = vpop.permute.xlu1 %2031 }
0x151e   :  { %v2037_v8 = vsel %vm654_vm13, %v2032_v19, 0 }
0x151f   :  { %v10239_v23 = vpop.eup %10238  ;;  %9250 = vmatpush3.bf16.msra.mxu1 %v2037_v8 }
0x1520   :  { %9261 = vmatprep.subr.bf16.mxu1 %v10724_v0  ;;  %v2023_v31 = vmul.f32 %v10239_v23, %v10235_v22 }
0x1521   :  { %v2130_v47 = vpop.permute.xlu1 %2129 }
0x1522   :  { %v2026_v35 = vpack.c.bf16 %v2023_v31, %v2023_v31  ;;  %8587 = vst.msk [vmem:[%s12960_s23 + $0x40] sm:$0xff] %vm526_vm12, %v2023_v31 }
0x1524   :  { %9252 = vmatmul.mubr.msk.bf16.vlgmr.msra.gmra.mxu1 %vm526_vm12, %v2026_v35 }
0x1525   :  { %9262 = vmatpush3.bf16.xpose.msra.mxu1 %v2137_v36  ;;  %9263 = vmatprep.mubr.msk.bf16.mxu1 %vm10725_vm0, %v10724_v0 }
0x1526   :  { %9273 = vmatprep.subr.bf16.mxu1 %v10724_v0 }
0x1527   :  { %v10241_v39 = vpop.eup %10240 }
0x1528   :  { %v2025_v43 = vmul.f32 %v10241_v39, %v10237_v4 }
0x152a   :  { %v2027_v46 = vpack.c.bf16 %v2025_v43, %v2025_v43  ;;  %8591 = vst.msk [vmem:[%s12960_s23 + $0x60] sm:$0xff] %vm526_vm12, %v2025_v43 }
0x152c   :  { %9258 = vmatmul.mubr.msk.bf16.vlgmr.msra.gmra.mxu0 %vm526_vm12, %v2027_v46  ;;  %9264 = vmatmul.mubr.msk.bf16.vlgmr.msra.gmra.mxu1 %vm526_vm12, %v2130_v47 }
0x152d   :  { %9268 = vmatpush3.bf16.xpose.msra.mxu0 %v2188_v50  ;;  %9269 = vmatprep.mubr.msk.bf16.mxu0 %vm10725_vm0, %v10724_v0 }
0x152e   :  { %9279 = vmatprep.subr.bf16.mxu0 %v10724_v0  ;;  %9275 = vmatprep.mubr.msk.bf16.mxu1 %vm10725_vm0, %v10724_v0 }
0x1534   :  { %9270 = vmatmul.mubr.msk.bf16.vlgmr.msra.gmra.mxu0 %vm526_vm12, %v2181_v51 }
0x1535   :  { %9281 = vmatprep.mubr.msk.bf16.mxu0 %vm10725_vm0, %v10724_v0 }
0x15e4   :  { %v11451_v52 = vpop.f32.mrf.mxu1 }
0x15e6   :  { %v9253_v53 = vpop.f32.mrf.mxu1 }
0x15e8   :  { %v2076_v10 = vpop.f32.mrf.mxu1 }
0x15ea   :  { %v9254_v54 = vpop.f32.mrf.mxu1 }
0x15ec   :  { %v11453_v55 = vpop.f32.mrf.mxu0  ;;  %v2173_v57 = vpop.f32.mrf.mxu1 }
0x15ed   :  { %v2174_v60 = vadd.f32 %v11395_v25, %v2173_v57 }
0x15ee   :  { %v9259_v1 = vpop.f32.mrf.mxu0  ;;  %v9265_v58 = vpop.f32.mrf.mxu1 }
0x15ef   :  { %v2230_v40 = vsel %vm526_vm12, %v2174_v60, -inf }
0x15f0   :  { %2231 = vmax.xlane.f32.xlu1 %v2230_v40  ;;  %v2125_v18 = vpop.f32.mrf.mxu0  ;;  %v2176_v27 = vpop.f32.mrf.mxu1 }
0x15f2   :  { %v9260_v28 = vpop.f32.mrf.mxu0  ;;  %v9266_v12 = vpop.f32.mrf.mxu1 }
0x15f4   :  { %v2224_v61 = vpop.f32.mrf.mxu0 }
0x15f5   :  { %v2225_v62 = vadd.f32 %v11395_v25, %v2224_v61 }
0x15f6   :  { %v9271_v63 = vpop.f32.mrf.mxu0 }
0x15f7   :  { %v2233_v22 = vsel %vm526_vm12, %v2225_v62, -inf }
0x15f8   :  { %2234 = vmax.xlane.f32.xlu0 %v2233_v22  ;;  %v2227_v3 = vpop.f32.mrf.mxu0 }
0x15fa   :  { %v9272_v4 = vpop.f32.mrf.mxu0 }
0x1601   :  { %2302 = vrot.lane.b32.xlu1 %v11404_v59, %s10730_s15 }
0x160e   :  { %2254 = vrot.lane.b32.xlu0 %v11417_v6, %s10730_s15 }
0x1679   :  { %v2232_v5 = vpop.xlane.xlu1 %2231 }
0x167a   :  { %v2236_v24 = vsub.f32 %v2174_v60, %v2232_v5 }
0x167c   :  { %v2238_v41 = vmul.f32 1.442695, %v2236_v24 }
0x167d   :  { %v2303_v7 = vpop.permute.xlu1 %2302 }
0x167e   :  { %10242 = vpow2.f32 %v2238_v41  ;;  %v2308_v9 = vsel %vm654_vm13, %v2303_v7, 0 }
0x167f   :  { %9280 = vmatpush3.bf16.msra.mxu0 %v2308_v9 }
0x1680   :  { %9291 = vmatprep.subr.bf16.mxu0 %v10724_v0 }
0x1681   :  { %v2235_v15 = vpop.xlane.xlu0 %2234 }
0x1682   :  { %v2237_v19 = vsub.f32 %v2225_v62, %v2235_v15 }
0x1684   :  { %v2240_v8 = vmul.f32 1.442695, %v2237_v19 }
0x1685   :  { %v2255_v23 = vpop.permute.xlu0 %2254 }
0x1686   :  { %10244 = vpow2.f32 %v2240_v8  ;;  %v2260_v31 = vsel %vm654_vm13, %v2255_v23, 0 }
0x1687   :  { %9274 = vmatpush3.bf16.msra.mxu1 %v2260_v31 }
0x1688   :  { %9285 = vmatprep.subr.bf16.mxu1 %v10724_v0 }
0x168b   :  { %v10243_v33 = vpop.eup %10242 }
0x168c   :  { %v2242_v35 = vsel %vm526_vm12, %v10243_v33, 0.0 }
0x168d   :  { %2243 = vadd.xlane.f32.xlu0 %v2242_v35 }
0x1693   :  { %v10245_v36 = vpop.eup %10244 }
0x1694   :  { %v2245_v39 = vsel %vm526_vm12, %v10245_v36, 0.0 }
0x1695   :  { %2246 = vadd.xlane.f32.xlu1 %v2245_v39 }
0x16a3   :  { %2402 = vrot.lane.b32.xlu0 %v11369_v29, %s10731_s9 }
0x16a6   :  { %2352 = vrot.lane.b32.xlu1 %v11365_v14, %s10731_s9 }
0x16a7   :  { %2400 = vrot.lane.b32.xlu0 %v11386_v45, %s10732_s16 }
0x16aa   :  { %2350 = vrot.lane.b32.xlu1 %v11378_v42, %s10732_s16 }
0x1716   :  { %v2244_v43 = vpop.xlane.xlu0 %2243 }
0x1717   :  { %10246 = vrcp.f32 %v2244_v43 }
0x171a   :  { %v2403_v57 = vpop.permute.xlu0 %2402 }
0x171b   :  { %v2408_v58 = vsel %vm526_vm12, %v2403_v57, 0 }
0x171e   :  { %v2247_v44 = vpop.xlane.xlu1 %2246  ;;  %v2401_v40 = vpop.permute.xlu0 %2400 }
0x171f   :  { %10248 = vrcp.f32 %v2247_v44 }
0x1722   :  { %v2353_v50 = vpop.permute.xlu1 %2352 }
0x1723   :  { %v2358_v53 = vsel %vm526_vm12, %v2353_v50, 0 }
0x1724   :  { %v10247_v46 = vpop.eup %10246 }
0x1725   :  { %v2249_v47 = vmul.f32 %v10247_v46, %v10243_v33 }
0x1726   :  { %v2351_v1 = vpop.permute.xlu1 %2350 }
0x1727   :  { %v2252_v51 = vpack.c.bf16 %v2249_v47, %v2249_v47  ;;  %8588 = vst.msk [vmem:[%s12960_s23 + $0x48] sm:$0xff] %vm526_vm12, %v2249_v47 }
0x1729   :  { %9276 = vmatmul.mubr.msk.bf16.vlgmr.msra.gmra.mxu1 %vm526_vm12, %v2252_v51 }
0x172a   :  { %9286 = vmatpush3.bf16.xpose.msra.mxu1 %v2358_v53  ;;  %9287 = vmatprep.mubr.msk.bf16.mxu1 %vm10725_vm0, %v10724_v0 }
0x172b   :  { %9297 = vmatprep.subr.bf16.mxu1 %v10724_v0 }
0x172c   :  { %v10249_v10 = vpop.eup %10248 }
0x172d   :  { %v2251_v54 = vmul.f32 %v10249_v10, %v10245_v36 }
0x172f   :  { %v2253_v60 = vpack.c.bf16 %v2251_v54, %v2251_v54  ;;  %8592 = vst.msk [vmem:[%s12960_s23 + $0x68] sm:$0xff] %vm526_vm12, %v2251_v54 }
0x1731   :  { %9282 = vmatmul.mubr.msk.bf16.vlgmr.msra.gmra.mxu0 %vm526_vm12, %v2253_v60  ;;  %9288 = vmatmul.mubr.msk.bf16.vlgmr.msra.gmra.mxu1 %vm526_vm12, %v2351_v1 }
0x1732   :  { %9292 = vmatpush3.bf16.xpose.msra.mxu0 %v2408_v58  ;;  %9293 = vmatprep.mubr.msk.bf16.mxu0 %vm10725_vm0, %v10724_v0 }
0x1733   :  { %9303 = vmatprep.subr.bf16.mxu0 %v10724_v0  ;;  %9299 = vmatprep.mubr.msk.bf16.mxu1 %vm10725_vm0, %v10724_v0 }
0x1739   :  { %9294 = vmatmul.mubr.msk.bf16.vlgmr.msra.gmra.mxu0 %vm526_vm12, %v2401_v40 }
0x173a   :  { %9305 = vmatprep.mubr.msk.bf16.mxu0 %vm10725_vm0, %v10724_v0 }
0x17e9   :  { %v11501_v18 = vpop.f32.mrf.mxu1 }
0x17eb   :  { %v9277_v27 = vpop.f32.mrf.mxu1 }
0x17ed   :  { %v2299_v28 = vpop.f32.mrf.mxu1 }
0x17ef   :  { %v9278_v12 = vpop.f32.mrf.mxu1 }
0x17f1   :  { %v11503_v61 = vpop.f32.mrf.mxu0  ;;  %v2394_v62 = vpop.f32.mrf.mxu1 }
0x17f2   :  { %v9988_v63 = vpack.i.bf16 %v11503_v61, %v11501_v18  ;;  %v2395_v22 = vadd.f32 %v11395_v25, %v2394_v62 }
0x17f3   :  { %v9283_v3 = vpop.f32.mrf.mxu0  ;;  %v9289_v4 = vpop.f32.mrf.mxu1 }
0x17f4   :  { %v2450_v5 = vsel %vm526_vm12, %v2395_v22, -inf }
0x17f5   :  { %2451 = vmax.xlane.f32.xlu1 %v2450_v5  ;;  %v2347_v24 = vpop.f32.mrf.mxu0  ;;  %v2397_v41 = vpop.f32.mrf.mxu1 }
0x17f7   :  { %v9284_v7 = vpop.f32.mrf.mxu0  ;;  %v9290_v9 = vpop.f32.mrf.mxu1 }
0x17f9   :  { %v2444_v15 = vpop.f32.mrf.mxu0 }
0x17fa   :  { %v2445_v19 = vadd.f32 %v11395_v25, %v2444_v15 }
0x17fb   :  { %v9295_v8 = vpop.f32.mrf.mxu0 }
0x17fc   :  { %v2453_v23 = vsel %vm526_vm12, %v2445_v19, -inf }
0x17fd   :  { %2454 = vmax.xlane.f32.xlu0 %v2453_v23  ;;  %v2447_v31 = vpop.f32.mrf.mxu0 }
0x17ff   :  { %v9296_v33 = vpop.f32.mrf.mxu0 }
0x1806   :  { %2522 = vrot.lane.b32.xlu1 %v11404_v59, %s10733_s10 }
0x1813   :  { %2474 = vrot.lane.b32.xlu0 %v11417_v6, %s10733_s10 }
0x187e   :  { %v2452_v35 = vpop.xlane.xlu1 %2451 }
0x187f   :  { %v2456_v36 = vsub.f32 %v2395_v22, %v2452_v35 }
0x1881   :  { %v2458_v39 = vmul.f32 1.442695, %v2456_v36 }
0x1882   :  { %v2523_v43 = vpop.permute.xlu1 %2522 }
0x1883   :  { %10250 = vpow2.f32 %v2458_v39  ;;  %v2528_v44 = vsel %vm654_vm13, %v2523_v43, 0 }
0x1884   :  { %9304 = vmatpush3.bf16.msra.mxu0 %v2528_v44 }
0x1885   :  { %9315 = vmatprep.subr.bf16.mxu0 %v10724_v0 }
0x1886   :  { %v2455_v46 = vpop.xlane.xlu0 %2454 }
0x1887   :  { %v2457_v47 = vsub.f32 %v2445_v19, %v2455_v46 }
0x1889   :  { %v2460_v50 = vmul.f32 1.442695, %v2457_v47 }
0x188a   :  { %v2475_v51 = vpop.permute.xlu0 %2474 }
0x188b   :  { %10252 = vpow2.f32 %v2460_v50  ;;  %v2480_v53 = vsel %vm654_vm13, %v2475_v51, 0 }
0x188c   :  { %9298 = vmatpush3.bf16.msra.mxu1 %v2480_v53 }
0x188d   :  { %9309 = vmatprep.subr.bf16.mxu1 %v10724_v0 }
0x1890   :  { %v10251_v10 = vpop.eup %10250 }
0x1891   :  { %v2462_v54 = vsel %vm526_vm12, %v10251_v10, 0.0 }
0x1892   :  { %2463 = vadd.xlane.f32.xlu0 %v2462_v54 }
0x1898   :  { %v10253_v57 = vpop.eup %10252 }
0x1899   :  { %v2465_v60 = vsel %vm526_vm12, %v10253_v57, 0.0 }
0x189a   :  { %2466 = vadd.xlane.f32.xlu1 %v2465_v60 }
0x18a8   :  { %2622 = vrot.lane.b32.xlu0 %v11369_v29, %s10734_s28 }
0x18ab   :  { %2572 = vrot.lane.b32.xlu1 %v11365_v14, %s10734_s28 }
0x18ac   :  { %2620 = vrot.lane.b32.xlu0 %v11386_v45, %s10735_s2 }
0x18af   :  { %2570 = vrot.lane.b32.xlu1 %v11378_v42, %s10735_s2 }
0x191b   :  { %v2464_v1 = vpop.xlane.xlu0 %2463 }
0x191c   :  { %10254 = vrcp.f32 %v2464_v1 }
0x191f   :  { %v2623_v45 = vpop.permute.xlu0 %2622 }
0x1920   :  { %v2628_v3 = vsel %vm526_vm12, %v2623_v45, 0 }
0x1923   :  { %v2467_v58 = vpop.xlane.xlu1 %2466  ;;  %v2621_v4 = vpop.permute.xlu0 %2620 }
0x1924   :  { %10256 = vrcp.f32 %v2467_v58 }
0x1927   :  { %v2573_v28 = vpop.permute.xlu1 %2572 }
0x1928   :  { %v2578_v14 = vsel %vm526_vm12, %v2573_v28, 0 }
0x1929   :  { %v10255_v40 = vpop.eup %10254 }
0x192a   :  { %v2469_v27 = vmul.f32 %v10255_v40, %v10251_v10 }
0x192b   :  { %v2571_v22 = vpop.permute.xlu1 %2570 }
0x192c   :  { %v2472_v12 = vpack.c.bf16 %v2469_v27, %v2469_v27  ;;  %8589 = vst.msk [vmem:[%s12960_s23 + $0x50] sm:$0xff] %vm526_vm12, %v2469_v27 }
0x192e   :  { %9300 = vmatmul.mubr.msk.bf16.vlgmr.msra.gmra.mxu1 %vm526_vm12, %v2472_v12 }
0x192f   :  { %9310 = vmatpush3.bf16.xpose.msra.mxu1 %v2578_v14  ;;  %9311 = vmatprep.mubr.msk.bf16.mxu1 %vm10725_vm0, %v10724_v0 }
0x1930   :  { %9321 = vmatprep.subr.bf16.mxu1 %v10724_v0 }
0x1931   :  { %v10257_v29 = vpop.eup %10256 }
0x1932   :  { %v2471_v42 = vmul.f32 %v10257_v29, %v10253_v57 }
0x1934   :  { %v2473_v62 = vpack.c.bf16 %v2471_v42, %v2471_v42  ;;  %8593 = vst.msk [vmem:[%s12960_s23 + $0x70] sm:$0xff] %vm526_vm12, %v2471_v42 }
0x1936   :  { %9306 = vmatmul.mubr.msk.bf16.vlgmr.msra.gmra.mxu0 %vm526_vm12, %v2473_v62  ;;  %9312 = vmatmul.mubr.msk.bf16.vlgmr.msra.gmra.mxu1 %vm526_vm12, %v2571_v22 }
0x1937   :  { %9316 = vmatpush3.bf16.xpose.msra.mxu0 %v2628_v3  ;;  %9317 = vmatprep.mubr.msk.bf16.mxu0 %vm10725_vm0, %v10724_v0  ;;  %v10128_v3 = vld [vmem:[#allocation6 + $0x18] sm:$0xff]  }
0x1938   :  { %9327 = vmatprep.subr.bf16.mxu0 %v10724_v0  ;;  %9323 = vmatprep.mubr.msk.bf16.mxu1 %vm10725_vm0, %v10724_v0 }
0x193e   :  { %9318 = vmatmul.mubr.msk.bf16.vlgmr.msra.gmra.mxu0 %vm526_vm12, %v2621_v4  ;;  %v10129_v4 = vld [vmem:[#allocation6 + $0x10] sm:$0xff]  }
0x193f   :  { %9329 = vmatprep.mubr.msk.bf16.mxu0 %vm10725_vm0, %v10724_v0 }
0x19ee   :  { %v2516_v5 = vpop.f32.mrf.mxu1 }
0x19f0   :  { %v9301_v24 = vpop.f32.mrf.mxu1 }
0x19f2   :  { %v2519_v41 = vpop.f32.mrf.mxu1 }
0x19f4   :  { %v9302_v7 = vpop.f32.mrf.mxu1 }
0x19f6   :  { %v2564_v9 = vpop.f32.mrf.mxu0  ;;  %v2614_v15 = vpop.f32.mrf.mxu1 }
0x19f7   :  { %v9993_v19 = vpack.i.bf16 %v2564_v9, %v2516_v5  ;;  %v2615_v8 = vadd.f32 %v11395_v25, %v2614_v15 }
0x19f8   :  { %v9307_v23 = vpop.f32.mrf.mxu0  ;;  %v9313_v31 = vpop.f32.mrf.mxu1 }
0x19f9   :  { %v2670_v33 = vsel %vm526_vm12, %v2615_v8, -inf }
0x19fa   :  { %2671 = vmax.xlane.f32.xlu1 %v2670_v33  ;;  %v2567_v35 = vpop.f32.mrf.mxu0  ;;  %v2617_v36 = vpop.f32.mrf.mxu1 }
0x19fc   :  { %v9308_v39 = vpop.f32.mrf.mxu0  ;;  %v9314_v43 = vpop.f32.mrf.mxu1 }
0x19fe   :  { %v2664_v44 = vpop.f32.mrf.mxu0 }
0x19ff   :  { %v2665_v46 = vadd.f32 %v11395_v25, %v2664_v44 }
0x1a00   :  { %v9319_v47 = vpop.f32.mrf.mxu0 }
0x1a01   :  { %v2673_v50 = vsel %vm526_vm12, %v2665_v46, -inf }
0x1a02   :  { %2674 = vmax.xlane.f32.xlu0 %v2673_v50  ;;  %v2667_v51 = vpop.f32.mrf.mxu0 }
0x1a04   :  { %v9320_v53 = vpop.f32.mrf.mxu0 }
0x1a83   :  { %v2672_v10 = vpop.xlane.xlu1 %2671 }
0x1a84   :  { %v2676_v54 = vsub.f32 %v2615_v8, %v2672_v10 }
0x1a86   :  { %v2678_v57 = vmul.f32 1.442695, %v2676_v54 }
0x1a88   :  { %10258 = vpow2.f32 %v2678_v57 }
0x1a8b   :  { %v2675_v60 = vpop.xlane.xlu0 %2674 }
0x1a8c   :  { %v2677_v1 = vsub.f32 %v2665_v46, %v2675_v60 }
0x1a8e   :  { %v2680_v58 = vmul.f32 1.442695, %v2677_v1 }
0x1a90   :  { %10260 = vpow2.f32 %v2680_v58 }
0x1a95   :  { %v10259_v40 = vpop.eup %10258 }
0x1a96   :  { %v2682_v27 = vsel %vm526_vm12, %v10259_v40, 0.0 }
0x1a97   :  { %2683 = vadd.xlane.f32.xlu0 %v2682_v27 }
0x1a9d   :  { %v10261_v28 = vpop.eup %10260 }
0x1a9e   :  { %v2685_v25 = vsel %vm526_vm12, %v10261_v28, 0.0 }
0x1a9f   :  { %2686 = vadd.xlane.f32.xlu1 %v2685_v25 }
0x1aad   :  { %2694 = vrot.lane.b32.xlu0 %v11417_v6, %s10736_s5 }
0x1ab0   :  { %2742 = vrot.lane.b32.xlu1 %v11404_v59, %s10736_s5 }
0x1ab1   :  { %9994 = vrot.lane.b32.xlu0 %v9993_v19, %s10737_s14 }
0x1ab4   :  { %9989 = vrot.lane.b32.xlu1 %v9988_v63, %s10713_s3 }
0x1b20   :  { %v2684_v12 = vpop.xlane.xlu0 %2683 }
0x1b21   :  { %10262 = vrcp.f32 %v2684_v12 }
0x1b24   :  { %v2695_v14 = vpop.permute.xlu0 %2694 }
0x1b25   :  { %v2700_v29 = vsel %vm654_vm13, %v2695_v14, 0 }
0x1b26   :  { %9322 = vmatpush3.bf16.msra.mxu1 %v2700_v29 }
0x1b27   :  { %9333 = vmatprep.subr.bf16.mxu1 %v10724_v0 }
0x1b28   :  { %v2687_v42 = vpop.xlane.xlu1 %2686  ;;  %v9995_v36 = vpop.permute.xlu0 %9994 }
0x1b29   :  { %10264 = vrcp.f32 %v2687_v42  ;;  %v9997_v44 = vunpack.i.h.bf16 %v9995_v36  ;;  %v9996_v46 = vunpack.i.l.bf16 %v9995_v36  ;;  %v11609_v42 = vld [vmem:[%s12984_s7] sm:$0xff] }
0x1b2c   :  { %v2743_v6 = vpop.permute.xlu1 %2742 }
0x1b2d   :  { %v2748_v59 = vsel %vm654_vm13, %v2743_v6, 0 }
0x1b2e   :  { %v10263_v45 = vpop.eup %10262  ;;  %9328 = vmatpush3.bf16.msra.mxu0 %v2748_v59 }
0x1b2f   :  { %v2689_v62 = vmul.f32 %v10263_v45, %v10259_v40  ;;  %9341 = vmatprep.subr.bf16.mxu0 %v10724_v0 }
0x1b30   :  { %v9990_v31 = vpop.permute.xlu1 %9989 }
0x1b31   :  { %v2692_v18 = vpack.c.bf16 %v2689_v62, %v2689_v62  ;;  %8590 = vst.msk [vmem:[%s12960_s23 + $0x58] sm:$0xff] %vm526_vm12, %v2689_v62  ;;  %v9992_v33 = vunpack.i.h.bf16 %v9990_v31  ;;  %v9991_v35 = vunpack.i.l.bf16 %v9990_v31 }
0x1b33   :  { %9324 = vmatmul.mubr.msk.bf16.vlgmr.msra.gmra.mxu1 %vm526_vm12, %v2692_v18  ;;  %v2824_v39 = vsel %vm526_vm12, %v11453_v55, %v9992_v33  ;;  %v2823_v43 = vsel %vm526_vm12, %v11451_v52, %v9991_v35  ;;  %v2833_v52 = vrot.slane %v11339_v56, %v11269_v16 }
0x1b34   :  { %9337 = vmatprep.mubr.msk.bf16.mxu1 %vm10725_vm0, %v10724_v0  ;;  %9334 = vmatpush3.bf16.msra.mxu1 %v10128_v3  ;;  %v2825_v53 = vsel %vm1443_vm14, %v2823_v43, %v9996_v46  ;;  %v2826_v10 = vsel %vm1443_vm14, %v2824_v39, %v9997_v44  ;;  %v3162_v3 = vrot.slane %v11609_v42, 1  ;;  %v2921_v44 = vrot.slane %v11339_v56, %v11283_v17 }
0x1b35   :  { %9335 = vmatprep.subr.bf16.mxu1 %v10724_v0 }
0x1b36   :  { %v10265_v61 = vpop.eup %10264 }
0x1b37   :  { %v2691_v63 = vmul.f32 %v10265_v61, %v10261_v28 }
0x1b38   :  { %9336 = vmatpush3.bf16.msra.mxu1 %v10129_v4  ;;  %v3163_v4 = vsel %vm363_vm4, %v3162_v3, 0.0 }
0x1b39   :  { %v2693_v22 = vpack.c.bf16 %v2691_v63, %v2691_v63  ;;  %8594 = vst.msk [vmem:[%s12960_s23 + $0x78] sm:$0xff] %vm526_vm12, %v2691_v63  ;;  %9349 = vmatprep.subr.bf16.mxu1 %v10724_v0 }
0x1b3b   :  { %9330 = vmatmul.mubr.msk.bf16.vlgmr.msra.gmra.mxu0 %vm526_vm12, %v2693_v22 }
0x1b3c   :  { %9345 = vmatprep.mubr.msk.bf16.mxu0 %vm10725_vm0, %v10724_v0 }
0x1bf3   :  { %v2736_v5 = vpop.f32.mrf.mxu1 }
0x1bf5   :  { %v9325_v24 = vpop.f32.mrf.mxu1 }
0x1bf7   :  { %v2739_v41 = vpop.f32.mrf.mxu1 }
0x1bf8   :  { %v10130_v41 = vld [vmem:[#allocation7 + $0x18] sm:$0xff]  }
0x1bf9   :  { %v9326_v7 = vpop.f32.mrf.mxu1  ;;  %9342 = vmatpush3.bf16.msra.mxu0 %v10130_v41 }
0x1bfa   :  { %v10131_v7 = vld [vmem:[#allocation7 + $0x10] sm:$0xff]   ;;  %9343 = vmatprep.subr.bf16.mxu0 %v10724_v0 }
0x1bfb   :  { %v2784_v9 = vpop.f32.mrf.mxu0 }
0x1bfc   :  { %v9998_v15 = vpack.i.bf16 %v2784_v9, %v2736_v5  ;;  %v3164_v5 = vsel %vm364_vm5, %v3162_v3, 0.0  ;;  %v11623_v9 = vld [vmem:[#allocation19] sm:$0xff] }
0x1bfd   :  { %v9331_v19 = vpop.f32.mrf.mxu0  ;;  %v10003_v24 = vpack.i.bf16 %v3164_v5, %v3163_v4  ;;  %9344 = vmatpush3.bf16.msra.mxu0 %v10131_v7 }
0x1bfe   :  { %9999 = vrot.lane.b32.xlu1 %v9998_v15, %s10738_s18  ;;  %9361 = vmatprep.subr.bf16.mxu0 %v10724_v0  ;;  %v10138_v15 = vld [vmem:[#allocation9 + $0x38] sm:$0xff]   ;;  %v3283_v19 = vrot.slane %v11623_v9, %v10983_v26 }
0x1bff   :  { %v2787_v8 = vpop.f32.mrf.mxu0 }
0x1c01   :  { %v9332_v23 = vpop.f32.mrf.mxu0 }
0x1c70   :  { %v10000_v47 = vpop.permute.xlu1 %9999 }
0x1c71   :  { %v10002_v50 = vunpack.i.h.bf16 %v10000_v47  ;;  %v10001_v51 = vunpack.i.l.bf16 %v10000_v47 }
0x1c73   :  { %v2828_v54 = vsel %vm1446_vm15, %v2826_v10, %v10002_v50  ;;  %v2827_v57 = vsel %vm1446_vm15, %v2825_v53, %v10001_v51  ;;  %v2927_v51 = vrot.slane %v11339_v56, %v11288_v30  ;;  %v10134_v56 = vld [vmem:[#allocation12 + $0x18] sm:$0xff]  }
0x1c74   :  { %v2829_v60 = vpack.c.bf16 %v2828_v54, %v2827_v57  ;;  %v10132_v57 = vld [vmem:[#allocation12 + $0x28] sm:$0xff]  }
0x1c76   :  { %9338 = vmatmul.mubr.msk.bf16.vlgmr.msra.gmra.mxu1 %vm389_vm9, %v2829_v60 }
0x1c77   :  { %9357 = vmatprep.mubr.msk.bf16.mxu1 %vm10725_vm0, %v10724_v0  ;;  %9350 = vmatpush3.bf16.msra.mxu1 %v10138_v15 }
0x1c78   :  { %9351 = vmatprep.subr.bf16.mxu1 %v10724_v0 }
0x1d36   :  { %v2883_v55 = vpop.f32.mrf.mxu1 }
0x1d37   :  { %v2884_v1 = vadd.f32 %v2883_v55, %v2833_v52  ;;  %v3159_v55 = vrot.slane %v11609_v42, 7 }
0x1d38   :  { %v9339_v58 = vpop.f32.mrf.mxu1 }
0x1d39   :  { %v2890_v40 = vadd.f32 %v2884_v1, %v11321_v48  ;;  %v10135_v1 = vld [vmem:[#allocation12 + $0x10] sm:$0xff]  }
0x1d3a   :  { %v2886_v27 = vpop.f32.mrf.mxu1 }
0x1d3b   :  { %v2887_v28 = vadd.f32 %v2886_v27, %v2833_v52  ;;  %v2892_v25 = vsel %vm389_vm9, %v2890_v40, 0.0  ;;  %v10133_v52 = vld [vmem:[#allocation12 + $0x20] sm:$0xff]   ;;  %v3161_v27 = vsel %vm343_vm8, %v3159_v55, 0.0 }
0x1d3c   :  { %2893 = vadd.xlane.f32.xlu0 %v2892_v25  ;;  %v9340_v12 = vpop.f32.mrf.mxu1  ;;  %v10136_v25 = vld [vmem:[#allocation12 + $0x8] sm:$0xff]  }
0x1d3d   :  { %v2891_v14 = vadd.f32 %v2887_v28, %v11324_v49 }
0x1d3f   :  { %v2895_v29 = vsel %vm389_vm9, %v2891_v14, 0.0 }
0x1d40   :  { %2896 = vadd.xlane.f32.xlu1 %v2895_v29 }
0x1d51   :  { %3166 = vrot.lane.b32.xlu1 %v11609_v42, %s10726_s26 }
0x1d55   :  { %3285 = vrot.lane.b32.xlu1 %v3283_v19, %s10726_s26 }
0x1dc5   :  { %v2894_v48 = vpop.xlane.xlu0 %2893 }
0x1dc6   :  { %v2898_v6 = vmul.f32 0.03125, %v2894_v48 }
0x1dc8   :  { %v2900_v59 = vsub.f32 %v2890_v40, %v2898_v6  ;;  %v3160_v40 = vsel %vm342_vm7, %v3159_v55, 0.0 }
0x1dc9   :  { %v2897_v45 = vpop.xlane.xlu1 %2896 }
0x1dca   :  { %v2899_v62 = vmul.f32 0.03125, %v2897_v45  ;;  %v2902_v18 = vmul.f32 %v2900_v59, %v2900_v59  ;;  %v10137_v45 = vld [vmem:[#allocation12] sm:$0xff]  }
0x1dcc   :  { %v2901_v61 = vsub.f32 %v2891_v14, %v2899_v62  ;;  %v2904_v49 = vsel %vm389_vm9, %v2902_v18, 0.0  ;;  %v10139_v18 = vld [vmem:[#allocation9 + $0x30] sm:$0xff]  }
0x1dcd   :  { %2905 = vadd.xlane.f32.xlu0 %v2904_v49  ;;  %v3167_v28 = vpop.permute.xlu1 %3166  ;;  %9352 = vmatpush3.bf16.msra.mxu1 %v10139_v18  ;;  %v10141_v49 = vld [vmem:[#allocation9 + $0x20] sm:$0xff]  }
0x1dce   :  { %v2903_v63 = vmul.f32 %v2901_v61, %v2901_v61  ;;  %v3177_v29 = vsel %vm389_vm9, %v3160_v40, %v3167_v28  ;;  %v3178_v48 = vsel %vm389_vm9, %v3161_v27, %v3167_v28  ;;  %9353 = vmatprep.subr.bf16.mxu1 %v10724_v0  ;;  %v11697_v40 = vld [vmem:[#allocation10 + $0x10] sm:$0xff] }
0x1dcf   :  { %v11701_v27 = vrot.slane %v11697_v40, %v11305_v13 }
0x1dd0   :  { %v2907_v22 = vsel %vm389_vm9, %v2903_v63, 0.0  ;;  %v8598_v63 = vld [vmem:[%s12948_s11 + $0x1] ss:$0 sm:$0xff] }
0x1dd1   :  { %2908 = vadd.xlane.f32.xlu0 %v2907_v22 }
0x1de7   :  { %10004 = vrot.lane.b32.xlu0 %v10003_v24, %s10708_s30 }
0x1e56   :  { %v2906_v8 = vpop.xlane.xlu0 %2905 }
0x1e57   :  { %v2910_v23 = vmul.f32 0.03125, %v2906_v8  ;;  %v3286_v8 = vpop.permute.xlu1 %3285 }
0x1e59   :  { %v2912_v31 = vadd.f32 1e-05, %v2910_v23 }
0x1e5a   :  { %v2909_v33 = vpop.xlane.xlu0 %2908 }
0x1e5b   :  { %10266 = vrsqrt.f32 %v2912_v31  ;;  %v2911_v35 = vmul.f32 0.03125, %v2909_v33 }
0x1e5d   :  { %v2913_v36 = vadd.f32 1e-05, %v2911_v35 }
0x1e5e   :  { %v10005_v58 = vpop.permute.xlu0 %10004 }
0x1e5f   :  { %10268 = vrsqrt.f32 %v2913_v36  ;;  %v10007_v12 = vunpack.i.h.bf16 %v10005_v58  ;;  %v10006_v14 = vunpack.i.l.bf16 %v10005_v58 }
0x1e61   :  { %v3179_v6 = vsel %vm392_vm10, %v3177_v29, %v10006_v14  ;;  %v11710_v14 = vld [vmem:[%s12985_s4] sm:$0xff] }
0x1e68   :  { %v10267_v39 = vpop.eup %10266 }
0x1e69   :  { %v2916_v43 = vmul.f32 %v10267_v39, %v2900_v59  ;;  %v3180_v59 = vsel %vm392_vm10, %v3178_v48, %v10007_v12 }
0x1e6a   :  { %v3193_v62 = vpack.c.bf16 %v3180_v59, %v3179_v6 }
0x1e6b   :  { %v2922_v50 = vmul.f32 %v2921_v44, %v2916_v43 }
0x1e6c   :  { %v10269_v46 = vpop.eup %10268 }
0x1e6d   :  { %v2917_v47 = vmul.f32 %v10269_v46, %v2901_v61  ;;  %v11633_v10 = vadd.f32 %v2927_v51, %v2922_v50  ;;  %v10140_v61 = vld [vmem:[#allocation9 + $0x28] sm:$0xff]   ;;  %v3277_v46 = vrot.slane %v11623_v9, %v11038_v2 }
0x1e6e   :  { %9354 = vmatpush3.bf16.msra.mxu1 %v10140_v61 }
0x1e6f   :  { %v2923_v53 = vmul.f32 %v2921_v44, %v2917_v47  ;;  %9355 = vmatprep.subr.bf16.mxu1 %v10724_v0 }
0x1e71   :  { %v11635_v54 = vadd.f32 %v2927_v51, %v2923_v53 }
0x1e72   :  { %9356 = vmatpush3.bf16.msra.mxu1 %v10141_v49 }
0x1e73   :  { %v2935_v60 = vpack.c.bf16 %v11635_v54, %v11633_v10  ;;  %9377 = vmatprep.subr.bf16.mxu1 %v10724_v0 }
0x1e75   :  { %9346 = vmatmul.mubr.msk.bf16.vlgmr.msra.gmra.mxu0 %vm389_vm9, %v2935_v60 }
0x1e76   :  { %9362 = vmatpush3.bf16.msra.mxu0 %v10132_v57  ;;  %9373 = vmatprep.mubr.msk.bf16.mxu0 %vm10725_vm0, %v10724_v0 }
0x1e77   :  { %9363 = vmatprep.subr.bf16.mxu0 %v10724_v0 }
0x1e7a   :  { %9364 = vmatpush3.bf16.msra.mxu0 %v10133_v52 }
0x1e7b   :  { %9365 = vmatprep.subr.bf16.mxu0 %v10724_v0 }
0x1e7e   :  { %9366 = vmatpush3.bf16.msra.mxu0 %v10134_v56 }
0x1e7f   :  { %9367 = vmatprep.subr.bf16.mxu0 %v10724_v0 }
0x1e82   :  { %9368 = vmatpush3.bf16.msra.mxu0 %v10135_v1 }
0x1e83   :  { %9369 = vmatprep.subr.bf16.mxu0 %v10724_v0 }
0x1e86   :  { %9370 = vmatpush3.bf16.msra.mxu0 %v10136_v25 }
0x1e87   :  { %9371 = vmatprep.subr.bf16.mxu0 %v10724_v0 }
0x1e8a   :  { %9372 = vmatpush3.bf16.msra.mxu0 %v10137_v45 }
0x1e8b   :  { %9389 = vmatprep.subr.bf16.mxu0 %v10724_v0 }
0x1e8d   :  { %9374 = vmatmul.mubr.msk.bf16.vlgmr.msra.gmra.mxu0 %vm444_vm11, %v3193_v62 }
0x1e8e   :  { %9391 = vmatprep.mubr.msk.bf16.mxu0 %vm10725_vm0, %v10724_v0 }
0x1f35   :  { %v2989_v22 = vpop.f32.mrf.mxu0 }
0x1f36   :  { %v2990_v4 = vadd.f32 %v8598_v63, %v2989_v22 }
0x1f37   :  { %v9347_v3 = vpop.f32.mrf.mxu0 }
0x1f38   :  { %v2996_v7 = vmax.f32 %v2990_v4, 0.0  ;;  %v3293_v3 = vrot.slane %v11623_v9, %v11068_v32 }
0x1f39   :  { %v2992_v5 = vpop.f32.mrf.mxu0 }
0x1f3a   :  { %v2993_v24 = vadd.f32 %v8598_v63, %v2992_v5 }
0x1f3b   :  { %v9348_v41 = vpop.f32.mrf.mxu0 }
0x1f3c   :  { %v2997_v15 = vmax.f32 %v2993_v24, 0.0 }
0x1f3e   :  { %v3007_v19 = vpack.c.bf16 %v2997_v15, %v2996_v7 }
0x1f40   :  { %9358 = vmatmul.mubr.msk.bf16.vlgmr.msra.gmra.mxu1 %vm392_vm10, %v3007_v19 }
0x1f41   :  { %9379 = vmatprep.mubr.msk.bf16.mxu1 %vm10725_vm0, %v10724_v0 }
0x1f4d   :  { %v3267_v23 = vpop.f32.mrf.mxu0 }
0x1f4e   :  { %v3288_v31 = vadd.f32 %v3286_v8, %v3267_v23  ;;  %v3278_v51 = vadd.f32 %v3277_v46, %v3267_v23 }
0x1f4f   :  { %v9375_v33 = vpop.f32.mrf.mxu0 }
0x1f50   :  { %v11669_v35 = vpack.c.bf16 %v3288_v31, %v3288_v31  ;;  %v11681_v57 = vpack.c.bf16 %v3278_v51, %v3278_v51 }
0x1f51   :  { %v3270_v36 = vpop.f32.mrf.mxu0 }
0x1f52   :  { %v3289_v39 = vadd.f32 %v3286_v8, %v3270_v36  ;;  %3309 = vrot.lane.b32.xlu1 %v11669_v35, %s10727_s8  ;;  %v3279_v52 = vadd.f32 %v3277_v46, %v3270_v36 }
0x1f53   :  { %v9376_v43 = vpop.f32.mrf.mxu0 }
0x1f54   :  { %v11673_v44 = vpack.c.bf16 %v3289_v39, %v3289_v39  ;;  %v11689_v56 = vpack.c.bf16 %v3279_v52, %v3279_v52 }
0x1f56   :  { %3358 = vrot.lane.b32.xlu0 %v11673_v44, %s10727_s8 }
0x1fc4   :  { %v3310_v47 = vpop.permute.xlu1 %3309 }
0x1fc5   :  { %v3315_v50 = vsel %vm526_vm12, %v3310_v47, 0 }
0x1fc6   :  { %9378 = vmatpush3.bf16.xpose.msra.mxu1 %v3315_v50 }
0x1fc7   :  { %9383 = vmatprep.subr.bf16.mxu1 %v10724_v0 }
0x1fc8   :  { %v3359_v53 = vpop.permute.xlu0 %3358 }
0x1fc9   :  { %v3364_v60 = vsel %vm526_vm12, %v3359_v53, 0 }
0x1fcd   :  { %9380 = vmatmul.mubr.msk.bf16.vlgmr.msra.gmra.mxu1 %vm526_vm12, %v11681_v57 }
0x1fce   :  { %9384 = vmatpush3.bf16.xpose.msra.mxu1 %v3364_v60  ;;  %9385 = vmatprep.mubr.msk.bf16.mxu1 %vm10725_vm0, %v10724_v0 }
0x1fcf   :  { %9395 = vmatprep.subr.bf16.mxu1 %v10724_v0 }
0x1fd5   :  { %9386 = vmatmul.mubr.msk.bf16.vlgmr.msra.gmra.mxu1 %vm526_vm12, %v11689_v56 }
0x1fd6   :  { %9397 = vmatprep.mubr.msk.bf16.mxu1 %vm10725_vm0, %v10724_v0 }
0x2000   :  { %v11695_v55 = vpop.f32.mrf.mxu1 }
0x2002   :  { %v9359_v1 = vpop.f32.mrf.mxu1 }
0x2004   :  { %v3072_v58 = vpop.f32.mrf.mxu1 }
0x2005   :  { %v3077_v28 = vadd.f32 %v3072_v58, %v11635_v54 }
0x2006   :  { %v9360_v25 = vpop.f32.mrf.mxu1 }
0x2007   :  { %v11705_v12 = vadd.f32 %v11701_v27, %v3077_v28 }
0x208d   :  { %v3351_v29 = vpop.f32.mrf.mxu1 }
0x208e   :  { %v3352_v48 = vadd.f32 %v3351_v29, %v11710_v14 }
0x208f   :  { %v9381_v6 = vpop.f32.mrf.mxu1 }
0x2090   :  { %v3406_v59 = vsel %vm526_vm12, %v3352_v48, -inf }
0x2091   :  { %3407 = vmax.xlane.f32.xlu1 %v3406_v59  ;;  %v3354_v45 = vpop.f32.mrf.mxu1 }
0x2093   :  { %v9382_v62 = vpop.f32.mrf.mxu1 }
0x2095   :  { %v3400_v18 = vpop.f32.mrf.mxu1 }
0x2096   :  { %v3401_v54 = vadd.f32 %v3400_v18, %v11710_v14 }
0x2097   :  { %v9387_v61 = vpop.f32.mrf.mxu1 }
0x2098   :  { %v3409_v49 = vsel %vm526_vm12, %v3401_v54, -inf }
0x2099   :  { %3410 = vmax.xlane.f32.xlu0 %v3409_v49  ;;  %v3403_v63 = vpop.f32.mrf.mxu1 }
0x209b   :  { %v9388_v22 = vpop.f32.mrf.mxu1 }
0x20af   :  { %3295 = vrot.lane.b32.xlu0 %v3293_v3, %s10708_s30 }
0x211a   :  { %v3408_v19 = vpop.xlane.xlu1 %3407 }
0x211b   :  { %v3412_v8 = vsub.f32 %v3352_v48, %v3408_v19 }
0x2122   :  { %v3411_v4 = vpop.xlane.xlu0 %3410 }
0x2123   :  { %v3413_v31 = vsub.f32 %v3401_v54, %v3411_v4 }
0x2125   :  { %v3416_v33 = vmul.f32 1.442695, %v3413_v31 }
0x2126   :  { %v3296_v5 = vpop.permute.xlu0 %3295 }
0x2127   :  { %v3298_v24 = vadd.f32 %v3296_v5, %v3267_v23  ;;  %v3299_v41 = vadd.f32 %v3296_v5, %v3270_v36  ;;  %v3414_v23 = vmul.f32 1.442695, %v3412_v8 }
0x2129   :  { %v11719_v7 = vpack.c.bf16 %v3298_v24, %v3298_v24  ;;  %v11721_v15 = vpack.c.bf16 %v3299_v41, %v3299_v41  ;;  %10270 = vpow2.f32 %v3414_v23 }
0x212a   :  { %10272 = vpow2.f32 %v3416_v33 }
0x212b   :  { %3482 = vrot.lane.b32.xlu0 %v11721_v15, %s10708_s30  ;;  %3433 = vrot.lane.b32.xlu1 %v11719_v7, %s10708_s30 }
0x212f   :  { %3533 = vrot.lane.b32.xlu0 %v11669_v35, %s10728_s13 }
0x2133   :  { %3531 = vrot.lane.b32.xlu0 %v11681_v57, %s10729_s12 }
0x2136   :  { %v10271_v36 = vpop.eup %10270 }
0x2137   :  { %v3418_v39 = vsel %vm526_vm12, %v10271_v36, 0.0  ;;  %v10273_v43 = vpop.eup %10272 }
0x2138   :  { %v3421_v46 = vsel %vm526_vm12, %v10273_v43, 0.0 }
0x214f   :  { %3419 = vadd.xlane.f32.xlu1 %v3418_v39 }
0x2153   :  { %3422 = vadd.xlane.f32.xlu1 %v3421_v46 }
0x2164   :  { %3584 = vrot.lane.b32.xlu1 %v11673_v44, %s10728_s13 }
0x2168   :  { %3582 = vrot.lane.b32.xlu1 %v11689_v56, %s10729_s12 }
0x219d   :  { %v3483_v47 = vpop.permute.xlu0 %3482  ;;  %v3434_v50 = vpop.permute.xlu1 %3433 }
0x219e   :  { %v3488_v51 = vsel %vm654_vm13, %v3483_v47, 0  ;;  %v3439_v53 = vsel %vm654_vm13, %v3434_v50, 0 }
0x219f   :  { %9390 = vmatpush3.bf16.msra.mxu0 %v3439_v53  ;;  %9396 = vmatpush3.bf16.msra.mxu1 %v3488_v51 }
0x21a0   :  { %9401 = vmatprep.subr.bf16.mxu0 %v10724_v0  ;;  %9407 = vmatprep.subr.bf16.mxu1 %v10724_v0 }
0x21a1   :  { %v3534_v28 = vpop.permute.xlu0 %3533 }
0x21a2   :  { %v3539_v48 = vsel %vm526_vm12, %v3534_v28, 0 }
0x21a5   :  { %v3532_v18 = vpop.permute.xlu0 %3531 }
0x21d8   :  { %v3420_v60 = vpop.xlane.xlu1 %3419 }
0x21d9   :  { %10274 = vrcp.f32 %v3420_v60 }
0x21dc   :  { %v3423_v52 = vpop.xlane.xlu1 %3422 }
0x21dd   :  { %10276 = vrcp.f32 %v3423_v52 }
0x21e0   :  { %v3585_v59 = vpop.permute.xlu1 %3584 }
0x21e1   :  { %v3590_v62 = vsel %vm526_vm12, %v3585_v59, 0 }
0x21e4   :  { %v3583_v54 = vpop.permute.xlu1 %3582 }
0x21e6   :  { %v10275_v1 = vpop.eup %10274 }
0x21e7   :  { %v3425_v58 = vmul.f32 %v10275_v1, %v10271_v36 }
0x21e9   :  { %v3428_v25 = vpack.c.bf16 %v3425_v58, %v3425_v58  ;;  %4192 = vst.msk [vmem:[%s12961_s24] sm:$0xff] %vm526_vm12, %v3425_v58 }
0x21ea   :  { %v10277_v29 = vpop.eup %10276 }
0x21eb   :  { %9392 = vmatmul.mubr.msk.bf16.vlgmr.msra.gmra.mxu0 %vm526_vm12, %v3428_v25  ;;  %v3427_v6 = vmul.f32 %v10277_v29, %v10273_v43 }
0x21ec   :  { %9402 = vmatpush3.bf16.xpose.msra.mxu0 %v3539_v48  ;;  %9403 = vmatprep.mubr.msk.bf16.mxu0 %vm10725_vm0, %v10724_v0 }
0x21ed   :  { %v3429_v45 = vpack.c.bf16 %v3427_v6, %v3427_v6  ;;  %4196 = vst.msk [vmem:[%s12961_s24 + $0x20] sm:$0xff] %vm526_vm12, %v3427_v6  ;;  %9413 = vmatprep.subr.bf16.mxu0 %v10724_v0 }
0x21ef   :  { %9398 = vmatmul.mubr.msk.bf16.vlgmr.msra.gmra.mxu1 %vm526_vm12, %v3429_v45 }
0x21f0   :  { %9408 = vmatpush3.bf16.xpose.msra.mxu1 %v3590_v62  ;;  %9409 = vmatprep.mubr.msk.bf16.mxu1 %vm10725_vm0, %v10724_v0 }
0x21f1   :  { %9419 = vmatprep.subr.bf16.mxu1 %v10724_v0 }
0x21f3   :  { %9404 = vmatmul.mubr.msk.bf16.vlgmr.msra.gmra.mxu0 %vm526_vm12, %v3532_v18 }
0x21f4   :  { %9415 = vmatprep.mubr.msk.bf16.mxu0 %vm10725_vm0, %v10724_v0 }
0x21f7   :  { %9410 = vmatmul.mubr.msk.bf16.vlgmr.msra.gmra.mxu1 %vm526_vm12, %v3583_v54 }
0x21f8   :  { %9421 = vmatprep.mubr.msk.bf16.mxu1 %vm10725_vm0, %v10724_v0 }
0x22ab   :  { %v11765_v61 = vpop.f32.mrf.mxu0 }
0x22ad   :  { %v9393_v49 = vpop.f32.mrf.mxu0 }
0x22af   :  { %v3478_v63 = vpop.f32.mrf.mxu0  ;;  %v11767_v22 = vpop.f32.mrf.mxu1 }
0x22b1   :  { %v9394_v3 = vpop.f32.mrf.mxu0  ;;  %v9399_v4 = vpop.f32.mrf.mxu1 }
0x22b3   :  { %v3527_v5 = vpop.f32.mrf.mxu1  ;;  %v3575_v24 = vpop.f32.mrf.mxu0 }
0x22b4   :  { %v3576_v41 = vadd.f32 %v3575_v24, %v11710_v14 }
0x22b5   :  { %v9400_v19 = vpop.f32.mrf.mxu1  ;;  %v9405_v8 = vpop.f32.mrf.mxu0 }
0x22b6   :  { %v3632_v23 = vsel %vm526_vm12, %v3576_v41, -inf }
0x22b7   :  { %v3626_v31 = vpop.f32.mrf.mxu1  ;;  %3633 = vmax.xlane.f32.xlu0 %v3632_v23  ;;  %v3578_v33 = vpop.f32.mrf.mxu0 }
0x22b8   :  { %v3627_v36 = vadd.f32 %v3626_v31, %v11710_v14 }
0x22b9   :  { %v9406_v39 = vpop.f32.mrf.mxu0  ;;  %v9411_v43 = vpop.f32.mrf.mxu1 }
0x22ba   :  { %v3635_v46 = vsel %vm526_vm12, %v3627_v36, -inf }
0x22bb   :  { %3636 = vmax.xlane.f32.xlu1 %v3635_v46  ;;  %v3629_v47 = vpop.f32.mrf.mxu1 }
0x22bd   :  { %v9412_v50 = vpop.f32.mrf.mxu1 }
0x22cc   :  { %3656 = vrot.lane.b32.xlu1 %v11719_v7, %s10730_s15 }
0x22d0   :  { %3754 = vrot.lane.b32.xlu1 %v11669_v35, %s10731_s9 }
0x22d4   :  { %3804 = vrot.lane.b32.xlu1 %v11673_v44, %s10731_s9 }
0x22d8   :  { %3802 = vrot.lane.b32.xlu1 %v11689_v56, %s10732_s16 }
0x2340   :  { %v3634_v51 = vpop.xlane.xlu0 %3633 }
0x2341   :  { %v3638_v53 = vsub.f32 %v3576_v41, %v3634_v51 }
0x2343   :  { %v3640_v60 = vmul.f32 1.442695, %v3638_v53 }
0x2344   :  { %v3637_v52 = vpop.xlane.xlu1 %3636 }
0x2345   :  { %10278 = vpow2.f32 %v3640_v60  ;;  %v3639_v1 = vsub.f32 %v3627_v36, %v3637_v52 }
0x2347   :  { %v3642_v58 = vmul.f32 1.442695, %v3639_v1 }
0x2348   :  { %v3657_v28 = vpop.permute.xlu1 %3656 }
0x2349   :  { %10280 = vpow2.f32 %v3642_v58  ;;  %v3662_v25 = vsel %vm654_vm13, %v3657_v28, 0 }
0x234a   :  { %9414 = vmatpush3.bf16.msra.mxu0 %v3662_v25 }
0x234b   :  { %9425 = vmatprep.subr.bf16.mxu0 %v10724_v0 }
0x234c   :  { %v3755_v63 = vpop.permute.xlu1 %3754 }
0x234d   :  { %v3760_v24 = vsel %vm526_vm12, %v3755_v63, 0 }
0x2350   :  { %v3805_v19 = vpop.permute.xlu1 %3804 }
0x2351   :  { %v3810_v23 = vsel %vm526_vm12, %v3805_v19, 0 }
0x2352   :  { %v10279_v29 = vpop.eup %10278 }
0x2353   :  { %v3644_v48 = vsel %vm526_vm12, %v10279_v29, 0.0 }
0x2354   :  { %3645 = vadd.xlane.f32.xlu0 %v3644_v48  ;;  %v3803_v33 = vpop.permute.xlu1 %3802 }
0x2356   :  { %v10281_v6 = vpop.eup %10280 }
0x2357   :  { %v3647_v59 = vsel %vm526_vm12, %v10281_v6, 0.0 }
0x2358   :  { %3648 = vadd.xlane.f32.xlu0 %v3647_v59 }
0x236e   :  { %3704 = vrot.lane.b32.xlu0 %v11721_v15, %s10730_s15 }
0x2372   :  { %3752 = vrot.lane.b32.xlu0 %v11681_v57, %s10732_s16 }
0x23dd   :  { %v3646_v45 = vpop.xlane.xlu0 %3645 }
0x23de   :  { %10282 = vrcp.f32 %v3646_v45 }
0x23e1   :  { %v3649_v62 = vpop.xlane.xlu0 %3648 }
0x23e2   :  { %10284 = vrcp.f32 %v3649_v62 }
0x23e5   :  { %v3705_v18 = vpop.permute.xlu0 %3704 }
0x23e6   :  { %v3710_v54 = vsel %vm654_vm13, %v3705_v18, 0 }
0x23e7   :  { %9420 = vmatpush3.bf16.msra.mxu1 %v3710_v54 }
0x23e8   :  { %9431 = vmatprep.subr.bf16.mxu1 %v10724_v0 }
0x23e9   :  { %v3753_v31 = vpop.permute.xlu0 %3752 }
0x23eb   :  { %v10283_v49 = vpop.eup %10282 }
0x23ec   :  { %v3651_v3 = vmul.f32 %v10283_v49, %v10279_v29 }
0x23ee   :  { %v3654_v4 = vpack.c.bf16 %v3651_v3, %v3651_v3  ;;  %4193 = vst.msk [vmem:[%s12961_s24 + $0x8] sm:$0xff] %vm526_vm12, %v3651_v3 }
0x23ef   :  { %v10285_v5 = vpop.eup %10284 }
0x23f0   :  { %9416 = vmatmul.mubr.msk.bf16.vlgmr.msra.gmra.mxu0 %vm526_vm12, %v3654_v4  ;;  %v3653_v41 = vmul.f32 %v10285_v5, %v10281_v6 }
0x23f1   :  { %9426 = vmatpush3.bf16.xpose.msra.mxu0 %v3760_v24  ;;  %9427 = vmatprep.mubr.msk.bf16.mxu0 %vm10725_vm0, %v10724_v0 }
0x23f2   :  { %v3655_v8 = vpack.c.bf16 %v3653_v41, %v3653_v41  ;;  %4197 = vst.msk [vmem:[%s12961_s24 + $0x28] sm:$0xff] %vm526_vm12, %v3653_v41  ;;  %9437 = vmatprep.subr.bf16.mxu0 %v10724_v0 }
0x23f4   :  { %9422 = vmatmul.mubr.msk.bf16.vlgmr.msra.gmra.mxu1 %vm526_vm12, %v3655_v8 }
0x23f5   :  { %9432 = vmatpush3.bf16.xpose.msra.mxu1 %v3810_v23  ;;  %9433 = vmatprep.mubr.msk.bf16.mxu1 %vm10725_vm0, %v10724_v0 }
0x23f6   :  { %9443 = vmatprep.subr.bf16.mxu1 %v10724_v0 }
0x23f8   :  { %9428 = vmatmul.mubr.msk.bf16.vlgmr.msra.gmra.mxu0 %vm526_vm12, %v3753_v31 }
0x23f9   :  { %9439 = vmatprep.mubr.msk.bf16.mxu0 %vm10725_vm0, %v10724_v0 }
0x23fc   :  { %9434 = vmatmul.mubr.msk.bf16.vlgmr.msra.gmra.mxu1 %vm526_vm12, %v3803_v33 }
0x23fd   :  { %9445 = vmatprep.mubr.msk.bf16.mxu1 %vm10725_vm0, %v10724_v0 }
0x24b0   :  { %v11815_v36 = vpop.f32.mrf.mxu0 }
0x24b2   :  { %v9417_v39 = vpop.f32.mrf.mxu0 }
0x24b4   :  { %v3701_v43 = vpop.f32.mrf.mxu0  ;;  %v11817_v46 = vpop.f32.mrf.mxu1 }
0x24b5   :  { %v10008_v47 = vpack.i.bf16 %v11817_v46, %v11815_v36 }
0x24b6   :  { %v9418_v50 = vpop.f32.mrf.mxu0  ;;  %v9423_v51 = vpop.f32.mrf.mxu1 }
0x24b8   :  { %v3749_v53 = vpop.f32.mrf.mxu1  ;;  %v3796_v60 = vpop.f32.mrf.mxu0 }
0x24b9   :  { %v3797_v52 = vadd.f32 %v3796_v60, %v11710_v14 }
0x24ba   :  { %v9424_v1 = vpop.f32.mrf.mxu1  ;;  %v9429_v58 = vpop.f32.mrf.mxu0 }
0x24bb   :  { %v3852_v28 = vsel %vm526_vm12, %v3797_v52, -inf }
0x24bc   :  { %v3846_v25 = vpop.f32.mrf.mxu1  ;;  %3853 = vmax.xlane.f32.xlu0 %v3852_v28  ;;  %v3799_v29 = vpop.f32.mrf.mxu0 }
0x24bd   :  { %v3847_v48 = vadd.f32 %v3846_v25, %v11710_v14 }
0x24be   :  { %v9430_v6 = vpop.f32.mrf.mxu0  ;;  %v9435_v59 = vpop.f32.mrf.mxu1 }
0x24bf   :  { %v3855_v45 = vsel %vm526_vm12, %v3847_v48, -inf }
0x24c0   :  { %3856 = vmax.xlane.f32.xlu1 %v3855_v45  ;;  %v3849_v62 = vpop.f32.mrf.mxu1 }
0x24c2   :  { %v9436_v18 = vpop.f32.mrf.mxu1 }
0x24d1   :  { %3876 = vrot.lane.b32.xlu1 %v11719_v7, %s10733_s10 }
0x24d5   :  { %3974 = vrot.lane.b32.xlu1 %v11669_v35, %s10734_s28 }
0x24d9   :  { %4024 = vrot.lane.b32.xlu1 %v11673_v44, %s10734_s28 }
0x24dd   :  { %4022 = vrot.lane.b32.xlu1 %v11689_v56, %s10735_s2 }
0x2545   :  { %v3854_v54 = vpop.xlane.xlu0 %3853 }
0x2546   :  { %v3858_v49 = vsub.f32 %v3797_v52, %v3854_v54 }
0x2548   :  { %v3860_v63 = vmul.f32 1.442695, %v3858_v49 }
0x2549   :  { %v3857_v3 = vpop.xlane.xlu1 %3856 }
0x254a   :  { %10286 = vpow2.f32 %v3860_v63  ;;  %v3859_v4 = vsub.f32 %v3847_v48, %v3857_v3 }
0x254c   :  { %v3862_v5 = vmul.f32 1.442695, %v3859_v4 }
0x254d   :  { %v3877_v24 = vpop.permute.xlu1 %3876 }
0x254e   :  { %10288 = vpow2.f32 %v3862_v5  ;;  %v3882_v41 = vsel %vm654_vm13, %v3877_v24, 0 }
0x254f   :  { %9438 = vmatpush3.bf16.msra.mxu0 %v3882_v41 }
0x2550   :  { %9449 = vmatprep.subr.bf16.mxu0 %v10724_v0 }
0x2551   :  { %v3975_v43 = vpop.permute.xlu1 %3974 }
0x2552   :  { %v3980_v53 = vsel %vm526_vm12, %v3975_v43, 0 }
0x2555   :  { %v4025_v52 = vpop.permute.xlu1 %4024 }
0x2556   :  { %v4030_v58 = vsel %vm526_vm12, %v4025_v52, 0 }
0x2557   :  { %v10287_v35 = vpop.eup %10286 }
0x2558   :  { %v3864_v44 = vsel %vm526_vm12, %v10287_v35, 0.0 }
0x2559   :  { %3865 = vadd.xlane.f32.xlu0 %v3864_v44  ;;  %v4023_v25 = vpop.permute.xlu1 %4022 }
0x255b   :  { %v10289_v19 = vpop.eup %10288 }
0x255c   :  { %v3867_v56 = vsel %vm526_vm12, %v10289_v19, 0.0 }
0x255d   :  { %3868 = vadd.xlane.f32.xlu0 %v3867_v56 }
0x2573   :  { %3924 = vrot.lane.b32.xlu0 %v11721_v15, %s10733_s10 }
0x2577   :  { %3972 = vrot.lane.b32.xlu0 %v11681_v57, %s10735_s2 }
0x25e2   :  { %v3866_v8 = vpop.xlane.xlu0 %3865 }
0x25e3   :  { %10290 = vrcp.f32 %v3866_v8 }
0x25e6   :  { %v3869_v23 = vpop.xlane.xlu0 %3868 }
0x25e7   :  { %10292 = vrcp.f32 %v3869_v23 }
0x25ea   :  { %v3925_v31 = vpop.permute.xlu0 %3924 }
0x25eb   :  { %v3930_v33 = vsel %vm654_vm13, %v3925_v31, 0 }
0x25ec   :  { %9444 = vmatpush3.bf16.msra.mxu1 %v3930_v33 }
0x25ed   :  { %9455 = vmatprep.subr.bf16.mxu1 %v10724_v0 }
0x25ee   :  { %v3973_v28 = vpop.permute.xlu0 %3972 }
0x25f0   :  { %v10291_v39 = vpop.eup %10290 }
0x25f1   :  { %v3871_v50 = vmul.f32 %v10291_v39, %v10287_v35 }
0x25f3   :  { %v3874_v51 = vpack.c.bf16 %v3871_v50, %v3871_v50  ;;  %4194 = vst.msk [vmem:[%s12961_s24 + $0x10] sm:$0xff] %vm526_vm12, %v3871_v50 }
0x25f4   :  { %v10293_v57 = vpop.eup %10292 }
0x25f5   :  { %9440 = vmatmul.mubr.msk.bf16.vlgmr.msra.gmra.mxu0 %vm526_vm12, %v3874_v51  ;;  %v3873_v60 = vmul.f32 %v10293_v57, %v10289_v19 }
0x25f6   :  { %9450 = vmatpush3.bf16.xpose.msra.mxu0 %v3980_v53  ;;  %9451 = vmatprep.mubr.msk.bf16.mxu0 %vm10725_vm0, %v10724_v0 }
0x25f7   :  { %v3875_v1 = vpack.c.bf16 %v3873_v60, %v3873_v60  ;;  %4198 = vst.msk [vmem:[%s12961_s24 + $0x30] sm:$0xff] %vm526_vm12, %v3873_v60  ;;  %9461 = vmatprep.subr.bf16.mxu0 %v10724_v0 }
0x25f9   :  { %9446 = vmatmul.mubr.msk.bf16.vlgmr.msra.gmra.mxu1 %vm526_vm12, %v3875_v1 }
0x25fa   :  { %9456 = vmatpush3.bf16.xpose.msra.mxu1 %v4030_v58  ;;  %9457 = vmatprep.mubr.msk.bf16.mxu1 %vm10725_vm0, %v10724_v0 }
0x25fb   :  { %9467 = vmatprep.subr.bf16.mxu1 %v10724_v0 }
0x25fd   :  { %9452 = vmatmul.mubr.msk.bf16.vlgmr.msra.gmra.mxu0 %vm526_vm12, %v3973_v28 }
0x25fe   :  { %9463 = vmatprep.mubr.msk.bf16.mxu0 %vm10725_vm0, %v10724_v0 }
0x2601   :  { %9458 = vmatmul.mubr.msk.bf16.vlgmr.msra.gmra.mxu1 %vm526_vm12, %v4023_v25 }
0x2602   :  { %9469 = vmatprep.mubr.msk.bf16.mxu1 %vm10725_vm0, %v10724_v0 }
0x26b5   :  { %v3918_v29 = vpop.f32.mrf.mxu0 }
0x26b7   :  { %v9441_v48 = vpop.f32.mrf.mxu0 }
0x26b9   :  { %v3921_v6 = vpop.f32.mrf.mxu0  ;;  %v3966_v59 = vpop.f32.mrf.mxu1 }
0x26ba   :  { %v10013_v23 = vpack.i.bf16 %v3966_v59, %v3918_v29  ;;  %v10142_v6 = vld [vmem:[#allocation16 + $0x8] sm:$0xff]   ;;  %v10143_v59 = vld [vmem:[#allocation16] sm:$0xff]  }
0x26bb   :  { %v9442_v45 = vpop.f32.mrf.mxu0  ;;  %v9447_v62 = vpop.f32.mrf.mxu1 }
0x26bd   :  { %v3969_v18 = vpop.f32.mrf.mxu1  ;;  %v4016_v54 = vpop.f32.mrf.mxu0 }
0x26be   :  { %v4017_v49 = vadd.f32 %v4016_v54, %v11710_v14 }
0x26bf   :  { %v9448_v63 = vpop.f32.mrf.mxu1  ;;  %v9453_v3 = vpop.f32.mrf.mxu0 }
0x26c0   :  { %v4072_v4 = vsel %vm526_vm12, %v4017_v49, -inf }
0x26c1   :  { %v4066_v5 = vpop.f32.mrf.mxu1  ;;  %4073 = vmax.xlane.f32.xlu0 %v4072_v4  ;;  %v4019_v24 = vpop.f32.mrf.mxu0 }
0x26c2   :  { %v4067_v41 = vadd.f32 %v4066_v5, %v11710_v14  ;;  %v3076_v14 = vadd.f32 %v11695_v55, %v11633_v10  ;;  %v3087_v24 = vsel %vm389_vm9, %v11705_v12, 0.0 }
0x26c3   :  { %v9454_v35 = vpop.f32.mrf.mxu0  ;;  %v9459_v44 = vpop.f32.mrf.mxu1 }
0x26c4   :  { %v4075_v19 = vsel %vm526_vm12, %v4067_v41, -inf  ;;  %v11881_v31 = vadd.f32 %v11701_v27, %v3076_v14 }
0x26c5   :  { %4076 = vmax.xlane.f32.xlu1 %v4075_v19  ;;  %v4069_v56 = vpop.f32.mrf.mxu1 }
0x26c6   :  { %v3084_v33 = vsel %vm389_vm9, %v11881_v31, 0.0 }
0x26c7   :  { %v9460_v8 = vpop.f32.mrf.mxu1 }
0x26d6   :  { %4096 = vrot.lane.b32.xlu1 %v11719_v7, %s10736_s5 }
0x26da   :  { %10009 = vrot.lane.b32.xlu1 %v10008_v47, %s10713_s3 }
0x26de   :  { %10014 = vrot.lane.b32.xlu1 %v10013_v23, %s10737_s14 }
0x2702   :  { %3085 = vadd.xlane.f32.xlu1 %v3084_v33 }
0x274a   :  { %v4074_v39 = vpop.xlane.xlu0 %4073 }
0x274b   :  { %v4078_v7 = vsub.f32 %v4017_v49, %v4074_v39 }
0x274d   :  { %v4080_v43 = vmul.f32 1.442695, %v4078_v7 }
0x274e   :  { %v4077_v50 = vpop.xlane.xlu1 %4076 }
0x274f   :  { %10294 = vpow2.f32 %v4080_v43  ;;  %v4079_v36 = vsub.f32 %v4067_v41, %v4077_v50 }
0x2751   :  { %v4082_v46 = vmul.f32 1.442695, %v4079_v36 }
0x2752   :  { %v4097_v47 = vpop.permute.xlu1 %4096 }
0x2753   :  { %10296 = vpow2.f32 %v4082_v46  ;;  %v4102_v51 = vsel %vm654_vm13, %v4097_v47, 0 }
0x2754   :  { %9462 = vmatpush3.bf16.msra.mxu0 %v4102_v51 }
0x2755   :  { %9473 = vmatprep.subr.bf16.mxu0 %v10724_v0 }
0x2756   :  { %v10010_v41 = vpop.permute.xlu1 %10009 }
0x2757   :  { %v10012_v44 = vunpack.i.h.bf16 %v10010_v41  ;;  %v10011_v19 = vunpack.i.l.bf16 %v10010_v41 }
0x2759   :  { %v4225_v14 = vsel %vm526_vm12, %v11767_v22, %v10012_v44  ;;  %v4224_v33 = vsel %vm526_vm12, %v11765_v61, %v10011_v19  ;;  %v4234_v61 = vrot.slane %v11623_v9, %v11269_v16 }
0x275a   :  { %v10015_v35 = vpop.permute.xlu1 %10014 }
0x275b   :  { %v10017_v56 = vunpack.i.h.bf16 %v10015_v35  ;;  %v10016_v8 = vunpack.i.l.bf16 %v10015_v35 }
0x275c   :  { %v10295_v10 = vpop.eup %10294 }
0x275d   :  { %v4084_v55 = vsel %vm526_vm12, %v10295_v10, 0.0  ;;  %v4227_v43 = vsel %vm1443_vm14, %v4225_v14, %v10017_v56  ;;  %v4226_v50 = vsel %vm1443_vm14, %v4224_v33, %v10016_v8  ;;  %v10147_v14 = vld [vmem:[#allocation15 + $0x10] sm:$0xff]   ;;  %v3113_v33 = vrot.slane %v11697_v40, %v11317_v34 }
0x275e   :  { %4085 = vadd.xlane.f32.xlu0 %v4084_v55 }
0x2760   :  { %v10297_v27 = vpop.eup %10296 }
0x2761   :  { %v4087_v57 = vsel %vm526_vm12, %v10297_v27, 0.0 }
0x2762   :  { %4088 = vadd.xlane.f32.xlu0 %v4087_v57 }
0x2778   :  { %4144 = vrot.lane.b32.xlu0 %v11721_v15, %s10736_s5 }
0x278b   :  { %v3086_v22 = vpop.xlane.xlu1 %3085 }
0x278c   :  { %v3090_v51 = vmul.f32 0.03125, %v3086_v22  ;;  %v10149_v22 = vld [vmem:[#allocation15] sm:$0xff]  }
0x27e7   :  { %v4086_v53 = vpop.xlane.xlu0 %4085 }
0x27e8   :  { %10298 = vrcp.f32 %v4086_v53 }
0x27eb   :  { %v4089_v60 = vpop.xlane.xlu0 %4088 }
0x27ec   :  { %10300 = vrcp.f32 %v4089_v60 }
0x27ef   :  { %v4145_v52 = vpop.permute.xlu0 %4144 }
0x27f0   :  { %v4150_v1 = vsel %vm654_vm13, %v4145_v52, 0 }
0x27f1   :  { %9468 = vmatpush3.bf16.msra.mxu1 %v4150_v1 }
0x27f2   :  { %9481 = vmatprep.subr.bf16.mxu1 %v10724_v0 }
0x27f5   :  { %v10299_v58 = vpop.eup %10298 }
0x27f6   :  { %v4091_v28 = vmul.f32 %v10299_v58, %v10295_v10 }
0x27f8   :  { %4195 = vst.msk [vmem:[%s12961_s24 + $0x18] sm:$0xff] %vm526_vm12, %v4091_v28  ;;  %v4094_v25 = vpack.c.bf16 %v4091_v28, %v4091_v28 }
0x27f9   :  { %v10301_v29 = vpop.eup %10300 }
0x27fa   :  { %9464 = vmatmul.mubr.msk.bf16.vlgmr.msra.gmra.mxu0 %vm526_vm12, %v4094_v25  ;;  %v4093_v15 = vmul.f32 %v10301_v29, %v10297_v27  ;;  %v3092_v27 = vsub.f32 %v11881_v31, %v3090_v51 }
0x27fb   :  { %9477 = vmatprep.mubr.msk.bf16.mxu0 %vm10725_vm0, %v10724_v0  ;;  %9474 = vmatpush3.bf16.msra.mxu0 %v10142_v6 }
0x27fc   :  { %v4095_v48 = vpack.c.bf16 %v4093_v15, %v4093_v15  ;;  %4199 = vst.msk [vmem:[%s12961_s24 + $0x38] sm:$0xff] %vm526_vm12, %v4093_v15  ;;  %9475 = vmatprep.subr.bf16.mxu0 %v10724_v0  ;;  %v3094_v29 = vmul.f32 %v3092_v27, %v3092_v27 }
0x27fe   :  { %9470 = vmatmul.mubr.msk.bf16.vlgmr.msra.gmra.mxu1 %vm526_vm12, %v4095_v48  ;;  %v3096_v48 = vsel %vm389_vm9, %v3094_v29, 0.0 }
0x27ff   :  { %9493 = vmatprep.mubr.msk.bf16.mxu1 %vm10725_vm0, %v10724_v0  ;;  %9476 = vmatpush3.bf16.msra.mxu0 %v10143_v59 }
0x2800   :  { %9497 = vmatprep.subr.bf16.mxu0 %v10724_v0 }
0x28ba   :  { %v4138_v45 = vpop.f32.mrf.mxu0 }
0x28bc   :  { %v9465_v62 = vpop.f32.mrf.mxu0 }
0x28bd   :  { %v10146_v62 = vld [vmem:[#allocation15 + $0x18] sm:$0xff]  }
0x28be   :  { %v4141_v18 = vpop.f32.mrf.mxu0  ;;  %v4186_v54 = vpop.f32.mrf.mxu1 }
0x28bf   :  { %v10018_v49 = vpack.i.bf16 %v4186_v54, %v4138_v45  ;;  %v10144_v45 = vld [vmem:[#allocation15 + $0x28] sm:$0xff]  }
0x28c0   :  { %v9466_v63 = vpop.f32.mrf.mxu0  ;;  %v9471_v3 = vpop.f32.mrf.mxu1 }
0x28c1   :  { %10019 = vrot.lane.b32.xlu0 %v10018_v49, %s10738_s18 }
0x28c2   :  { %v4189_v4 = vpop.f32.mrf.mxu1 }
0x28c4   :  { %v9472_v5 = vpop.f32.mrf.mxu1 }
0x28e0   :  { %3088 = vadd.xlane.f32.xlu0 %v3087_v24 }
0x2933   :  { %v10020_v23 = vpop.permute.xlu0 %10019 }
0x2934   :  { %v10022_v39 = vunpack.i.h.bf16 %v10020_v23  ;;  %v10021_v7 = vunpack.i.l.bf16 %v10020_v23 }
0x2936   :  { %v4229_v36 = vsel %vm1446_vm15, %v4227_v43, %v10022_v39  ;;  %v4228_v46 = vsel %vm1446_vm15, %v4226_v50, %v10021_v7  ;;  %v10148_v43 = vld [vmem:[#allocation15 + $0x8] sm:$0xff]   ;;  %v8607_v50 = vld [vmem:[#allocation10 + $0x18] ss:$0 sm:$0xff] }
0x2937   :  { %v4230_v47 = vpack.c.bf16 %v4229_v36, %v4228_v46 }
0x2939   :  { %9478 = vmatmul.mubr.msk.bf16.vlgmr.msra.gmra.mxu0 %vm389_vm9, %v4230_v47 }
0x293a   :  { %9509 = vmatprep.mubr.msk.bf16.mxu0 %vm10725_vm0, %v10724_v0  ;;  %9498 = vmatpush3.bf16.msra.mxu0 %v10144_v45 }
0x293b   :  { %9499 = vmatprep.subr.bf16.mxu0 %v10724_v0 }
0x2969   :  { %v3089_v10 = vpop.xlane.xlu0 %3088 }
0x296a   :  { %v3091_v57 = vmul.f32 0.03125, %v3089_v10 }
0x296c   :  { %v3093_v58 = vsub.f32 %v11705_v12, %v3091_v57  ;;  %v10145_v12 = vld [vmem:[#allocation15 + $0x20] sm:$0xff]  }
0x296d   :  { %9500 = vmatpush3.bf16.msra.mxu0 %v10145_v12 }
0x296e   :  { %v3095_v6 = vmul.f32 %v3093_v58, %v3093_v58  ;;  %9501 = vmatprep.subr.bf16.mxu0 %v10724_v0 }
0x2970   :  { %v3099_v59 = vsel %vm389_vm9, %v3095_v6, 0.0 }
0x2971   :  { %9502 = vmatpush3.bf16.msra.mxu0 %v10146_v62 }
0x2972   :  { %9503 = vmatprep.subr.bf16.mxu0 %v10724_v0 }
0x2975   :  { %9504 = vmatpush3.bf16.msra.mxu0 %v10147_v14  ;;  %v11981_v14 = vld [vmem:[#allocation19 + $0x8] sm:$0x7f] }
0x2976   :  { %9505 = vmatprep.subr.bf16.mxu0 %v10724_v0 }
0x2979   :  { %9506 = vmatpush3.bf16.msra.mxu0 %v10148_v43  ;;  %v10154_v43 = vld [vmem:[#allocation13 + $0x8] sm:$0xff]  }
0x297a   :  { %9507 = vmatprep.subr.bf16.mxu0 %v10724_v0 }
0x297d   :  { %9508 = vmatpush3.bf16.msra.mxu0 %v10149_v22  ;;  %v10155_v22 = vld [vmem:[#allocation13] sm:$0xff]  }
0x297e   :  { %9519 = vmatprep.subr.bf16.mxu0 %v10724_v0 }
0x29f9   :  { %v4284_v55 = vpop.f32.mrf.mxu0 }
0x29fa   :  { %v4285_v53 = vadd.f32 %v4284_v55, %v4234_v61 }
0x29fb   :  { %v9479_v60 = vpop.f32.mrf.mxu0 }
0x29fc   :  { %v4291_v52 = vadd.f32 %v4285_v53, %v11609_v42 }
0x29fd   :  { %v4287_v1 = vpop.f32.mrf.mxu0 }
0x29fe   :  { %v4288_v28 = vadd.f32 %v4287_v1, %v4234_v61  ;;  %v4293_v25 = vsel %vm389_vm9, %v4291_v52, 0.0 }
0x29ff   :  { %4294 = vadd.xlane.f32.xlu0 %v4293_v25  ;;  %v9480_v15 = vpop.f32.mrf.mxu0 }
0x2a00   :  { %v4292_v9 = vadd.f32 %v4288_v28, %v11609_v42  ;;  %v10150_v15 = vld [vmem:[#allocation13 + $0x28] sm:$0xff]  }
0x2a01   :  { %9482 = vmatpush3.bf16.msra.mxu1 %v10150_v15 }
0x2a02   :  { %v4296_v31 = vsel %vm389_vm9, %v4292_v9, 0.0  ;;  %9483 = vmatprep.subr.bf16.mxu1 %v10724_v0 }
0x2a03   :  { %3097 = vadd.xlane.f32.xlu0 %v3096_v48  ;;  %4297 = vadd.xlane.f32.xlu1 %v4296_v31  ;;  %v10152_v48 = vld [vmem:[#allocation13 + $0x18] sm:$0xff]   ;;  %v10153_v31 = vld [vmem:[#allocation13 + $0x10] sm:$0xff]  }
0x2a07   :  { %3100 = vadd.xlane.f32.xlu1 %v3099_v59 }
0x2a88   :  { %v4295_v42 = vpop.xlane.xlu0 %4294 }
0x2a89   :  { %v4299_v18 = vmul.f32 0.03125, %v4295_v42 }
0x2a8b   :  { %v11936_v54 = vsub.f32 %v4291_v52, %v4299_v18 }
0x2a8c   :  { %v3098_v49 = vpop.xlane.xlu0 %3097  ;;  %v4298_v63 = vpop.xlane.xlu1 %4297 }
0x2a8d   :  { %v3102_v3 = vmul.f32 0.03125, %v3098_v49  ;;  %v4300_v4 = vmul.f32 0.03125, %v4298_v63  ;;  %v4303_v5 = vmul.f32 %v11936_v54, %v11936_v54 }
0x2a8f   :  { %v3104_v24 = vadd.f32 1e-05, %v3102_v3  ;;  %v11940_v41 = vsub.f32 %v4292_v9, %v4300_v4  ;;  %v4305_v35 = vsel %vm389_vm9, %v4303_v5, 0.0  ;;  %v10151_v9 = vld [vmem:[#allocation13 + $0x20] sm:$0xff]  }
0x2a90   :  { %4306 = vadd.xlane.f32.xlu0 %v4305_v35  ;;  %v3101_v44 = vpop.xlane.xlu1 %3100  ;;  %9484 = vmatpush3.bf16.msra.mxu1 %v10151_v9 }
0x2a91   :  { %10302 = vrsqrt.f32 %v3104_v24  ;;  %v3103_v19 = vmul.f32 0.03125, %v3101_v44  ;;  %v4304_v56 = vmul.f32 %v11940_v41, %v11940_v41  ;;  %9485 = vmatprep.subr.bf16.mxu1 %v10724_v0 }
0x2a93   :  { %v3105_v8 = vadd.f32 1e-05, %v3103_v19  ;;  %v4308_v23 = vsel %vm389_vm9, %v4304_v56, 0.0 }
0x2a94   :  { %4309 = vadd.xlane.f32.xlu1 %v4308_v23  ;;  %9486 = vmatpush3.bf16.msra.mxu1 %v10152_v48 }
0x2a95   :  { %10304 = vrsqrt.f32 %v3105_v8  ;;  %9487 = vmatprep.subr.bf16.mxu1 %v10724_v0 }
0x2a98   :  { %9488 = vmatpush3.bf16.msra.mxu1 %v10153_v31 }
0x2a99   :  { %9489 = vmatprep.subr.bf16.mxu1 %v10724_v0 }
0x2a9c   :  { %9490 = vmatpush3.bf16.msra.mxu1 %v10154_v43 }
0x2a9d   :  { %9491 = vmatprep.subr.bf16.mxu1 %v10724_v0 }
0x2a9e   :  { %v10303_v39 = vpop.eup %10302 }
0x2a9f   :  { %v3108_v7 = vmul.f32 %v10303_v39, %v3092_v27 }
0x2aa0   :  { %9492 = vmatpush3.bf16.msra.mxu1 %v10155_v22 }
0x2aa1   :  { %v3114_v36 = vmul.f32 %v3113_v33, %v3108_v7  ;;  %9513 = vmatprep.subr.bf16.mxu1 %v10724_v0 }
0x2aa2   :  { %v10305_v46 = vpop.eup %10304 }
0x2aa3   :  { %v3109_v47 = vmul.f32 %v10305_v46, %v3093_v58  ;;  %v3120_v51 = vadd.f32 %v8607_v50, %v3114_v36  ;;  %v4328_v36 = vrot.slane %v11981_v14, %v11068_v32 }
0x2aa5   :  { %v3115_v61 = vmul.f32 %v3113_v33, %v3109_v47  ;;  %v3128_v10 = vrot.slane %v3120_v51, 1  ;;  %v3122_v53 = vrot.slane %v3120_v51, 7  ;;  %v4322_v33 = vrot.slane %v11981_v14, %v10983_v26 }
0x2aa7   :  { %v3121_v40 = vadd.f32 %v8607_v50, %v3115_v61 }
0x2aa9   :  { %v10023_v55 = vpack.i.bf16 %v3121_v40, %v3120_v51  ;;  %v3129_v57 = vrot.slane %v3121_v40, 1  ;;  %v3123_v27 = vrot.slane %v3121_v40, 7 }
0x2aab   :  { %10024 = vrot.lane.b32.xlu0 %v10023_v55, %s10726_s26  ;;  %v3130_v60 = vsel %vm356_vm3, %v3128_v10, %v3129_v57  ;;  %v3131_v52 = vsel %vm356_vm3, %v3129_v57, %v3128_v10  ;;  %v3124_v1 = vsel %vm337_vm6, %v3122_v53, %v3123_v27  ;;  %v3125_v58 = vsel %vm337_vm6, %v3123_v27, %v3122_v53 }
0x2aac   :  { %v3132_v28 = vsel %vm363_vm4, %v3130_v60, 0.0  ;;  %v3133_v25 = vsel %vm364_vm5, %v3131_v52, 0.0  ;;  %v3126_v3 = vsel %vm342_vm7, %v3125_v58, 0.0  ;;  %v3127_v5 = vsel %vm343_vm8, %v3124_v1, 0.0 }
0x2aad   :  { %v10028_v29 = vpack.i.bf16 %v3133_v25, %v3132_v28 }
0x2aaf   :  { %10029 = vrot.lane.b32.xlu1 %v10028_v29, %s10708_s30 }
0x2b19   :  { %v4307_v6 = vpop.xlane.xlu0 %4306 }
0x2b1a   :  { %v4311_v59 = vmul.f32 0.03125, %v4307_v6 }
0x2b1c   :  { %v4313_v45 = vadd.f32 1e-05, %v4311_v59 }
0x2b1d   :  { %v10025_v12 = vpop.permute.xlu0 %10024  ;;  %v4310_v62 = vpop.xlane.xlu1 %4309 }
0x2b1e   :  { %10306 = vrsqrt.f32 %v4313_v45  ;;  %v4312_v42 = vmul.f32 0.03125, %v4310_v62  ;;  %v10027_v18 = vunpack.i.h.bf16 %v10025_v12  ;;  %v10026_v49 = vunpack.i.l.bf16 %v10025_v12 }
0x2b20   :  { %v4314_v63 = vadd.f32 1e-05, %v4312_v42  ;;  %v3150_v44 = vsel %vm389_vm9, %v3126_v3, %v10026_v49  ;;  %v3151_v19 = vsel %vm389_vm9, %v3127_v5, %v10027_v18  ;;  %v12028_v49 = vld [vmem:[#allocation19] sm:$0xff] }
0x2b21   :  { %v10030_v4 = vpop.permute.xlu1 %10029 }
0x2b22   :  { %10308 = vrsqrt.f32 %v4314_v63  ;;  %v10032_v24 = vunpack.i.h.bf16 %v10030_v4  ;;  %v10031_v35 = vunpack.i.l.bf16 %v10030_v4  ;;  %v4556_v63 = vrot.slane %v12028_v49, %v11283_v17 }
0x2b24   :  { %v3153_v56 = vsel %vm392_vm10, %v3151_v19, %v10032_v24  ;;  %v3152_v8 = vsel %vm392_vm10, %v3150_v44, %v10031_v35 }
0x2b25   :  { %v11977_v23 = vpack.c.bf16 %v3153_v56, %v3152_v8 }
0x2b27   :  { %9510 = vmatmul.mubr.msk.bf16.vlgmr.msra.gmra.mxu0 %vm444_vm11, %v11977_v23 }
0x2b28   :  { %9521 = vmatprep.mubr.msk.bf16.mxu0 %vm10725_vm0, %v10724_v0 }
0x2b2b   :  { %v10307_v39 = vpop.eup %10306 }
0x2b2c   :  { %v4317_v7 = vmul.f32 %v10307_v39, %v11936_v54  ;;  %v4379_v39 = vrot.slane %v12028_v49, %v11305_v13 }
0x2b2e   :  { %v4323_v50 = vmul.f32 %v4322_v33, %v4317_v7 }
0x2b2f   :  { %v10309_v46 = vpop.eup %10308 }
0x2b30   :  { %v4318_v47 = vmul.f32 %v10309_v46, %v11940_v41  ;;  %v11992_v61 = vadd.f32 %v4328_v36, %v4323_v50 }
0x2b32   :  { %v4324_v51 = vmul.f32 %v4322_v33, %v4318_v47  ;;  %v4337_v10 = vrot.slane %v11992_v61, 1  ;;  %v4331_v1 = vrot.slane %v11992_v61, 7 }
0x2b34   :  { %v11995_v40 = vadd.f32 %v4328_v36, %v4324_v51 }
0x2b36   :  { %v10033_v54 = vpack.i.bf16 %v11995_v40, %v11992_v61  ;;  %v4338_v55 = vrot.slane %v11995_v40, 1  ;;  %v4332_v52 = vrot.slane %v11995_v40, 7 }
0x2b38   :  { %10034 = vrot.lane.b32.xlu1 %v10033_v54, %s10726_s26  ;;  %v4339_v41 = vsel %vm356_vm3, %v4337_v10, %v4338_v55  ;;  %v4340_v57 = vsel %vm356_vm3, %v4338_v55, %v4337_v10  ;;  %v4333_v28 = vsel %vm337_vm6, %v4331_v1, %v4332_v52  ;;  %v4334_v25 = vsel %vm337_vm6, %v4332_v52, %v4331_v1 }
0x2b39   :  { %v4341_v53 = vsel %vm363_vm4, %v4339_v41, 0.0  ;;  %v4342_v27 = vsel %vm364_vm5, %v4340_v57, 0.0  ;;  %v4335_v48 = vsel %vm342_vm7, %v4334_v25, 0.0  ;;  %v4336_v31 = vsel %vm343_vm8, %v4333_v28, 0.0 }
0x2b3a   :  { %v10038_v60 = vpack.i.bf16 %v4342_v27, %v4341_v53 }
0x2b3c   :  { %10039 = vrot.lane.b32.xlu0 %v10038_v60, %s10708_s30 }
0x2baa   :  { %v10035_v58 = vpop.permute.xlu1 %10034 }
0x2bab   :  { %v10037_v29 = vunpack.i.h.bf16 %v10035_v58  ;;  %v10036_v15 = vunpack.i.l.bf16 %v10035_v58  ;;  %v4562_v58 = vrot.slane %v12028_v49, %v11288_v30 }
0x2bad   :  { %v4360_v45 = vsel %vm389_vm9, %v4336_v31, %v10037_v29  ;;  %v4359_v12 = vsel %vm389_vm9, %v4335_v48, %v10036_v15 }
0x2bae   :  { %v10040_v9 = vpop.permute.xlu0 %10039 }
0x2baf   :  { %v10042_v6 = vunpack.i.h.bf16 %v10040_v9  ;;  %v10041_v59 = vunpack.i.l.bf16 %v10040_v9 }
0x2bb1   :  { %v4361_v62 = vsel %vm392_vm10, %v4359_v12, %v10041_v59  ;;  %v4362_v42 = vsel %vm392_vm10, %v4360_v45, %v10042_v6 }
0x2bb2   :  { %v4375_v18 = vpack.c.bf16 %v4362_v42, %v4361_v62 }
0x2bb4   :  { %9494 = vmatmul.mubr.msk.bf16.vlgmr.msra.gmra.mxu1 %vm444_vm11, %v4375_v18 }
0x2bb5   :  { %9515 = vmatprep.mubr.msk.bf16.mxu1 %vm10725_vm0, %v10724_v0 }
0x2be7   :  { %v4546_v3 = vpop.f32.mrf.mxu0 }
0x2be8   :  { %v4557_v4 = vadd.f32 %v4556_v63, %v4546_v3 }
0x2be9   :  { %v9511_v5 = vpop.f32.mrf.mxu0 }
0x2bea   :  { %v12032_v24 = vpack.c.bf16 %v4557_v4, %v4557_v4 }
0x2beb   :  { %v4549_v35 = vpop.f32.mrf.mxu0 }
0x2bec   :  { %v4558_v44 = vadd.f32 %v4556_v63, %v4549_v35  ;;  %v4582_v19 = vsel %vm526_vm12, %v12032_v24, 0 }
0x2bed   :  { %v9512_v56 = vpop.f32.mrf.mxu0  ;;  %9514 = vmatpush3.bf16.xpose.msra.mxu1 %v4582_v19 }
0x2bee   :  { %v12036_v8 = vpack.c.bf16 %v4558_v44, %v4558_v44  ;;  %9525 = vmatprep.subr.bf16.mxu1 %v10724_v0 }
0x2bf0   :  { %v4628_v33 = vsel %vm526_vm12, %v12036_v8, 0 }
0x2bf1   :  { %9520 = vmatpush3.bf16.xpose.msra.mxu0 %v4628_v33 }
0x2bf2   :  { %9531 = vmatprep.subr.bf16.mxu0 %v10724_v0 }
0x2c74   :  { %v4453_v7 = vpop.f32.mrf.mxu1 }
0x2c75   :  { %v4454_v43 = vadd.f32 %v4453_v7, %v4379_v39 }
0x2c76   :  { %v9495_v50 = vpop.f32.mrf.mxu1 }
0x2c77   :  { %v12044_v36 = vpack.c.bf16 %v4454_v43, %v4454_v43 }
0x2c78   :  { %v4456_v46 = vpop.f32.mrf.mxu1 }
0x2c79   :  { %v4457_v47 = vadd.f32 %v4456_v46, %v4379_v39  ;;  %9516 = vmatmul.mubr.msk.bf16.vlgmr.msra.gmra.mxu1 %vm526_vm12, %v12044_v36 }
0x2c7a   :  { %v9496_v22 = vpop.f32.mrf.mxu1  ;;  %9527 = vmatprep.mubr.msk.bf16.mxu1 %vm10725_vm0, %v10724_v0 }
0x2c7b   :  { %v12050_v51 = vpack.c.bf16 %v4457_v47, %v4457_v47 }
0x2c7d   :  { %9522 = vmatmul.mubr.msk.bf16.vlgmr.msra.gmra.mxu0 %vm526_vm12, %v12050_v51 }
0x2c7e   :  { %9533 = vmatprep.mubr.msk.bf16.mxu0 %vm10725_vm0, %v10724_v0 }
0x2d39   :  { %v4618_v54 = vpop.f32.mrf.mxu1 }
0x2d3a   :  { %v4670_v10 = vsel %vm526_vm12, %v4618_v54, -inf }
0x2d3b   :  { %4671 = vmax.xlane.f32.xlu1 %v4670_v10  ;;  %v9517_v55 = vpop.f32.mrf.mxu1 }
0x2d3d   :  { %v4621_v41 = vpop.f32.mrf.mxu1  ;;  %v4664_v57 = vpop.f32.mrf.mxu0 }
0x2d3e   :  { %v4673_v53 = vsel %vm526_vm12, %v4664_v57, -inf }
0x2d3f   :  { %v9518_v27 = vpop.f32.mrf.mxu1  ;;  %4674 = vmax.xlane.f32.xlu0 %v4673_v53  ;;  %v9523_v60 = vpop.f32.mrf.mxu0 }
0x2d41   :  { %v4667_v52 = vpop.f32.mrf.mxu0 }
0x2d43   :  { %v9524_v1 = vpop.f32.mrf.mxu0 }
0x2d55   :  { %4564 = vrot.lane.b32.xlu0 %v4562_v58, %s10726_s26 }
0x2dc4   :  { %v4672_v31 = vpop.xlane.xlu1 %4671 }
0x2dc5   :  { %v4676_v6 = vsub.f32 %v4618_v54, %v4672_v31 }
0x2dc7   :  { %v4678_v59 = vmul.f32 1.442695, %v4676_v6 }
0x2dc8   :  { %v4675_v28 = vpop.xlane.xlu0 %4674 }
0x2dc9   :  { %v4677_v45 = vsub.f32 %v4664_v57, %v4675_v28  ;;  %10310 = vpow2.f32 %v4678_v59 }
0x2dcb   :  { %v4680_v12 = vmul.f32 1.442695, %v4677_v45 }
0x2dcc   :  { %v4565_v25 = vpop.permute.xlu0 %4564 }
0x2dcd   :  { %v4567_v29 = vadd.f32 %v4565_v25, %v4546_v3  ;;  %v4568_v15 = vadd.f32 %v4565_v25, %v4549_v35  ;;  %10312 = vpow2.f32 %v4680_v12 }
0x2dcf   :  { %v12061_v9 = vpack.c.bf16 %v4567_v29, %v4567_v29  ;;  %v12063_v48 = vpack.c.bf16 %v4568_v15, %v4568_v15 }
0x2dd1   :  { %4746 = vrot.lane.b32.xlu0 %v12063_v48, %s10727_s8  ;;  %4697 = vrot.lane.b32.xlu1 %v12061_v9, %s10727_s8 }
0x2dd5   :  { %4798 = vrot.lane.b32.xlu0 %v12032_v24, %s10729_s12 }
0x2dd6   :  { %v10311_v62 = vpop.eup %10310 }
0x2dd7   :  { %v4682_v42 = vsel %vm526_vm12, %v10311_v62, 0.0 }
0x2dd9   :  { %4795 = vrot.lane.b32.xlu0 %v12044_v36, %s10729_s12 }
0x2dda   :  { %v10313_v18 = vpop.eup %10312 }
0x2ddb   :  { %v4685_v63 = vsel %vm526_vm12, %v10313_v18, 0.0 }
0x2df5   :  { %4683 = vadd.xlane.f32.xlu1 %v4682_v42 }
0x2df9   :  { %4686 = vadd.xlane.f32.xlu1 %v4685_v63 }
0x2e0a   :  { %4850 = vrot.lane.b32.xlu1 %v12036_v8, %s10729_s12 }
0x2e0e   :  { %4847 = vrot.lane.b32.xlu1 %v12050_v51, %s10729_s12 }
0x2e43   :  { %v4747_v3 = vpop.permute.xlu0 %4746  ;;  %v4698_v4 = vpop.permute.xlu1 %4697 }
0x2e44   :  { %v4752_v5 = vsel %vm654_vm13, %v4747_v3, 0  ;;  %v4703_v35 = vsel %vm654_vm13, %v4698_v4, 0 }
0x2e45   :  { %9526 = vmatpush3.bf16.msra.mxu1 %v4703_v35  ;;  %9532 = vmatpush3.bf16.msra.mxu0 %v4752_v5 }
0x2e46   :  { %9537 = vmatprep.subr.bf16.mxu1 %v10724_v0  ;;  %9543 = vmatprep.subr.bf16.mxu0 %v10724_v0 }
0x2e47   :  { %v4799_v39 = vpop.permute.xlu0 %4798 }
0x2e48   :  { %v4804_v50 = vsel %vm526_vm12, %v4799_v39, 0 }
0x2e4b   :  { %v4796_v10 = vpop.permute.xlu0 %4795 }
0x2e7e   :  { %v4684_v44 = vpop.xlane.xlu1 %4683 }
0x2e7f   :  { %10314 = vrcp.f32 %v4684_v44 }
0x2e82   :  { %v4687_v19 = vpop.xlane.xlu1 %4686 }
0x2e83   :  { %10316 = vrcp.f32 %v4687_v19 }
0x2e86   :  { %v4851_v47 = vpop.permute.xlu1 %4850 }
0x2e87   :  { %v4856_v54 = vsel %vm526_vm12, %v4851_v47, 0 }
0x2e8a   :  { %v4848_v55 = vpop.permute.xlu1 %4847 }
0x2e8c   :  { %v10315_v56 = vpop.eup %10314 }
0x2e8d   :  { %v4689_v33 = vmul.f32 %v10315_v56, %v10311_v62 }
0x2e8f   :  { %5458 = vst.msk [vmem:[%s12962_s25] sm:$0xff] %vm526_vm12, %v4689_v33  ;;  %v4692_v7 = vpack.c.bf16 %v4689_v33, %v4689_v33 }
0x2e90   :  { %v10317_v43 = vpop.eup %10316 }
0x2e91   :  { %v4691_v46 = vmul.f32 %v10317_v43, %v10313_v18  ;;  %9528 = vmatmul.mubr.msk.bf16.vlgmr.msra.gmra.mxu1 %vm526_vm12, %v4692_v7 }
0x2e92   :  { %9538 = vmatpush3.bf16.xpose.msra.mxu1 %v4804_v50  ;;  %9539 = vmatprep.mubr.msk.bf16.mxu1 %vm10725_vm0, %v10724_v0 }
0x2e93   :  { %5462 = vst.msk [vmem:[%s12962_s25 + $0x20] sm:$0xff] %vm526_vm12, %v4691_v46  ;;  %v4693_v22 = vpack.c.bf16 %v4691_v46, %v4691_v46  ;;  %9549 = vmatprep.subr.bf16.mxu1 %v10724_v0 }
0x2e95   :  { %9534 = vmatmul.mubr.msk.bf16.vlgmr.msra.gmra.mxu0 %vm526_vm12, %v4693_v22 }
0x2e96   :  { %9544 = vmatpush3.bf16.xpose.msra.mxu0 %v4856_v54  ;;  %9545 = vmatprep.mubr.msk.bf16.mxu0 %vm10725_vm0, %v10724_v0 }
0x2e97   :  { %9555 = vmatprep.subr.bf16.mxu0 %v10724_v0 }
0x2e99   :  { %9540 = vmatmul.mubr.msk.bf16.vlgmr.msra.gmra.mxu1 %vm526_vm12, %v4796_v10 }
0x2e9a   :  { %9551 = vmatprep.mubr.msk.bf16.mxu1 %vm10725_vm0, %v10724_v0 }
0x2e9d   :  { %9546 = vmatmul.mubr.msk.bf16.vlgmr.msra.gmra.mxu0 %vm526_vm12, %v4848_v55 }
0x2e9e   :  { %9557 = vmatprep.mubr.msk.bf16.mxu0 %vm10725_vm0, %v10724_v0 }
0x2f51   :  { %v12107_v41 = vpop.f32.mrf.mxu1 }
0x2f53   :  { %v9529_v57 = vpop.f32.mrf.mxu1 }
0x2f55   :  { %v4742_v53 = vpop.f32.mrf.mxu1  ;;  %v12109_v27 = vpop.f32.mrf.mxu0 }
0x2f57   :  { %v9530_v60 = vpop.f32.mrf.mxu1  ;;  %v9535_v52 = vpop.f32.mrf.mxu0 }
0x2f59   :  { %v4791_v1 = vpop.f32.mrf.mxu0  ;;  %v4840_v58 = vpop.f32.mrf.mxu1 }
0x2f5a   :  { %v4898_v28 = vsel %vm526_vm12, %v4840_v58, -inf }
0x2f5b   :  { %4899 = vmax.xlane.f32.xlu0 %v4898_v28  ;;  %v9536_v25 = vpop.f32.mrf.mxu0  ;;  %v9541_v29 = vpop.f32.mrf.mxu1 }
0x2f5d   :  { %v4843_v15 = vpop.f32.mrf.mxu1  ;;  %v4892_v31 = vpop.f32.mrf.mxu0 }
0x2f5e   :  { %v4901_v6 = vsel %vm526_vm12, %v4892_v31, -inf }
0x2f5f   :  { %v9542_v59 = vpop.f32.mrf.mxu1  ;;  %4902 = vmax.xlane.f32.xlu1 %v4901_v6  ;;  %v9547_v45 = vpop.f32.mrf.mxu0 }
0x2f61   :  { %v4895_v12 = vpop.f32.mrf.mxu0 }
0x2f63   :  { %v9548_v62 = vpop.f32.mrf.mxu0 }
0x2f70   :  { %4922 = vrot.lane.b32.xlu1 %v12061_v9, %s10728_s13 }
0x2f74   :  { %5020 = vrot.lane.b32.xlu1 %v12032_v24, %s10732_s16 }
0x2f78   :  { %5070 = vrot.lane.b32.xlu1 %v12036_v8, %s10732_s16 }
0x2f7c   :  { %5068 = vrot.lane.b32.xlu1 %v12050_v51, %s10732_s16 }
0x2fe4   :  { %v4900_v42 = vpop.xlane.xlu0 %4899 }
0x2fe5   :  { %v4904_v18 = vsub.f32 %v4840_v58, %v4900_v42 }
0x2fe7   :  { %v4906_v63 = vmul.f32 1.442695, %v4904_v18 }
0x2fe8   :  { %v4903_v3 = vpop.xlane.xlu1 %4902 }
0x2fe9   :  { %10318 = vpow2.f32 %v4906_v63  ;;  %v4905_v4 = vsub.f32 %v4892_v31, %v4903_v3 }
0x2feb   :  { %v4908_v5 = vmul.f32 1.442695, %v4905_v4 }
0x2fec   :  { %v4923_v35 = vpop.permute.xlu1 %4922 }
0x2fed   :  { %10320 = vpow2.f32 %v4908_v5  ;;  %v4928_v44 = vsel %vm654_vm13, %v4923_v35, 0 }
0x2fee   :  { %9550 = vmatpush3.bf16.msra.mxu1 %v4928_v44 }
0x2fef   :  { %9561 = vmatprep.subr.bf16.mxu1 %v10724_v0 }
0x2ff0   :  { %v5021_v22 = vpop.permute.xlu1 %5020 }
0x2ff1   :  { %v5026_v57 = vsel %vm526_vm12, %v5021_v22, 0 }
0x2ff4   :  { %v5071_v60 = vpop.permute.xlu1 %5070 }
0x2ff5   :  { %v5076_v1 = vsel %vm526_vm12, %v5071_v60, 0 }
0x2ff6   :  { %v10319_v19 = vpop.eup %10318 }
0x2ff7   :  { %v4910_v56 = vsel %vm526_vm12, %v10319_v19, 0.0 }
0x2ff8   :  { %4911 = vadd.xlane.f32.xlu0 %v4910_v56  ;;  %v5069_v28 = vpop.permute.xlu1 %5068 }
0x2ffa   :  { %v10321_v33 = vpop.eup %10320 }
0x2ffb   :  { %v4913_v39 = vsel %vm526_vm12, %v10321_v33, 0.0 }
0x2ffc   :  { %4914 = vadd.xlane.f32.xlu0 %v4913_v39 }
0x3012   :  { %4970 = vrot.lane.b32.xlu0 %v12063_v48, %s10728_s13 }
0x3016   :  { %5018 = vrot.lane.b32.xlu0 %v12044_v36, %s10732_s16 }
0x3081   :  { %v4912_v7 = vpop.xlane.xlu0 %4911 }
0x3082   :  { %10322 = vrcp.f32 %v4912_v7 }
0x3085   :  { %v4915_v43 = vpop.xlane.xlu0 %4914 }
0x3086   :  { %10324 = vrcp.f32 %v4915_v43 }
0x3089   :  { %v4971_v50 = vpop.permute.xlu0 %4970 }
0x308a   :  { %v4976_v46 = vsel %vm654_vm13, %v4971_v50, 0 }
0x308b   :  { %9556 = vmatpush3.bf16.msra.mxu0 %v4976_v46 }
0x308c   :  { %9567 = vmatprep.subr.bf16.mxu0 %v10724_v0 }
0x308d   :  { %v5019_v58 = vpop.permute.xlu0 %5018 }
0x308f   :  { %v10323_v47 = vpop.eup %10322 }
0x3090   :  { %v4917_v54 = vmul.f32 %v10323_v47, %v10319_v19 }
0x3092   :  { %5459 = vst.msk [vmem:[%s12962_s25 + $0x8] sm:$0xff] %vm526_vm12, %v4917_v54  ;;  %v4920_v10 = vpack.c.bf16 %v4917_v54, %v4917_v54 }
0x3093   :  { %v10325_v55 = vpop.eup %10324 }
0x3094   :  { %v4919_v53 = vmul.f32 %v10325_v55, %v10321_v33  ;;  %9552 = vmatmul.mubr.msk.bf16.vlgmr.msra.gmra.mxu1 %vm526_vm12, %v4920_v10 }
0x3095   :  { %9562 = vmatpush3.bf16.xpose.msra.mxu1 %v5026_v57  ;;  %9563 = vmatprep.mubr.msk.bf16.mxu1 %vm10725_vm0, %v10724_v0 }
0x3096   :  { %5463 = vst.msk [vmem:[%s12962_s25 + $0x28] sm:$0xff] %vm526_vm12, %v4919_v53  ;;  %v4921_v52 = vpack.c.bf16 %v4919_v53, %v4919_v53  ;;  %9573 = vmatprep.subr.bf16.mxu1 %v10724_v0 }
0x3098   :  { %9558 = vmatmul.mubr.msk.bf16.vlgmr.msra.gmra.mxu0 %vm526_vm12, %v4921_v52 }
0x3099   :  { %9568 = vmatpush3.bf16.xpose.msra.mxu0 %v5076_v1  ;;  %9569 = vmatprep.mubr.msk.bf16.mxu0 %vm10725_vm0, %v10724_v0 }
0x309a   :  { %9579 = vmatprep.subr.bf16.mxu0 %v10724_v0 }
0x309c   :  { %9564 = vmatmul.mubr.msk.bf16.vlgmr.msra.gmra.mxu1 %vm526_vm12, %v5019_v58 }
0x309d   :  { %9575 = vmatprep.mubr.msk.bf16.mxu1 %vm10725_vm0, %v10724_v0 }
0x30a0   :  { %9570 = vmatmul.mubr.msk.bf16.vlgmr.msra.gmra.mxu0 %vm526_vm12, %v5069_v28 }
0x30a1   :  { %9581 = vmatprep.mubr.msk.bf16.mxu0 %vm10725_vm0, %v10724_v0 }
0x3154   :  { %v12155_v25 = vpop.f32.mrf.mxu1 }
0x3156   :  { %v9553_v29 = vpop.f32.mrf.mxu1 }
0x3158   :  { %v4967_v15 = vpop.f32.mrf.mxu1  ;;  %v12157_v31 = vpop.f32.mrf.mxu0 }
0x3159   :  { %v10043_v6 = vpack.i.bf16 %v12157_v31, %v12155_v25 }
0x315a   :  { %v9554_v59 = vpop.f32.mrf.mxu1  ;;  %v9559_v45 = vpop.f32.mrf.mxu0 }
0x315c   :  { %v5015_v12 = vpop.f32.mrf.mxu0  ;;  %v5062_v62 = vpop.f32.mrf.mxu1 }
0x315d   :  { %v5118_v42 = vsel %vm526_vm12, %v5062_v62, -inf }
0x315e   :  { %5119 = vmax.xlane.f32.xlu0 %v5118_v42  ;;  %v9560_v18 = vpop.f32.mrf.mxu0  ;;  %v9565_v63 = vpop.f32.mrf.mxu1 }
0x3160   :  { %v5065_v3 = vpop.f32.mrf.mxu1  ;;  %v5112_v4 = vpop.f32.mrf.mxu0 }
0x3161   :  { %v5121_v5 = vsel %vm526_vm12, %v5112_v4, -inf }
0x3162   :  { %v9566_v35 = vpop.f32.mrf.mxu1  ;;  %5122 = vmax.xlane.f32.xlu1 %v5121_v5  ;;  %v9571_v44 = vpop.f32.mrf.mxu0 }
0x3164   :  { %v5115_v19 = vpop.f32.mrf.mxu0 }
0x3166   :  { %v9572_v56 = vpop.f32.mrf.mxu0 }
0x3173   :  { %5142 = vrot.lane.b32.xlu1 %v12061_v9, %s10731_s9 }
0x3177   :  { %5240 = vrot.lane.b32.xlu1 %v12032_v24, %s10735_s2 }
0x317b   :  { %5290 = vrot.lane.b32.xlu1 %v12036_v8, %s10735_s2 }
0x317f   :  { %5288 = vrot.lane.b32.xlu1 %v12050_v51, %s10735_s2 }
0x31e7   :  { %v5120_v33 = vpop.xlane.xlu0 %5119 }
0x31e8   :  { %v5124_v39 = vsub.f32 %v5062_v62, %v5120_v33 }
0x31ea   :  { %v5126_v7 = vmul.f32 1.442695, %v5124_v39 }
0x31eb   :  { %v5123_v43 = vpop.xlane.xlu1 %5122 }
0x31ec   :  { %10326 = vpow2.f32 %v5126_v7  ;;  %v5125_v50 = vsub.f32 %v5112_v4, %v5123_v43 }
0x31ee   :  { %v5128_v46 = vmul.f32 1.442695, %v5125_v50 }
0x31ef   :  { %v5143_v47 = vpop.permute.xlu1 %5142 }
0x31f0   :  { %10328 = vpow2.f32 %v5128_v46  ;;  %v5148_v22 = vsel %vm654_vm13, %v5143_v47, 0 }
0x31f1   :  { %9574 = vmatpush3.bf16.msra.mxu1 %v5148_v22 }
0x31f2   :  { %9585 = vmatprep.subr.bf16.mxu1 %v10724_v0 }
0x31f3   :  { %v5241_v52 = vpop.permute.xlu1 %5240 }
0x31f4   :  { %v5246_v28 = vsel %vm526_vm12, %v5241_v52, 0 }
0x31f7   :  { %v5291_v15 = vpop.permute.xlu1 %5290 }
0x31f8   :  { %v5296_v45 = vsel %vm526_vm12, %v5291_v15, 0 }
0x31f9   :  { %v10327_v24 = vpop.eup %10326 }
0x31fa   :  { %v5130_v8 = vsel %vm526_vm12, %v10327_v24, 0.0 }
0x31fb   :  { %5131 = vadd.xlane.f32.xlu0 %v5130_v8  ;;  %v5289_v62 = vpop.permute.xlu1 %5288 }
0x31fd   :  { %v10329_v54 = vpop.eup %10328 }
0x31fe   :  { %v5133_v51 = vsel %vm526_vm12, %v10329_v54, 0.0 }
0x31ff   :  { %5134 = vadd.xlane.f32.xlu0 %v5133_v51 }
0x3215   :  { %5190 = vrot.lane.b32.xlu0 %v12063_v48, %s10731_s9 }
0x3219   :  { %5238 = vrot.lane.b32.xlu0 %v12044_v36, %s10735_s2 }
0x3284   :  { %v5132_v10 = vpop.xlane.xlu0 %5131 }
0x3285   :  { %10330 = vrcp.f32 %v5132_v10 }
0x3288   :  { %v5135_v55 = vpop.xlane.xlu0 %5134 }
0x3289   :  { %10332 = vrcp.f32 %v5135_v55 }
0x328c   :  { %v5191_v57 = vpop.permute.xlu0 %5190 }
0x328d   :  { %v5196_v53 = vsel %vm654_vm13, %v5191_v57, 0 }
0x328e   :  { %9580 = vmatpush3.bf16.msra.mxu0 %v5196_v53 }
0x328f   :  { %9591 = vmatprep.subr.bf16.mxu0 %v10724_v0 }
0x3290   :  { %v5239_v12 = vpop.permute.xlu0 %5238 }
0x3292   :  { %v10331_v60 = vpop.eup %10330 }
0x3293   :  { %v5137_v1 = vmul.f32 %v10331_v60, %v10327_v24 }
0x3295   :  { %5460 = vst.msk [vmem:[%s12962_s25 + $0x10] sm:$0xff] %vm526_vm12, %v5137_v1  ;;  %v5140_v58 = vpack.c.bf16 %v5137_v1, %v5137_v1 }
0x3296   :  { %v10333_v36 = vpop.eup %10332 }
0x3297   :  { %v5139_v29 = vmul.f32 %v10333_v36, %v10329_v54  ;;  %9576 = vmatmul.mubr.msk.bf16.vlgmr.msra.gmra.mxu1 %vm526_vm12, %v5140_v58 }
0x3298   :  { %9586 = vmatpush3.bf16.xpose.msra.mxu1 %v5246_v28  ;;  %9587 = vmatprep.mubr.msk.bf16.mxu1 %vm10725_vm0, %v10724_v0 }
0x3299   :  { %5464 = vst.msk [vmem:[%s12962_s25 + $0x30] sm:$0xff] %vm526_vm12, %v5139_v29  ;;  %v5141_v59 = vpack.c.bf16 %v5139_v29, %v5139_v29  ;;  %9597 = vmatprep.subr.bf16.mxu1 %v10724_v0 }
0x329b   :  { %9582 = vmatmul.mubr.msk.bf16.vlgmr.msra.gmra.mxu0 %vm526_vm12, %v5141_v59 }
0x329c   :  { %9592 = vmatpush3.bf16.xpose.msra.mxu0 %v5296_v45  ;;  %9593 = vmatprep.mubr.msk.bf16.mxu0 %vm10725_vm0, %v10724_v0 }
0x329d   :  { %9603 = vmatprep.subr.bf16.mxu0 %v10724_v0 }
0x329f   :  { %9588 = vmatmul.mubr.msk.bf16.vlgmr.msra.gmra.mxu1 %vm526_vm12, %v5239_v12  ;;  %v10156_v12 = vld [vmem:[#allocation16 + $0x18] sm:$0xff]  }
0x32a0   :  { %9599 = vmatprep.mubr.msk.bf16.mxu1 %vm10725_vm0, %v10724_v0 }
0x32a3   :  { %9594 = vmatmul.mubr.msk.bf16.vlgmr.msra.gmra.mxu0 %vm526_vm12, %v5289_v62  ;;  %v10157_v62 = vld [vmem:[#allocation16 + $0x10] sm:$0xff]  }
0x32a4   :  { %9605 = vmatprep.mubr.msk.bf16.mxu0 %vm10725_vm0, %v10724_v0 }
0x3357   :  { %v5184_v42 = vpop.f32.mrf.mxu1 }
0x3359   :  { %v9577_v18 = vpop.f32.mrf.mxu1 }
0x335b   :  { %v5187_v63 = vpop.f32.mrf.mxu1  ;;  %v5232_v3 = vpop.f32.mrf.mxu0 }
0x335c   :  { %v10048_v24 = vpack.i.bf16 %v5232_v3, %v5184_v42 }
0x335d   :  { %v9578_v4 = vpop.f32.mrf.mxu1  ;;  %v9583_v5 = vpop.f32.mrf.mxu0 }
0x335f   :  { %v5235_v35 = vpop.f32.mrf.mxu0  ;;  %v5282_v44 = vpop.f32.mrf.mxu1 }
0x3360   :  { %v5338_v19 = vsel %vm526_vm12, %v5282_v44, -inf }
0x3361   :  { %5339 = vmax.xlane.f32.xlu0 %v5338_v19  ;;  %v9584_v56 = vpop.f32.mrf.mxu0  ;;  %v9589_v33 = vpop.f32.mrf.mxu1 }
0x3363   :  { %v5285_v39 = vpop.f32.mrf.mxu1  ;;  %v5332_v7 = vpop.f32.mrf.mxu0 }
0x3364   :  { %v5341_v43 = vsel %vm526_vm12, %v5332_v7, -inf }
0x3365   :  { %v9590_v50 = vpop.f32.mrf.mxu1  ;;  %5342 = vmax.xlane.f32.xlu1 %v5341_v43  ;;  %v9595_v46 = vpop.f32.mrf.mxu0 }
0x3367   :  { %v5335_v47 = vpop.f32.mrf.mxu0 }
0x3369   :  { %v9596_v22 = vpop.f32.mrf.mxu0 }
0x3376   :  { %5362 = vrot.lane.b32.xlu1 %v12061_v9, %s10734_s28 }
0x337a   :  { %10044 = vrot.lane.b32.xlu1 %v10043_v6, %s10713_s3 }
0x337e   :  { %10049 = vrot.lane.b32.xlu1 %v10048_v24, %s10737_s14 }
0x33ea   :  { %v5340_v8 = vpop.xlane.xlu0 %5339 }
0x33eb   :  { %v5344_v54 = vsub.f32 %v5282_v44, %v5340_v8 }
0x33ed   :  { %v5346_v51 = vmul.f32 1.442695, %v5344_v54 }
0x33ee   :  { %v5343_v10 = vpop.xlane.xlu1 %5342 }
0x33ef   :  { %10334 = vpow2.f32 %v5346_v51  ;;  %v5345_v55 = vsub.f32 %v5332_v7, %v5343_v10 }
0x33f1   :  { %v5348_v57 = vmul.f32 1.442695, %v5345_v55 }
0x33f2   :  { %v5363_v53 = vpop.permute.xlu1 %5362 }
0x33f3   :  { %10336 = vpow2.f32 %v5348_v57  ;;  %v5368_v60 = vsel %vm654_vm13, %v5363_v53, 0 }
0x33f4   :  { %9598 = vmatpush3.bf16.msra.mxu1 %v5368_v60 }
0x33f5   :  { %9609 = vmatprep.subr.bf16.mxu1 %v10724_v0 }
0x33f6   :  { %v10045_v56 = vpop.permute.xlu1 %10044 }
0x33f7   :  { %v10047_v39 = vunpack.i.h.bf16 %v10045_v56  ;;  %v10046_v7 = vunpack.i.l.bf16 %v10045_v56 }
0x33f9   :  { %v5491_v47 = vsel %vm526_vm12, %v12109_v27, %v10047_v39  ;;  %v5490_v22 = vsel %vm526_vm12, %v12107_v41, %v10046_v7  ;;  %v5500_v27 = vrot.slane %v12028_v49, %v11317_v34 }
0x33fa   :  { %v10050_v33 = vpop.permute.xlu1 %10049 }
0x33fb   :  { %v10052_v43 = vunpack.i.h.bf16 %v10050_v33  ;;  %v10051_v50 = vunpack.i.l.bf16 %v10050_v33 }
0x33fc   :  { %v10335_v9 = vpop.eup %10334 }
0x33fd   :  { %v5350_v25 = vsel %vm526_vm12, %v10335_v9, 0.0  ;;  %v5492_v54 = vsel %vm1443_vm14, %v5490_v22, %v10051_v50  ;;  %v5493_v51 = vsel %vm1443_vm14, %v5491_v47, %v10052_v43  ;;  %v5594_v43 = vrot.slane %v11981_v14, %v11305_v13 }
0x33fe   :  { %5351 = vadd.xlane.f32.xlu0 %v5350_v25 }
0x3400   :  { %v10337_v31 = vpop.eup %10336 }
0x3401   :  { %v5353_v6 = vsel %vm526_vm12, %v10337_v31, 0.0 }
0x3402   :  { %5354 = vadd.xlane.f32.xlu0 %v5353_v6 }
0x3418   :  { %5410 = vrot.lane.b32.xlu0 %v12063_v48, %s10734_s28 }
0x3487   :  { %v5352_v52 = vpop.xlane.xlu0 %5351 }
0x3488   :  { %10338 = vrcp.f32 %v5352_v52 }
0x348b   :  { %v5355_v1 = vpop.xlane.xlu0 %5354 }
0x348c   :  { %10340 = vrcp.f32 %v5355_v1 }
0x348f   :  { %v5411_v58 = vpop.permute.xlu0 %5410 }
0x3490   :  { %v5416_v36 = vsel %vm654_vm13, %v5411_v58, 0 }
0x3491   :  { %9604 = vmatpush3.bf16.msra.mxu0 %v5416_v36 }
0x3492   :  { %9617 = vmatprep.subr.bf16.mxu0 %v10724_v0 }
0x3495   :  { %v10339_v28 = vpop.eup %10338 }
0x3496   :  { %v5357_v29 = vmul.f32 %v10339_v28, %v10335_v9 }
0x3498   :  { %5461 = vst.msk [vmem:[%s12962_s25 + $0x18] sm:$0xff] %vm526_vm12, %v5357_v29  ;;  %v5360_v15 = vpack.c.bf16 %v5357_v29, %v5357_v29 }
0x3499   :  { %v10341_v59 = vpop.eup %10340 }
0x349a   :  { %v5359_v48 = vmul.f32 %v10341_v59, %v10337_v31  ;;  %9600 = vmatmul.mubr.msk.bf16.vlgmr.msra.gmra.mxu1 %vm526_vm12, %v5360_v15 }
0x349b   :  { %9613 = vmatprep.mubr.msk.bf16.mxu1 %vm10725_vm0, %v10724_v0  ;;  %9610 = vmatpush3.bf16.msra.mxu1 %v10156_v12 }
0x349c   :  { %5465 = vst.msk [vmem:[%s12962_s25 + $0x38] sm:$0xff] %vm526_vm12, %v5359_v48  ;;  %v5361_v45 = vpack.c.bf16 %v5359_v48, %v5359_v48  ;;  %9611 = vmatprep.subr.bf16.mxu1 %v10724_v0 }
0x349e   :  { %9606 = vmatmul.mubr.msk.bf16.vlgmr.msra.gmra.mxu0 %vm526_vm12, %v5361_v45 }
0x349f   :  { %9621 = vmatprep.mubr.msk.bf16.mxu0 %vm10725_vm0, %v10724_v0  ;;  %9612 = vmatpush3.bf16.msra.mxu1 %v10157_v62  ;;  %v10158_v62 = vld [vmem:[#allocation18 + $0x8] sm:$0xff]  }
0x34a0   :  { %9625 = vmatprep.subr.bf16.mxu1 %v10724_v0  ;;  %9618 = vmatpush3.bf16.msra.mxu0 %v10158_v62 }
0x34a1   :  { %9619 = vmatprep.subr.bf16.mxu0 %v10724_v0 }
0x355a   :  { %v5404_v42 = vpop.f32.mrf.mxu1 }
0x355c   :  { %v9601_v18 = vpop.f32.mrf.mxu1 }
0x355e   :  { %v5407_v63 = vpop.f32.mrf.mxu1  ;;  %v5452_v3 = vpop.f32.mrf.mxu0 }
0x355f   :  { %v10053_v4 = vpack.i.bf16 %v5452_v3, %v5404_v42  ;;  %v10160_v42 = vld [vmem:[%s12954_s17 + $0x18] sm:$0xff]  }
0x3560   :  { %v9602_v5 = vpop.f32.mrf.mxu1  ;;  %v9607_v35 = vpop.f32.mrf.mxu0 }
0x3561   :  { %10054 = vrot.lane.b32.xlu0 %v10053_v4, %s10738_s18 }
0x3562   :  { %v5455_v44 = vpop.f32.mrf.mxu0 }
0x3564   :  { %v9608_v19 = vpop.f32.mrf.mxu0 }
0x3565   :  { %v5588_v19 = vrot.slane %v11981_v14, %v11269_v16 }
0x35d3   :  { %v10055_v46 = vpop.permute.xlu0 %10054 }
0x35d4   :  { %v10057_v24 = vunpack.i.h.bf16 %v10055_v46  ;;  %v10056_v8 = vunpack.i.l.bf16 %v10055_v46 }
0x35d6   :  { %v5495_v10 = vsel %vm1446_vm15, %v5493_v51, %v10057_v24  ;;  %v5494_v55 = vsel %vm1446_vm15, %v5492_v54, %v10056_v8  ;;  %v10161_v24 = vld [vmem:[%s12954_s17 + $0x10] sm:$0xff]   ;;  %v10162_v8 = vld [vmem:[%s12954_s17 + $0x8] sm:$0xff]   ;;  %v10163_v54 = vld [vmem:[%s12954_s17] sm:$0xff]  }
0x35d7   :  { %v5496_v57 = vpack.c.bf16 %v5495_v10, %v5494_v55  ;;  %v8667_v51 = vld [vmem:[%s12956_s19] ss:$0 sm:$0xff] }
0x35d9   :  { %9614 = vmatmul.mubr.msk.bf16.vlgmr.msra.gmra.mxu1 %vm389_vm9, %v5496_v57 }
0x35da   :  { %9633 = vmatprep.mubr.msk.bf16.mxu1 %vm10725_vm0, %v10724_v0  ;;  %9626 = vmatpush3.bf16.msra.mxu1 %v10160_v42 }
0x35db   :  { %9627 = vmatprep.subr.bf16.mxu1 %v10724_v0 }
0x35de   :  { %9628 = vmatpush3.bf16.msra.mxu1 %v10161_v24 }
0x35df   :  { %9629 = vmatprep.subr.bf16.mxu1 %v10724_v0 }
0x35e2   :  { %9630 = vmatpush3.bf16.msra.mxu1 %v10162_v8 }
0x35e3   :  { %9631 = vmatprep.subr.bf16.mxu1 %v10724_v0 }
0x35e6   :  { %9632 = vmatpush3.bf16.msra.mxu1 %v10163_v54 }
0x35e7   :  { %9653 = vmatprep.subr.bf16.mxu1 %v10724_v0 }
0x3699   :  { %v5550_v41 = vpop.f32.mrf.mxu1 }
0x369a   :  { %v5551_v53 = vadd.f32 %v5550_v41, %v5500_v27 }
0x369b   :  { %v9615_v60 = vpop.f32.mrf.mxu1 }
0x369c   :  { %v5557_v9 = vadd.f32 %v5551_v53, %v11992_v61 }
0x369d   :  { %v5553_v25 = vpop.f32.mrf.mxu1 }
0x369e   :  { %v5554_v31 = vadd.f32 %v5553_v25, %v5500_v27  ;;  %v5559_v6 = vsel %vm389_vm9, %v5557_v9, 0.0 }
0x369f   :  { %5560 = vadd.xlane.f32.xlu1 %v5559_v6  ;;  %v9616_v52 = vpop.f32.mrf.mxu1 }
0x36a0   :  { %v5558_v1 = vadd.f32 %v5554_v31, %v11995_v40  ;;  %v10159_v40 = vld [vmem:[#allocation18] sm:$0xff]   ;;  %v5746_v31 = vrot.slane %v11981_v14, %v11038_v2 }
0x36a1   :  { %9620 = vmatpush3.bf16.msra.mxu0 %v10159_v40 }
0x36a2   :  { %v5562_v58 = vsel %vm389_vm9, %v5558_v1, 0.0  ;;  %9637 = vmatprep.subr.bf16.mxu0 %v10724_v0 }
0x36a3   :  { %5563 = vadd.xlane.f32.xlu0 %v5562_v58 }
0x3728   :  { %v5561_v36 = vpop.xlane.xlu1 %5560 }
0x3729   :  { %v5565_v28 = vmul.f32 0.03125, %v5561_v36 }
0x372b   :  { %v5567_v29 = vsub.f32 %v5557_v9, %v5565_v28 }
0x372c   :  { %v5564_v49 = vpop.xlane.xlu0 %5563 }
0x372d   :  { %v5566_v15 = vmul.f32 0.03125, %v5564_v49  ;;  %v5569_v59 = vmul.f32 %v5567_v29, %v5567_v29 }
0x372f   :  { %v5568_v48 = vsub.f32 %v5558_v1, %v5566_v15  ;;  %v5571_v61 = vsel %vm389_vm9, %v5569_v59, 0.0 }
0x3730   :  { %5572 = vadd.xlane.f32.xlu0 %v5571_v61 }
0x3731   :  { %v5570_v45 = vmul.f32 %v5568_v48, %v5568_v48 }
0x3733   :  { %v5574_v12 = vsel %vm389_vm9, %v5570_v45, 0.0 }
0x3734   :  { %5575 = vadd.xlane.f32.xlu1 %v5574_v12 }
0x37b9   :  { %v5573_v18 = vpop.xlane.xlu0 %5572 }
0x37ba   :  { %v5577_v63 = vmul.f32 0.03125, %v5573_v18 }
0x37bc   :  { %v5579_v3 = vadd.f32 1e-05, %v5577_v63 }
0x37bd   :  { %v5576_v4 = vpop.xlane.xlu1 %5575 }
0x37be   :  { %10342 = vrsqrt.f32 %v5579_v3  ;;  %v5578_v5 = vmul.f32 0.03125, %v5576_v4  ;;  %v10164_v3 = vld [vmem:[#allocation12 + $0x58] sm:$0xff]   ;;  %v10165_v4 = vld [vmem:[#allocation12 + $0x50] sm:$0xff]  }
0x37c0   :  { %v5580_v35 = vadd.f32 1e-05, %v5578_v5  ;;  %v10166_v5 = vld [vmem:[#allocation12 + $0x48] sm:$0xff]  }
0x37c2   :  { %10344 = vrsqrt.f32 %v5580_v35  ;;  %v10167_v35 = vld [vmem:[#allocation12 + $0x40] sm:$0xff]  }
0x37cb   :  { %v10343_v44 = vpop.eup %10342 }
0x37cc   :  { %v5583_v56 = vmul.f32 %v10343_v44, %v5567_v29 }
0x37ce   :  { %v5589_v39 = vmul.f32 %v5588_v19, %v5583_v56 }
0x37cf   :  { %v10345_v33 = vpop.eup %10344 }
0x37d0   :  { %v5584_v7 = vmul.f32 %v10345_v33, %v5568_v48  ;;  %v5595_v46 = vadd.f32 %v5594_v43, %v5589_v39 }
0x37d2   :  { %v5590_v50 = vmul.f32 %v5588_v19, %v5584_v7 }
0x37d4   :  { %v5596_v47 = vadd.f32 %v5594_v43, %v5590_v50  ;;  %v10430_v43 = vld [vmem:[#allocation19 + $0x8] sm:$0x7f] }
0x37d5   :  { %v5778_v50 = vrot.slane %v10430_v43, %v11283_v17  ;;  %v5784_v8 = vrot.slane %v10430_v43, %v11288_v30 }
0x37d6   :  { %v5601_v22 = vpack.c.bf16 %v5596_v47, %v5595_v46 }
0x37d8   :  { %9622 = vmatmul.mubr.msk.bf16.vlgmr.msra.gmra.mxu0 %vm389_vm9, %v5601_v22  ;;  %v10168_v22 = vld [vmem:[#allocation12 + $0x38] sm:$0xff]  }
0x37d9   :  { %9649 = vmatprep.mubr.msk.bf16.mxu0 %vm10725_vm0, %v10724_v0  ;;  %9638 = vmatpush3.bf16.msra.mxu0 %v10164_v3 }
0x37da   :  { %9639 = vmatprep.subr.bf16.mxu0 %v10724_v0 }
0x37dd   :  { %9640 = vmatpush3.bf16.msra.mxu0 %v10165_v4 }
0x37de   :  { %9641 = vmatprep.subr.bf16.mxu0 %v10724_v0 }
0x37e1   :  { %9642 = vmatpush3.bf16.msra.mxu0 %v10166_v5 }
0x37e2   :  { %9643 = vmatprep.subr.bf16.mxu0 %v10724_v0 }
0x37e5   :  { %9644 = vmatpush3.bf16.msra.mxu0 %v10167_v35 }
0x37e6   :  { %9645 = vmatprep.subr.bf16.mxu0 %v10724_v0 }
0x37e9   :  { %9646 = vmatpush3.bf16.msra.mxu0 %v10168_v22 }
0x37ea   :  { %9647 = vmatprep.subr.bf16.mxu0 %v10724_v0 }
0x3898   :  { %v5655_v10 = vpop.f32.mrf.mxu0 }
0x3899   :  { %v5656_v57 = vadd.f32 %v8667_v51, %v5655_v10  ;;  %v10169_v10 = vld [vmem:[#allocation12 + $0x30] sm:$0xff]  }
0x389a   :  { %v9623_v55 = vpop.f32.mrf.mxu0  ;;  %9648 = vmatpush3.bf16.msra.mxu0 %v10169_v10 }
0x389b   :  { %v5662_v60 = vmax.f32 %v5656_v57, 0.0  ;;  %9665 = vmatprep.subr.bf16.mxu0 %v10724_v0 }
0x389c   :  { %v5658_v27 = vpop.f32.mrf.mxu0 }
0x389d   :  { %v5659_v41 = vadd.f32 %v8667_v51, %v5658_v27 }
0x389e   :  { %v9624_v53 = vpop.f32.mrf.mxu0 }
0x389f   :  { %v5663_v9 = vmax.f32 %v5659_v41, 0.0 }
0x38a1   :  { %v5672_v25 = vpack.c.bf16 %v5663_v9, %v5662_v60 }
0x38a3   :  { %9634 = vmatmul.mubr.msk.bf16.vlgmr.msra.gmra.mxu1 %vm392_vm10, %v5672_v25 }
0x38a4   :  { %9655 = vmatprep.mubr.msk.bf16.mxu1 %vm10725_vm0, %v10724_v0 }
0x3963   :  { %v5734_v6 = vpop.f32.mrf.mxu1 }
0x3964   :  { %v5741_v52 = vadd.f32 %v5734_v6, %v5595_v46 }
0x3965   :  { %v9635_v1 = vpop.f32.mrf.mxu1 }
0x3966   :  { %v5747_v58 = vadd.f32 %v5746_v31, %v5741_v52  ;;  %v12320_v52 = vld [vmem:[#allocation19 + $0x10] sm:$0xff] }
0x3967   :  { %v5737_v36 = vpop.f32.mrf.mxu1  ;;  %v5920_v43 = vrot.slane %v12320_v52, %v11038_v2 }
0x3968   :  { %v5742_v28 = vadd.f32 %v5737_v36, %v5596_v47  ;;  %v5749_v29 = vsel %vm389_vm9, %v5747_v58, 0.0 }
0x3969   :  { %5750 = vadd.xlane.f32.xlu0 %v5749_v29  ;;  %v9636_v49 = vpop.f32.mrf.mxu1 }
0x396a   :  { %v5748_v15 = vadd.f32 %v5746_v31, %v5742_v28 }
0x396c   :  { %v5752_v59 = vsel %vm389_vm9, %v5748_v15, 0.0 }
0x396d   :  { %5753 = vadd.xlane.f32.xlu1 %v5752_v59 }
0x39f2   :  { %v5751_v48 = vpop.xlane.xlu0 %5750 }
0x39f3   :  { %v5755_v61 = vmul.f32 0.03125, %v5751_v48 }
0x39f5   :  { %v5757_v45 = vsub.f32 %v5747_v58, %v5755_v61  ;;  %v5926_v58 = vrot.slane %v12320_v52, %v10983_v26 }
0x39f6   :  { %v5754_v12 = vpop.xlane.xlu1 %5753 }
0x39f7   :  { %v5756_v62 = vmul.f32 0.03125, %v5754_v12  ;;  %v5759_v14 = vmul.f32 %v5757_v45, %v5757_v45 }
0x39f9   :  { %v5758_v40 = vsub.f32 %v5748_v15, %v5756_v62  ;;  %v5761_v42 = vsel %vm389_vm9, %v5759_v14, 0.0 }
0x39fa   :  { %5762 = vadd.xlane.f32.xlu0 %v5761_v42 }
0x39fb   :  { %v5760_v18 = vmul.f32 %v5758_v40, %v5758_v40 }
0x39fd   :  { %v5764_v63 = vsel %vm389_vm9, %v5760_v18, 0.0 }
0x39fe   :  { %5765 = vadd.xlane.f32.xlu1 %v5764_v63 }
0x3a83   :  { %v5763_v44 = vpop.xlane.xlu0 %5762 }
0x3a84   :  { %v5767_v19 = vmul.f32 0.03125, %v5763_v44 }
0x3a86   :  { %v5769_v56 = vadd.f32 1e-05, %v5767_v19 }
0x3a87   :  { %v5766_v33 = vpop.xlane.xlu1 %5765 }
0x3a88   :  { %10346 = vrsqrt.f32 %v5769_v56  ;;  %v5768_v39 = vmul.f32 0.03125, %v5766_v33 }
0x3a8a   :  { %v5770_v7 = vadd.f32 1e-05, %v5768_v39 }
0x3a8c   :  { %10348 = vrsqrt.f32 %v5770_v7 }
0x3a95   :  { %v10347_v46 = vpop.eup %10346 }
0x3a96   :  { %v5773_v47 = vmul.f32 %v10347_v46, %v5757_v45 }
0x3a98   :  { %v5779_v24 = vmul.f32 %v5778_v50, %v5773_v47 }
0x3a99   :  { %v10349_v54 = vpop.eup %10348 }
0x3a9a   :  { %v5774_v51 = vmul.f32 %v10349_v54, %v5758_v40  ;;  %v12302_v57 = vadd.f32 %v5784_v8, %v5779_v24 }
0x3a9c   :  { %v5780_v55 = vmul.f32 %v5778_v50, %v5774_v51  ;;  %v5797_v53 = vrot.slane %v12302_v57, 1  ;;  %v5791_v28 = vrot.slane %v12302_v57, 7 }
0x3a9e   :  { %v12305_v27 = vadd.f32 %v5784_v8, %v5780_v55  ;;  %v12376_v55 = vld [vmem:[%s12985_s4] sm:$0xff] }
0x3aa0   :  { %v10058_v41 = vpack.i.bf16 %v12305_v27, %v12302_v57  ;;  %v5798_v60 = vrot.slane %v12305_v27, 1  ;;  %v5792_v36 = vrot.slane %v12305_v27, 7 }
0x3aa2   :  { %10059 = vrot.lane.b32.xlu0 %v10058_v41, %s10726_s26  ;;  %v5799_v9 = vsel %vm356_vm3, %v5797_v53, %v5798_v60  ;;  %v5800_v25 = vsel %vm356_vm3, %v5798_v60, %v5797_v53  ;;  %v5793_v59 = vsel %vm337_vm6, %v5791_v28, %v5792_v36  ;;  %v5794_v48 = vsel %vm337_vm6, %v5792_v36, %v5791_v28 }
0x3aa3   :  { %v5801_v31 = vsel %vm363_vm4, %v5799_v9, 0.0  ;;  %v5802_v6 = vsel %vm364_vm5, %v5800_v25, 0.0  ;;  %v5795_v45 = vsel %vm342_vm7, %v5794_v48, 0.0  ;;  %v5796_v12 = vsel %vm343_vm8, %v5793_v59, 0.0 }
0x3aa4   :  { %v10063_v1 = vpack.i.bf16 %v5802_v6, %v5801_v31 }
0x3aa6   :  { %10064 = vrot.lane.b32.xlu1 %v10063_v1, %s10708_s30 }
0x3aaa   :  { %5928 = vrot.lane.b32.xlu1 %v5926_v58, %s10726_s26 }
0x3b14   :  { %v10060_v29 = vpop.permute.xlu0 %10059 }
0x3b15   :  { %v10062_v49 = vunpack.i.h.bf16 %v10060_v29  ;;  %v10061_v15 = vunpack.i.l.bf16 %v10060_v29  ;;  %v5936_v29 = vrot.slane %v12320_v52, %v11068_v32 }
0x3b17   :  { %v5819_v40 = vsel %vm389_vm9, %v5795_v45, %v10061_v15  ;;  %v5820_v42 = vsel %vm389_vm9, %v5796_v12, %v10062_v49 }
0x3b18   :  { %v10065_v61 = vpop.permute.xlu1 %10064 }
0x3b19   :  { %v10067_v62 = vunpack.i.h.bf16 %v10065_v61  ;;  %v10066_v14 = vunpack.i.l.bf16 %v10065_v61 }
0x3b1b   :  { %v5821_v18 = vsel %vm392_vm10, %v5819_v40, %v10066_v14  ;;  %v5822_v63 = vsel %vm392_vm10, %v5820_v42, %v10067_v62 }
0x3b1c   :  { %v5836_v3 = vpack.c.bf16 %v5822_v63, %v5821_v18  ;;  %v5929_v4 = vpop.permute.xlu1 %5928 }
0x3b1e   :  { %9650 = vmatmul.mubr.msk.bf16.vlgmr.msra.gmra.mxu0 %vm444_vm11, %v5836_v3 }
0x3b1f   :  { %9667 = vmatprep.mubr.msk.bf16.mxu0 %vm10725_vm0, %v10724_v0 }
0x3bde   :  { %v12343_v5 = vpop.f32.mrf.mxu0 }
0x3bdf   :  { %v5931_v35 = vadd.f32 %v5929_v4, %v12343_v5  ;;  %v5921_v47 = vadd.f32 %v5920_v43, %v12343_v5 }
0x3be0   :  { %v9651_v44 = vpop.f32.mrf.mxu0 }
0x3be1   :  { %v12346_v19 = vpack.c.bf16 %v5931_v35, %v5931_v35  ;;  %v12359_v24 = vpack.c.bf16 %v5921_v47, %v5921_v47 }
0x3be2   :  { %v5913_v56 = vpop.f32.mrf.mxu0 }
0x3be3   :  { %v5932_v33 = vadd.f32 %v5929_v4, %v5913_v56  ;;  %5953 = vrot.lane.b32.xlu0 %v12346_v19, %s10727_s8  ;;  %v5922_v54 = vadd.f32 %v5920_v43, %v5913_v56 }
0x3be4   :  { %v9652_v39 = vpop.f32.mrf.mxu0 }
0x3be5   :  { %v12350_v7 = vpack.c.bf16 %v5932_v33, %v5932_v33  ;;  %v12367_v51 = vpack.c.bf16 %v5922_v54, %v5922_v54 }
0x3be7   :  { %6002 = vrot.lane.b32.xlu1 %v12350_v7, %s10727_s8 }
0x3c55   :  { %v5954_v50 = vpop.permute.xlu0 %5953 }
0x3c56   :  { %v5959_v46 = vsel %vm526_vm12, %v5954_v50, 0 }
0x3c57   :  { %9654 = vmatpush3.bf16.xpose.msra.mxu1 %v5959_v46 }
0x3c58   :  { %9659 = vmatprep.subr.bf16.mxu1 %v10724_v0 }
0x3c59   :  { %v6003_v22 = vpop.permute.xlu1 %6002 }
0x3c5a   :  { %v6008_v8 = vsel %vm526_vm12, %v6003_v22, 0 }
0x3c5e   :  { %9656 = vmatmul.mubr.msk.bf16.vlgmr.msra.gmra.mxu1 %vm526_vm12, %v12359_v24 }
0x3c5f   :  { %9660 = vmatpush3.bf16.xpose.msra.mxu1 %v6008_v8  ;;  %9661 = vmatprep.mubr.msk.bf16.mxu1 %vm10725_vm0, %v10724_v0 }
0x3c60   :  { %9671 = vmatprep.subr.bf16.mxu1 %v10724_v0 }
0x3c66   :  { %9662 = vmatmul.mubr.msk.bf16.vlgmr.msra.gmra.mxu1 %vm526_vm12, %v12367_v51 }
0x3c67   :  { %9673 = vmatprep.mubr.msk.bf16.mxu1 %vm10725_vm0, %v10724_v0 }
0x3d1e   :  { %v5995_v10 = vpop.f32.mrf.mxu1 }
0x3d1f   :  { %v5996_v41 = vadd.f32 %v12376_v55, %v5995_v10 }
0x3d20   :  { %v9657_v53 = vpop.f32.mrf.mxu1 }
0x3d21   :  { %v6050_v60 = vsel %vm526_vm12, %v5996_v41, -inf }
0x3d22   :  { %6051 = vmax.xlane.f32.xlu0 %v6050_v60  ;;  %v5998_v9 = vpop.f32.mrf.mxu1 }
0x3d24   :  { %v9658_v25 = vpop.f32.mrf.mxu1 }
0x3d26   :  { %v6044_v31 = vpop.f32.mrf.mxu1 }
0x3d27   :  { %v6045_v6 = vadd.f32 %v12376_v55, %v6044_v31 }
0x3d28   :  { %v9663_v1 = vpop.f32.mrf.mxu1 }
0x3d29   :  { %v6053_v58 = vsel %vm526_vm12, %v6045_v6, -inf }
0x3d2a   :  { %6054 = vmax.xlane.f32.xlu1 %v6053_v58  ;;  %v6047_v36 = vpop.f32.mrf.mxu1 }
0x3d2c   :  { %v9664_v28 = vpop.f32.mrf.mxu1 }
0x3d38   :  { %5938 = vrot.lane.b32.xlu0 %v5936_v29, %s10708_s30 }
0x3dab   :  { %v6052_v49 = vpop.xlane.xlu0 %6051 }
0x3dac   :  { %v6056_v15 = vsub.f32 %v5996_v41, %v6052_v49 }
0x3dae   :  { %v6058_v59 = vmul.f32 1.442695, %v6056_v15 }
0x3daf   :  { %v5939_v48 = vpop.permute.xlu0 %5938 }
0x3db0   :  { %10350 = vpow2.f32 %v6058_v59  ;;  %v5942_v61 = vadd.f32 %v5939_v48, %v5913_v56  ;;  %v5941_v3 = vadd.f32 %v5939_v48, %v12343_v5 }
0x3db2   :  { %v12385_v45 = vpack.c.bf16 %v5942_v61, %v5942_v61  ;;  %v12398_v4 = vpack.c.bf16 %v5941_v3, %v5941_v3 }
0x3db3   :  { %v6055_v12 = vpop.xlane.xlu1 %6054 }
0x3db4   :  { %v6057_v62 = vsub.f32 %v6045_v6, %v6055_v12  ;;  %6126 = vrot.lane.b32.xlu0 %v12385_v45, %s10708_s30 }
0x3db6   :  { %v6060_v14 = vmul.f32 1.442695, %v6057_v62 }
0x3db8   :  { %10352 = vpow2.f32 %v6060_v14  ;;  %6177 = vrot.lane.b32.xlu0 %v12346_v19, %s10728_s13 }
0x3dbc   :  { %6228 = vrot.lane.b32.xlu0 %v12350_v7, %s10728_s13 }
0x3dbd   :  { %v10351_v40 = vpop.eup %10350 }
0x3dbe   :  { %v6062_v42 = vsel %vm526_vm12, %v10351_v40, 0.0 }
0x3dbf   :  { %6063 = vadd.xlane.f32.xlu1 %v6062_v42 }
0x3dc0   :  { %6226 = vrot.lane.b32.xlu0 %v12367_v51, %s10729_s12 }
0x3dc5   :  { %v10353_v18 = vpop.eup %10352 }
0x3dc6   :  { %v6065_v63 = vsel %vm526_vm12, %v10353_v18, 0.0 }
0x3dc7   :  { %6066 = vadd.xlane.f32.xlu1 %v6065_v63 }
0x3dd8   :  { %6077 = vrot.lane.b32.xlu1 %v12398_v4, %s10708_s30 }
0x3ddc   :  { %6175 = vrot.lane.b32.xlu1 %v12359_v24, %s10729_s12 }
0x3e26   :  { %v6127_v35 = vpop.permute.xlu0 %6126 }
0x3e27   :  { %v6132_v44 = vsel %vm654_vm13, %v6127_v35, 0 }
0x3e28   :  { %9672 = vmatpush3.bf16.msra.mxu1 %v6132_v44 }
0x3e29   :  { %9683 = vmatprep.subr.bf16.mxu1 %v10724_v0 }
0x3e2a   :  { %v6178_v46 = vpop.permute.xlu0 %6177 }
0x3e2b   :  { %v6183_v22 = vsel %vm526_vm12, %v6178_v46, 0 }
0x3e2e   :  { %v6229_v10 = vpop.permute.xlu0 %6228 }
0x3e2f   :  { %v6234_v60 = vsel %vm526_vm12, %v6229_v10, 0 }
0x3e32   :  { %v6227_v9 = vpop.permute.xlu0 %6226 }
0x3e48   :  { %v6064_v56 = vpop.xlane.xlu1 %6063 }
0x3e49   :  { %10354 = vrcp.f32 %v6064_v56 }
0x3e50   :  { %v6067_v33 = vpop.xlane.xlu1 %6066 }
0x3e51   :  { %10356 = vrcp.f32 %v6067_v33 }
0x3e54   :  { %v6078_v39 = vpop.permute.xlu1 %6077 }
0x3e55   :  { %v6083_v5 = vsel %vm654_vm13, %v6078_v39, 0 }
0x3e56   :  { %v10355_v43 = vpop.eup %10354  ;;  %9666 = vmatpush3.bf16.msra.mxu0 %v6083_v5 }
0x3e57   :  { %v6069_v50 = vmul.f32 %v10355_v43, %v10351_v40  ;;  %9677 = vmatprep.subr.bf16.mxu0 %v10724_v0 }
0x3e58   :  { %v6176_v53 = vpop.permute.xlu1 %6175 }
0x3e59   :  { %v6072_v47 = vpack.c.bf16 %v6069_v50, %v6069_v50  ;;  %8699 = vst.msk [vmem:[%s12961_s24 + $0x40] sm:$0xff] %vm526_vm12, %v6069_v50 }
0x3e5b   :  { %9668 = vmatmul.mubr.msk.bf16.vlgmr.msra.gmra.mxu0 %vm526_vm12, %v6072_v47 }
0x3e5c   :  { %9678 = vmatpush3.bf16.xpose.msra.mxu0 %v6183_v22  ;;  %9679 = vmatprep.mubr.msk.bf16.mxu0 %vm10725_vm0, %v10724_v0 }
0x3e5d   :  { %9689 = vmatprep.subr.bf16.mxu0 %v10724_v0 }
0x3e5e   :  { %v10357_v8 = vpop.eup %10356 }
0x3e5f   :  { %v6071_v54 = vmul.f32 %v10357_v8, %v10353_v18 }
0x3e61   :  { %v6073_v41 = vpack.c.bf16 %v6071_v54, %v6071_v54  ;;  %8703 = vst.msk [vmem:[%s12961_s24 + $0x60] sm:$0xff] %vm526_vm12, %v6071_v54 }
0x3e63   :  { %9674 = vmatmul.mubr.msk.bf16.vlgmr.msra.gmra.mxu1 %vm526_vm12, %v6073_v41  ;;  %9680 = vmatmul.mubr.msk.bf16.vlgmr.msra.gmra.mxu0 %vm526_vm12, %v6176_v53 }
0x3e64   :  { %9684 = vmatpush3.bf16.xpose.msra.mxu1 %v6234_v60  ;;  %9685 = vmatprep.mubr.msk.bf16.mxu1 %vm10725_vm0, %v10724_v0 }
0x3e65   :  { %9695 = vmatprep.subr.bf16.mxu1 %v10724_v0  ;;  %9691 = vmatprep.mubr.msk.bf16.mxu0 %vm10725_vm0, %v10724_v0 }
0x3e6b   :  { %9686 = vmatmul.mubr.msk.bf16.vlgmr.msra.gmra.mxu1 %vm526_vm12, %v6227_v9 }
0x3e6c   :  { %9697 = vmatprep.mubr.msk.bf16.mxu1 %vm10725_vm0, %v10724_v0 }
0x3f1b   :  { %v12432_v25 = vpop.f32.mrf.mxu0 }
0x3f1d   :  { %v9669_v31 = vpop.f32.mrf.mxu0 }
0x3f1f   :  { %v6122_v6 = vpop.f32.mrf.mxu0 }
0x3f21   :  { %v9670_v1 = vpop.f32.mrf.mxu0 }
0x3f23   :  { %v12434_v58 = vpop.f32.mrf.mxu1  ;;  %v6219_v36 = vpop.f32.mrf.mxu0 }
0x3f24   :  { %v6220_v28 = vadd.f32 %v12376_v55, %v6219_v36 }
0x3f25   :  { %v9675_v29 = vpop.f32.mrf.mxu1  ;;  %v9681_v49 = vpop.f32.mrf.mxu0 }
0x3f26   :  { %v6276_v15 = vsel %vm526_vm12, %v6220_v28, -inf }
0x3f27   :  { %v6171_v59 = vpop.f32.mrf.mxu1  ;;  %6277 = vmax.xlane.f32.xlu1 %v6276_v15  ;;  %v6222_v48 = vpop.f32.mrf.mxu0 }
0x3f29   :  { %v9676_v61 = vpop.f32.mrf.mxu1  ;;  %v9682_v12 = vpop.f32.mrf.mxu0 }
0x3f2b   :  { %v6270_v62 = vpop.f32.mrf.mxu1 }
0x3f2c   :  { %v6271_v14 = vadd.f32 %v12376_v55, %v6270_v62 }
0x3f2d   :  { %v9687_v40 = vpop.f32.mrf.mxu1 }
0x3f2e   :  { %v6279_v42 = vsel %vm526_vm12, %v6271_v14, -inf }
0x3f2f   :  { %6280 = vmax.xlane.f32.xlu0 %v6279_v42  ;;  %v6273_v18 = vpop.f32.mrf.mxu1 }
0x3f31   :  { %v9688_v63 = vpop.f32.mrf.mxu1 }
0x3f38   :  { %6348 = vrot.lane.b32.xlu1 %v12385_v45, %s10730_s15 }
0x3f45   :  { %6300 = vrot.lane.b32.xlu0 %v12398_v4, %s10730_s15 }
0x3fb0   :  { %v6278_v3 = vpop.xlane.xlu1 %6277 }
0x3fb1   :  { %v6282_v35 = vsub.f32 %v6220_v28, %v6278_v3 }
0x3fb3   :  { %v6284_v44 = vmul.f32 1.442695, %v6282_v35 }
0x3fb4   :  { %v6349_v56 = vpop.permute.xlu1 %6348 }
0x3fb5   :  { %10358 = vpow2.f32 %v6284_v44  ;;  %v6354_v33 = vsel %vm654_vm13, %v6349_v56, 0 }
0x3fb6   :  { %9696 = vmatpush3.bf16.msra.mxu1 %v6354_v33 }
0x3fb7   :  { %9707 = vmatprep.subr.bf16.mxu1 %v10724_v0 }
0x3fb8   :  { %v6281_v39 = vpop.xlane.xlu0 %6280 }
0x3fb9   :  { %v6283_v5 = vsub.f32 %v6271_v14, %v6281_v39 }
0x3fbb   :  { %v6286_v43 = vmul.f32 1.442695, %v6283_v5 }
0x3fbc   :  { %v6301_v50 = vpop.permute.xlu0 %6300 }
0x3fbd   :  { %10360 = vpow2.f32 %v6286_v43  ;;  %v6306_v46 = vsel %vm654_vm13, %v6301_v50, 0 }
0x3fbe   :  { %9690 = vmatpush3.bf16.msra.mxu0 %v6306_v46 }
0x3fbf   :  { %9701 = vmatprep.subr.bf16.mxu0 %v10724_v0 }
0x3fc2   :  { %v10359_v47 = vpop.eup %10358 }
0x3fc3   :  { %v6288_v22 = vsel %vm526_vm12, %v10359_v47, 0.0 }
0x3fc4   :  { %6289 = vadd.xlane.f32.xlu0 %v6288_v22 }
0x3fca   :  { %v10361_v8 = vpop.eup %10360 }
0x3fcb   :  { %v6291_v54 = vsel %vm526_vm12, %v10361_v8, 0.0 }
0x3fcc   :  { %6292 = vadd.xlane.f32.xlu1 %v6291_v54 }
0x3fda   :  { %6448 = vrot.lane.b32.xlu0 %v12350_v7, %s10731_s9 }
0x3fdd   :  { %6398 = vrot.lane.b32.xlu1 %v12346_v19, %s10731_s9 }
0x3fde   :  { %6446 = vrot.lane.b32.xlu0 %v12367_v51, %s10732_s16 }
0x3fe1   :  { %6396 = vrot.lane.b32.xlu1 %v12359_v24, %s10732_s16 }
0x404d   :  { %v6290_v10 = vpop.xlane.xlu0 %6289 }
0x404e   :  { %10362 = vrcp.f32 %v6290_v10 }
0x4051   :  { %v6449_v28 = vpop.permute.xlu0 %6448 }
0x4052   :  { %v6454_v15 = vsel %vm526_vm12, %v6449_v28, 0 }
0x4055   :  { %v6293_v41 = vpop.xlane.xlu1 %6292  ;;  %v6447_v59 = vpop.permute.xlu0 %6446 }
0x4056   :  { %10364 = vrcp.f32 %v6293_v41 }
0x4059   :  { %v6399_v9 = vpop.permute.xlu1 %6398 }
0x405a   :  { %v6404_v6 = vsel %vm526_vm12, %v6399_v9, 0 }
0x405b   :  { %v10363_v53 = vpop.eup %10362 }
0x405c   :  { %v6295_v60 = vmul.f32 %v10363_v53, %v10359_v47 }
0x405d   :  { %v6397_v49 = vpop.permute.xlu1 %6396 }
0x405e   :  { %v6298_v31 = vpack.c.bf16 %v6295_v60, %v6295_v60  ;;  %8700 = vst.msk [vmem:[%s12961_s24 + $0x48] sm:$0xff] %vm526_vm12, %v6295_v60 }
0x4060   :  { %9692 = vmatmul.mubr.msk.bf16.vlgmr.msra.gmra.mxu0 %vm526_vm12, %v6298_v31 }
0x4061   :  { %9702 = vmatpush3.bf16.xpose.msra.mxu0 %v6404_v6  ;;  %9703 = vmatprep.mubr.msk.bf16.mxu0 %vm10725_vm0, %v10724_v0 }
0x4062   :  { %9713 = vmatprep.subr.bf16.mxu0 %v10724_v0 }
0x4063   :  { %v10365_v1 = vpop.eup %10364 }
0x4064   :  { %v6297_v36 = vmul.f32 %v10365_v1, %v10361_v8 }
0x4066   :  { %v6299_v29 = vpack.c.bf16 %v6297_v36, %v6297_v36  ;;  %8704 = vst.msk [vmem:[%s12961_s24 + $0x68] sm:$0xff] %vm526_vm12, %v6297_v36 }
0x4068   :  { %9698 = vmatmul.mubr.msk.bf16.vlgmr.msra.gmra.mxu1 %vm526_vm12, %v6299_v29  ;;  %9704 = vmatmul.mubr.msk.bf16.vlgmr.msra.gmra.mxu0 %vm526_vm12, %v6397_v49 }
0x4069   :  { %9708 = vmatpush3.bf16.xpose.msra.mxu1 %v6454_v15  ;;  %9709 = vmatprep.mubr.msk.bf16.mxu1 %vm10725_vm0, %v10724_v0 }
0x406a   :  { %9719 = vmatprep.subr.bf16.mxu1 %v10724_v0  ;;  %9715 = vmatprep.mubr.msk.bf16.mxu0 %vm10725_vm0, %v10724_v0 }
0x4070   :  { %9710 = vmatmul.mubr.msk.bf16.vlgmr.msra.gmra.mxu1 %vm526_vm12, %v6447_v59 }
0x4071   :  { %9721 = vmatprep.mubr.msk.bf16.mxu1 %vm10725_vm0, %v10724_v0 }
0x4120   :  { %v12482_v48 = vpop.f32.mrf.mxu0 }
0x4122   :  { %v9693_v61 = vpop.f32.mrf.mxu0 }
0x4124   :  { %v6345_v12 = vpop.f32.mrf.mxu0 }
0x4126   :  { %v9694_v62 = vpop.f32.mrf.mxu0 }
0x4128   :  { %v12484_v14 = vpop.f32.mrf.mxu1  ;;  %v6440_v40 = vpop.f32.mrf.mxu0 }
0x4129   :  { %v10068_v42 = vpack.i.bf16 %v12484_v14, %v12482_v48  ;;  %v6441_v18 = vadd.f32 %v12376_v55, %v6440_v40 }
0x412a   :  { %v9699_v63 = vpop.f32.mrf.mxu1  ;;  %v9705_v3 = vpop.f32.mrf.mxu0 }
0x412b   :  { %v6496_v35 = vsel %vm526_vm12, %v6441_v18, -inf }
0x412c   :  { %v6393_v44 = vpop.f32.mrf.mxu1  ;;  %6497 = vmax.xlane.f32.xlu1 %v6496_v35  ;;  %v6443_v56 = vpop.f32.mrf.mxu0 }
0x412e   :  { %v9700_v33 = vpop.f32.mrf.mxu1  ;;  %v9706_v39 = vpop.f32.mrf.mxu0 }
0x4130   :  { %v6490_v5 = vpop.f32.mrf.mxu1 }
0x4131   :  { %v6491_v43 = vadd.f32 %v12376_v55, %v6490_v5 }
0x4132   :  { %v9711_v50 = vpop.f32.mrf.mxu1 }
0x4133   :  { %v6499_v46 = vsel %vm526_vm12, %v6491_v43, -inf }
0x4134   :  { %6500 = vmax.xlane.f32.xlu0 %v6499_v46  ;;  %v6493_v47 = vpop.f32.mrf.mxu1 }
0x4136   :  { %v9712_v22 = vpop.f32.mrf.mxu1 }
0x413d   :  { %6568 = vrot.lane.b32.xlu1 %v12385_v45, %s10733_s10 }
0x414a   :  { %6520 = vrot.lane.b32.xlu0 %v12398_v4, %s10733_s10 }
0x41b5   :  { %v6498_v8 = vpop.xlane.xlu1 %6497 }
0x41b6   :  { %v6502_v54 = vsub.f32 %v6441_v18, %v6498_v8 }
0x41b8   :  { %v6504_v10 = vmul.f32 1.442695, %v6502_v54 }
0x41b9   :  { %v6569_v41 = vpop.permute.xlu1 %6568 }
0x41ba   :  { %10366 = vpow2.f32 %v6504_v10  ;;  %v6574_v53 = vsel %vm654_vm13, %v6569_v41, 0 }
0x41bb   :  { %9720 = vmatpush3.bf16.msra.mxu1 %v6574_v53 }
0x41bc   :  { %9731 = vmatprep.subr.bf16.mxu1 %v10724_v0 }
0x41bd   :  { %v6501_v60 = vpop.xlane.xlu0 %6500 }
0x41be   :  { %v6503_v9 = vsub.f32 %v6491_v43, %v6501_v60 }
0x41c0   :  { %v6506_v31 = vmul.f32 1.442695, %v6503_v9 }
0x41c1   :  { %v6521_v6 = vpop.permute.xlu0 %6520 }
0x41c2   :  { %10368 = vpow2.f32 %v6506_v31  ;;  %v6526_v1 = vsel %vm654_vm13, %v6521_v6, 0 }
0x41c3   :  { %9714 = vmatpush3.bf16.msra.mxu0 %v6526_v1 }
0x41c4   :  { %9725 = vmatprep.subr.bf16.mxu0 %v10724_v0 }
0x41c7   :  { %v10367_v36 = vpop.eup %10366 }
0x41c8   :  { %v6508_v28 = vsel %vm526_vm12, %v10367_v36, 0.0 }
0x41c9   :  { %6509 = vadd.xlane.f32.xlu0 %v6508_v28 }
0x41cf   :  { %v10369_v29 = vpop.eup %10368 }
0x41d0   :  { %v6511_v49 = vsel %vm526_vm12, %v10369_v29, 0.0 }
0x41d1   :  { %6512 = vadd.xlane.f32.xlu1 %v6511_v49 }
0x41df   :  { %6668 = vrot.lane.b32.xlu0 %v12350_v7, %s10734_s28 }
0x41e2   :  { %6618 = vrot.lane.b32.xlu1 %v12346_v19, %s10734_s28 }
0x41e3   :  { %6666 = vrot.lane.b32.xlu0 %v12367_v51, %s10735_s2 }
0x41e6   :  { %6616 = vrot.lane.b32.xlu1 %v12359_v24, %s10735_s2 }
0x4252   :  { %v6510_v15 = vpop.xlane.xlu0 %6509 }
0x4253   :  { %10370 = vrcp.f32 %v6510_v15 }
0x4256   :  { %v6669_v51 = vpop.permute.xlu0 %6668 }
0x4257   :  { %v6674_v3 = vsel %vm526_vm12, %v6669_v51, 0 }
0x425a   :  { %v6513_v59 = vpop.xlane.xlu1 %6512  ;;  %v6667_v35 = vpop.permute.xlu0 %6666 }
0x425b   :  { %10372 = vrcp.f32 %v6513_v59 }
0x425e   :  { %v6619_v62 = vpop.permute.xlu1 %6618 }
0x425f   :  { %v6624_v19 = vsel %vm526_vm12, %v6619_v62, 0 }
0x4260   :  { %v10371_v61 = vpop.eup %10370 }
0x4261   :  { %v6515_v12 = vmul.f32 %v10371_v61, %v10367_v36 }
0x4262   :  { %v6617_v63 = vpop.permute.xlu1 %6616 }
0x4263   :  { %v6518_v40 = vpack.c.bf16 %v6515_v12, %v6515_v12  ;;  %8701 = vst.msk [vmem:[%s12961_s24 + $0x50] sm:$0xff] %vm526_vm12, %v6515_v12 }
0x4265   :  { %9716 = vmatmul.mubr.msk.bf16.vlgmr.msra.gmra.mxu0 %vm526_vm12, %v6518_v40 }
0x4266   :  { %9726 = vmatpush3.bf16.xpose.msra.mxu0 %v6624_v19  ;;  %9727 = vmatprep.mubr.msk.bf16.mxu0 %vm10725_vm0, %v10724_v0 }
0x4267   :  { %9737 = vmatprep.subr.bf16.mxu0 %v10724_v0 }
0x4268   :  { %v10373_v7 = vpop.eup %10372 }
0x4269   :  { %v6517_v24 = vmul.f32 %v10373_v7, %v10369_v29 }
0x426b   :  { %v6519_v18 = vpack.c.bf16 %v6517_v24, %v6517_v24  ;;  %8705 = vst.msk [vmem:[%s12961_s24 + $0x70] sm:$0xff] %vm526_vm12, %v6517_v24 }
0x426d   :  { %9722 = vmatmul.mubr.msk.bf16.vlgmr.msra.gmra.mxu1 %vm526_vm12, %v6519_v18  ;;  %9728 = vmatmul.mubr.msk.bf16.vlgmr.msra.gmra.mxu0 %vm526_vm12, %v6617_v63 }
0x426e   :  { %9732 = vmatpush3.bf16.xpose.msra.mxu1 %v6674_v3  ;;  %9733 = vmatprep.mubr.msk.bf16.mxu1 %vm10725_vm0, %v10724_v0 }
0x426f   :  { %9743 = vmatprep.subr.bf16.mxu1 %v10724_v0  ;;  %9739 = vmatprep.mubr.msk.bf16.mxu0 %vm10725_vm0, %v10724_v0 }
0x4275   :  { %9734 = vmatmul.mubr.msk.bf16.vlgmr.msra.gmra.mxu1 %vm526_vm12, %v6667_v35  ;;  %v10170_v35 = vld [vmem:[#allocation16 + $0x28] sm:$0xff]  }
0x4276   :  { %9745 = vmatprep.mubr.msk.bf16.mxu1 %vm10725_vm0, %v10724_v0 }
0x4325   :  { %v6562_v44 = vpop.f32.mrf.mxu0 }
0x4327   :  { %v9717_v56 = vpop.f32.mrf.mxu0 }
0x4329   :  { %v6565_v33 = vpop.f32.mrf.mxu0 }
0x432b   :  { %v9718_v39 = vpop.f32.mrf.mxu0 }
0x432d   :  { %v6610_v5 = vpop.f32.mrf.mxu1  ;;  %v6660_v43 = vpop.f32.mrf.mxu0 }
0x432e   :  { %v10073_v50 = vpack.i.bf16 %v6610_v5, %v6562_v44  ;;  %v6661_v46 = vadd.f32 %v12376_v55, %v6660_v43  ;;  %v10171_v44 = vld [vmem:[#allocation16 + $0x20] sm:$0xff]  }
0x432f   :  { %v9723_v47 = vpop.f32.mrf.mxu1  ;;  %v9729_v22 = vpop.f32.mrf.mxu0 }
0x4330   :  { %v6716_v8 = vsel %vm526_vm12, %v6661_v46, -inf }
0x4331   :  { %v6613_v54 = vpop.f32.mrf.mxu1  ;;  %6717 = vmax.xlane.f32.xlu1 %v6716_v8  ;;  %v6663_v10 = vpop.f32.mrf.mxu0 }
0x4333   :  { %v9724_v41 = vpop.f32.mrf.mxu1  ;;  %v9730_v53 = vpop.f32.mrf.mxu0 }
0x4335   :  { %v6710_v60 = vpop.f32.mrf.mxu1 }
0x4336   :  { %v6711_v9 = vadd.f32 %v12376_v55, %v6710_v60 }
0x4337   :  { %v9735_v31 = vpop.f32.mrf.mxu1 }
0x4338   :  { %v6719_v6 = vsel %vm526_vm12, %v6711_v9, -inf }
0x4339   :  { %6720 = vmax.xlane.f32.xlu0 %v6719_v6  ;;  %v6713_v1 = vpop.f32.mrf.mxu1 }
0x433b   :  { %v9736_v36 = vpop.f32.mrf.mxu1 }
0x43ba   :  { %v6718_v28 = vpop.xlane.xlu1 %6717 }
0x43bb   :  { %v6722_v29 = vsub.f32 %v6661_v46, %v6718_v28 }
0x43bd   :  { %v6724_v49 = vmul.f32 1.442695, %v6722_v29 }
0x43bf   :  { %10374 = vpow2.f32 %v6724_v49 }
0x43c2   :  { %v6721_v15 = vpop.xlane.xlu0 %6720 }
0x43c3   :  { %v6723_v59 = vsub.f32 %v6711_v9, %v6721_v15 }
0x43c5   :  { %v6726_v61 = vmul.f32 1.442695, %v6723_v59  ;;  %v10172_v59 = vld [vmem:[#allocation15 + $0x58] sm:$0xff]  }
0x43c7   :  { %10376 = vpow2.f32 %v6726_v61 }
0x43cc   :  { %v10375_v12 = vpop.eup %10374 }
0x43cd   :  { %v6728_v62 = vsel %vm526_vm12, %v10375_v12, 0.0 }
0x43ce   :  { %6729 = vadd.xlane.f32.xlu0 %v6728_v62  ;;  %v10176_v62 = vld [vmem:[#allocation15 + $0x38] sm:$0xff]  }
0x43d4   :  { %v10377_v40 = vpop.eup %10376 }
0x43d5   :  { %v6731_v55 = vsel %vm526_vm12, %v10377_v40, 0.0 }
0x43d6   :  { %6732 = vadd.xlane.f32.xlu1 %v6731_v55  ;;  %v6879_v55 = vrot.slane %v12320_v52, %v11269_v16 }
0x43e4   :  { %6740 = vrot.lane.b32.xlu0 %v12398_v4, %s10736_s5 }
0x43e7   :  { %6788 = vrot.lane.b32.xlu1 %v12385_v45, %s10736_s5 }
0x43e8   :  { %10074 = vrot.lane.b32.xlu0 %v10073_v50, %s10737_s14 }
0x43eb   :  { %10069 = vrot.lane.b32.xlu1 %v10068_v42, %s10713_s3 }
0x4457   :  { %v6730_v19 = vpop.xlane.xlu0 %6729 }
0x4458   :  { %10378 = vrcp.f32 %v6730_v19 }
0x445b   :  { %v6741_v7 = vpop.permute.xlu0 %6740 }
0x445c   :  { %v6746_v24 = vsel %vm654_vm13, %v6741_v7, 0 }
0x445d   :  { %9738 = vmatpush3.bf16.msra.mxu0 %v6746_v24 }
0x445e   :  { %9749 = vmatprep.subr.bf16.mxu0 %v10724_v0 }
0x445f   :  { %v6733_v51 = vpop.xlane.xlu1 %6732  ;;  %v10075_v41 = vpop.permute.xlu0 %10074 }
0x4460   :  { %10380 = vrcp.f32 %v6733_v51  ;;  %v10077_v9 = vunpack.i.h.bf16 %v10075_v41  ;;  %v10076_v31 = vunpack.i.l.bf16 %v10075_v41  ;;  %v10180_v41 = vld [vmem:[#allocation13 + $0x48] sm:$0xff]  }
0x4463   :  { %v6789_v4 = vpop.permute.xlu1 %6788 }
0x4464   :  { %v6794_v45 = vsel %vm654_vm13, %v6789_v4, 0 }
0x4465   :  { %v10379_v18 = vpop.eup %10378  ;;  %9744 = vmatpush3.bf16.msra.mxu1 %v6794_v45 }
0x4466   :  { %v6735_v63 = vmul.f32 %v10379_v18, %v10375_v12  ;;  %9757 = vmatprep.subr.bf16.mxu1 %v10724_v0  ;;  %v10175_v12 = vld [vmem:[#allocation15 + $0x40] sm:$0xff]  }
0x4467   :  { %v10070_v8 = vpop.permute.xlu1 %10069 }
0x4468   :  { %v6738_v48 = vpack.c.bf16 %v6735_v63, %v6735_v63  ;;  %8702 = vst.msk [vmem:[%s12961_s24 + $0x58] sm:$0xff] %vm526_vm12, %v6735_v63  ;;  %v10072_v54 = vunpack.i.h.bf16 %v10070_v8  ;;  %v10071_v10 = vunpack.i.l.bf16 %v10070_v8 }
0x446a   :  { %9740 = vmatmul.mubr.msk.bf16.vlgmr.msra.gmra.mxu0 %vm526_vm12, %v6738_v48  ;;  %v6870_v53 = vsel %vm526_vm12, %v12434_v58, %v10072_v54  ;;  %v6869_v60 = vsel %vm526_vm12, %v12432_v25, %v10071_v10  ;;  %v10173_v58 = vld [vmem:[#allocation15 + $0x50] sm:$0xff]   ;;  %v10174_v25 = vld [vmem:[#allocation15 + $0x48] sm:$0xff]   ;;  %v10178_v54 = vld [vmem:[#allocation13 + $0x58] sm:$0xff]  }
0x446b   :  { %9753 = vmatprep.mubr.msk.bf16.mxu0 %vm10725_vm0, %v10724_v0  ;;  %9750 = vmatpush3.bf16.msra.mxu0 %v10170_v35  ;;  %v6871_v28 = vsel %vm1443_vm14, %v6869_v60, %v10076_v31  ;;  %v6872_v29 = vsel %vm1443_vm14, %v6870_v53, %v10077_v9  ;;  %v10179_v10 = vld [vmem:[#allocation13 + $0x50] sm:$0xff]   ;;  %v10181_v53 = vld [vmem:[#allocation13 + $0x40] sm:$0xff]  }
0x446c   :  { %9751 = vmatprep.subr.bf16.mxu0 %v10724_v0 }
0x446d   :  { %v10381_v14 = vpop.eup %10380 }
0x446e   :  { %v6737_v42 = vmul.f32 %v10381_v14, %v10377_v40  ;;  %v10177_v40 = vld [vmem:[#allocation15 + $0x30] sm:$0xff]  }
0x446f   :  { %9752 = vmatpush3.bf16.msra.mxu0 %v10171_v44 }
0x4470   :  { %v6739_v3 = vpack.c.bf16 %v6737_v42, %v6737_v42  ;;  %8706 = vst.msk [vmem:[%s12961_s24 + $0x78] sm:$0xff] %vm526_vm12, %v6737_v42  ;;  %9773 = vmatprep.subr.bf16.mxu0 %v10724_v0 }
0x4472   :  { %9746 = vmatmul.mubr.msk.bf16.vlgmr.msra.gmra.mxu1 %vm526_vm12, %v6739_v3  ;;  %v12601_v3 = vrot.slane %v12320_v52, %v11283_v17 }
0x4473   :  { %9769 = vmatprep.mubr.msk.bf16.mxu1 %vm10725_vm0, %v10724_v0  ;;  %9758 = vmatpush3.bf16.msra.mxu1 %v10178_v54 }
0x4474   :  { %9759 = vmatprep.subr.bf16.mxu1 %v10724_v0 }
0x4477   :  { %9760 = vmatpush3.bf16.msra.mxu1 %v10179_v10 }
0x4478   :  { %9761 = vmatprep.subr.bf16.mxu1 %v10724_v0 }
0x447b   :  { %9762 = vmatpush3.bf16.msra.mxu1 %v10180_v41 }
0x447c   :  { %9763 = vmatprep.subr.bf16.mxu1 %v10724_v0 }
0x447f   :  { %9764 = vmatpush3.bf16.msra.mxu1 %v10181_v53 }
0x4480   :  { %9765 = vmatprep.subr.bf16.mxu1 %v10724_v0 }
0x452a   :  { %v6782_v56 = vpop.f32.mrf.mxu0 }
0x452c   :  { %v9741_v33 = vpop.f32.mrf.mxu0 }
0x452e   :  { %v6785_v39 = vpop.f32.mrf.mxu0 }
0x4530   :  { %v9742_v5 = vpop.f32.mrf.mxu0 }
0x4532   :  { %v6830_v43 = vpop.f32.mrf.mxu1 }
0x4533   :  { %v10078_v50 = vpack.i.bf16 %v6830_v43, %v6782_v56 }
0x4534   :  { %v9747_v46 = vpop.f32.mrf.mxu1 }
0x4535   :  { %10079 = vrot.lane.b32.xlu1 %v10078_v50, %s10738_s18 }
0x4536   :  { %v6833_v47 = vpop.f32.mrf.mxu1 }
0x4538   :  { %v9748_v22 = vpop.f32.mrf.mxu1 }
0x45a7   :  { %v10080_v6 = vpop.permute.xlu1 %10079 }
0x45a8   :  { %v10082_v1 = vunpack.i.h.bf16 %v10080_v6  ;;  %v10081_v36 = vunpack.i.l.bf16 %v10080_v6 }
0x45aa   :  { %v6874_v49 = vsel %vm1446_vm15, %v6872_v29, %v10082_v1  ;;  %v6873_v15 = vsel %vm1446_vm15, %v6871_v28, %v10081_v36  ;;  %v12618_v28 = vld [vmem:[#allocation19 + $0x18] sm:$0x7f] }
0x45ab   :  { %v6875_v61 = vpack.c.bf16 %v6874_v49, %v6873_v15  ;;  %v6967_v29 = vrot.slane %v12618_v28, %v10983_v26  ;;  %v10182_v15 = vld [vmem:[#allocation13 + $0x38] sm:$0xff]  }
0x45ac   :  { %9766 = vmatpush3.bf16.msra.mxu1 %v10182_v15 }
0x45ad   :  { %9754 = vmatmul.mubr.msk.bf16.vlgmr.msra.gmra.mxu0 %vm389_vm9, %v6875_v61  ;;  %9767 = vmatprep.subr.bf16.mxu1 %v10724_v0 }
0x45ae   :  { %9774 = vmatpush3.bf16.msra.mxu0 %v10172_v59  ;;  %9785 = vmatprep.mubr.msk.bf16.mxu0 %vm10725_vm0, %v10724_v0 }
0x45af   :  { %9775 = vmatprep.subr.bf16.mxu0 %v10724_v0 }
0x45b2   :  { %9776 = vmatpush3.bf16.msra.mxu0 %v10173_v58  ;;  %v6973_v58 = vrot.slane %v12618_v28, %v11068_v32 }
0x45b3   :  { %9777 = vmatprep.subr.bf16.mxu0 %v10724_v0 }
0x45b6   :  { %9778 = vmatpush3.bf16.msra.mxu0 %v10174_v25 }
0x45b7   :  { %9779 = vmatprep.subr.bf16.mxu0 %v10724_v0 }
0x45ba   :  { %9780 = vmatpush3.bf16.msra.mxu0 %v10175_v12  ;;  %v10183_v12 = vld [vmem:[#allocation13 + $0x30] sm:$0xff]  }
0x45bb   :  { %9781 = vmatprep.subr.bf16.mxu0 %v10724_v0  ;;  %9768 = vmatpush3.bf16.msra.mxu1 %v10183_v12  ;;  %v7205_v12 = vrot.slane %v12668_v38, %v11288_v30 }
0x45bc   :  { %9789 = vmatprep.subr.bf16.mxu1 %v10724_v0 }
0x45be   :  { %9782 = vmatpush3.bf16.msra.mxu0 %v10176_v62 }
0x45bf   :  { %9783 = vmatprep.subr.bf16.mxu0 %v10724_v0 }
0x45c2   :  { %9784 = vmatpush3.bf16.msra.mxu0 %v10177_v40 }
0x45c3   :  { %9795 = vmatprep.subr.bf16.mxu0 %v10724_v0 }
0x45c5   :  { %9786 = vmatmul.mubr.msk.bf16.vlgmr.msra.gmra.mxu0 %vm444_vm11, %v11977_v23 }
0x45c6   :  { %9797 = vmatprep.mubr.msk.bf16.mxu0 %vm10725_vm0, %v10724_v0 }
0x466d   :  { %v6929_v19 = vpop.f32.mrf.mxu0 }
0x466e   :  { %v6930_v7 = vadd.f32 %v6929_v19, %v6879_v55 }
0x466f   :  { %v9755_v24 = vpop.f32.mrf.mxu0 }
0x4670   :  { %v6936_v51 = vadd.f32 %v6930_v7, %v12302_v57 }
0x4671   :  { %v6932_v4 = vpop.f32.mrf.mxu0 }
0x4672   :  { %v6933_v45 = vadd.f32 %v6932_v4, %v6879_v55  ;;  %v6938_v18 = vsel %vm389_vm9, %v6936_v51, 0.0 }
0x4673   :  { %6939 = vadd.xlane.f32.xlu0 %v6938_v18  ;;  %v9756_v63 = vpop.f32.mrf.mxu0 }
0x4674   :  { %v6937_v48 = vadd.f32 %v6933_v45, %v12305_v27 }
0x4676   :  { %v6941_v23 = vsel %vm389_vm9, %v6937_v48, 0.0 }
0x4677   :  { %6942 = vadd.xlane.f32.xlu1 %v6941_v23 }
0x4685   :  { %v12597_v14 = vpop.f32.mrf.mxu0 }
0x4687   :  { %v9787_v42 = vpop.f32.mrf.mxu0 }
0x4688   :  { %v7200_v42 = vadd.f32 %v12601_v3, %v12597_v14 }
0x4689   :  { %v12603_v35 = vpop.f32.mrf.mxu0 }
0x468a   :  { %v7201_v57 = vadd.f32 %v12601_v3, %v12603_v35 }
0x468b   :  { %v9788_v44 = vpop.f32.mrf.mxu0 }
0x468c   :  { %v12607_v56 = vpack.c.bf16 %v7201_v57, %v7201_v57 }
0x468e   :  { %v7271_v27 = vsel %vm526_vm12, %v12607_v56, 0 }
0x468f   :  { %9796 = vmatpush3.bf16.xpose.msra.mxu0 %v7271_v27 }
0x4690   :  { %9807 = vmatprep.subr.bf16.mxu0 %v10724_v0 }
0x46fc   :  { %v6940_v33 = vpop.xlane.xlu0 %6939 }
0x46fd   :  { %v6944_v39 = vmul.f32 0.03125, %v6940_v33 }
0x46ff   :  { %v6946_v5 = vsub.f32 %v6936_v51, %v6944_v39 }
0x4700   :  { %v6943_v43 = vpop.xlane.xlu1 %6942 }
0x4701   :  { %v6945_v52 = vmul.f32 0.03125, %v6943_v43  ;;  %v6948_v50 = vmul.f32 %v6946_v5, %v6946_v5 }
0x4703   :  { %v6947_v46 = vsub.f32 %v6937_v48, %v6945_v52  ;;  %v6950_v47 = vsel %vm389_vm9, %v6948_v50, 0.0  ;;  %v12656_v52 = vpack.c.bf16 %v7200_v42, %v7200_v42 }
0x4704   :  { %6951 = vadd.xlane.f32.xlu0 %v6950_v47 }
0x4705   :  { %v6949_v22 = vmul.f32 %v6947_v46, %v6947_v46  ;;  %v7225_v37 = vsel %vm526_vm12, %v12656_v52, 0 }
0x4707   :  { %v6953_v8 = vsel %vm389_vm9, %v6949_v22, 0.0  ;;  %v7025_v22 = vrot.slane %v12668_v38, %v11305_v13 }
0x4708   :  { %6954 = vadd.xlane.f32.xlu0 %v6953_v8 }
0x478d   :  { %v6952_v60 = vpop.xlane.xlu0 %6951 }
0x478e   :  { %v6956_v9 = vmul.f32 0.03125, %v6952_v60 }
0x4790   :  { %v6958_v31 = vadd.f32 1e-05, %v6956_v9 }
0x4791   :  { %v6955_v6 = vpop.xlane.xlu0 %6954 }
0x4792   :  { %10382 = vrsqrt.f32 %v6958_v31  ;;  %v6957_v1 = vmul.f32 0.03125, %v6955_v6 }
0x4794   :  { %v6959_v36 = vadd.f32 1e-05, %v6957_v1 }
0x4796   :  { %10384 = vrsqrt.f32 %v6959_v36 }
0x479f   :  { %v10383_v49 = vpop.eup %10382 }
0x47a0   :  { %v6962_v59 = vmul.f32 %v10383_v49, %v6946_v5 }
0x47a2   :  { %v6968_v61 = vmul.f32 %v6967_v29, %v6962_v59 }
0x47a3   :  { %v10385_v25 = vpop.eup %10384 }
0x47a4   :  { %v6963_v62 = vmul.f32 %v10385_v25, %v6947_v46  ;;  %v12625_v55 = vadd.f32 %v6973_v58, %v6968_v61 }
0x47a6   :  { %v6969_v40 = vmul.f32 %v6967_v29, %v6963_v62  ;;  %v6982_v7 = vrot.slane %v12625_v55, 1  ;;  %v6976_v48 = vrot.slane %v12625_v55, 7 }
0x47a8   :  { %v12628_v26 = vadd.f32 %v6973_v58, %v6969_v40 }
0x47aa   :  { %v10083_v19 = vpack.i.bf16 %v12628_v26, %v12625_v55  ;;  %v6983_v32 = vrot.slane %v12628_v26, 1  ;;  %v6977_v63 = vrot.slane %v12628_v26, 7 }
0x47ac   :  { %10084 = vrot.lane.b32.xlu1 %v10083_v19, %s10726_s26  ;;  %v6984_v24 = vsel %vm356_vm3, %v6982_v7, %v6983_v32  ;;  %v6985_v51 = vsel %vm356_vm3, %v6983_v32, %v6982_v7  ;;  %v6978_v20 = vsel %vm337_vm6, %v6976_v48, %v6977_v63  ;;  %v6979_v21 = vsel %vm337_vm6, %v6977_v63, %v6976_v48 }
0x47ad   :  { %v6986_v4 = vsel %vm363_vm4, %v6984_v24, 0.0  ;;  %v6987_v45 = vsel %vm364_vm5, %v6985_v51, 0.0  ;;  %v6980_v33 = vsel %vm342_vm7, %v6979_v21, 0.0  ;;  %v6981_v39 = vsel %vm343_vm8, %v6978_v20, 0.0 }
0x47ae   :  { %v10088_v18 = vpack.i.bf16 %v6987_v45, %v6986_v4 }
0x47b0   :  { %10089 = vrot.lane.b32.xlu0 %v10088_v18, %s10708_s30 }
0x481e   :  { %v10085_v23 = vpop.permute.xlu1 %10084 }
0x481f   :  { %v10087_v57 = vunpack.i.h.bf16 %v10085_v23  ;;  %v10086_v44 = vunpack.i.l.bf16 %v10085_v23 }
0x4821   :  { %v7004_v3 = vsel %vm389_vm9, %v6980_v33, %v10086_v44  ;;  %v7005_v50 = vsel %vm389_vm9, %v6981_v39, %v10087_v57 }
0x4822   :  { %v10090_v27 = vpop.permute.xlu0 %10089 }
0x4823   :  { %v10092_v5 = vunpack.i.h.bf16 %v10090_v27  ;;  %v10091_v43 = vunpack.i.l.bf16 %v10090_v27 }
0x4825   :  { %v7006_v46 = vsel %vm392_vm10, %v7004_v3, %v10091_v43  ;;  %v7007_v11 = vsel %vm392_vm10, %v7005_v50, %v10092_v5 }
0x4826   :  { %v7021_v47 = vpack.c.bf16 %v7007_v11, %v7006_v46 }
0x4828   :  { %9770 = vmatmul.mubr.msk.bf16.vlgmr.msra.gmra.mxu1 %vm444_vm11, %v7021_v47 }
0x4829   :  { %9790 = vmatpush3.bf16.xpose.msra.mxu1 %v7225_v37  ;;  %9791 = vmatprep.mubr.msk.bf16.mxu1 %vm10725_vm0, %v10724_v0 }
0x482a   :  { %9801 = vmatprep.subr.bf16.mxu1 %v10724_v0 }
0x48e8   :  { %v7099_v8 = vpop.f32.mrf.mxu1 }
0x48e9   :  { %v7100_v54 = vadd.f32 %v7099_v8, %v7025_v22 }
0x48ea   :  { %v9771_v10 = vpop.f32.mrf.mxu1 }
0x48eb   :  { %v12672_v41 = vpack.c.bf16 %v7100_v54, %v7100_v54 }
0x48ec   :  { %v7102_v53 = vpop.f32.mrf.mxu1 }
0x48ed   :  { %v7103_v60 = vadd.f32 %v7102_v53, %v7025_v22  ;;  %9792 = vmatmul.mubr.msk.bf16.vlgmr.msra.gmra.mxu1 %vm526_vm12, %v12672_v41 }
0x48ee   :  { %v9772_v9 = vpop.f32.mrf.mxu1  ;;  %9803 = vmatprep.mubr.msk.bf16.mxu1 %vm10725_vm0, %v10724_v0 }
0x48ef   :  { %v12678_v31 = vpack.c.bf16 %v7103_v60, %v7103_v60 }
0x48f1   :  { %9798 = vmatmul.mubr.msk.bf16.vlgmr.msra.gmra.mxu0 %vm526_vm12, %v12678_v31 }
0x48f2   :  { %9809 = vmatprep.mubr.msk.bf16.mxu0 %vm10725_vm0, %v10724_v0 }
0x49ad   :  { %v7261_v6 = vpop.f32.mrf.mxu1 }
0x49ae   :  { %v7313_v1 = vsel %vm526_vm12, %v7261_v6, -inf }
0x49af   :  { %7314 = vmax.xlane.f32.xlu1 %v7313_v1  ;;  %v9793_v36 = vpop.f32.mrf.mxu1 }
0x49b1   :  { %v7264_v29 = vpop.f32.mrf.mxu1  ;;  %v7307_v49 = vpop.f32.mrf.mxu0 }
0x49b2   :  { %v7316_v15 = vsel %vm526_vm12, %v7307_v49, -inf }
0x49b3   :  { %v9794_v59 = vpop.f32.mrf.mxu1  ;;  %7317 = vmax.xlane.f32.xlu0 %v7316_v15  ;;  %v9799_v61 = vpop.f32.mrf.mxu0 }
0x49b5   :  { %v7310_v58 = vpop.f32.mrf.mxu0 }
0x49b7   :  { %v9800_v25 = vpop.f32.mrf.mxu0 }
0x49c0   :  { %7207 = vrot.lane.b32.xlu1 %v7205_v12, %s10726_s26 }
0x4a38   :  { %v7315_v62 = vpop.xlane.xlu1 %7314 }
0x4a39   :  { %v7319_v40 = vsub.f32 %v7261_v6, %v7315_v62 }
0x4a3b   :  { %v7321_v19 = vmul.f32 1.442695, %v7319_v40 }
0x4a3c   :  { %v7208_v7 = vpop.permute.xlu1 %7207  ;;  %v7318_v32 = vpop.xlane.xlu0 %7317 }
0x4a3d   :  { %10386 = vpow2.f32 %v7321_v19  ;;  %v7211_v24 = vadd.f32 %v7208_v7, %v12603_v35  ;;  %v7320_v51 = vsub.f32 %v7307_v49, %v7318_v32  ;;  %v7210_v23 = vadd.f32 %v7208_v7, %v12597_v14 }
0x4a3f   :  { %v12690_v4 = vpack.c.bf16 %v7211_v24, %v7211_v24  ;;  %v7323_v45 = vmul.f32 1.442695, %v7320_v51  ;;  %v12703_v42 = vpack.c.bf16 %v7210_v23, %v7210_v23 }
0x4a41   :  { %10388 = vpow2.f32 %v7323_v45  ;;  %7389 = vrot.lane.b32.xlu1 %v12690_v4, %s10727_s8 }
0x4a45   :  { %7441 = vrot.lane.b32.xlu1 %v12656_v52, %s10729_s12 }
0x4a49   :  { %7493 = vrot.lane.b32.xlu1 %v12607_v56, %s10729_s12 }
0x4a4a   :  { %v10387_v18 = vpop.eup %10386 }
0x4a4b   :  { %v7325_v63 = vsel %vm526_vm12, %v10387_v18, 0.0 }
0x4a4c   :  { %7326 = vadd.xlane.f32.xlu0 %v7325_v63 }
0x4a4d   :  { %7438 = vrot.lane.b32.xlu1 %v12672_v41, %s10729_s12 }
0x4a4e   :  { %v10389_v35 = vpop.eup %10388 }
0x4a4f   :  { %v7328_v48 = vsel %vm526_vm12, %v10389_v35, 0.0 }
0x4a50   :  { %7329 = vadd.xlane.f32.xlu0 %v7328_v48 }
0x4a66   :  { %7340 = vrot.lane.b32.xlu0 %v12703_v42, %s10727_s8 }
0x4a6a   :  { %7490 = vrot.lane.b32.xlu0 %v12678_v31, %s10729_s12 }
0x4ab3   :  { %v7390_v57 = vpop.permute.xlu1 %7389 }
0x4ab4   :  { %v7395_v44 = vsel %vm654_vm13, %v7390_v57, 0 }
0x4ab5   :  { %9808 = vmatpush3.bf16.msra.mxu0 %v7395_v44 }
0x4ab6   :  { %9819 = vmatprep.subr.bf16.mxu0 %v10724_v0 }
0x4ab7   :  { %v7442_v39 = vpop.permute.xlu1 %7441 }
0x4ab8   :  { %v7447_v50 = vsel %vm526_vm12, %v7442_v39, 0 }
0x4abb   :  { %v7494_v11 = vpop.permute.xlu1 %7493 }
0x4abc   :  { %v7499_v37 = vsel %vm526_vm12, %v7494_v11, 0 }
0x4abf   :  { %v7439_v22 = vpop.permute.xlu1 %7438 }
0x4ad5   :  { %v7327_v20 = vpop.xlane.xlu0 %7326 }
0x4ad6   :  { %10390 = vrcp.f32 %v7327_v20 }
0x4ad9   :  { %v7330_v21 = vpop.xlane.xlu0 %7329 }
0x4ada   :  { %10392 = vrcp.f32 %v7330_v21 }
0x4add   :  { %v7341_v27 = vpop.permute.xlu0 %7340 }
0x4ade   :  { %v7346_v14 = vsel %vm654_vm13, %v7341_v27, 0 }
0x4adf   :  { %9802 = vmatpush3.bf16.msra.mxu1 %v7346_v14 }
0x4ae0   :  { %9813 = vmatprep.subr.bf16.mxu1 %v10724_v0 }
0x4ae1   :  { %v7491_v8 = vpop.permute.xlu0 %7490 }
0x4ae3   :  { %v10391_v33 = vpop.eup %10390 }
0x4ae4   :  { %v7332_v5 = vmul.f32 %v10391_v33, %v10387_v18 }
0x4ae6   :  { %v7335_v43 = vpack.c.bf16 %v7332_v5, %v7332_v5  ;;  %8740 = vst.msk [vmem:[%s12962_s25 + $0x40] sm:$0xff] %vm526_vm12, %v7332_v5 }
0x4ae7   :  { %v10393_v3 = vpop.eup %10392 }
0x4ae8   :  { %v7334_v46 = vmul.f32 %v10393_v3, %v10389_v35  ;;  %9804 = vmatmul.mubr.msk.bf16.vlgmr.msra.gmra.mxu1 %vm526_vm12, %v7335_v43 }
0x4ae9   :  { %9814 = vmatpush3.bf16.xpose.msra.mxu1 %v7447_v50  ;;  %9815 = vmatprep.mubr.msk.bf16.mxu1 %vm10725_vm0, %v10724_v0 }
0x4aea   :  { %v7336_v47 = vpack.c.bf16 %v7334_v46, %v7334_v46  ;;  %8744 = vst.msk [vmem:[%s12962_s25 + $0x60] sm:$0xff] %vm526_vm12, %v7334_v46  ;;  %9825 = vmatprep.subr.bf16.mxu1 %v10724_v0 }
0x4aec   :  { %9810 = vmatmul.mubr.msk.bf16.vlgmr.msra.gmra.mxu0 %vm526_vm12, %v7336_v47 }
0x4aed   :  { %9820 = vmatpush3.bf16.xpose.msra.mxu0 %v7499_v37  ;;  %9821 = vmatprep.mubr.msk.bf16.mxu0 %vm10725_vm0, %v10724_v0 }
0x4aee   :  { %9831 = vmatprep.subr.bf16.mxu0 %v10724_v0 }
0x4af0   :  { %9816 = vmatmul.mubr.msk.bf16.vlgmr.msra.gmra.mxu1 %vm526_vm12, %v7439_v22 }
0x4af1   :  { %9827 = vmatprep.mubr.msk.bf16.mxu1 %vm10725_vm0, %v10724_v0 }
0x4af4   :  { %9822 = vmatmul.mubr.msk.bf16.vlgmr.msra.gmra.mxu0 %vm526_vm12, %v7491_v8 }
0x4af5   :  { %9833 = vmatprep.mubr.msk.bf16.mxu0 %vm10725_vm0, %v10724_v0 }
0x4ba8   :  { %v12737_v54 = vpop.f32.mrf.mxu1 }
0x4baa   :  { %v9805_v10 = vpop.f32.mrf.mxu1 }
0x4bac   :  { %v7385_v53 = vpop.f32.mrf.mxu1  ;;  %v12739_v60 = vpop.f32.mrf.mxu0 }
0x4bae   :  { %v9806_v9 = vpop.f32.mrf.mxu1  ;;  %v9811_v6 = vpop.f32.mrf.mxu0 }
0x4bb0   :  { %v7434_v1 = vpop.f32.mrf.mxu0  ;;  %v7483_v36 = vpop.f32.mrf.mxu1 }
0x4bb1   :  { %v7541_v29 = vsel %vm526_vm12, %v7483_v36, -inf }
0x4bb2   :  { %7542 = vmax.xlane.f32.xlu1 %v7541_v29  ;;  %v9812_v49 = vpop.f32.mrf.mxu0  ;;  %v9817_v15 = vpop.f32.mrf.mxu1 }
0x4bb4   :  { %v7486_v59 = vpop.f32.mrf.mxu1  ;;  %v7535_v61 = vpop.f32.mrf.mxu0 }
0x4bb5   :  { %v7544_v58 = vsel %vm526_vm12, %v7535_v61, -inf }
0x4bb6   :  { %v9818_v25 = vpop.f32.mrf.mxu1  ;;  %7545 = vmax.xlane.f32.xlu0 %v7544_v58  ;;  %v9823_v12 = vpop.f32.mrf.mxu0 }
0x4bb8   :  { %v7538_v62 = vpop.f32.mrf.mxu0 }
0x4bba   :  { %v9824_v40 = vpop.f32.mrf.mxu0 }
0x4bc3   :  { %7613 = vrot.lane.b32.xlu1 %v12690_v4, %s10728_s13 }
0x4bcc   :  { %7565 = vrot.lane.b32.xlu0 %v12703_v42, %s10728_s13 }
0x4c3b   :  { %v7543_v19 = vpop.xlane.xlu1 %7542 }
0x4c3c   :  { %v7547_v7 = vsub.f32 %v7483_v36, %v7543_v19 }
0x4c3e   :  { %v7549_v32 = vmul.f32 1.442695, %v7547_v7 }
0x4c3f   :  { %v7614_v24 = vpop.permute.xlu1 %7613  ;;  %v7546_v51 = vpop.xlane.xlu0 %7545 }
0x4c40   :  { %10394 = vpow2.f32 %v7549_v32  ;;  %v7619_v45 = vsel %vm654_vm13, %v7614_v24, 0  ;;  %v7548_v18 = vsub.f32 %v7535_v61, %v7546_v51 }
0x4c41   :  { %9832 = vmatpush3.bf16.msra.mxu0 %v7619_v45 }
0x4c42   :  { %v7551_v63 = vmul.f32 1.442695, %v7548_v18  ;;  %9843 = vmatprep.subr.bf16.mxu0 %v10724_v0 }
0x4c43   :  { %v7566_v35 = vpop.permute.xlu0 %7565 }
0x4c44   :  { %10396 = vpow2.f32 %v7551_v63  ;;  %v7571_v48 = vsel %vm654_vm13, %v7566_v35, 0 }
0x4c45   :  { %9826 = vmatpush3.bf16.msra.mxu1 %v7571_v48 }
0x4c46   :  { %9837 = vmatprep.subr.bf16.mxu1 %v10724_v0 }
0x4c4d   :  { %v10395_v23 = vpop.eup %10394 }
0x4c4e   :  { %v7553_v57 = vsel %vm526_vm12, %v10395_v23, 0.0 }
0x4c4f   :  { %7554 = vadd.xlane.f32.xlu0 %v7553_v57 }
0x4c51   :  { %v10397_v44 = vpop.eup %10396 }
0x4c52   :  { %v7556_v20 = vsel %vm526_vm12, %v10397_v44, 0.0 }
0x4c53   :  { %7557 = vadd.xlane.f32.xlu1 %v7556_v20 }
0x4c64   :  { %7663 = vrot.lane.b32.xlu1 %v12656_v52, %s10732_s16 }
0x4c65   :  { %7713 = vrot.lane.b32.xlu0 %v12607_v56, %s10732_s16 }
0x4c68   :  { %7661 = vrot.lane.b32.xlu1 %v12672_v41, %s10732_s16 }
0x4c69   :  { %7711 = vrot.lane.b32.xlu0 %v12678_v31, %s10732_s16 }
0x4cd8   :  { %v7555_v21 = vpop.xlane.xlu0 %7554 }
0x4cd9   :  { %10398 = vrcp.f32 %v7555_v21 }
0x4cdc   :  { %v7558_v27 = vpop.xlane.xlu1 %7557  ;;  %v7714_v46 = vpop.permute.xlu0 %7713 }
0x4cdd   :  { %10400 = vrcp.f32 %v7558_v27  ;;  %v7719_v47 = vsel %vm526_vm12, %v7714_v46, 0 }
0x4ce0   :  { %v7664_v39 = vpop.permute.xlu1 %7663  ;;  %v7712_v22 = vpop.permute.xlu0 %7711 }
0x4ce1   :  { %v7669_v50 = vsel %vm526_vm12, %v7664_v39, 0 }
0x4ce4   :  { %v7662_v37 = vpop.permute.xlu1 %7661 }
0x4ce6   :  { %v10399_v14 = vpop.eup %10398 }
0x4ce7   :  { %v7560_v33 = vmul.f32 %v10399_v14, %v10395_v23 }
0x4ce9   :  { %v7563_v5 = vpack.c.bf16 %v7560_v33, %v7560_v33  ;;  %8741 = vst.msk [vmem:[%s12962_s25 + $0x48] sm:$0xff] %vm526_vm12, %v7560_v33 }
0x4cea   :  { %v10401_v43 = vpop.eup %10400 }
0x4ceb   :  { %v7562_v3 = vmul.f32 %v10401_v43, %v10397_v44  ;;  %9828 = vmatmul.mubr.msk.bf16.vlgmr.msra.gmra.mxu1 %vm526_vm12, %v7563_v5 }
0x4cec   :  { %9838 = vmatpush3.bf16.xpose.msra.mxu1 %v7669_v50  ;;  %9839 = vmatprep.mubr.msk.bf16.mxu1 %vm10725_vm0, %v10724_v0 }
0x4ced   :  { %v7564_v11 = vpack.c.bf16 %v7562_v3, %v7562_v3  ;;  %8745 = vst.msk [vmem:[%s12962_s25 + $0x68] sm:$0xff] %vm526_vm12, %v7562_v3  ;;  %9849 = vmatprep.subr.bf16.mxu1 %v10724_v0 }
0x4cef   :  { %9834 = vmatmul.mubr.msk.bf16.vlgmr.msra.gmra.mxu0 %vm526_vm12, %v7564_v11 }
0x4cf0   :  { %9844 = vmatpush3.bf16.xpose.msra.mxu0 %v7719_v47  ;;  %9845 = vmatprep.mubr.msk.bf16.mxu0 %vm10725_vm0, %v10724_v0 }
0x4cf1   :  { %9855 = vmatprep.subr.bf16.mxu0 %v10724_v0 }
0x4cf3   :  { %9840 = vmatmul.mubr.msk.bf16.vlgmr.msra.gmra.mxu1 %vm526_vm12, %v7662_v37 }
0x4cf4   :  { %9851 = vmatprep.mubr.msk.bf16.mxu1 %vm10725_vm0, %v10724_v0 }
0x4cf7   :  { %9846 = vmatmul.mubr.msk.bf16.vlgmr.msra.gmra.mxu0 %vm526_vm12, %v7712_v22 }
0x4cf8   :  { %9857 = vmatprep.mubr.msk.bf16.mxu0 %vm10725_vm0, %v10724_v0 }
0x4dab   :  { %v12785_v8 = vpop.f32.mrf.mxu1 }
0x4dad   :  { %v9829_v10 = vpop.f32.mrf.mxu1 }
0x4daf   :  { %v7610_v53 = vpop.f32.mrf.mxu1  ;;  %v12787_v9 = vpop.f32.mrf.mxu0 }
0x4db0   :  { %v10093_v6 = vpack.i.bf16 %v12787_v9, %v12785_v8 }
0x4db1   :  { %v9830_v1 = vpop.f32.mrf.mxu1  ;;  %v9835_v36 = vpop.f32.mrf.mxu0 }
0x4db3   :  { %v7658_v29 = vpop.f32.mrf.mxu0  ;;  %v7705_v49 = vpop.f32.mrf.mxu1 }
0x4db4   :  { %v7761_v15 = vsel %vm526_vm12, %v7705_v49, -inf }
0x4db5   :  { %7762 = vmax.xlane.f32.xlu1 %v7761_v15  ;;  %v9836_v59 = vpop.f32.mrf.mxu0  ;;  %v9841_v61 = vpop.f32.mrf.mxu1 }
0x4db7   :  { %v7708_v58 = vpop.f32.mrf.mxu1  ;;  %v7755_v25 = vpop.f32.mrf.mxu0 }
0x4db8   :  { %v7764_v12 = vsel %vm526_vm12, %v7755_v25, -inf }
0x4db9   :  { %v9842_v62 = vpop.f32.mrf.mxu1  ;;  %7765 = vmax.xlane.f32.xlu0 %v7764_v12  ;;  %v9847_v40 = vpop.f32.mrf.mxu0 }
0x4dbb   :  { %v7758_v19 = vpop.f32.mrf.mxu0 }
0x4dbd   :  { %v9848_v7 = vpop.f32.mrf.mxu0 }
0x4dc6   :  { %7833 = vrot.lane.b32.xlu1 %v12690_v4, %s10731_s9 }
0x4dcf   :  { %7785 = vrot.lane.b32.xlu0 %v12703_v42, %s10731_s9 }
0x4e3e   :  { %v7763_v32 = vpop.xlane.xlu1 %7762 }
0x4e3f   :  { %v7767_v24 = vsub.f32 %v7705_v49, %v7763_v32 }
0x4e41   :  { %v7769_v51 = vmul.f32 1.442695, %v7767_v24 }
0x4e42   :  { %v7834_v45 = vpop.permute.xlu1 %7833  ;;  %v7766_v18 = vpop.xlane.xlu0 %7765 }
0x4e43   :  { %10402 = vpow2.f32 %v7769_v51  ;;  %v7839_v63 = vsel %vm654_vm13, %v7834_v45, 0  ;;  %v7768_v35 = vsub.f32 %v7755_v25, %v7766_v18 }
0x4e44   :  { %9856 = vmatpush3.bf16.msra.mxu0 %v7839_v63 }
0x4e45   :  { %v7771_v48 = vmul.f32 1.442695, %v7768_v35  ;;  %9867 = vmatprep.subr.bf16.mxu0 %v10724_v0 }
0x4e46   :  { %v7786_v23 = vpop.permute.xlu0 %7785 }
0x4e47   :  { %10404 = vpow2.f32 %v7771_v48  ;;  %v7791_v57 = vsel %vm654_vm13, %v7786_v23, 0 }
0x4e48   :  { %9850 = vmatpush3.bf16.msra.mxu1 %v7791_v57 }
0x4e49   :  { %9861 = vmatprep.subr.bf16.mxu1 %v10724_v0 }
0x4e50   :  { %v10403_v44 = vpop.eup %10402 }
0x4e51   :  { %v7773_v20 = vsel %vm526_vm12, %v10403_v44, 0.0 }
0x4e52   :  { %7774 = vadd.xlane.f32.xlu0 %v7773_v20 }
0x4e54   :  { %v10405_v21 = vpop.eup %10404 }
0x4e55   :  { %v7776_v27 = vsel %vm526_vm12, %v10405_v21, 0.0 }
0x4e56   :  { %7777 = vadd.xlane.f32.xlu1 %v7776_v27 }
0x4e67   :  { %7883 = vrot.lane.b32.xlu1 %v12656_v52, %s10735_s2 }
0x4e68   :  { %7933 = vrot.lane.b32.xlu0 %v12607_v56, %s10735_s2 }
0x4e6b   :  { %7881 = vrot.lane.b32.xlu1 %v12672_v41, %s10735_s2 }
0x4e6c   :  { %7931 = vrot.lane.b32.xlu0 %v12678_v31, %s10735_s2 }
0x4edb   :  { %v7775_v14 = vpop.xlane.xlu0 %7774 }
0x4edc   :  { %10406 = vrcp.f32 %v7775_v14 }
0x4edf   :  { %v7778_v33 = vpop.xlane.xlu1 %7777  ;;  %v7934_v31 = vpop.permute.xlu0 %7933 }
0x4ee0   :  { %10408 = vrcp.f32 %v7778_v33  ;;  %v7939_v46 = vsel %vm526_vm12, %v7934_v31, 0 }
0x4ee3   :  { %v7884_v43 = vpop.permute.xlu1 %7883  ;;  %v7932_v47 = vpop.permute.xlu0 %7931 }
0x4ee4   :  { %v7889_v41 = vsel %vm526_vm12, %v7884_v43, 0  ;;  %v10184_v43 = vld [vmem:[#allocation16 + $0x38] sm:$0xff]  }
0x4ee7   :  { %v7882_v11 = vpop.permute.xlu1 %7881 }
0x4ee9   :  { %v10407_v39 = vpop.eup %10406 }
0x4eea   :  { %v7780_v5 = vmul.f32 %v10407_v39, %v10403_v44 }
0x4eec   :  { %v7783_v3 = vpack.c.bf16 %v7780_v5, %v7780_v5  ;;  %8742 = vst.msk [vmem:[%s12962_s25 + $0x50] sm:$0xff] %vm526_vm12, %v7780_v5 }
0x4eed   :  { %v10409_v56 = vpop.eup %10408 }
0x4eee   :  { %v7782_v52 = vmul.f32 %v10409_v56, %v10405_v21  ;;  %9852 = vmatmul.mubr.msk.bf16.vlgmr.msra.gmra.mxu1 %vm526_vm12, %v7783_v3  ;;  %v10185_v3 = vld [vmem:[#allocation16 + $0x30] sm:$0xff]  }
0x4eef   :  { %9862 = vmatpush3.bf16.xpose.msra.mxu1 %v7889_v41  ;;  %9863 = vmatprep.mubr.msk.bf16.mxu1 %vm10725_vm0, %v10724_v0 }
0x4ef0   :  { %v7784_v50 = vpack.c.bf16 %v7782_v52, %v7782_v52  ;;  %8746 = vst.msk [vmem:[%s12962_s25 + $0x70] sm:$0xff] %vm526_vm12, %v7782_v52  ;;  %9873 = vmatprep.subr.bf16.mxu1 %v10724_v0 }
0x4ef2   :  { %9858 = vmatmul.mubr.msk.bf16.vlgmr.msra.gmra.mxu0 %vm526_vm12, %v7784_v50 }
0x4ef3   :  { %9868 = vmatpush3.bf16.xpose.msra.mxu0 %v7939_v46  ;;  %9869 = vmatprep.mubr.msk.bf16.mxu0 %vm10725_vm0, %v10724_v0 }
0x4ef4   :  { %9879 = vmatprep.subr.bf16.mxu0 %v10724_v0 }
0x4ef6   :  { %9864 = vmatmul.mubr.msk.bf16.vlgmr.msra.gmra.mxu1 %vm526_vm12, %v7882_v11 }
0x4ef7   :  { %9875 = vmatprep.mubr.msk.bf16.mxu1 %vm10725_vm0, %v10724_v0 }
0x4efa   :  { %9870 = vmatmul.mubr.msk.bf16.vlgmr.msra.gmra.mxu0 %vm526_vm12, %v7932_v47 }
0x4efb   :  { %9881 = vmatprep.mubr.msk.bf16.mxu0 %vm10725_vm0, %v10724_v0 }
0x4fae   :  { %v7827_v37 = vpop.f32.mrf.mxu1 }
0x4fb0   :  { %v9853_v22 = vpop.f32.mrf.mxu1 }
0x4fb2   :  { %v7830_v10 = vpop.f32.mrf.mxu1  ;;  %v7875_v53 = vpop.f32.mrf.mxu0 }
0x4fb3   :  { %v10098_v1 = vpack.i.bf16 %v7875_v53, %v7827_v37 }
0x4fb4   :  { %v9854_v36 = vpop.f32.mrf.mxu1  ;;  %v9859_v29 = vpop.f32.mrf.mxu0 }
0x4fb6   :  { %v7878_v49 = vpop.f32.mrf.mxu0  ;;  %v7925_v15 = vpop.f32.mrf.mxu1 }
0x4fb7   :  { %v7981_v59 = vsel %vm526_vm12, %v7925_v15, -inf }
0x4fb8   :  { %7982 = vmax.xlane.f32.xlu1 %v7981_v59  ;;  %v9860_v61 = vpop.f32.mrf.mxu0  ;;  %v9865_v58 = vpop.f32.mrf.mxu1 }
0x4fba   :  { %v7928_v25 = vpop.f32.mrf.mxu1  ;;  %v7975_v12 = vpop.f32.mrf.mxu0 }
0x4fbb   :  { %v7984_v62 = vsel %vm526_vm12, %v7975_v12, -inf }
0x4fbc   :  { %v9866_v40 = vpop.f32.mrf.mxu1  ;;  %7985 = vmax.xlane.f32.xlu0 %v7984_v62  ;;  %v9871_v19 = vpop.f32.mrf.mxu0 }
0x4fbe   :  { %v7978_v7 = vpop.f32.mrf.mxu0 }
0x4fc0   :  { %v9872_v32 = vpop.f32.mrf.mxu0 }
0x5041   :  { %v7983_v24 = vpop.xlane.xlu1 %7982 }
0x5042   :  { %v7987_v51 = vsub.f32 %v7925_v15, %v7983_v24 }
0x5044   :  { %v7989_v45 = vmul.f32 1.442695, %v7987_v51 }
0x5045   :  { %v7986_v18 = vpop.xlane.xlu0 %7985 }
0x5046   :  { %10410 = vpow2.f32 %v7989_v45  ;;  %v7988_v63 = vsub.f32 %v7975_v12, %v7986_v18 }
0x5048   :  { %v7991_v35 = vmul.f32 1.442695, %v7988_v63 }
0x504a   :  { %10412 = vpow2.f32 %v7991_v35 }
0x5053   :  { %v10411_v48 = vpop.eup %10410 }
0x5054   :  { %v7993_v23 = vsel %vm526_vm12, %v10411_v48, 0.0 }
0x5055   :  { %7994 = vadd.xlane.f32.xlu0 %v7993_v23 }
0x5057   :  { %v10413_v57 = vpop.eup %10412 }
0x5058   :  { %v7996_v44 = vsel %vm526_vm12, %v10413_v57, 0.0 }
0x5059   :  { %7997 = vadd.xlane.f32.xlu1 %v7996_v44 }
0x506a   :  { %8053 = vrot.lane.b32.xlu1 %v12690_v4, %s10734_s28 }
0x506b   :  { %8005 = vrot.lane.b32.xlu0 %v12703_v42, %s10734_s28 }
0x506e   :  { %10094 = vrot.lane.b32.xlu1 %v10093_v6, %s10713_s3 }
0x506f   :  { %10099 = vrot.lane.b32.xlu0 %v10098_v1, %s10737_s14 }
0x50de   :  { %v7995_v20 = vpop.xlane.xlu0 %7994 }
0x50df   :  { %10414 = vrcp.f32 %v7995_v20 }
0x50e2   :  { %v7998_v21 = vpop.xlane.xlu1 %7997  ;;  %v8006_v27 = vpop.permute.xlu0 %8005 }
0x50e3   :  { %10416 = vrcp.f32 %v7998_v21  ;;  %v8011_v14 = vsel %vm654_vm13, %v8006_v27, 0 }
0x50e4   :  { %9874 = vmatpush3.bf16.msra.mxu1 %v8011_v14 }
0x50e5   :  { %9885 = vmatprep.subr.bf16.mxu1 %v10724_v0 }
0x50e6   :  { %v8054_v4 = vpop.permute.xlu1 %8053  ;;  %v10100_v1 = vpop.permute.xlu0 %10099 }
0x50e7   :  { %v8059_v42 = vsel %vm654_vm13, %v8054_v4, 0  ;;  %v10102_v49 = vunpack.i.h.bf16 %v10100_v1  ;;  %v10101_v15 = vunpack.i.l.bf16 %v10100_v1  ;;  %v10186_v4 = vld [vmem:[#allocation18 + $0x18] sm:$0xff]  }
0x50e8   :  { %9880 = vmatpush3.bf16.msra.mxu0 %v8059_v42  ;;  %v10188_v42 = vld [vmem:[%s12954_s17 + $0x38] sm:$0xff]  }
0x50e9   :  { %9893 = vmatprep.subr.bf16.mxu0 %v10724_v0 }
0x50ea   :  { %v10095_v22 = vpop.permute.xlu1 %10094 }
0x50eb   :  { %v10097_v10 = vunpack.i.h.bf16 %v10095_v22  ;;  %v10096_v53 = vunpack.i.l.bf16 %v10095_v22  ;;  %v10191_v22 = vld [vmem:[%s12954_s17 + $0x20] sm:$0xff]  }
0x50ec   :  { %v10415_v8 = vpop.eup %10414 }
0x50ed   :  { %v8000_v9 = vmul.f32 %v10415_v8, %v10411_v48  ;;  %v8135_v36 = vsel %vm526_vm12, %v12739_v60, %v10097_v10  ;;  %v8134_v29 = vsel %vm526_vm12, %v12737_v54, %v10096_v53  ;;  %v8144_v54 = vrot.slane %v12668_v38, %v11317_v34  ;;  %v8751_v10 = vld [vmem:[%s12956_s19 + $0x1] ss:$0 sm:$0xff] }
0x50ee   :  { %v8136_v25 = vsel %vm1443_vm14, %v8134_v29, %v10101_v15  ;;  %v8137_v12 = vsel %vm1443_vm14, %v8135_v36, %v10102_v49 }
0x50ef   :  { %v8003_v6 = vpack.c.bf16 %v8000_v9, %v8000_v9  ;;  %8743 = vst.msk [vmem:[%s12962_s25 + $0x58] sm:$0xff] %vm526_vm12, %v8000_v9 }
0x50f0   :  { %v10417_v33 = vpop.eup %10416 }
0x50f1   :  { %v8002_v39 = vmul.f32 %v10417_v33, %v10413_v57  ;;  %9876 = vmatmul.mubr.msk.bf16.vlgmr.msra.gmra.mxu1 %vm526_vm12, %v8003_v6 }
0x50f2   :  { %9889 = vmatprep.mubr.msk.bf16.mxu1 %vm10725_vm0, %v10724_v0  ;;  %9886 = vmatpush3.bf16.msra.mxu1 %v10184_v43 }
0x50f3   :  { %v8004_v5 = vpack.c.bf16 %v8002_v39, %v8002_v39  ;;  %8747 = vst.msk [vmem:[%s12962_s25 + $0x78] sm:$0xff] %vm526_vm12, %v8002_v39  ;;  %9887 = vmatprep.subr.bf16.mxu1 %v10724_v0 }
0x50f5   :  { %9882 = vmatmul.mubr.msk.bf16.vlgmr.msra.gmra.mxu0 %vm526_vm12, %v8004_v5 }
0x50f6   :  { %9897 = vmatprep.mubr.msk.bf16.mxu0 %vm10725_vm0, %v10724_v0  ;;  %9888 = vmatpush3.bf16.msra.mxu1 %v10185_v3  ;;  %v8232_v3 = vrot.slane %v12618_v28, %v11269_v16  ;;  %v10189_v16 = vld [vmem:[%s12954_s17 + $0x30] sm:$0xff]  }
0x50f7   :  { %9901 = vmatprep.subr.bf16.mxu1 %v10724_v0  ;;  %9894 = vmatpush3.bf16.msra.mxu0 %v10186_v4 }
0x50f8   :  { %9895 = vmatprep.subr.bf16.mxu0 %v10724_v0 }
0x51b1   :  { %v8047_v56 = vpop.f32.mrf.mxu1 }
0x51b3   :  { %v9877_v52 = vpop.f32.mrf.mxu1 }
0x51b5   :  { %v8050_v41 = vpop.f32.mrf.mxu1  ;;  %v8095_v31 = vpop.f32.mrf.mxu0 }
0x51b6   :  { %v10103_v50 = vpack.i.bf16 %v8095_v31, %v8047_v56 }
0x51b7   :  { %v9878_v46 = vpop.f32.mrf.mxu1  ;;  %v9883_v11 = vpop.f32.mrf.mxu0 }
0x51b8   :  { %10104 = vrot.lane.b32.xlu1 %v10103_v50, %s10738_s18  ;;  %v8238_v50 = vrot.slane %v12618_v28, %v11305_v13  ;;  %v10190_v13 = vld [vmem:[%s12954_s17 + $0x28] sm:$0xff]  }
0x51b9   :  { %v8098_v47 = vpop.f32.mrf.mxu0 }
0x51bb   :  { %v9884_v37 = vpop.f32.mrf.mxu0 }
0x522a   :  { %v10105_v59 = vpop.permute.xlu1 %10104 }
0x522b   :  { %v10107_v61 = vunpack.i.h.bf16 %v10105_v59  ;;  %v10106_v58 = vunpack.i.l.bf16 %v10105_v59 }
0x522d   :  { %v8139_v62 = vsel %vm1446_vm15, %v8137_v12, %v10107_v61  ;;  %v8138_v40 = vsel %vm1446_vm15, %v8136_v25, %v10106_v58  ;;  %v8392_v25 = vrot.slane %v12618_v28, %v11038_v2 }
0x522e   :  { %v8140_v19 = vpack.c.bf16 %v8139_v62, %v8138_v40 }
0x5230   :  { %9890 = vmatmul.mubr.msk.bf16.vlgmr.msra.gmra.mxu1 %vm389_vm9, %v8140_v19 }
0x5231   :  { %9909 = vmatprep.mubr.msk.bf16.mxu1 %vm10725_vm0, %v10724_v0  ;;  %9902 = vmatpush3.bf16.msra.mxu1 %v10188_v42 }
0x5232   :  { %9903 = vmatprep.subr.bf16.mxu1 %v10724_v0 }
0x5235   :  { %9904 = vmatpush3.bf16.msra.mxu1 %v10189_v16 }
0x5236   :  { %9905 = vmatprep.subr.bf16.mxu1 %v10724_v0 }
0x5239   :  { %9906 = vmatpush3.bf16.msra.mxu1 %v10190_v13 }
0x523a   :  { %9907 = vmatprep.subr.bf16.mxu1 %v10724_v0 }
0x523d   :  { %9908 = vmatpush3.bf16.msra.mxu1 %v10191_v22 }
0x52f0   :  { %v8194_v60 = vpop.f32.mrf.mxu1 }
0x52f1   :  { %v8195_v7 = vadd.f32 %v8194_v60, %v8144_v54 }
0x52f2   :  { %v9891_v32 = vpop.f32.mrf.mxu1 }
0x52f3   :  { %v8201_v24 = vadd.f32 %v8195_v7, %v12625_v55 }
0x52f4   :  { %v8197_v51 = vpop.f32.mrf.mxu1 }
0x52f5   :  { %v8198_v45 = vadd.f32 %v8197_v51, %v8144_v54  ;;  %v8203_v18 = vsel %vm389_vm9, %v8201_v24, 0.0 }
0x52f6   :  { %8204 = vadd.xlane.f32.xlu0 %v8203_v18  ;;  %v9892_v63 = vpop.f32.mrf.mxu1 }
0x52f7   :  { %v8202_v35 = vadd.f32 %v8198_v45, %v12628_v26  ;;  %v10187_v26 = vld [vmem:[#allocation18 + $0x10] sm:$0xff]  }
0x52f8   :  { %9896 = vmatpush3.bf16.msra.mxu0 %v10187_v26 }
0x52f9   :  { %v8206_v48 = vsel %vm389_vm9, %v8202_v35, 0.0  ;;  %9913 = vmatprep.subr.bf16.mxu0 %v10724_v0 }
0x52fa   :  { %8207 = vadd.xlane.f32.xlu1 %v8206_v48 }
0x537f   :  { %v8205_v23 = vpop.xlane.xlu0 %8204 }
0x5380   :  { %v8209_v57 = vmul.f32 0.03125, %v8205_v23 }
0x5382   :  { %v8211_v44 = vsub.f32 %v8201_v24, %v8209_v57 }
0x5383   :  { %v8208_v34 = vpop.xlane.xlu1 %8207 }
0x5384   :  { %v8210_v38 = vmul.f32 0.03125, %v8208_v34  ;;  %v8213_v20 = vmul.f32 %v8211_v44, %v8211_v44 }
0x5386   :  { %v8212_v21 = vsub.f32 %v8202_v35, %v8210_v38  ;;  %v8215_v55 = vsel %vm389_vm9, %v8213_v20, 0.0  ;;  %v10192_v38 = vld [vmem:[#allocation21 + $0x8] sm:$0xff]   ;;  %v10193_v20 = vld [vmem:[#allocation21] sm:$0xff]  }
0x5387   :  { %8216 = vadd.xlane.f32.xlu0 %v8215_v55 }
0x5388   :  { %v8214_v27 = vmul.f32 %v8212_v21, %v8212_v21 }
0x538a   :  { %v8218_v14 = vsel %vm389_vm9, %v8214_v27, 0.0 }
0x538b   :  { %8219 = vadd.xlane.f32.xlu0 %v8218_v14 }
0x5410   :  { %v8217_v8 = vpop.xlane.xlu0 %8216 }
0x5411   :  { %v8221_v9 = vmul.f32 0.03125, %v8217_v8  ;;  %v8424_v8 = vrot.slane %v12618_v28, %v11283_v17 }
0x5413   :  { %v8223_v6 = vadd.f32 1e-05, %v8221_v9 }
0x5414   :  { %v8220_v33 = vpop.xlane.xlu0 %8219 }
0x5415   :  { %10418 = vrsqrt.f32 %v8223_v6  ;;  %v8222_v39 = vmul.f32 0.03125, %v8220_v33  ;;  %v8430_v33 = vrot.slane %v12618_v28, %v11288_v30 }
0x5417   :  { %v8224_v5 = vadd.f32 1e-05, %v8222_v39 }
0x5419   :  { %10420 = vrsqrt.f32 %v8224_v5 }
0x5422   :  { %v10419_v43 = vpop.eup %10418 }
0x5423   :  { %v8227_v56 = vmul.f32 %v10419_v43, %v8211_v44 }
0x5425   :  { %v8233_v41 = vmul.f32 %v8232_v3, %v8227_v56 }
0x5426   :  { %v10421_v52 = vpop.eup %10420 }
0x5427   :  { %v8228_v31 = vmul.f32 %v10421_v52, %v8212_v21  ;;  %v8239_v11 = vadd.f32 %v8238_v50, %v8233_v41  ;;  %v8768_v52 = vld [vmem:[%s12958_s21] ss:$0 sm:$0xff] }
0x5429   :  { %v8234_v46 = vmul.f32 %v8232_v3, %v8228_v31 }
0x542b   :  { %v8240_v47 = vadd.f32 %v8238_v50, %v8234_v46 }
0x542d   :  { %v8246_v37 = vpack.c.bf16 %v8240_v47, %v8239_v11 }
0x542f   :  { %9898 = vmatmul.mubr.msk.bf16.vlgmr.msra.gmra.mxu0 %vm389_vm9, %v8246_v37 }
0x5430   :  { %9917 = vmatprep.mubr.msk.bf16.mxu0 %vm10725_vm0, %v10724_v0  ;;  %9914 = vmatpush3.bf16.msra.mxu0 %v10192_v38  ;;  %vm8501_vm0 = vcmask 15360  }
0x5431   :  { %9915 = vmatprep.subr.bf16.mxu0 %v10724_v0 }
0x5434   :  { %9916 = vmatpush3.bf16.msra.mxu0 %v10193_v20 }
0x54ef   :  { %v8300_v53 = vpop.f32.mrf.mxu0 }
0x54f0   :  { %v8301_v36 = vadd.f32 %v8751_v10, %v8300_v53 }
0x54f1   :  { %v9899_v1 = vpop.f32.mrf.mxu0 }
0x54f2   :  { %v8307_v59 = vmax.f32 %v8301_v36, 0.0 }
0x54f3   :  { %v8303_v29 = vpop.f32.mrf.mxu0 }
0x54f4   :  { %v8304_v49 = vadd.f32 %v8751_v10, %v8303_v29 }
0x54f5   :  { %v9900_v15 = vpop.f32.mrf.mxu0 }
0x54f6   :  { %v8308_v61 = vmax.f32 %v8304_v49, 0.0 }
0x54f8   :  { %v8318_v58 = vpack.c.bf16 %v8308_v61, %v8307_v59 }
0x54fa   :  { %9910 = vmatmul.mubr.msk.bf16.vlgmr.msra.gmra.mxu1 %vm392_vm10, %v8318_v58 }
0x55ba   :  { %v8380_v12 = vpop.f32.mrf.mxu1 }
0x55bb   :  { %v8387_v62 = vadd.f32 %v8380_v12, %v8239_v11 }
0x55bc   :  { %v9911_v40 = vpop.f32.mrf.mxu1 }
0x55bd   :  { %v8393_v19 = vadd.f32 %v8392_v25, %v8387_v62 }
0x55be   :  { %v8383_v54 = vpop.f32.mrf.mxu1 }
0x55bf   :  { %v8388_v60 = vadd.f32 %v8383_v54, %v8240_v47  ;;  %v8395_v7 = vsel %vm389_vm9, %v8393_v19, 0.0 }
0x55c0   :  { %8396 = vadd.xlane.f32.xlu1 %v8395_v7  ;;  %v9912_v32 = vpop.f32.mrf.mxu1 }
0x55c1   :  { %v8394_v24 = vadd.f32 %v8392_v25, %v8388_v60 }
0x55c3   :  { %v8398_v51 = vsel %vm389_vm9, %v8394_v24, 0.0 }
0x55c4   :  { %8399 = vadd.xlane.f32.xlu0 %v8398_v51 }
0x5649   :  { %v8397_v45 = vpop.xlane.xlu1 %8396 }
0x564a   :  { %v8401_v18 = vmul.f32 0.03125, %v8397_v45 }
0x564c   :  { %v8403_v63 = vsub.f32 %v8393_v19, %v8401_v18 }
0x564d   :  { %v8400_v35 = vpop.xlane.xlu0 %8399 }
0x564e   :  { %v8402_v48 = vmul.f32 0.03125, %v8400_v35  ;;  %v8405_v2 = vmul.f32 %v8403_v63, %v8403_v63 }
0x5650   :  { %v8404_v23 = vsub.f32 %v8394_v24, %v8402_v48  ;;  %v8407_v57 = vsel %vm389_vm9, %v8405_v2, 0.0 }
0x5651   :  { %8408 = vadd.xlane.f32.xlu1 %v8407_v57 }
0x5652   :  { %v8406_v44 = vmul.f32 %v8404_v23, %v8404_v23 }
0x5654   :  { %v8410_v34 = vsel %vm389_vm9, %v8406_v44, 0.0 }
0x5655   :  { %8411 = vadd.xlane.f32.xlu0 %v8410_v34 }
0x56da   :  { %v8409_v21 = vpop.xlane.xlu1 %8408 }
0x56db   :  { %v8413_v55 = vmul.f32 0.03125, %v8409_v21 }
0x56dd   :  { %v8415_v27 = vadd.f32 1e-05, %v8413_v55 }
0x56de   :  { %v8412_v14 = vpop.xlane.xlu0 %8411 }
0x56df   :  { %10422 = vrsqrt.f32 %v8415_v27  ;;  %v8414_v4 = vmul.f32 0.03125, %v8412_v14 }
0x56e1   :  { %v8416_v26 = vadd.f32 1e-05, %v8414_v4 }
0x56e3   :  { %10424 = vrsqrt.f32 %v8416_v26 }
0x56ec   :  { %v10423_v42 = vpop.eup %10422 }
0x56ed   :  { %v8419_v9 = vmul.f32 %v10423_v42, %v8403_v63 }
0x56ef   :  { %v8425_v0 = vmul.f32 %v8424_v8, %v8419_v9 }
0x56f0   :  { %v10425_v6 = vpop.eup %10424 }
0x56f1   :  { %v8420_v39 = vmul.f32 %v10425_v6, %v8404_v23  ;;  %v8431_v43 = vadd.f32 %v8430_v33, %v8425_v0 }
0x56f3   :  { %v8426_v5 = vmul.f32 %v8424_v8, %v8420_v39 }
0x56f5   :  { %v8432_v3 = vadd.f32 %v8430_v33, %v8426_v5 }
0x56f7   :  { %v8437_v56 = vpack.c.bf16 %v8432_v3, %v8431_v43 }
0x56f9   :  { %9918 = vmatmul.mubr.msk.bf16.vlgmr.msra.gmra.mxu0 %vm389_vm9, %v8437_v56 }
0x57b9   :  { %v8494_v41 = vpop.f32.mrf.mxu0 }
0x57ba   :  { %v8495_v17 = vadd.f32 %v8768_v52, %v8494_v41 }
0x57bb   :  { %v9919_v31 = vpop.f32.mrf.mxu0 }
0x57bc   :  { %8502 = vst.msk [vmem:[%s12959_s22] sm:$0xff] %vm8501_vm0, %v8495_v17 }
0x57bd   :  { %v8497_v30 = vpop.f32.mrf.mxu0 }
0x57be   :  { %v8498_v28 = vadd.f32 %v8768_v52, %v8497_v30 }
0x57bf   :  { %v9920_v50 = vpop.f32.mrf.mxu0 }
0x57c0   :  { %8503 = vst.msk [vmem:[%s12959_s22 + $0x8] sm:$0xff] %vm8501_vm0, %v8498_v28 }
0x57c1   :  { %8520 = vsyncpa [#allocation3], 1 }
0x57c2   :  { %8521 = vsyncpa [#allocation5], 1 }
0x57c3   :  { %8522 = vsyncpa [#allocation8], 1 }
0x57c4   :  { %8523 = vsyncpa [#allocation11], 1 }
0x57c5   :  { %8524 = vsyncpa [#allocation14], 1 }
0x57c6   :  { %8525 = vsyncpa [#allocation17], 1 }
0x57c7   :  { %8526 = vsyncpa [#allocation20], 1 }

</bundles_post_ra>
